<compile_context>
chip_gen: v7x
topology: tpu7x:2x2x1
jax: 0.10.0
libtpu: 0.0.40
codegen_flags: <defaults>
</compile_context>

<pallas_src>
import functools
import math

import jax
import jax.numpy as jnp
from jax.experimental import pallas as pl
from jax.experimental.pallas import tpu as pltpu

LANE = 128                    # padded channel width (TPU lane dimension)
BN_EPS = 1e-5
MM_DTYPE = jnp.bfloat16       # MXU operand dtype (weights pre-packed in this dtype)
ACT_DTYPE = jnp.bfloat16      # inter-kernel activation storage dtype (f32 math in-kernel)


# ----------------------------- small helpers --------------------------------

def _row_tile(m):
    """Largest row tile (multiple of 8, capped at 1024) that divides m."""
    for t in (1024, 512, 256, 128, 64, 32, 16, 8):
        if m % t == 0:
            return t
    return m


def _mod(idx, m):
    if m & (m - 1) == 0:
        return jnp.bitwise_and(idx, m - 1)
    return idx % m


def _floordiv(idx, m):
    if m & (m - 1) == 0:
        return jnp.right_shift(idx, int(math.log2(m)))
    return idx // m


def _bn_scale_shift(stats_ref, g_ref, b_ref, inv_m):
    """Finalize training-mode BN scale/shift from (sum; sumsq) stats in the consumer."""
    st = stats_ref[...].astype(jnp.float32)          # (2, LANE)
    mean = st[0:1, :] * inv_m
    var = st[1:2, :] * inv_m - mean * mean           # biased variance (BN forward)
    scale = g_ref[...] * jax.lax.rsqrt(var + BN_EPS)
    shift = b_ref[...] - mean * scale
    return scale, shift


def _accumulate_stats(ostat_ref, acc_f32):
    """Accumulate per-channel (sum; sumsq) into a VMEM-resident (2,LANE) output block."""
    @pl.when(pl.program_id(0) == 0)
    def _():
        ostat_ref[...] = jnp.zeros_like(ostat_ref)
    s = jnp.sum(acc_f32, axis=0, keepdims=True)
    q = jnp.sum(acc_f32 * acc_f32, axis=0, keepdims=True)
    ostat_ref[...] += jnp.concatenate([s, q], axis=0)


def _tap_mask(iy, ix, dy, dx, H, W):
    """Validity mask for a (dy,dx) tap; None when the tap is always valid."""
    conds = []
    if dy == -1:
        conds.append(iy >= 1)
    elif dy == 1:
        conds.append(iy <= H - 2)
    if dx == -1:
        conds.append(ix >= 1)
    elif dx == 1:
        conds.append(ix <= W - 2)
    if not conds:
        return None
    valid = conds[0]
    for c in conds[1:]:
        valid = valid & c
    return valid


# ----------------------------- Pallas kernels -------------------------------

def _make_conv3x3_kernel(H, W, bn_relu, add_prev, m_in):
    """(optional BN+ReLU) + 3x3/s1/p1 conv as a single K-stacked MXU matmul per image,
    (+ optional add of the previous channel-padded feature buffer == torch.cat).
    Also emits BN stats of its own output."""
    HW = H * W
    inv_m = 1.0 / m_in

    def kernel(*refs):
        idx = 0
        x_ref = refs[idx]; idx += 1
        if bn_relu:
            stats_ref, g_ref, b_ref = refs[idx:idx + 3]; idx += 3
        w_ref = refs[idx]; idx += 1
        if add_prev:
            prev_ref = refs[idx]; idx += 1
        o_ref, ostat_ref = refs[idx:idx + 2]; idx += 2
        col_ref = refs[idx]                               # (HW, 9*LANE) MM_DTYPE scratch

        x = x_ref[...].astype(jnp.float32)                # (HW, LANE)
        if bn_relu:
            scale, shift = _bn_scale_shift(stats_ref, g_ref, b_ref, inv_m)
            h = jnp.maximum(x * scale + shift, 0.0)
        else:
            h = x

        r = jax.lax.broadcasted_iota(jnp.int32, (HW, LANE), 0)
        ix = _mod(r, W)
        iy = _floordiv(r, W)

        # Build the K-stacked im2col patch: tap k at lanes [k*LANE, (k+1)*LANE).
        # Rolled wrap rows are always out-of-bounds rows, hence masked to zero.
        for dy in (-1, 0, 1):
            for dx in (-1, 0, 1):
                k = (dy + 1) * 3 + (dx + 1)
                shift_amt = dy * W + dx
                if shift_amt == 0:
                    slab = h
                else:
                    slab = pltpu.roll(h, shift=(-shift_amt) % HW, axis=0)
                valid = _tap_mask(iy, ix, dy, dx, H, W)
                if valid is not None:
                    slab = jnp.where(valid, slab, 0.0)
                col_ref[:, k * LANE:(k + 1) * LANE] = slab.astype(MM_DTYPE)

        acc = jnp.dot(col_ref[...], w_ref[...], preferred_element_type=jnp.float32)
        if add_prev:
            acc = acc + prev_ref[...].astype(jnp.float32)   # concat (disjoint columns)
        o_ref[...] = acc.astype(o_ref.dtype)
        _accumulate_stats(ostat_ref, acc)

    return kernel


def _make_conv1x1_kernel(m_in):
    """BN(apply)+ReLU + 1x1 conv (one 128-wide MXU matmul per row tile) + output stats."""
    inv_m = 1.0 / m_in

    def kernel(x_ref, stats_ref, g_ref, b_ref, w_ref, o_ref, ostat_ref):
        scale, shift = _bn_scale_shift(stats_ref, g_ref, b_ref, inv_m)
        h = jnp.maximum(x_ref[...].astype(jnp.float32) * scale + shift, 0.0)
        acc = jnp.dot(h.astype(MM_DTYPE), w_ref[...], preferred_element_type=jnp.float32)
        o_ref[...] = acc.astype(o_ref.dtype)
        _accumulate_stats(ostat_ref, acc)

    return kernel


def _make_maxpool_kernel(H, W, Ho, Wo, m_in):
    """Single-read BN(apply)+ReLU + 3x3/s2/p1 max-pool (rolled taps + masks) + stats."""
    HW = H * W
    inv_m = 1.0 / m_in

    def kernel(x_ref, stats_ref, g_ref, b_ref, o_ref, ostat_ref, full_ref, p_ref):
        scale, shift = _bn_scale_shift(stats_ref, g_ref, b_ref, inv_m)
        h = jnp.maximum(x_ref[...].astype(jnp.float32) * scale + shift, 0.0)

        r = jax.lax.broadcasted_iota(jnp.int32, (HW, LANE), 0)
        ix = _mod(r, W)
        iy = _floordiv(r, W)

        acc = h                                            # center tap, always valid
        for dy in (-1, 0, 1):
            for dx in (-1, 0, 1):
                if dy == 0 and dx == 0:
                    continue
                shift_amt = dy * W + dx
                slab = pltpu.roll(h, shift=(-shift_amt) % HW, axis=0)
                valid = _tap_mask(iy, ix, dy, dx, H, W)
                slab = jnp.where(valid, slab, 0.0)          # safe: post-ReLU values >= 0
                acc = jnp.maximum(acc, slab)
        full_ref[...] = acc                                 # full-res 3x3 max map

        # Downsample: output (ho,wo) = full[2*ho, 2*wo] (window centered at (2ho,2wo)).
        for ho in range(Ho):
            p_ref[ho * Wo:(ho + 1) * Wo, :] = \
                full_ref[pl.ds(2 * ho * W, Wo, stride=2), :]
        pooled = p_ref[...]
        o_ref[...] = pooled.astype(o_ref.dtype)
        _accumulate_stats(ostat_ref, pooled)

    return kernel


def _make_transition_kernel(H, W, m_in):
    """BN(apply)+ReLU + 2x2/s2 avg-pool (rolls + strided select) + 1x1 conv + stats."""
    HW = H * W
    Ho, Wo = H // 2, W // 2
    inv_m = 1.0 / m_in

    def kernel(x_ref, stats_ref, g_ref, b_ref, w_ref, o_ref, ostat_ref, s_ref, p_ref):
        scale, shift = _bn_scale_shift(stats_ref, g_ref, b_ref, inv_m)
        h = jnp.maximum(x_ref[...].astype(jnp.float32) * scale + shift, 0.0)
        # 2x2 window sums anchored at the top-left corner; only even-row/even-col
        # anchors are consumed below, so roll wrap-around never leaks into the result.
        s = (h
             + pltpu.roll(h, shift=(HW - 1) % HW, axis=0)
             + pltpu.roll(h, shift=(HW - W) % HW, axis=0)
             + pltpu.roll(h, shift=(HW - W - 1) % HW, axis=0))
        s_ref[...] = s * 0.25
        for ho in range(Ho):
            p_ref[ho * Wo:(ho + 1) * Wo, :] = \
                s_ref[pl.ds(2 * ho * W, Wo, stride=2), :]
        acc = jnp.dot(p_ref[...].astype(MM_DTYPE), w_ref[...],
                      preferred_element_type=jnp.float32)
        o_ref[...] = acc.astype(o_ref.dtype)
        _accumulate_stats(ostat_ref, acc)

    return kernel


def _make_head_kernel(n, hw, m_in):
    """norm5 + ReLU + global-avg-pool (in-kernel per-image mean) + classifier."""
    inv_m = 1.0 / m_in
    inv_hw = 1.0 / hw

    def kernel(x_ref, stats_ref, g_ref, b_ref, w_ref, fb_ref, o_ref):
        scale, shift = _bn_scale_shift(stats_ref, g_ref, b_ref, inv_m)
        rows = []
        for i in range(n):
            h = jnp.maximum(
                x_ref[pl.ds(i * hw, hw), :].astype(jnp.float32) * scale + shift, 0.0)
            rows.append(jnp.sum(h, axis=0, keepdims=True) * inv_hw)
        g = jnp.concatenate(rows, axis=0)                   # (n, LANE) pooled features
        o_ref[...] = jnp.dot(g.astype(MM_DTYPE), w_ref[...],
                             preferred_element_type=jnp.float32) + fb_ref[...]

    return kernel


# ----------------------------- kernel wrappers -------------------------------

def conv3x3_fused(feat, w_taps, stats=None, gamma=None, beta=None, prev=None, *, H, W):
    n, hw, _ = feat.shape
    assert hw == H * W
    bn_relu = stats is not None
    add_prev = prev is not None
    kernel = _make_conv3x3_kernel(H, W, bn_relu, add_prev, m_in=n * hw)

    in_specs = [pl.BlockSpec((None, hw, LANE), lambda i: (i, 0, 0))]
    args = [feat]
    if bn_relu:
        in_specs += [
            pl.BlockSpec((2, LANE), lambda i: (0, 0)),
            pl.BlockSpec((1, LANE), lambda i: (0, 0)),
            pl.BlockSpec((1, LANE), lambda i: (0, 0)),
        ]
        args += [stats, gamma, beta]
    in_specs.append(pl.BlockSpec((9 * LANE, LANE), lambda i: (0, 0)))
    args.append(w_taps)
    io_aliases = {}
    if add_prev:
        in_specs.append(pl.BlockSpec((None, hw, LANE), lambda i: (i, 0, 0)))
        args.append(prev)
        io_aliases = {len(args) - 1: 0}      # donate prev buffer (concat in place)

    out, ostats = pl.pallas_call(
        kernel,
        grid=(n,),
        in_specs=in_specs,
        out_specs=[
            pl.BlockSpec((None, hw, LANE), lambda i: (i, 0, 0)),
            pl.BlockSpec((2, LANE), lambda i: (0, 0)),
        ],
        out_shape=[
            jax.ShapeDtypeStruct((n, hw, LANE), ACT_DTYPE),
            jax.ShapeDtypeStruct((2, LANE), jnp.float32),
        ],
        scratch_shapes=[pltpu.VMEM((hw, 9 * LANE), MM_DTYPE)],
        input_output_aliases=io_aliases,
        compiler_params=pltpu.CompilerParams(dimension_semantics=("arbitrary",)),
    )(*args)
    return out, ostats


def bnrelu_conv1x1(feat, stats, gamma, beta, w):
    n, hw, _ = feat.shape
    m = n * hw
    tm = _row_tile(m)
    kernel = _make_conv1x1_kernel(m)
    out, ostats = pl.pallas_call(
        kernel,
        grid=(m // tm,),
        in_specs=[
            pl.BlockSpec((tm, LANE), lambda i: (i, 0)),
            pl.BlockSpec((2, LANE), lambda i: (0, 0)),
            pl.BlockSpec((1, LANE), lambda i: (0, 0)),
            pl.BlockSpec((1, LANE), lambda i: (0, 0)),
            pl.BlockSpec((LANE, LANE), lambda i: (0, 0)),
        ],
        out_specs=[
            pl.BlockSpec((tm, LANE), lambda i: (i, 0)),
            pl.BlockSpec((2, LANE), lambda i: (0, 0)),
        ],
        out_shape=[
            jax.ShapeDtypeStruct((m, LANE), ACT_DTYPE),
            jax.ShapeDtypeStruct((2, LANE), jnp.float32),
        ],
        compiler_params=pltpu.CompilerParams(dimension_semantics=("arbitrary",)),
    )(feat.reshape(m, LANE), stats, gamma, beta, w)
    return out.reshape(n, hw, LANE), ostats


def bnrelu_maxpool(feat, stats, gamma, beta, *, H, W):
    n, hw, _ = feat.shape
    Ho = (H + 2 - 3) // 2 + 1
    Wo = (W + 2 - 3) // 2 + 1
    kernel = _make_maxpool_kernel(H, W, Ho, Wo, m_in=n * hw)
    out, ostats = pl.pallas_call(
        kernel,
        grid=(n,),
        in_specs=[
            pl.BlockSpec((None, hw, LANE), lambda i: (i, 0, 0)),
            pl.BlockSpec((2, LANE), lambda i: (0, 0)),
            pl.BlockSpec((1, LANE), lambda i: (0, 0)),
            pl.BlockSpec((1, LANE), lambda i: (0, 0)),
        ],
        out_specs=[
            pl.BlockSpec((None, Ho * Wo, LANE), lambda i: (i, 0, 0)),
            pl.BlockSpec((2, LANE), lambda i: (0, 0)),
        ],
        out_shape=[
            jax.ShapeDtypeStruct((n, Ho * Wo, LANE), ACT_DTYPE),
            jax.ShapeDtypeStruct((2, LANE), jnp.float32),
        ],
        scratch_shapes=[
            pltpu.VMEM((hw, LANE), jnp.float32),
            pltpu.VMEM((Ho * Wo, LANE), jnp.float32),
        ],
        compiler_params=pltpu.CompilerParams(dimension_semantics=("arbitrary",)),
    )(feat, stats, gamma, beta)
    return out, ostats, Ho, Wo


def transition_fused(feat, stats, gamma, beta, w, *, H, W):
    n, hw, _ = feat.shape
    Ho, Wo = H // 2, W // 2
    kernel = _make_transition_kernel(H, W, m_in=n * hw)
    out, ostats = pl.pallas_call(
        kernel,
        grid=(n,),
        in_specs=[
            pl.BlockSpec((None, hw, LANE), lambda i: (i, 0, 0)),
            pl.BlockSpec((2, LANE), lambda i: (0, 0)),
            pl.BlockSpec((1, LANE), lambda i: (0, 0)),
            pl.BlockSpec((1, LANE), lambda i: (0, 0)),
            pl.BlockSpec((LANE, LANE), lambda i: (0, 0)),
        ],
        out_specs=[
            pl.BlockSpec((None, Ho * Wo, LANE), lambda i: (i, 0, 0)),
            pl.BlockSpec((2, LANE), lambda i: (0, 0)),
        ],
        out_shape=[
            jax.ShapeDtypeStruct((n, Ho * Wo, LANE), ACT_DTYPE),
            jax.ShapeDtypeStruct((2, LANE), jnp.float32),
        ],
        scratch_shapes=[
            pltpu.VMEM((hw, LANE), jnp.float32),
            pltpu.VMEM((Ho * Wo, LANE), jnp.float32),
        ],
        compiler_params=pltpu.CompilerParams(dimension_semantics=("arbitrary",)),
    )(feat, stats, gamma, beta, w)
    return out, ostats


def head_fused(feat, stats, gamma, beta, fc_w, fc_b):
    n, hw, _ = feat.shape
    kernel = _make_head_kernel(n, hw, m_in=n * hw)
    # Everything here is tiny (a few vregs); one full-block call, no grid.
    return pl.pallas_call(
        kernel,
        out_shape=jax.ShapeDtypeStruct((n, LANE), jnp.float32),
    )(feat.reshape(n * hw, LANE), stats, gamma, beta, fc_w, fc_b)


# ----------------------------- parameter packing ----------------------------

def _pad_vec(v):
    assert v.shape[0] <= LANE
    return jnp.zeros((1, LANE), jnp.float32).at[0, :v.shape[0]].set(v.astype(jnp.float32))


def _pad_conv1x1(w):
    cout, cin = w.shape[0], w.shape[1]
    assert cout <= LANE and cin <= LANE
    out = jnp.zeros((LANE, LANE), jnp.float32).at[:cin, :cout].set(w.reshape(cout, cin).T)
    return out.astype(MM_DTYPE)


def _pad_conv3x3(w, col_off=0):
    """(cout,cin,3,3) -> K-stacked (9*LANE, LANE) weight, tap k = ky*3+kx at rows
    [k*LANE, (k+1)*LANE); output channels placed at column offset `col_off`."""
    cout, cin = w.shape[0], w.shape[1]
    assert cin <= LANE and col_off + cout <= LANE
    taps = jnp.zeros((9, LANE, LANE), jnp.float32)
    wt = jnp.transpose(w, (2, 3, 1, 0)).reshape(9, cin, cout)
    taps = taps.at[:, :cin, col_off:col_off + cout].set(wt)
    return taps.reshape(9 * LANE, LANE).astype(MM_DTYPE)


def _pad_matrix(w):
    r, c = w.shape
    assert r <= LANE and c <= LANE
    return jnp.zeros((LANE, LANE), jnp.float32).at[:r, :c].set(w).astype(MM_DTYPE)


def init_params(key, growth_rate=8, block_config=(2, 2), num_init_features=16,
                bn_size=2, num_classes=10):
    keys = iter(jax.random.split(key, 256))

    def kaiming(cout, cin, k):
        fan_in = cin * k * k
        std = (2.0 / fan_in) ** 0.5                    # kaiming_normal_
        return jax.random.normal(next(keys), (cout, cin, k, k), jnp.float32) * std

    params = {
        "conv0": _pad_conv3x3(kaiming(num_init_features, 3, 3)),
        "g0": _pad_vec(jnp.ones((num_init_features,))),
        "b0": _pad_vec(jnp.zeros((num_init_features,))),
    }
    num_features = num_init_features
    blocks = []
    for bi, num_layers in enumerate(block_config):
        layers = []
        for li in range(num_layers):
            cin = num_features + li * growth_rate
            cmid = bn_size * growth_rate
            layers.append({
                "g1": _pad_vec(jnp.ones((cin,))), "b1": _pad_vec(jnp.zeros((cin,))),
                "w1": _pad_conv1x1(kaiming(cmid, cin, 1)),
                "g2": _pad_vec(jnp.ones((cmid,))), "b2": _pad_vec(jnp.zeros((cmid,))),
                # new features land at channel offset `cin`: the in-kernel add then
                # realizes torch.cat([x, new_features], dim=1) in the padded buffer.
                "w2": _pad_conv3x3(kaiming(growth_rate, cmid, 3), col_off=cin),
            })
        num_features += num_layers * growth_rate
        trans = None
        if bi != len(block_config) - 1:
            trans = {
                "g": _pad_vec(jnp.ones((num_features,))),
                "b": _pad_vec(jnp.zeros((num_features,))),
                "w": _pad_conv1x1(kaiming(num_features // 2, num_features, 1)),
            }
            num_features //= 2
        blocks.append({"layers": layers, "trans": trans})
    params["blocks"] = blocks
    params["g5"] = _pad_vec(jnp.ones((num_features,)))
    params["b5"] = _pad_vec(jnp.zeros((num_features,)))
    bound = 1.0 / (num_features ** 0.5)
    fc_w = jax.random.uniform(next(keys), (num_features, num_classes), jnp.float32,
                              -bound, bound)
    params["fc_w"] = _pad_matrix(fc_w)
    params["fc_b"] = jnp.zeros((1, LANE), jnp.float32)          # classifier bias = 0
    return params


# ----------------------------- forward pass ----------------------------------

def densenet_forward(params, x_nchw, num_classes=10):
    n, cin, H, W = x_nchw.shape
    x = jnp.transpose(x_nchw, (0, 2, 3, 1)).astype(jnp.float32)       # NCHW -> NHWC
    x = jnp.pad(x, ((0, 0), (0, 0), (0, 0), (0, LANE - cin)))         # pad to 128 lanes
    feat = x.reshape(n, H * W, LANE).astype(ACT_DTYPE)

    # conv0 (3x3/s1/p1, no preceding norm/relu) -> also emits stats for norm0
    feat, stats = conv3x3_fused(feat, params["conv0"], H=H, W=W)

    # norm0 + relu0 + maxpool 3x3/s2/p1 (single-read fused kernel) -> stats for norm1
    feat, stats, H, W = bnrelu_maxpool(feat, stats, params["g0"], params["b0"], H=H, W=W)

    for block in params["blocks"]:
        for lp in block["layers"]:
            # norm1 + relu1 + conv1 (1x1), emits stats of the bottleneck activation
            mid, mstats = bnrelu_conv1x1(feat, stats, lp["g1"], lp["b1"], lp["w1"])
            # norm2 + relu2 + conv2 (3x3) + torch.cat via in-place add, emits stats
            feat, stats = conv3x3_fused(mid, lp["w2"], stats=mstats,
                                        gamma=lp["g2"], beta=lp["b2"],
                                        prev=feat, H=H, W=W)
        if block["trans"] is not None:
            tp = block["trans"]
            feat, stats = transition_fused(feat, stats, tp["g"], tp["b"], tp["w"],
                                           H=H, W=W)
            H, W = H // 2, W // 2

    # norm5 + F.relu + adaptive_avg_pool2d((1,1)) + classifier
    logits = head_fused(feat, stats, params["g5"], params["b5"],
                        params["fc_w"], params["fc_b"])
    return logits[:, :num_classes]


# --------------------------------- main ---------------------------------------

if __name__ == "__main__":
    key = jax.random.PRNGKey(0)
    pkey, xkey = jax.random.split(key)

    # Small DenseNet-BC config (same structure as the reference module).
    params = init_params(pkey, growth_rate=8, block_config=(2, 2),
                         num_init_features=16, bn_size=2, num_classes=10)

    x = jax.random.normal(xkey, (2, 3, 16, 16), jnp.float32)           # NCHW like PyTorch

    fwd = jax.jit(functools.partial(densenet_forward, params))
    out = jax.block_until_ready(fwd(x))
    assert out.shape == (2, 10), out.shape
    assert bool(jnp.all(jnp.isfinite(out))), "non-finite output"
    print("KERNEL_OK")
</pallas_src>

<mosaic_0001>
module attributes {stable_mosaic.version = 11 : i64} {
  func.func @kernel(%arg0: i32, %arg1: memref<1x256x128xbf16, #tpu.memory_space<vmem>>, %arg2: memref<1152x128xbf16, #tpu.memory_space<vmem>>, %arg3: memref<1x256x128xbf16, #tpu.memory_space<vmem>>, %arg4: memref<2x128xf32, #tpu.memory_space<vmem>>, %arg5: memref<256x1152xbf16, #tpu.memory_space<vmem>>) attributes {dimension_semantics = [#tpu.dimension_semantics<arbitrary>], iteration_bounds = array<i64: 2>, scalar_prefetch = 0 : i64, scratch_operands = 1 : i64, tpu.core_type = #tpu.core_type<tc>, window_params = [{transform_indices = @transform_0, window_bounds = array<i64: 1, 256, 128>}, {pipeline_mode = #tpu.pipeline_mode<synchronous>, transform_indices = @transform_1, window_bounds = array<i64: 1152, 128>}, {transform_indices = @transform_2, window_bounds = array<i64: 1, 256, 128>}, {pipeline_mode = #tpu.pipeline_mode<synchronous>, transform_indices = @transform_3, window_bounds = array<i64: 2, 128>}]} {
    %c0 = arith.constant 0 : index
    %c0_0 = arith.constant 0 : index
    %c0_1 = arith.constant 0 : index
    %0 = vector.load %arg1[%c0, %c0_0, %c0_1] : memref<1x256x128xbf16, #tpu.memory_space<vmem>>, vector<1x256x128xbf16>
    %1 = vector.shape_cast %0 : vector<1x256x128xbf16> to vector<256x128xbf16>
    %2 = arith.extf %1 : vector<256x128xbf16> to vector<256x128xf32>
    %3 = tpu.iota {dimensions = array<i32: 0>} : vector<256x128xi32>
    %c15_i32 = arith.constant 15 : i32
    %4 = vector.broadcast %c15_i32 : i32 to vector<256x128xi32>
    %5 = arith.andi %3, %4 : vector<256x128xi32>
    %c4_i32 = arith.constant 4 : i32
    %6 = vector.broadcast %c4_i32 : i32 to vector<256x128xi32>
    %7 = arith.shrsi %3, %6 : vector<256x128xi32>
    %c17_i32 = arith.constant 17 : i32
    %8 = tpu.dynamic_rotate %2 by %c17_i32 dim 0 : vector<256x128xf32>, i32 -> vector<256x128xf32>
    %c1_i32 = arith.constant 1 : i32
    %9 = vector.broadcast %c1_i32 : i32 to vector<256x128xi32>
    %10 = arith.cmpi sge, %7, %9 : vector<256x128xi32>
    %c1_i32_2 = arith.constant 1 : i32
    %11 = vector.broadcast %c1_i32_2 : i32 to vector<256x128xi32>
    %12 = arith.cmpi sge, %5, %11 : vector<256x128xi32>
    %13 = arith.andi %10, %12 : vector<256x128xi1>
    %cst = arith.constant 0.000000e+00 : f32
    %14 = vector.broadcast %cst : f32 to vector<256x128xf32>
    %15 = arith.select %13, %8, %14 : vector<256x128xi1>, vector<256x128xf32>
    %16 = arith.truncf %15 : vector<256x128xf32> to vector<256x128xbf16>
    %c0_3 = arith.constant 0 : index
    %c0_4 = arith.constant 0 : index
    %17 = vector.load %arg5[%c0_3, %c0_4] : memref<256x1152xbf16, #tpu.memory_space<vmem>>, vector<256x128xbf16>
    tpu.vector_store %arg5[%c0_3, %c0_4], %16 {strides = array<i32>} : memref<256x1152xbf16, #tpu.memory_space<vmem>>, vector<256x128xbf16>,
    %c16_i32 = arith.constant 16 : i32
    %18 = tpu.dynamic_rotate %2 by %c16_i32 dim 0 : vector<256x128xf32>, i32 -> vector<256x128xf32>
    %c1_i32_5 = arith.constant 1 : i32
    %19 = vector.broadcast %c1_i32_5 : i32 to vector<256x128xi32>
    %20 = arith.cmpi sge, %7, %19 : vector<256x128xi32>
    %cst_6 = arith.constant 0.000000e+00 : f32
    %21 = vector.broadcast %cst_6 : f32 to vector<256x128xf32>
    %22 = arith.select %20, %18, %21 : vector<256x128xi1>, vector<256x128xf32>
    %23 = arith.truncf %22 : vector<256x128xf32> to vector<256x128xbf16>
    %c0_7 = arith.constant 0 : index
    %c128 = arith.constant 128 : index
    %24 = vector.load %arg5[%c0_7, %c128] : memref<256x1152xbf16, #tpu.memory_space<vmem>>, vector<256x128xbf16>
    tpu.vector_store %arg5[%c0_7, %c128], %23 {strides = array<i32>} : memref<256x1152xbf16, #tpu.memory_space<vmem>>, vector<256x128xbf16>,
    %c15_i32_8 = arith.constant 15 : i32
    %25 = tpu.dynamic_rotate %2 by %c15_i32_8 dim 0 : vector<256x128xf32>, i32 -> vector<256x128xf32>
    %c1_i32_9 = arith.constant 1 : i32
    %26 = vector.broadcast %c1_i32_9 : i32 to vector<256x128xi32>
    %27 = arith.cmpi sge, %7, %26 : vector<256x128xi32>
    %c14_i32 = arith.constant 14 : i32
    %28 = vector.broadcast %c14_i32 : i32 to vector<256x128xi32>
    %29 = arith.cmpi sle, %5, %28 : vector<256x128xi32>
    %30 = arith.andi %27, %29 : vector<256x128xi1>
    %cst_10 = arith.constant 0.000000e+00 : f32
    %31 = vector.broadcast %cst_10 : f32 to vector<256x128xf32>
    %32 = arith.select %30, %25, %31 : vector<256x128xi1>, vector<256x128xf32>
    %33 = arith.truncf %32 : vector<256x128xf32> to vector<256x128xbf16>
    %c0_11 = arith.constant 0 : index
    %c256 = arith.constant 256 : index
    %34 = vector.load %arg5[%c0_11, %c256] : memref<256x1152xbf16, #tpu.memory_space<vmem>>, vector<256x128xbf16>
    tpu.vector_store %arg5[%c0_11, %c256], %33 {strides = array<i32>} : memref<256x1152xbf16, #tpu.memory_space<vmem>>, vector<256x128xbf16>,
    %c1_i32_12 = arith.constant 1 : i32
    %35 = tpu.dynamic_rotate %2 by %c1_i32_12 dim 0 : vector<256x128xf32>, i32 -> vector<256x128xf32>
    %c1_i32_13 = arith.constant 1 : i32
    %36 = vector.broadcast %c1_i32_13 : i32 to vector<256x128xi32>
    %37 = arith.cmpi sge, %5, %36 : vector<256x128xi32>
    %cst_14 = arith.constant 0.000000e+00 : f32
    %38 = vector.broadcast %cst_14 : f32 to vector<256x128xf32>
    %39 = arith.select %37, %35, %38 : vector<256x128xi1>, vector<256x128xf32>
    %40 = arith.truncf %39 : vector<256x128xf32> to vector<256x128xbf16>
    %c0_15 = arith.constant 0 : index
    %c384 = arith.constant 384 : index
    %41 = vector.load %arg5[%c0_15, %c384] : memref<256x1152xbf16, #tpu.memory_space<vmem>>, vector<256x128xbf16>
    tpu.vector_store %arg5[%c0_15, %c384], %40 {strides = array<i32>} : memref<256x1152xbf16, #tpu.memory_space<vmem>>, vector<256x128xbf16>,
    %42 = arith.truncf %2 : vector<256x128xf32> to vector<256x128xbf16>
    %c0_16 = arith.constant 0 : index
    %c512 = arith.constant 512 : index
    %43 = vector.load %arg5[%c0_16, %c512] : memref<256x1152xbf16, #tpu.memory_space<vmem>>, vector<256x128xbf16>
    tpu.vector_store %arg5[%c0_16, %c512], %42 {strides = array<i32>} : memref<256x1152xbf16, #tpu.memory_space<vmem>>, vector<256x128xbf16>,
    %c255_i32 = arith.constant 255 : i32
    %44 = tpu.dynamic_rotate %2 by %c255_i32 dim 0 : vector<256x128xf32>, i32 -> vector<256x128xf32>
    %c14_i32_17 = arith.constant 14 : i32
    %45 = vector.broadcast %c14_i32_17 : i32 to vector<256x128xi32>
    %46 = arith.cmpi sle, %5, %45 : vector<256x128xi32>
    %cst_18 = arith.constant 0.000000e+00 : f32
    %47 = vector.broadcast %cst_18 : f32 to vector<256x128xf32>
    %48 = arith.select %46, %44, %47 : vector<256x128xi1>, vector<256x128xf32>
    %49 = arith.truncf %48 : vector<256x128xf32> to vector<256x128xbf16>
    %c0_19 = arith.constant 0 : index
    %c640 = arith.constant 640 : index
    %50 = vector.load %arg5[%c0_19, %c640] : memref<256x1152xbf16, #tpu.memory_space<vmem>>, vector<256x128xbf16>
    tpu.vector_store %arg5[%c0_19, %c640], %49 {strides = array<i32>} : memref<256x1152xbf16, #tpu.memory_space<vmem>>, vector<256x128xbf16>,
    %c241_i32 = arith.constant 241 : i32
    %51 = tpu.dynamic_rotate %2 by %c241_i32 dim 0 : vector<256x128xf32>, i32 -> vector<256x128xf32>
    %c14_i32_20 = arith.constant 14 : i32
    %52 = vector.broadcast %c14_i32_20 : i32 to vector<256x128xi32>
    %53 = arith.cmpi sle, %7, %52 : vector<256x128xi32>
    %c1_i32_21 = arith.constant 1 : i32
    %54 = vector.broadcast %c1_i32_21 : i32 to vector<256x128xi32>
    %55 = arith.cmpi sge, %5, %54 : vector<256x128xi32>
    %56 = arith.andi %53, %55 : vector<256x128xi1>
    %cst_22 = arith.constant 0.000000e+00 : f32
    %57 = vector.broadcast %cst_22 : f32 to vector<256x128xf32>
    %58 = arith.select %56, %51, %57 : vector<256x128xi1>, vector<256x128xf32>
    %59 = arith.truncf %58 : vector<256x128xf32> to vector<256x128xbf16>
    %c0_23 = arith.constant 0 : index
    %c768 = arith.constant 768 : index
    %60 = vector.load %arg5[%c0_23, %c768] : memref<256x1152xbf16, #tpu.memory_space<vmem>>, vector<256x128xbf16>
    tpu.vector_store %arg5[%c0_23, %c768], %59 {strides = array<i32>} : memref<256x1152xbf16, #tpu.memory_space<vmem>>, vector<256x128xbf16>,
    %c240_i32 = arith.constant 240 : i32
    %61 = tpu.dynamic_rotate %2 by %c240_i32 dim 0 : vector<256x128xf32>, i32 -> vector<256x128xf32>
    %c14_i32_24 = arith.constant 14 : i32
    %62 = vector.broadcast %c14_i32_24 : i32 to vector<256x128xi32>
    %63 = arith.cmpi sle, %7, %62 : vector<256x128xi32>
    %cst_25 = arith.constant 0.000000e+00 : f32
    %64 = vector.broadcast %cst_25 : f32 to vector<256x128xf32>
    %65 = arith.select %63, %61, %64 : vector<256x128xi1>, vector<256x128xf32>
    %66 = arith.truncf %65 : vector<256x128xf32> to vector<256x128xbf16>
    %c0_26 = arith.constant 0 : index
    %c896 = arith.constant 896 : index
    %67 = vector.load %arg5[%c0_26, %c896] : memref<256x1152xbf16, #tpu.memory_space<vmem>>, vector<256x128xbf16>
    tpu.vector_store %arg5[%c0_26, %c896], %66 {strides = array<i32>} : memref<256x1152xbf16, #tpu.memory_space<vmem>>, vector<256x128xbf16>,
    %c239_i32 = arith.constant 239 : i32
    %68 = tpu.dynamic_rotate %2 by %c239_i32 dim 0 : vector<256x128xf32>, i32 -> vector<256x128xf32>
    %c14_i32_27 = arith.constant 14 : i32
    %69 = vector.broadcast %c14_i32_27 : i32 to vector<256x128xi32>
    %70 = arith.cmpi sle, %7, %69 : vector<256x128xi32>
    %c14_i32_28 = arith.constant 14 : i32
    %71 = vector.broadcast %c14_i32_28 : i32 to vector<256x128xi32>
    %72 = arith.cmpi sle, %5, %71 : vector<256x128xi32>
    %73 = arith.andi %70, %72 : vector<256x128xi1>
    %cst_29 = arith.constant 0.000000e+00 : f32
    %74 = vector.broadcast %cst_29 : f32 to vector<256x128xf32>
    %75 = arith.select %73, %68, %74 : vector<256x128xi1>, vector<256x128xf32>
    %76 = arith.truncf %75 : vector<256x128xf32> to vector<256x128xbf16>
    %c0_30 = arith.constant 0 : index
    %c1024 = arith.constant 1024 : index
    %77 = vector.load %arg5[%c0_30, %c1024] : memref<256x1152xbf16, #tpu.memory_space<vmem>>, vector<256x128xbf16>
    tpu.vector_store %arg5[%c0_30, %c1024], %76 {strides = array<i32>} : memref<256x1152xbf16, #tpu.memory_space<vmem>>, vector<256x128xbf16>,
    %c0_31 = arith.constant 0 : index
    %c0_32 = arith.constant 0 : index
    %78 = vector.load %arg5[%c0_31, %c0_32] : memref<256x1152xbf16, #tpu.memory_space<vmem>>, vector<256x1152xbf16>
    %c0_33 = arith.constant 0 : index
    %c0_34 = arith.constant 0 : index
    %79 = vector.load %arg2[%c0_33, %c0_34] : memref<1152x128xbf16, #tpu.memory_space<vmem>>, vector<1152x128xbf16>
    %cst_35 = arith.constant dense<0.000000e+00> : vector<256x128xf32>
    %80 = tpu.matmul %78, %79, %cst_35 {dimension_numbers = #tpu.dot_dimension_numbers<[1], [0], [0], [1], [0, 0, 1, 1], [], []>} : vector<256x1152xbf16>, vector<1152x128xbf16>, vector<256x128xf32> -> vector<256x128xf32>
    %81 = arith.truncf %80 : vector<256x128xf32> to vector<256x128xbf16>
    %c0_36 = arith.constant 0 : index
    %c0_37 = arith.constant 0 : index
    %c0_38 = arith.constant 0 : index
    %82 = vector.load %arg3[%c0_36, %c0_37, %c0_38] : memref<1x256x128xbf16, #tpu.memory_space<vmem>>, vector<1x256x128xbf16>
    %83 = vector.shape_cast %82 : vector<1x256x128xbf16> to vector<256x128xbf16>
    %84 = vector.shape_cast %81 : vector<256x128xbf16> to vector<1x256x128xbf16>
    tpu.vector_store %arg3[%c0_36, %c0_37, %c0_38], %84 {strides = array<i32>} : memref<1x256x128xbf16, #tpu.memory_space<vmem>>, vector<1x256x128xbf16>,
    %c0_i32 = arith.constant 0 : i32
    %85 = arith.cmpi eq, %arg0, %c0_i32 : i32
    %86 = arith.extui %85 : i1 to i32
    %c0_i32_39 = arith.constant 0 : i32
    %87 = arith.cmpi ne, %86, %c0_i32_39 : i32
    scf.if %87 {
      %cst_46 = arith.constant 0.000000e+00 : f32
      %97 = vector.broadcast %cst_46 : f32 to vector<2x128xf32>
      %c0_47 = arith.constant 0 : index
      %c0_48 = arith.constant 0 : index
      %98 = vector.load %arg4[%c0_47, %c0_48] : memref<2x128xf32, #tpu.memory_space<vmem>>, vector<2x128xf32>
      tpu.vector_store %arg4[%c0_47, %c0_48], %97 {strides = array<i32>} : memref<2x128xf32, #tpu.memory_space<vmem>>, vector<2x128xf32>,
    } else {
    }
    %cst_40 = arith.constant dense<0.000000e+00> : vector<128xf32>
    %88 = vector.multi_reduction <add>, %80, %cst_40 [0] : vector<256x128xf32> to vector<128xf32>
    %89 = vector.shape_cast %88 : vector<128xf32> to vector<1x128xf32>
    %90 = arith.mulf %80, %80 : vector<256x128xf32>
    %cst_41 = arith.constant dense<0.000000e+00> : vector<128xf32>
    %91 = vector.multi_reduction <add>, %90, %cst_41 [0] : vector<256x128xf32> to vector<128xf32>
    %92 = vector.shape_cast %91 : vector<128xf32> to vector<1x128xf32>
    %c0_42 = arith.constant 0 : index
    %c0_43 = arith.constant 0 : index
    %93 = vector.load %arg4[%c0_42, %c0_43] : memref<2x128xf32, #tpu.memory_space<vmem>>, vector<2x128xf32>
    %94 = tpu.concatenate %89, %92 in 0 : vector<1x128xf32>, vector<1x128xf32> -> vector<2x128xf32>
    %95 = arith.addf %93, %94 : vector<2x128xf32>
    %c0_44 = arith.constant 0 : index
    %c0_45 = arith.constant 0 : index
    %96 = vector.load %arg4[%c0_44, %c0_45] : memref<2x128xf32, #tpu.memory_space<vmem>>, vector<2x128xf32>
    tpu.vector_store %arg4[%c0_44, %c0_45], %95 {strides = array<i32>} : memref<2x128xf32, #tpu.memory_space<vmem>>, vector<2x128xf32>,
    return
  }
  func.func @transform_0(%arg0: i32) -> (i32, i32, i32) {
    %c0_i32 = arith.constant 0 : i32
    %c0_i32_0 = arith.constant 0 : i32
    %c0_i32_1 = arith.constant 0 : i32
    return %arg0, %c0_i32, %c0_i32_0 : i32, i32, i32
  }
  func.func @transform_1(%arg0: i32) -> (i32, i32) {
    %c0_i32 = arith.constant 0 : i32
    %c0_i32_0 = arith.constant 0 : i32
    %c0_i32_1 = arith.constant 0 : i32
    return %c0_i32, %c0_i32_0 : i32, i32
  }
  func.func @transform_2(%arg0: i32) -> (i32, i32, i32) {
    %c0_i32 = arith.constant 0 : i32
    %c0_i32_0 = arith.constant 0 : i32
    %c0_i32_1 = arith.constant 0 : i32
    return %arg0, %c0_i32, %c0_i32_0 : i32, i32, i32
  }
  func.func @transform_3(%arg0: i32) -> (i32, i32) {
    %c0_i32 = arith.constant 0 : i32
    %c0_i32_0 = arith.constant 0 : i32
    %c0_i32_1 = arith.constant 0 : i32
    return %c0_i32, %c0_i32_0 : i32, i32
  }
}

module attributes {stable_mosaic.version = 11 : i64} {
  func.func @kernel(%arg0: i32, %arg1: memref<128x128xbf16, #tpu.memory_space<vmem>>, %arg2: memref<2x128xf32, #tpu.memory_space<vmem>>, %arg3: memref<1x128xf32, #tpu.memory_space<vmem>>, %arg4: memref<1x128xf32, #tpu.memory_space<vmem>>, %arg5: memref<128x128xbf16, #tpu.memory_space<vmem>>, %arg6: memref<128x128xbf16, #tpu.memory_space<vmem>>, %arg7: memref<2x128xf32, #tpu.memory_space<vmem>>) attributes {dimension_semantics = [#tpu.dimension_semantics<arbitrary>], iteration_bounds = array<i64: 1>, scalar_prefetch = 0 : i64, scratch_operands = 0 : i64, tpu.core_type = #tpu.core_type<tc>, window_params = [{transform_indices = @transform_0, window_bounds = array<i64: 128, 128>}, {pipeline_mode = #tpu.pipeline_mode<synchronous>, transform_indices = @transform_1, window_bounds = array<i64: 2, 128>}, {pipeline_mode = #tpu.pipeline_mode<synchronous>, transform_indices = @transform_2, window_bounds = array<i64: 1, 128>}, {pipeline_mode = #tpu.pipeline_mode<synchronous>, transform_indices = @transform_3, window_bounds = array<i64: 1, 128>}, {pipeline_mode = #tpu.pipeline_mode<synchronous>, transform_indices = @transform_4, window_bounds = array<i64: 128, 128>}, {transform_indices = @transform_5, window_bounds = array<i64: 128, 128>}, {pipeline_mode = #tpu.pipeline_mode<synchronous>, transform_indices = @transform_6, window_bounds = array<i64: 2, 128>}]} {
    %c0 = arith.constant 0 : index
    %c0_0 = arith.constant 0 : index
    %0 = vector.load %arg2[%c0, %c0_0] : memref<2x128xf32, #tpu.memory_space<vmem>>, vector<2x128xf32>
    %1 = vector.extract_strided_slice %0 {offsets = [0, 0], sizes = [1, 128], strides = [1, 1]} : vector<2x128xf32> to vector<1x128xf32>
    %cst = arith.constant 7.812500e-03 : f32
    %2 = vector.broadcast %cst : f32 to vector<1x128xf32>
    %3 = arith.mulf %1, %2 : vector<1x128xf32>
    %4 = vector.extract_strided_slice %0 {offsets = [1, 0], sizes = [1, 128], strides = [1, 1]} : vector<2x128xf32> to vector<1x128xf32>
    %cst_1 = arith.constant 7.812500e-03 : f32
    %5 = vector.broadcast %cst_1 : f32 to vector<1x128xf32>
    %6 = arith.mulf %4, %5 : vector<1x128xf32>
    %7 = arith.mulf %3, %3 : vector<1x128xf32>
    %8 = arith.subf %6, %7 : vector<1x128xf32>
    %c0_2 = arith.constant 0 : index
    %c0_3 = arith.constant 0 : index
    %9 = vector.load %arg3[%c0_2, %c0_3] : memref<1x128xf32, #tpu.memory_space<vmem>>, vector<1x128xf32>
    %cst_4 = arith.constant 9.99999974E-6 : f32
    %10 = vector.broadcast %cst_4 : f32 to vector<1x128xf32>
    %11 = arith.addf %8, %10 : vector<1x128xf32>
    %12 = math.rsqrt %11 : vector<1x128xf32>
    %13 = arith.mulf %9, %12 : vector<1x128xf32>
    %c0_5 = arith.constant 0 : index
    %c0_6 = arith.constant 0 : index
    %14 = vector.load %arg4[%c0_5, %c0_6] : memref<1x128xf32, #tpu.memory_space<vmem>>, vector<1x128xf32>
    %15 = arith.mulf %3, %13 : vector<1x128xf32>
    %16 = arith.subf %14, %15 : vector<1x128xf32>
    %c0_7 = arith.constant 0 : index
    %c0_8 = arith.constant 0 : index
    %17 = vector.load %arg1[%c0_7, %c0_8] : memref<128x128xbf16, #tpu.memory_space<vmem>>, vector<128x128xbf16>
    %18 = arith.extf %17 : vector<128x128xbf16> to vector<128x128xf32>
    %19 = vector.broadcast %13 : vector<1x128xf32> to vector<128x128xf32>
    %20 = arith.mulf %18, %19 : vector<128x128xf32>
    %21 = vector.broadcast %16 : vector<1x128xf32> to vector<128x128xf32>
    %22 = arith.addf %20, %21 : vector<128x128xf32>
    %cst_9 = arith.constant 0.000000e+00 : f32
    %23 = vector.broadcast %cst_9 : f32 to vector<128x128xf32>
    %24 = arith.maximumf %22, %23 : vector<128x128xf32>
    %25 = arith.truncf %24 : vector<128x128xf32> to vector<128x128xbf16>
    %c0_10 = arith.constant 0 : index
    %c0_11 = arith.constant 0 : index
    %26 = vector.load %arg5[%c0_10, %c0_11] : memref<128x128xbf16, #tpu.memory_space<vmem>>, vector<128x128xbf16>
    %cst_12 = arith.constant dense<0.000000e+00> : vector<128x128xf32>
    %27 = tpu.matmul %25, %26, %cst_12 {dimension_numbers = #tpu.dot_dimension_numbers<[1], [0], [0], [1], [0, 0, 1, 1], [], []>} : vector<128x128xbf16>, vector<128x128xbf16>, vector<128x128xf32> -> vector<128x128xf32>
    %28 = arith.truncf %27 : vector<128x128xf32> to vector<128x128xbf16>
    %c0_13 = arith.constant 0 : index
    %c0_14 = arith.constant 0 : index
    %29 = vector.load %arg6[%c0_13, %c0_14] : memref<128x128xbf16, #tpu.memory_space<vmem>>, vector<128x128xbf16>
    tpu.vector_store %arg6[%c0_13, %c0_14], %28 {strides = array<i32>} : memref<128x128xbf16, #tpu.memory_space<vmem>>, vector<128x128xbf16>,
    %c0_i32 = arith.constant 0 : i32
    %30 = arith.cmpi eq, %arg0, %c0_i32 : i32
    %31 = arith.extui %30 : i1 to i32
    %c0_i32_15 = arith.constant 0 : i32
    %32 = arith.cmpi ne, %31, %c0_i32_15 : i32
    scf.if %32 {
      %cst_22 = arith.constant 0.000000e+00 : f32
      %42 = vector.broadcast %cst_22 : f32 to vector<2x128xf32>
      %c0_23 = arith.constant 0 : index
      %c0_24 = arith.constant 0 : index
      %43 = vector.load %arg7[%c0_23, %c0_24] : memref<2x128xf32, #tpu.memory_space<vmem>>, vector<2x128xf32>
      tpu.vector_store %arg7[%c0_23, %c0_24], %42 {strides = array<i32>} : memref<2x128xf32, #tpu.memory_space<vmem>>, vector<2x128xf32>,
    } else {
    }
    %cst_16 = arith.constant dense<0.000000e+00> : vector<128xf32>
    %33 = vector.multi_reduction <add>, %27, %cst_16 [0] : vector<128x128xf32> to vector<128xf32>
    %34 = vector.shape_cast %33 : vector<128xf32> to vector<1x128xf32>
    %35 = arith.mulf %27, %27 : vector<128x128xf32>
    %cst_17 = arith.constant dense<0.000000e+00> : vector<128xf32>
    %36 = vector.multi_reduction <add>, %35, %cst_17 [0] : vector<128x128xf32> to vector<128xf32>
    %37 = vector.shape_cast %36 : vector<128xf32> to vector<1x128xf32>
    %c0_18 = arith.constant 0 : index
    %c0_19 = arith.constant 0 : index
    %38 = vector.load %arg7[%c0_18, %c0_19] : memref<2x128xf32, #tpu.memory_space<vmem>>, vector<2x128xf32>
    %39 = tpu.concatenate %34, %37 in 0 : vector<1x128xf32>, vector<1x128xf32> -> vector<2x128xf32>
    %40 = arith.addf %38, %39 : vector<2x128xf32>
    %c0_20 = arith.constant 0 : index
    %c0_21 = arith.constant 0 : index
    %41 = vector.load %arg7[%c0_20, %c0_21] : memref<2x128xf32, #tpu.memory_space<vmem>>, vector<2x128xf32>
    tpu.vector_store %arg7[%c0_20, %c0_21], %40 {strides = array<i32>} : memref<2x128xf32, #tpu.memory_space<vmem>>, vector<2x128xf32>,
    return
  }
  func.func @transform_0(%arg0: i32) -> (i32, i32) {
    %c0_i32 = arith.constant 0 : i32
    %c0_i32_0 = arith.constant 0 : i32
    return %arg0, %c0_i32 : i32, i32
  }
  func.func @transform_1(%arg0: i32) -> (i32, i32) {
    %c0_i32 = arith.constant 0 : i32
    %c0_i32_0 = arith.constant 0 : i32
    %c0_i32_1 = arith.constant 0 : i32
    return %c0_i32, %c0_i32_0 : i32, i32
  }
  func.func @transform_2(%arg0: i32) -> (i32, i32) {
    %c0_i32 = arith.constant 0 : i32
    %c0_i32_0 = arith.constant 0 : i32
    %c0_i32_1 = arith.constant 0 : i32
    return %c0_i32, %c0_i32_0 : i32, i32
  }
  func.func @transform_3(%arg0: i32) -> (i32, i32) {
    %c0_i32 = arith.constant 0 : i32
    %c0_i32_0 = arith.constant 0 : i32
    %c0_i32_1 = arith.constant 0 : i32
    return %c0_i32, %c0_i32_0 : i32, i32
  }
  func.func @transform_4(%arg0: i32) -> (i32, i32) {
    %c0_i32 = arith.constant 0 : i32
    %c0_i32_0 = arith.constant 0 : i32
    %c0_i32_1 = arith.constant 0 : i32
    return %c0_i32, %c0_i32_0 : i32, i32
  }
  func.func @transform_5(%arg0: i32) -> (i32, i32) {
    %c0_i32 = arith.constant 0 : i32
    %c0_i32_0 = arith.constant 0 : i32
    return %arg0, %c0_i32 : i32, i32
  }
  func.func @transform_6(%arg0: i32) -> (i32, i32) {
    %c0_i32 = arith.constant 0 : i32
    %c0_i32_0 = arith.constant 0 : i32
    %c0_i32_1 = arith.constant 0 : i32
    return %c0_i32, %c0_i32_0 : i32, i32
  }
}

module attributes {stable_mosaic.version = 11 : i64} {
  func.func @kernel(%arg0: i32, %arg1: memref<1x64x128xbf16, #tpu.memory_space<vmem>>, %arg2: memref<2x128xf32, #tpu.memory_space<vmem>>, %arg3: memref<1x128xf32, #tpu.memory_space<vmem>>, %arg4: memref<1x128xf32, #tpu.memory_space<vmem>>, %arg5: memref<1152x128xbf16, #tpu.memory_space<vmem>>, %arg6: memref<1x64x128xbf16, #tpu.memory_space<vmem>>, %arg7: memref<1x64x128xbf16, #tpu.memory_space<vmem>>, %arg8: memref<2x128xf32, #tpu.memory_space<vmem>>, %arg9: memref<64x1152xbf16, #tpu.memory_space<vmem>>) attributes {dimension_semantics = [#tpu.dimension_semantics<arbitrary>], iteration_bounds = array<i64: 2>, scalar_prefetch = 0 : i64, scratch_operands = 1 : i64, tpu.core_type = #tpu.core_type<tc>, window_params = [{transform_indices = @transform_0, window_bounds = array<i64: 1, 64, 128>}, {pipeline_mode = #tpu.pipeline_mode<synchronous>, transform_indices = @transform_1, window_bounds = array<i64: 2, 128>}, {pipeline_mode = #tpu.pipeline_mode<synchronous>, transform_indices = @transform_2, window_bounds = array<i64: 1, 128>}, {pipeline_mode = #tpu.pipeline_mode<synchronous>, transform_indices = @transform_3, window_bounds = array<i64: 1, 128>}, {pipeline_mode = #tpu.pipeline_mode<synchronous>, transform_indices = @transform_4, window_bounds = array<i64: 1152, 128>}, {transform_indices = @transform_5, window_bounds = array<i64: 1, 64, 128>}, {transform_indices = @transform_6, window_bounds = array<i64: 1, 64, 128>}, {pipeline_mode = #tpu.pipeline_mode<synchronous>, transform_indices = @transform_7, window_bounds = array<i64: 2, 128>}]} {
    %c0 = arith.constant 0 : index
    %c0_0 = arith.constant 0 : index
    %c0_1 = arith.constant 0 : index
    %0 = vector.load %arg1[%c0, %c0_0, %c0_1] : memref<1x64x128xbf16, #tpu.memory_space<vmem>>, vector<1x64x128xbf16>
    %1 = vector.shape_cast %0 : vector<1x64x128xbf16> to vector<64x128xbf16>
    %2 = arith.extf %1 : vector<64x128xbf16> to vector<64x128xf32>
    %c0_2 = arith.constant 0 : index
    %c0_3 = arith.constant 0 : index
    %3 = vector.load %arg2[%c0_2, %c0_3] : memref<2x128xf32, #tpu.memory_space<vmem>>, vector<2x128xf32>
    %4 = vector.extract_strided_slice %3 {offsets = [0, 0], sizes = [1, 128], strides = [1, 1]} : vector<2x128xf32> to vector<1x128xf32>
    %cst = arith.constant 7.812500e-03 : f32
    %5 = vector.broadcast %cst : f32 to vector<1x128xf32>
    %6 = arith.mulf %4, %5 : vector<1x128xf32>
    %7 = vector.extract_strided_slice %3 {offsets = [1, 0], sizes = [1, 128], strides = [1, 1]} : vector<2x128xf32> to vector<1x128xf32>
    %cst_4 = arith.constant 7.812500e-03 : f32
    %8 = vector.broadcast %cst_4 : f32 to vector<1x128xf32>
    %9 = arith.mulf %7, %8 : vector<1x128xf32>
    %10 = arith.mulf %6, %6 : vector<1x128xf32>
    %11 = arith.subf %9, %10 : vector<1x128xf32>
    %c0_5 = arith.constant 0 : index
    %c0_6 = arith.constant 0 : index
    %12 = vector.load %arg3[%c0_5, %c0_6] : memref<1x128xf32, #tpu.memory_space<vmem>>, vector<1x128xf32>
    %cst_7 = arith.constant 9.99999974E-6 : f32
    %13 = vector.broadcast %cst_7 : f32 to vector<1x128xf32>
    %14 = arith.addf %11, %13 : vector<1x128xf32>
    %15 = math.rsqrt %14 : vector<1x128xf32>
    %16 = arith.mulf %12, %15 : vector<1x128xf32>
    %c0_8 = arith.constant 0 : index
    %c0_9 = arith.constant 0 : index
    %17 = vector.load %arg4[%c0_8, %c0_9] : memref<1x128xf32, #tpu.memory_space<vmem>>, vector<1x128xf32>
    %18 = arith.mulf %6, %16 : vector<1x128xf32>
    %19 = arith.subf %17, %18 : vector<1x128xf32>
    %20 = vector.broadcast %16 : vector<1x128xf32> to vector<64x128xf32>
    %21 = arith.mulf %2, %20 : vector<64x128xf32>
    %22 = vector.broadcast %19 : vector<1x128xf32> to vector<64x128xf32>
    %23 = arith.addf %21, %22 : vector<64x128xf32>
    %cst_10 = arith.constant 0.000000e+00 : f32
    %24 = vector.broadcast %cst_10 : f32 to vector<64x128xf32>
    %25 = arith.maximumf %23, %24 : vector<64x128xf32>
    %26 = tpu.iota {dimensions = array<i32: 0>} : vector<64x128xi32>
    %c7_i32 = arith.constant 7 : i32
    %27 = vector.broadcast %c7_i32 : i32 to vector<64x128xi32>
    %28 = arith.andi %26, %27 : vector<64x128xi32>
    %c3_i32 = arith.constant 3 : i32
    %29 = vector.broadcast %c3_i32 : i32 to vector<64x128xi32>
    %30 = arith.shrsi %26, %29 : vector<64x128xi32>
    %c9_i32 = arith.constant 9 : i32
    %31 = tpu.dynamic_rotate %25 by %c9_i32 dim 0 : vector<64x128xf32>, i32 -> vector<64x128xf32>
    %c1_i32 = arith.constant 1 : i32
    %32 = vector.broadcast %c1_i32 : i32 to vector<64x128xi32>
    %33 = arith.cmpi sge, %30, %32 : vector<64x128xi32>
    %c1_i32_11 = arith.constant 1 : i32
    %34 = vector.broadcast %c1_i32_11 : i32 to vector<64x128xi32>
    %35 = arith.cmpi sge, %28, %34 : vector<64x128xi32>
    %36 = arith.andi %33, %35 : vector<64x128xi1>
    %cst_12 = arith.constant 0.000000e+00 : f32
    %37 = vector.broadcast %cst_12 : f32 to vector<64x128xf32>
    %38 = arith.select %36, %31, %37 : vector<64x128xi1>, vector<64x128xf32>
    %39 = arith.truncf %38 : vector<64x128xf32> to vector<64x128xbf16>
    %c0_13 = arith.constant 0 : index
    %c0_14 = arith.constant 0 : index
    %40 = vector.load %arg9[%c0_13, %c0_14] : memref<64x1152xbf16, #tpu.memory_space<vmem>>, vector<64x128xbf16>
    tpu.vector_store %arg9[%c0_13, %c0_14], %39 {strides = array<i32>} : memref<64x1152xbf16, #tpu.memory_space<vmem>>, vector<64x128xbf16>,
    %c8_i32 = arith.constant 8 : i32
    %41 = tpu.dynamic_rotate %25 by %c8_i32 dim 0 : vector<64x128xf32>, i32 -> vector<64x128xf32>
    %c1_i32_15 = arith.constant 1 : i32
    %42 = vector.broadcast %c1_i32_15 : i32 to vector<64x128xi32>
    %43 = arith.cmpi sge, %30, %42 : vector<64x128xi32>
    %cst_16 = arith.constant 0.000000e+00 : f32
    %44 = vector.broadcast %cst_16 : f32 to vector<64x128xf32>
    %45 = arith.select %43, %41, %44 : vector<64x128xi1>, vector<64x128xf32>
    %46 = arith.truncf %45 : vector<64x128xf32> to vector<64x128xbf16>
    %c0_17 = arith.constant 0 : index
    %c128 = arith.constant 128 : index
    %47 = vector.load %arg9[%c0_17, %c128] : memref<64x1152xbf16, #tpu.memory_space<vmem>>, vector<64x128xbf16>
    tpu.vector_store %arg9[%c0_17, %c128], %46 {strides = array<i32>} : memref<64x1152xbf16, #tpu.memory_space<vmem>>, vector<64x128xbf16>,
    %c7_i32_18 = arith.constant 7 : i32
    %48 = tpu.dynamic_rotate %25 by %c7_i32_18 dim 0 : vector<64x128xf32>, i32 -> vector<64x128xf32>
    %c1_i32_19 = arith.constant 1 : i32
    %49 = vector.broadcast %c1_i32_19 : i32 to vector<64x128xi32>
    %50 = arith.cmpi sge, %30, %49 : vector<64x128xi32>
    %c6_i32 = arith.constant 6 : i32
    %51 = vector.broadcast %c6_i32 : i32 to vector<64x128xi32>
    %52 = arith.cmpi sle, %28, %51 : vector<64x128xi32>
    %53 = arith.andi %50, %52 : vector<64x128xi1>
    %cst_20 = arith.constant 0.000000e+00 : f32
    %54 = vector.broadcast %cst_20 : f32 to vector<64x128xf32>
    %55 = arith.select %53, %48, %54 : vector<64x128xi1>, vector<64x128xf32>
    %56 = arith.truncf %55 : vector<64x128xf32> to vector<64x128xbf16>
    %c0_21 = arith.constant 0 : index
    %c256 = arith.constant 256 : index
    %57 = vector.load %arg9[%c0_21, %c256] : memref<64x1152xbf16, #tpu.memory_space<vmem>>, vector<64x128xbf16>
    tpu.vector_store %arg9[%c0_21, %c256], %56 {strides = array<i32>} : memref<64x1152xbf16, #tpu.memory_space<vmem>>, vector<64x128xbf16>,
    %c1_i32_22 = arith.constant 1 : i32
    %58 = tpu.dynamic_rotate %25 by %c1_i32_22 dim 0 : vector<64x128xf32>, i32 -> vector<64x128xf32>
    %c1_i32_23 = arith.constant 1 : i32
    %59 = vector.broadcast %c1_i32_23 : i32 to vector<64x128xi32>
    %60 = arith.cmpi sge, %28, %59 : vector<64x128xi32>
    %cst_24 = arith.constant 0.000000e+00 : f32
    %61 = vector.broadcast %cst_24 : f32 to vector<64x128xf32>
    %62 = arith.select %60, %58, %61 : vector<64x128xi1>, vector<64x128xf32>
    %63 = arith.truncf %62 : vector<64x128xf32> to vector<64x128xbf16>
    %c0_25 = arith.constant 0 : index
    %c384 = arith.constant 384 : index
    %64 = vector.load %arg9[%c0_25, %c384] : memref<64x1152xbf16, #tpu.memory_space<vmem>>, vector<64x128xbf16>
    tpu.vector_store %arg9[%c0_25, %c384], %63 {strides = array<i32>} : memref<64x1152xbf16, #tpu.memory_space<vmem>>, vector<64x128xbf16>,
    %65 = arith.truncf %25 : vector<64x128xf32> to vector<64x128xbf16>
    %c0_26 = arith.constant 0 : index
    %c512 = arith.constant 512 : index
    %66 = vector.load %arg9[%c0_26, %c512] : memref<64x1152xbf16, #tpu.memory_space<vmem>>, vector<64x128xbf16>
    tpu.vector_store %arg9[%c0_26, %c512], %65 {strides = array<i32>} : memref<64x1152xbf16, #tpu.memory_space<vmem>>, vector<64x128xbf16>,
    %c63_i32 = arith.constant 63 : i32
    %67 = tpu.dynamic_rotate %25 by %c63_i32 dim 0 : vector<64x128xf32>, i32 -> vector<64x128xf32>
    %c6_i32_27 = arith.constant 6 : i32
    %68 = vector.broadcast %c6_i32_27 : i32 to vector<64x128xi32>
    %69 = arith.cmpi sle, %28, %68 : vector<64x128xi32>
    %cst_28 = arith.constant 0.000000e+00 : f32
    %70 = vector.broadcast %cst_28 : f32 to vector<64x128xf32>
    %71 = arith.select %69, %67, %70 : vector<64x128xi1>, vector<64x128xf32>
    %72 = arith.truncf %71 : vector<64x128xf32> to vector<64x128xbf16>
    %c0_29 = arith.constant 0 : index
    %c640 = arith.constant 640 : index
    %73 = vector.load %arg9[%c0_29, %c640] : memref<64x1152xbf16, #tpu.memory_space<vmem>>, vector<64x128xbf16>
    tpu.vector_store %arg9[%c0_29, %c640], %72 {strides = array<i32>} : memref<64x1152xbf16, #tpu.memory_space<vmem>>, vector<64x128xbf16>,
    %c57_i32 = arith.constant 57 : i32
    %74 = tpu.dynamic_rotate %25 by %c57_i32 dim 0 : vector<64x128xf32>, i32 -> vector<64x128xf32>
    %c6_i32_30 = arith.constant 6 : i32
    %75 = vector.broadcast %c6_i32_30 : i32 to vector<64x128xi32>
    %76 = arith.cmpi sle, %30, %75 : vector<64x128xi32>
    %c1_i32_31 = arith.constant 1 : i32
    %77 = vector.broadcast %c1_i32_31 : i32 to vector<64x128xi32>
    %78 = arith.cmpi sge, %28, %77 : vector<64x128xi32>
    %79 = arith.andi %76, %78 : vector<64x128xi1>
    %cst_32 = arith.constant 0.000000e+00 : f32
    %80 = vector.broadcast %cst_32 : f32 to vector<64x128xf32>
    %81 = arith.select %79, %74, %80 : vector<64x128xi1>, vector<64x128xf32>
    %82 = arith.truncf %81 : vector<64x128xf32> to vector<64x128xbf16>
    %c0_33 = arith.constant 0 : index
    %c768 = arith.constant 768 : index
    %83 = vector.load %arg9[%c0_33, %c768] : memref<64x1152xbf16, #tpu.memory_space<vmem>>, vector<64x128xbf16>
    tpu.vector_store %arg9[%c0_33, %c768], %82 {strides = array<i32>} : memref<64x1152xbf16, #tpu.memory_space<vmem>>, vector<64x128xbf16>,
    %c56_i32 = arith.constant 56 : i32
    %84 = tpu.dynamic_rotate %25 by %c56_i32 dim 0 : vector<64x128xf32>, i32 -> vector<64x128xf32>
    %c6_i32_34 = arith.constant 6 : i32
    %85 = vector.broadcast %c6_i32_34 : i32 to vector<64x128xi32>
    %86 = arith.cmpi sle, %30, %85 : vector<64x128xi32>
    %cst_35 = arith.constant 0.000000e+00 : f32
    %87 = vector.broadcast %cst_35 : f32 to vector<64x128xf32>
    %88 = arith.select %86, %84, %87 : vector<64x128xi1>, vector<64x128xf32>
    %89 = arith.truncf %88 : vector<64x128xf32> to vector<64x128xbf16>
    %c0_36 = arith.constant 0 : index
    %c896 = arith.constant 896 : index
    %90 = vector.load %arg9[%c0_36, %c896] : memref<64x1152xbf16, #tpu.memory_space<vmem>>, vector<64x128xbf16>
    tpu.vector_store %arg9[%c0_36, %c896], %89 {strides = array<i32>} : memref<64x1152xbf16, #tpu.memory_space<vmem>>, vector<64x128xbf16>,
    %c55_i32 = arith.constant 55 : i32
    %91 = tpu.dynamic_rotate %25 by %c55_i32 dim 0 : vector<64x128xf32>, i32 -> vector<64x128xf32>
    %c6_i32_37 = arith.constant 6 : i32
    %92 = vector.broadcast %c6_i32_37 : i32 to vector<64x128xi32>
    %93 = arith.cmpi sle, %30, %92 : vector<64x128xi32>
    %c6_i32_38 = arith.constant 6 : i32
    %94 = vector.broadcast %c6_i32_38 : i32 to vector<64x128xi32>
    %95 = arith.cmpi sle, %28, %94 : vector<64x128xi32>
    %96 = arith.andi %93, %95 : vector<64x128xi1>
    %cst_39 = arith.constant 0.000000e+00 : f32
    %97 = vector.broadcast %cst_39 : f32 to vector<64x128xf32>
    %98 = arith.select %96, %91, %97 : vector<64x128xi1>, vector<64x128xf32>
    %99 = arith.truncf %98 : vector<64x128xf32> to vector<64x128xbf16>
    %c0_40 = arith.constant 0 : index
    %c1024 = arith.constant 1024 : index
    %100 = vector.load %arg9[%c0_40, %c1024] : memref<64x1152xbf16, #tpu.memory_space<vmem>>, vector<64x128xbf16>
    tpu.vector_store %arg9[%c0_40, %c1024], %99 {strides = array<i32>} : memref<64x1152xbf16, #tpu.memory_space<vmem>>, vector<64x128xbf16>,
    %c0_41 = arith.constant 0 : index
    %c0_42 = arith.constant 0 : index
    %101 = vector.load %arg9[%c0_41, %c0_42] : memref<64x1152xbf16, #tpu.memory_space<vmem>>, vector<64x1152xbf16>
    %c0_43 = arith.constant 0 : index
    %c0_44 = arith.constant 0 : index
    %102 = vector.load %arg5[%c0_43, %c0_44] : memref<1152x128xbf16, #tpu.memory_space<vmem>>, vector<1152x128xbf16>
    %cst_45 = arith.constant dense<0.000000e+00> : vector<64x128xf32>
    %103 = tpu.matmul %101, %102, %cst_45 {dimension_numbers = #tpu.dot_dimension_numbers<[1], [0], [0], [1], [0, 0, 1, 1], [], []>} : vector<64x1152xbf16>, vector<1152x128xbf16>, vector<64x128xf32> -> vector<64x128xf32>
    %c0_46 = arith.constant 0 : index
    %c0_47 = arith.constant 0 : index
    %c0_48 = arith.constant 0 : index
    %104 = vector.load %arg6[%c0_46, %c0_47, %c0_48] : memref<1x64x128xbf16, #tpu.memory_space<vmem>>, vector<1x64x128xbf16>
    %105 = vector.shape_cast %104 : vector<1x64x128xbf16> to vector<64x128xbf16>
    %106 = arith.extf %105 : vector<64x128xbf16> to vector<64x128xf32>
    %107 = arith.addf %103, %106 : vector<64x128xf32>
    %108 = arith.truncf %107 : vector<64x128xf32> to vector<64x128xbf16>
    %c0_49 = arith.constant 0 : index
    %c0_50 = arith.constant 0 : index
    %c0_51 = arith.constant 0 : index
    %109 = vector.load %arg7[%c0_49, %c0_50, %c0_51] : memref<1x64x128xbf16, #tpu.memory_space<vmem>>, vector<1x64x128xbf16>
    %110 = vector.shape_cast %109 : vector<1x64x128xbf16> to vector<64x128xbf16>
    %111 = vector.shape_cast %108 : vector<64x128xbf16> to vector<1x64x128xbf16>
    tpu.vector_store %arg7[%c0_49, %c0_50, %c0_51], %111 {strides = array<i32>} : memref<1x64x128xbf16, #tpu.memory_space<vmem>>, vector<1x64x128xbf16>,
    %c0_i32 = arith.constant 0 : i32
    %112 = arith.cmpi eq, %arg0, %c0_i32 : i32
    %113 = arith.extui %112 : i1 to i32
    %c0_i32_52 = arith.constant 0 : i32
    %114 = arith.cmpi ne, %113, %c0_i32_52 : i32
    scf.if %114 {
      %cst_59 = arith.constant 0.000000e+00 : f32
      %124 = vector.broadcast %cst_59 : f32 to vector<2x128xf32>
      %c0_60 = arith.constant 0 : index
      %c0_61 = arith.constant 0 : index
      %125 = vector.load %arg8[%c0_60, %c0_61] : memref<2x128xf32, #tpu.memory_space<vmem>>, vector<2x128xf32>
      tpu.vector_store %arg8[%c0_60, %c0_61], %124 {strides = array<i32>} : memref<2x128xf32, #tpu.memory_space<vmem>>, vector<2x128xf32>,
    } else {
    }
    %cst_53 = arith.constant dense<0.000000e+00> : vector<128xf32>
    %115 = vector.multi_reduction <add>, %107, %cst_53 [0] : vector<64x128xf32> to vector<128xf32>
    %116 = vector.shape_cast %115 : vector<128xf32> to vector<1x128xf32>
    %117 = arith.mulf %107, %107 : vector<64x128xf32>
    %cst_54 = arith.constant dense<0.000000e+00> : vector<128xf32>
    %118 = vector.multi_reduction <add>, %117, %cst_54 [0] : vector<64x128xf32> to vector<128xf32>
    %119 = vector.shape_cast %118 : vector<128xf32> to vector<1x128xf32>
    %c0_55 = arith.constant 0 : index
    %c0_56 = arith.constant 0 : index
    %120 = vector.load %arg8[%c0_55, %c0_56] : memref<2x128xf32, #tpu.memory_space<vmem>>, vector<2x128xf32>
    %121 = tpu.concatenate %116, %119 in 0 : vector<1x128xf32>, vector<1x128xf32> -> vector<2x128xf32>
    %122 = arith.addf %120, %121 : vector<2x128xf32>
    %c0_57 = arith.constant 0 : index
    %c0_58 = arith.constant 0 : index
    %123 = vector.load %arg8[%c0_57, %c0_58] : memref<2x128xf32, #tpu.memory_space<vmem>>, vector<2x128xf32>
    tpu.vector_store %arg8[%c0_57, %c0_58], %122 {strides = array<i32>} : memref<2x128xf32, #tpu.memory_space<vmem>>, vector<2x128xf32>,
    return
  }
  func.func @transform_0(%arg0: i32) -> (i32, i32, i32) {
    %c0_i32 = arith.constant 0 : i32
    %c0_i32_0 = arith.constant 0 : i32
    %c0_i32_1 = arith.constant 0 : i32
    return %arg0, %c0_i32, %c0_i32_0 : i32, i32, i32
  }
  func.func @transform_1(%arg0: i32) -> (i32, i32) {
    %c0_i32 = arith.constant 0 : i32
    %c0_i32_0 = arith.constant 0 : i32
    %c0_i32_1 = arith.constant 0 : i32
    return %c0_i32, %c0_i32_0 : i32, i32
  }
  func.func @transform_2(%arg0: i32) -> (i32, i32) {
    %c0_i32 = arith.constant 0 : i32
    %c0_i32_0 = arith.constant 0 : i32
    %c0_i32_1 = arith.constant 0 : i32
    return %c0_i32, %c0_i32_0 : i32, i32
  }
  func.func @transform_3(%arg0: i32) -> (i32, i32) {
    %c0_i32 = arith.constant 0 : i32
    %c0_i32_0 = arith.constant 0 : i32
    %c0_i32_1 = arith.constant 0 : i32
    return %c0_i32, %c0_i32_0 : i32, i32
  }
  func.func @transform_4(%arg0: i32) -> (i32, i32) {
    %c0_i32 = arith.constant 0 : i32
    %c0_i32_0 = arith.constant 0 : i32
    %c0_i32_1 = arith.constant 0 : i32
    return %c0_i32, %c0_i32_0 : i32, i32
  }
  func.func @transform_5(%arg0: i32) -> (i32, i32, i32) {
    %c0_i32 = arith.constant 0 : i32
    %c0_i32_0 = arith.constant 0 : i32
    %c0_i32_1 = arith.constant 0 : i32
    return %arg0, %c0_i32, %c0_i32_0 : i32, i32, i32
  }
  func.func @transform_6(%arg0: i32) -> (i32, i32, i32) {
    %c0_i32 = arith.constant 0 : i32
    %c0_i32_0 = arith.constant 0 : i32
    %c0_i32_1 = arith.constant 0 : i32
    return %arg0, %c0_i32, %c0_i32_0 : i32, i32, i32
  }
  func.func @transform_7(%arg0: i32) -> (i32, i32) {
    %c0_i32 = arith.constant 0 : i32
    %c0_i32_0 = arith.constant 0 : i32
    %c0_i32_1 = arith.constant 0 : i32
    return %c0_i32, %c0_i32_0 : i32, i32
  }
}

module attributes {stable_mosaic.version = 11 : i64} {
  func.func @kernel(%arg0: i32, %arg1: memref<1x256x128xbf16, #tpu.memory_space<vmem>>, %arg2: memref<2x128xf32, #tpu.memory_space<vmem>>, %arg3: memref<1x128xf32, #tpu.memory_space<vmem>>, %arg4: memref<1x128xf32, #tpu.memory_space<vmem>>, %arg5: memref<1x64x128xbf16, #tpu.memory_space<vmem>>, %arg6: memref<2x128xf32, #tpu.memory_space<vmem>>, %arg7: memref<256x128xf32, #tpu.memory_space<vmem>>, %arg8: memref<64x128xf32, #tpu.memory_space<vmem>>) attributes {dimension_semantics = [#tpu.dimension_semantics<arbitrary>], iteration_bounds = array<i64: 2>, scalar_prefetch = 0 : i64, scratch_operands = 2 : i64, tpu.core_type = #tpu.core_type<tc>, window_params = [{transform_indices = @transform_0, window_bounds = array<i64: 1, 256, 128>}, {pipeline_mode = #tpu.pipeline_mode<synchronous>, transform_indices = @transform_1, window_bounds = array<i64: 2, 128>}, {pipeline_mode = #tpu.pipeline_mode<synchronous>, transform_indices = @transform_2, window_bounds = array<i64: 1, 128>}, {pipeline_mode = #tpu.pipeline_mode<synchronous>, transform_indices = @transform_3, window_bounds = array<i64: 1, 128>}, {transform_indices = @transform_4, window_bounds = array<i64: 1, 64, 128>}, {pipeline_mode = #tpu.pipeline_mode<synchronous>, transform_indices = @transform_5, window_bounds = array<i64: 2, 128>}]} {
    %c0 = arith.constant 0 : index
    %c0_0 = arith.constant 0 : index
    %0 = vector.load %arg2[%c0, %c0_0] : memref<2x128xf32, #tpu.memory_space<vmem>>, vector<2x128xf32>
    %1 = vector.extract_strided_slice %0 {offsets = [0, 0], sizes = [1, 128], strides = [1, 1]} : vector<2x128xf32> to vector<1x128xf32>
    %cst = arith.constant 0.001953125 : f32
    %2 = vector.broadcast %cst : f32 to vector<1x128xf32>
    %3 = arith.mulf %1, %2 : vector<1x128xf32>
    %4 = vector.extract_strided_slice %0 {offsets = [1, 0], sizes = [1, 128], strides = [1, 1]} : vector<2x128xf32> to vector<1x128xf32>
    %cst_1 = arith.constant 0.001953125 : f32
    %5 = vector.broadcast %cst_1 : f32 to vector<1x128xf32>
    %6 = arith.mulf %4, %5 : vector<1x128xf32>
    %7 = arith.mulf %3, %3 : vector<1x128xf32>
    %8 = arith.subf %6, %7 : vector<1x128xf32>
    %c0_2 = arith.constant 0 : index
    %c0_3 = arith.constant 0 : index
    %9 = vector.load %arg3[%c0_2, %c0_3] : memref<1x128xf32, #tpu.memory_space<vmem>>, vector<1x128xf32>
    %cst_4 = arith.constant 9.99999974E-6 : f32
    %10 = vector.broadcast %cst_4 : f32 to vector<1x128xf32>
    %11 = arith.addf %8, %10 : vector<1x128xf32>
    %12 = math.rsqrt %11 : vector<1x128xf32>
    %13 = arith.mulf %9, %12 : vector<1x128xf32>
    %c0_5 = arith.constant 0 : index
    %c0_6 = arith.constant 0 : index
    %14 = vector.load %arg4[%c0_5, %c0_6] : memref<1x128xf32, #tpu.memory_space<vmem>>, vector<1x128xf32>
    %15 = arith.mulf %3, %13 : vector<1x128xf32>
    %16 = arith.subf %14, %15 : vector<1x128xf32>
    %c0_7 = arith.constant 0 : index
    %c0_8 = arith.constant 0 : index
    %c0_9 = arith.constant 0 : index
    %17 = vector.load %arg1[%c0_7, %c0_8, %c0_9] : memref<1x256x128xbf16, #tpu.memory_space<vmem>>, vector<1x256x128xbf16>
    %18 = vector.shape_cast %17 : vector<1x256x128xbf16> to vector<256x128xbf16>
    %19 = arith.extf %18 : vector<256x128xbf16> to vector<256x128xf32>
    %20 = vector.broadcast %13 : vector<1x128xf32> to vector<256x128xf32>
    %21 = arith.mulf %19, %20 : vector<256x128xf32>
    %22 = vector.broadcast %16 : vector<1x128xf32> to vector<256x128xf32>
    %23 = arith.addf %21, %22 : vector<256x128xf32>
    %cst_10 = arith.constant 0.000000e+00 : f32
    %24 = vector.broadcast %cst_10 : f32 to vector<256x128xf32>
    %25 = arith.maximumf %23, %24 : vector<256x128xf32>
    %26 = tpu.iota {dimensions = array<i32: 0>} : vector<256x128xi32>
    %c15_i32 = arith.constant 15 : i32
    %27 = vector.broadcast %c15_i32 : i32 to vector<256x128xi32>
    %28 = arith.andi %26, %27 : vector<256x128xi32>
    %c4_i32 = arith.constant 4 : i32
    %29 = vector.broadcast %c4_i32 : i32 to vector<256x128xi32>
    %30 = arith.shrsi %26, %29 : vector<256x128xi32>
    %c17_i32 = arith.constant 17 : i32
    %31 = tpu.dynamic_rotate %25 by %c17_i32 dim 0 : vector<256x128xf32>, i32 -> vector<256x128xf32>
    %c1_i32 = arith.constant 1 : i32
    %32 = vector.broadcast %c1_i32 : i32 to vector<256x128xi32>
    %33 = arith.cmpi sge, %30, %32 : vector<256x128xi32>
    %c1_i32_11 = arith.constant 1 : i32
    %34 = vector.broadcast %c1_i32_11 : i32 to vector<256x128xi32>
    %35 = arith.cmpi sge, %28, %34 : vector<256x128xi32>
    %36 = arith.andi %33, %35 : vector<256x128xi1>
    %cst_12 = arith.constant 0.000000e+00 : f32
    %37 = vector.broadcast %cst_12 : f32 to vector<256x128xf32>
    %38 = arith.select %36, %31, %37 : vector<256x128xi1>, vector<256x128xf32>
    %39 = arith.maximumf %25, %38 : vector<256x128xf32>
    %c16_i32 = arith.constant 16 : i32
    %40 = tpu.dynamic_rotate %25 by %c16_i32 dim 0 : vector<256x128xf32>, i32 -> vector<256x128xf32>
    %c1_i32_13 = arith.constant 1 : i32
    %41 = vector.broadcast %c1_i32_13 : i32 to vector<256x128xi32>
    %42 = arith.cmpi sge, %30, %41 : vector<256x128xi32>
    %cst_14 = arith.constant 0.000000e+00 : f32
    %43 = vector.broadcast %cst_14 : f32 to vector<256x128xf32>
    %44 = arith.select %42, %40, %43 : vector<256x128xi1>, vector<256x128xf32>
    %45 = arith.maximumf %39, %44 : vector<256x128xf32>
    %c15_i32_15 = arith.constant 15 : i32
    %46 = tpu.dynamic_rotate %25 by %c15_i32_15 dim 0 : vector<256x128xf32>, i32 -> vector<256x128xf32>
    %c1_i32_16 = arith.constant 1 : i32
    %47 = vector.broadcast %c1_i32_16 : i32 to vector<256x128xi32>
    %48 = arith.cmpi sge, %30, %47 : vector<256x128xi32>
    %c14_i32 = arith.constant 14 : i32
    %49 = vector.broadcast %c14_i32 : i32 to vector<256x128xi32>
    %50 = arith.cmpi sle, %28, %49 : vector<256x128xi32>
    %51 = arith.andi %48, %50 : vector<256x128xi1>
    %cst_17 = arith.constant 0.000000e+00 : f32
    %52 = vector.broadcast %cst_17 : f32 to vector<256x128xf32>
    %53 = arith.select %51, %46, %52 : vector<256x128xi1>, vector<256x128xf32>
    %54 = arith.maximumf %45, %53 : vector<256x128xf32>
    %c1_i32_18 = arith.constant 1 : i32
    %55 = tpu.dynamic_rotate %25 by %c1_i32_18 dim 0 : vector<256x128xf32>, i32 -> vector<256x128xf32>
    %c1_i32_19 = arith.constant 1 : i32
    %56 = vector.broadcast %c1_i32_19 : i32 to vector<256x128xi32>
    %57 = arith.cmpi sge, %28, %56 : vector<256x128xi32>
    %cst_20 = arith.constant 0.000000e+00 : f32
    %58 = vector.broadcast %cst_20 : f32 to vector<256x128xf32>
    %59 = arith.select %57, %55, %58 : vector<256x128xi1>, vector<256x128xf32>
    %60 = arith.maximumf %54, %59 : vector<256x128xf32>
    %c255_i32 = arith.constant 255 : i32
    %61 = tpu.dynamic_rotate %25 by %c255_i32 dim 0 : vector<256x128xf32>, i32 -> vector<256x128xf32>
    %c14_i32_21 = arith.constant 14 : i32
    %62 = vector.broadcast %c14_i32_21 : i32 to vector<256x128xi32>
    %63 = arith.cmpi sle, %28, %62 : vector<256x128xi32>
    %cst_22 = arith.constant 0.000000e+00 : f32
    %64 = vector.broadcast %cst_22 : f32 to vector<256x128xf32>
    %65 = arith.select %63, %61, %64 : vector<256x128xi1>, vector<256x128xf32>
    %66 = arith.maximumf %60, %65 : vector<256x128xf32>
    %c241_i32 = arith.constant 241 : i32
    %67 = tpu.dynamic_rotate %25 by %c241_i32 dim 0 : vector<256x128xf32>, i32 -> vector<256x128xf32>
    %c14_i32_23 = arith.constant 14 : i32
    %68 = vector.broadcast %c14_i32_23 : i32 to vector<256x128xi32>
    %69 = arith.cmpi sle, %30, %68 : vector<256x128xi32>
    %c1_i32_24 = arith.constant 1 : i32
    %70 = vector.broadcast %c1_i32_24 : i32 to vector<256x128xi32>
    %71 = arith.cmpi sge, %28, %70 : vector<256x128xi32>
    %72 = arith.andi %69, %71 : vector<256x128xi1>
    %cst_25 = arith.constant 0.000000e+00 : f32
    %73 = vector.broadcast %cst_25 : f32 to vector<256x128xf32>
    %74 = arith.select %72, %67, %73 : vector<256x128xi1>, vector<256x128xf32>
    %75 = arith.maximumf %66, %74 : vector<256x128xf32>
    %c240_i32 = arith.constant 240 : i32
    %76 = tpu.dynamic_rotate %25 by %c240_i32 dim 0 : vector<256x128xf32>, i32 -> vector<256x128xf32>
    %c14_i32_26 = arith.constant 14 : i32
    %77 = vector.broadcast %c14_i32_26 : i32 to vector<256x128xi32>
    %78 = arith.cmpi sle, %30, %77 : vector<256x128xi32>
    %cst_27 = arith.constant 0.000000e+00 : f32
    %79 = vector.broadcast %cst_27 : f32 to vector<256x128xf32>
    %80 = arith.select %78, %76, %79 : vector<256x128xi1>, vector<256x128xf32>
    %81 = arith.maximumf %75, %80 : vector<256x128xf32>
    %c239_i32 = arith.constant 239 : i32
    %82 = tpu.dynamic_rotate %25 by %c239_i32 dim 0 : vector<256x128xf32>, i32 -> vector<256x128xf32>
    %c14_i32_28 = arith.constant 14 : i32
    %83 = vector.broadcast %c14_i32_28 : i32 to vector<256x128xi32>
    %84 = arith.cmpi sle, %30, %83 : vector<256x128xi32>
    %c14_i32_29 = arith.constant 14 : i32
    %85 = vector.broadcast %c14_i32_29 : i32 to vector<256x128xi32>
    %86 = arith.cmpi sle, %28, %85 : vector<256x128xi32>
    %87 = arith.andi %84, %86 : vector<256x128xi1>
    %cst_30 = arith.constant 0.000000e+00 : f32
    %88 = vector.broadcast %cst_30 : f32 to vector<256x128xf32>
    %89 = arith.select %87, %82, %88 : vector<256x128xi1>, vector<256x128xf32>
    %90 = arith.maximumf %81, %89 : vector<256x128xf32>
    %c0_31 = arith.constant 0 : index
    %c0_32 = arith.constant 0 : index
    %91 = vector.load %arg7[%c0_31, %c0_32] : memref<256x128xf32, #tpu.memory_space<vmem>>, vector<256x128xf32>
    tpu.vector_store %arg7[%c0_31, %c0_32], %90 {strides = array<i32>} : memref<256x128xf32, #tpu.memory_space<vmem>>, vector<256x128xf32>,
    %c0_33 = arith.constant 0 : index
    %c0_34 = arith.constant 0 : index
    %92 = tpu.strided_load %arg7[%c0_33, %c0_34] {strides = array<i32: 2, 1>} : memref<256x128xf32, #tpu.memory_space<vmem>>, vector<8x128xf32>
    %c0_35 = arith.constant 0 : index
    %c0_36 = arith.constant 0 : index
    %93 = vector.load %arg8[%c0_35, %c0_36] : memref<64x128xf32, #tpu.memory_space<vmem>>, vector<8x128xf32>
    tpu.vector_store %arg8[%c0_35, %c0_36], %92 {strides = array<i32>} : memref<64x128xf32, #tpu.memory_space<vmem>>, vector<8x128xf32>,
    %c32 = arith.constant 32 : index
    %c0_37 = arith.constant 0 : index
    %94 = tpu.strided_load %arg7[%c32, %c0_37] {strides = array<i32: 2, 1>} : memref<256x128xf32, #tpu.memory_space<vmem>>, vector<8x128xf32>
    %c8 = arith.constant 8 : index
    %c0_38 = arith.constant 0 : index
    %95 = vector.load %arg8[%c8, %c0_38] : memref<64x128xf32, #tpu.memory_space<vmem>>, vector<8x128xf32>
    tpu.vector_store %arg8[%c8, %c0_38], %94 {strides = array<i32>} : memref<64x128xf32, #tpu.memory_space<vmem>>, vector<8x128xf32>,
    %c64 = arith.constant 64 : index
    %c0_39 = arith.constant 0 : index
    %96 = tpu.strided_load %arg7[%c64, %c0_39] {strides = array<i32: 2, 1>} : memref<256x128xf32, #tpu.memory_space<vmem>>, vector<8x128xf32>
    %c16 = arith.constant 16 : index
    %c0_40 = arith.constant 0 : index
    %97 = vector.load %arg8[%c16, %c0_40] : memref<64x128xf32, #tpu.memory_space<vmem>>, vector<8x128xf32>
    tpu.vector_store %arg8[%c16, %c0_40], %96 {strides = array<i32>} : memref<64x128xf32, #tpu.memory_space<vmem>>, vector<8x128xf32>,
    %c96 = arith.constant 96 : index
    %c0_41 = arith.constant 0 : index
    %98 = tpu.strided_load %arg7[%c96, %c0_41] {strides = array<i32: 2, 1>} : memref<256x128xf32, #tpu.memory_space<vmem>>, vector<8x128xf32>
    %c24 = arith.constant 24 : index
    %c0_42 = arith.constant 0 : index
    %99 = vector.load %arg8[%c24, %c0_42] : memref<64x128xf32, #tpu.memory_space<vmem>>, vector<8x128xf32>
    tpu.vector_store %arg8[%c24, %c0_42], %98 {strides = array<i32>} : memref<64x128xf32, #tpu.memory_space<vmem>>, vector<8x128xf32>,
    %c128 = arith.constant 128 : index
    %c0_43 = arith.constant 0 : index
    %100 = tpu.strided_load %arg7[%c128, %c0_43] {strides = array<i32: 2, 1>} : memref<256x128xf32, #tpu.memory_space<vmem>>, vector<8x128xf32>
    %c32_44 = arith.constant 32 : index
    %c0_45 = arith.constant 0 : index
    %101 = vector.load %arg8[%c32_44, %c0_45] : memref<64x128xf32, #tpu.memory_space<vmem>>, vector<8x128xf32>
    tpu.vector_store %arg8[%c32_44, %c0_45], %100 {strides = array<i32>} : memref<64x128xf32, #tpu.memory_space<vmem>>, vector<8x128xf32>,
    %c160 = arith.constant 160 : index
    %c0_46 = arith.constant 0 : index
    %102 = tpu.strided_load %arg7[%c160, %c0_46] {strides = array<i32: 2, 1>} : memref<256x128xf32, #tpu.memory_space<vmem>>, vector<8x128xf32>
    %c40 = arith.constant 40 : index
    %c0_47 = arith.constant 0 : index
    %103 = vector.load %arg8[%c40, %c0_47] : memref<64x128xf32, #tpu.memory_space<vmem>>, vector<8x128xf32>
    tpu.vector_store %arg8[%c40, %c0_47], %102 {strides = array<i32>} : memref<64x128xf32, #tpu.memory_space<vmem>>, vector<8x128xf32>,
    %c192 = arith.constant 192 : index
    %c0_48 = arith.constant 0 : index
    %104 = tpu.strided_load %arg7[%c192, %c0_48] {strides = array<i32: 2, 1>} : memref<256x128xf32, #tpu.memory_space<vmem>>, vector<8x128xf32>
    %c48 = arith.constant 48 : index
    %c0_49 = arith.constant 0 : index
    %105 = vector.load %arg8[%c48, %c0_49] : memref<64x128xf32, #tpu.memory_space<vmem>>, vector<8x128xf32>
    tpu.vector_store %arg8[%c48, %c0_49], %104 {strides = array<i32>} : memref<64x128xf32, #tpu.memory_space<vmem>>, vector<8x128xf32>,
    %c224 = arith.constant 224 : index
    %c0_50 = arith.constant 0 : index
    %106 = tpu.strided_load %arg7[%c224, %c0_50] {strides = array<i32: 2, 1>} : memref<256x128xf32, #tpu.memory_space<vmem>>, vector<8x128xf32>
    %c56 = arith.constant 56 : index
    %c0_51 = arith.constant 0 : index
    %107 = vector.load %arg8[%c56, %c0_51] : memref<64x128xf32, #tpu.memory_space<vmem>>, vector<8x128xf32>
    tpu.vector_store %arg8[%c56, %c0_51], %106 {strides = array<i32>} : memref<64x128xf32, #tpu.memory_space<vmem>>, vector<8x128xf32>,
    %c0_52 = arith.constant 0 : index
    %c0_53 = arith.constant 0 : index
    %108 = vector.load %arg8[%c0_52, %c0_53] : memref<64x128xf32, #tpu.memory_space<vmem>>, vector<64x128xf32>
    %109 = arith.truncf %108 : vector<64x128xf32> to vector<64x128xbf16>
    %c0_54 = arith.constant 0 : index
    %c0_55 = arith.constant 0 : index
    %c0_56 = arith.constant 0 : index
    %110 = vector.load %arg5[%c0_54, %c0_55, %c0_56] : memref<1x64x128xbf16, #tpu.memory_space<vmem>>, vector<1x64x128xbf16>
    %111 = vector.shape_cast %110 : vector<1x64x128xbf16> to vector<64x128xbf16>
    %112 = vector.shape_cast %109 : vector<64x128xbf16> to vector<1x64x128xbf16>
    tpu.vector_store %arg5[%c0_54, %c0_55, %c0_56], %112 {strides = array<i32>} : memref<1x64x128xbf16, #tpu.memory_space<vmem>>, vector<1x64x128xbf16>,
    %c0_i32 = arith.constant 0 : i32
    %113 = arith.cmpi eq, %arg0, %c0_i32 : i32
    %114 = arith.extui %113 : i1 to i32
    %c0_i32_57 = arith.constant 0 : i32
    %115 = arith.cmpi ne, %114, %c0_i32_57 : i32
    scf.if %115 {
      %cst_64 = arith.constant 0.000000e+00 : f32
      %125 = vector.broadcast %cst_64 : f32 to vector<2x128xf32>
      %c0_65 = arith.constant 0 : index
      %c0_66 = arith.constant 0 : index
      %126 = vector.load %arg6[%c0_65, %c0_66] : memref<2x128xf32, #tpu.memory_space<vmem>>, vector<2x128xf32>
      tpu.vector_store %arg6[%c0_65, %c0_66], %125 {strides = array<i32>} : memref<2x128xf32, #tpu.memory_space<vmem>>, vector<2x128xf32>,
    } else {
    }
    %cst_58 = arith.constant dense<0.000000e+00> : vector<128xf32>
    %116 = vector.multi_reduction <add>, %108, %cst_58 [0] : vector<64x128xf32> to vector<128xf32>
    %117 = vector.shape_cast %116 : vector<128xf32> to vector<1x128xf32>
    %118 = arith.mulf %108, %108 : vector<64x128xf32>
    %cst_59 = arith.constant dense<0.000000e+00> : vector<128xf32>
    %119 = vector.multi_reduction <add>, %118, %cst_59 [0] : vector<64x128xf32> to vector<128xf32>
    %120 = vector.shape_cast %119 : vector<128xf32> to vector<1x128xf32>
    %c0_60 = arith.constant 0 : index
    %c0_61 = arith.constant 0 : index
    %121 = vector.load %arg6[%c0_60, %c0_61] : memref<2x128xf32, #tpu.memory_space<vmem>>, vector<2x128xf32>
    %122 = tpu.concatenate %117, %120 in 0 : vector<1x128xf32>, vector<1x128xf32> -> vector<2x128xf32>
    %123 = arith.addf %121, %122 : vector<2x128xf32>
    %c0_62 = arith.constant 0 : index
    %c0_63 = arith.constant 0 : index
    %124 = vector.load %arg6[%c0_62, %c0_63] : memref<2x128xf32, #tpu.memory_space<vmem>>, vector<2x128xf32>
    tpu.vector_store %arg6[%c0_62, %c0_63], %123 {strides = array<i32>} : memref<2x128xf32, #tpu.memory_space<vmem>>, vector<2x128xf32>,
    return
  }
  func.func @transform_0(%arg0: i32) -> (i32, i32, i32) {
    %c0_i32 = arith.constant 0 : i32
    %c0_i32_0 = arith.constant 0 : i32
    %c0_i32_1 = arith.constant 0 : i32
    return %arg0, %c0_i32, %c0_i32_0 : i32, i32, i32
  }
  func.func @transform_1(%arg0: i32) -> (i32, i32) {
    %c0_i32 = arith.constant 0 : i32
    %c0_i32_0 = arith.constant 0 : i32
    %c0_i32_1 = arith.constant 0 : i32
    return %c0_i32, %c0_i32_0 : i32, i32
  }
  func.func @transform_2(%arg0: i32) -> (i32, i32) {
    %c0_i32 = arith.constant 0 : i32
    %c0_i32_0 = arith.constant 0 : i32
    %c0_i32_1 = arith.constant 0 : i32
    return %c0_i32, %c0_i32_0 : i32, i32
  }
  func.func @transform_3(%arg0: i32) -> (i32, i32) {
    %c0_i32 = arith.constant 0 : i32
    %c0_i32_0 = arith.constant 0 : i32
    %c0_i32_1 = arith.constant 0 : i32
    return %c0_i32, %c0_i32_0 : i32, i32
  }
  func.func @transform_4(%arg0: i32) -> (i32, i32, i32) {
    %c0_i32 = arith.constant 0 : i32
    %c0_i32_0 = arith.constant 0 : i32
    %c0_i32_1 = arith.constant 0 : i32
    return %arg0, %c0_i32, %c0_i32_0 : i32, i32, i32
  }
  func.func @transform_5(%arg0: i32) -> (i32, i32) {
    %c0_i32 = arith.constant 0 : i32
    %c0_i32_0 = arith.constant 0 : i32
    %c0_i32_1 = arith.constant 0 : i32
    return %c0_i32, %c0_i32_0 : i32, i32
  }
}

module attributes {stable_mosaic.version = 11 : i64} {
  func.func @kernel(%arg0: i32, %arg1: memref<1x64x128xbf16, #tpu.memory_space<vmem>>, %arg2: memref<2x128xf32, #tpu.memory_space<vmem>>, %arg3: memref<1x128xf32, #tpu.memory_space<vmem>>, %arg4: memref<1x128xf32, #tpu.memory_space<vmem>>, %arg5: memref<128x128xbf16, #tpu.memory_space<vmem>>, %arg6: memref<1x16x128xbf16, #tpu.memory_space<vmem>>, %arg7: memref<2x128xf32, #tpu.memory_space<vmem>>, %arg8: memref<64x128xf32, #tpu.memory_space<vmem>>, %arg9: memref<16x128xf32, #tpu.memory_space<vmem>>) attributes {dimension_semantics = [#tpu.dimension_semantics<arbitrary>], iteration_bounds = array<i64: 2>, scalar_prefetch = 0 : i64, scratch_operands = 2 : i64, tpu.core_type = #tpu.core_type<tc>, window_params = [{transform_indices = @transform_0, window_bounds = array<i64: 1, 64, 128>}, {pipeline_mode = #tpu.pipeline_mode<synchronous>, transform_indices = @transform_1, window_bounds = array<i64: 2, 128>}, {pipeline_mode = #tpu.pipeline_mode<synchronous>, transform_indices = @transform_2, window_bounds = array<i64: 1, 128>}, {pipeline_mode = #tpu.pipeline_mode<synchronous>, transform_indices = @transform_3, window_bounds = array<i64: 1, 128>}, {pipeline_mode = #tpu.pipeline_mode<synchronous>, transform_indices = @transform_4, window_bounds = array<i64: 128, 128>}, {transform_indices = @transform_5, window_bounds = array<i64: 1, 16, 128>}, {pipeline_mode = #tpu.pipeline_mode<synchronous>, transform_indices = @transform_6, window_bounds = array<i64: 2, 128>}]} {
    %c0 = arith.constant 0 : index
    %c0_0 = arith.constant 0 : index
    %0 = vector.load %arg2[%c0, %c0_0] : memref<2x128xf32, #tpu.memory_space<vmem>>, vector<2x128xf32>
    %1 = vector.extract_strided_slice %0 {offsets = [0, 0], sizes = [1, 128], strides = [1, 1]} : vector<2x128xf32> to vector<1x128xf32>
    %cst = arith.constant 7.812500e-03 : f32
    %2 = vector.broadcast %cst : f32 to vector<1x128xf32>
    %3 = arith.mulf %1, %2 : vector<1x128xf32>
    %4 = vector.extract_strided_slice %0 {offsets = [1, 0], sizes = [1, 128], strides = [1, 1]} : vector<2x128xf32> to vector<1x128xf32>
    %cst_1 = arith.constant 7.812500e-03 : f32
    %5 = vector.broadcast %cst_1 : f32 to vector<1x128xf32>
    %6 = arith.mulf %4, %5 : vector<1x128xf32>
    %7 = arith.mulf %3, %3 : vector<1x128xf32>
    %8 = arith.subf %6, %7 : vector<1x128xf32>
    %c0_2 = arith.constant 0 : index
    %c0_3 = arith.constant 0 : index
    %9 = vector.load %arg3[%c0_2, %c0_3] : memref<1x128xf32, #tpu.memory_space<vmem>>, vector<1x128xf32>
    %cst_4 = arith.constant 9.99999974E-6 : f32
    %10 = vector.broadcast %cst_4 : f32 to vector<1x128xf32>
    %11 = arith.addf %8, %10 : vector<1x128xf32>
    %12 = math.rsqrt %11 : vector<1x128xf32>
    %13 = arith.mulf %9, %12 : vector<1x128xf32>
    %c0_5 = arith.constant 0 : index
    %c0_6 = arith.constant 0 : index
    %14 = vector.load %arg4[%c0_5, %c0_6] : memref<1x128xf32, #tpu.memory_space<vmem>>, vector<1x128xf32>
    %15 = arith.mulf %3, %13 : vector<1x128xf32>
    %16 = arith.subf %14, %15 : vector<1x128xf32>
    %c0_7 = arith.constant 0 : index
    %c0_8 = arith.constant 0 : index
    %c0_9 = arith.constant 0 : index
    %17 = vector.load %arg1[%c0_7, %c0_8, %c0_9] : memref<1x64x128xbf16, #tpu.memory_space<vmem>>, vector<1x64x128xbf16>
    %18 = vector.shape_cast %17 : vector<1x64x128xbf16> to vector<64x128xbf16>
    %19 = arith.extf %18 : vector<64x128xbf16> to vector<64x128xf32>
    %20 = vector.broadcast %13 : vector<1x128xf32> to vector<64x128xf32>
    %21 = arith.mulf %19, %20 : vector<64x128xf32>
    %22 = vector.broadcast %16 : vector<1x128xf32> to vector<64x128xf32>
    %23 = arith.addf %21, %22 : vector<64x128xf32>
    %cst_10 = arith.constant 0.000000e+00 : f32
    %24 = vector.broadcast %cst_10 : f32 to vector<64x128xf32>
    %25 = arith.maximumf %23, %24 : vector<64x128xf32>
    %c63_i32 = arith.constant 63 : i32
    %26 = tpu.dynamic_rotate %25 by %c63_i32 dim 0 : vector<64x128xf32>, i32 -> vector<64x128xf32>
    %27 = arith.addf %25, %26 : vector<64x128xf32>
    %c56_i32 = arith.constant 56 : i32
    %28 = tpu.dynamic_rotate %25 by %c56_i32 dim 0 : vector<64x128xf32>, i32 -> vector<64x128xf32>
    %29 = arith.addf %27, %28 : vector<64x128xf32>
    %c55_i32 = arith.constant 55 : i32
    %30 = tpu.dynamic_rotate %25 by %c55_i32 dim 0 : vector<64x128xf32>, i32 -> vector<64x128xf32>
    %31 = arith.addf %29, %30 : vector<64x128xf32>
    %cst_11 = arith.constant 2.500000e-01 : f32
    %32 = vector.broadcast %cst_11 : f32 to vector<64x128xf32>
    %33 = arith.mulf %31, %32 : vector<64x128xf32>
    %c0_12 = arith.constant 0 : index
    %c0_13 = arith.constant 0 : index
    %34 = vector.load %arg8[%c0_12, %c0_13] : memref<64x128xf32, #tpu.memory_space<vmem>>, vector<64x128xf32>
    tpu.vector_store %arg8[%c0_12, %c0_13], %33 {strides = array<i32>} : memref<64x128xf32, #tpu.memory_space<vmem>>, vector<64x128xf32>,
    %c0_14 = arith.constant 0 : index
    %c0_15 = arith.constant 0 : index
    %35 = tpu.strided_load %arg8[%c0_14, %c0_15] {strides = array<i32: 2, 1>} : memref<64x128xf32, #tpu.memory_space<vmem>>, vector<4x128xf32>
    %c0_16 = arith.constant 0 : index
    %c0_17 = arith.constant 0 : index
    %36 = vector.load %arg9[%c0_16, %c0_17] : memref<16x128xf32, #tpu.memory_space<vmem>>, vector<4x128xf32>
    tpu.vector_store %arg9[%c0_16, %c0_17], %35 {strides = array<i32>} : memref<16x128xf32, #tpu.memory_space<vmem>>, vector<4x128xf32>,
    %c16 = arith.constant 16 : index
    %c0_18 = arith.constant 0 : index
    %37 = tpu.strided_load %arg8[%c16, %c0_18] {strides = array<i32: 2, 1>} : memref<64x128xf32, #tpu.memory_space<vmem>>, vector<4x128xf32>
    %c4 = arith.constant 4 : index
    %c0_19 = arith.constant 0 : index
    %38 = vector.load %arg9[%c4, %c0_19] : memref<16x128xf32, #tpu.memory_space<vmem>>, vector<4x128xf32>
    tpu.vector_store %arg9[%c4, %c0_19], %37 {strides = array<i32>} : memref<16x128xf32, #tpu.memory_space<vmem>>, vector<4x128xf32>,
    %c32 = arith.constant 32 : index
    %c0_20 = arith.constant 0 : index
    %39 = tpu.strided_load %arg8[%c32, %c0_20] {strides = array<i32: 2, 1>} : memref<64x128xf32, #tpu.memory_space<vmem>>, vector<4x128xf32>
    %c8 = arith.constant 8 : index
    %c0_21 = arith.constant 0 : index
    %40 = vector.load %arg9[%c8, %c0_21] : memref<16x128xf32, #tpu.memory_space<vmem>>, vector<4x128xf32>
    tpu.vector_store %arg9[%c8, %c0_21], %39 {strides = array<i32>} : memref<16x128xf32, #tpu.memory_space<vmem>>, vector<4x128xf32>,
    %c48 = arith.constant 48 : index
    %c0_22 = arith.constant 0 : index
    %41 = tpu.strided_load %arg8[%c48, %c0_22] {strides = array<i32: 2, 1>} : memref<64x128xf32, #tpu.memory_space<vmem>>, vector<4x128xf32>
    %c12 = arith.constant 12 : index
    %c0_23 = arith.constant 0 : index
    %42 = vector.load %arg9[%c12, %c0_23] : memref<16x128xf32, #tpu.memory_space<vmem>>, vector<4x128xf32>
    tpu.vector_store %arg9[%c12, %c0_23], %41 {strides = array<i32>} : memref<16x128xf32, #tpu.memory_space<vmem>>, vector<4x128xf32>,
    %c0_24 = arith.constant 0 : index
    %c0_25 = arith.constant 0 : index
    %43 = vector.load %arg9[%c0_24, %c0_25] : memref<16x128xf32, #tpu.memory_space<vmem>>, vector<16x128xf32>
    %44 = arith.truncf %43 : vector<16x128xf32> to vector<16x128xbf16>
    %c0_26 = arith.constant 0 : index
    %c0_27 = arith.constant 0 : index
    %45 = vector.load %arg5[%c0_26, %c0_27] : memref<128x128xbf16, #tpu.memory_space<vmem>>, vector<128x128xbf16>
    %cst_28 = arith.constant dense<0.000000e+00> : vector<16x128xf32>
    %46 = tpu.matmul %44, %45, %cst_28 {dimension_numbers = #tpu.dot_dimension_numbers<[1], [0], [0], [1], [0, 0, 1, 1], [], []>} : vector<16x128xbf16>, vector<128x128xbf16>, vector<16x128xf32> -> vector<16x128xf32>
    %47 = arith.truncf %46 : vector<16x128xf32> to vector<16x128xbf16>
    %c0_29 = arith.constant 0 : index
    %c0_30 = arith.constant 0 : index
    %c0_31 = arith.constant 0 : index
    %48 = vector.load %arg6[%c0_29, %c0_30, %c0_31] : memref<1x16x128xbf16, #tpu.memory_space<vmem>>, vector<1x16x128xbf16>
    %49 = vector.shape_cast %48 : vector<1x16x128xbf16> to vector<16x128xbf16>
    %50 = vector.shape_cast %47 : vector<16x128xbf16> to vector<1x16x128xbf16>
    tpu.vector_store %arg6[%c0_29, %c0_30, %c0_31], %50 {strides = array<i32>} : memref<1x16x128xbf16, #tpu.memory_space<vmem>>, vector<1x16x128xbf16>,
    %c0_i32 = arith.constant 0 : i32
    %51 = arith.cmpi eq, %arg0, %c0_i32 : i32
    %52 = arith.extui %51 : i1 to i32
    %c0_i32_32 = arith.constant 0 : i32
    %53 = arith.cmpi ne, %52, %c0_i32_32 : i32
    scf.if %53 {
      %cst_39 = arith.constant 0.000000e+00 : f32
      %63 = vector.broadcast %cst_39 : f32 to vector<2x128xf32>
      %c0_40 = arith.constant 0 : index
      %c0_41 = arith.constant 0 : index
      %64 = vector.load %arg7[%c0_40, %c0_41] : memref<2x128xf32, #tpu.memory_space<vmem>>, vector<2x128xf32>
      tpu.vector_store %arg7[%c0_40, %c0_41], %63 {strides = array<i32>} : memref<2x128xf32, #tpu.memory_space<vmem>>, vector<2x128xf32>,
    } else {
    }
    %cst_33 = arith.constant dense<0.000000e+00> : vector<128xf32>
    %54 = vector.multi_reduction <add>, %46, %cst_33 [0] : vector<16x128xf32> to vector<128xf32>
    %55 = vector.shape_cast %54 : vector<128xf32> to vector<1x128xf32>
    %56 = arith.mulf %46, %46 : vector<16x128xf32>
    %cst_34 = arith.constant dense<0.000000e+00> : vector<128xf32>
    %57 = vector.multi_reduction <add>, %56, %cst_34 [0] : vector<16x128xf32> to vector<128xf32>
    %58 = vector.shape_cast %57 : vector<128xf32> to vector<1x128xf32>
    %c0_35 = arith.constant 0 : index
    %c0_36 = arith.constant 0 : index
    %59 = vector.load %arg7[%c0_35, %c0_36] : memref<2x128xf32, #tpu.memory_space<vmem>>, vector<2x128xf32>
    %60 = tpu.concatenate %55, %58 in 0 : vector<1x128xf32>, vector<1x128xf32> -> vector<2x128xf32>
    %61 = arith.addf %59, %60 : vector<2x128xf32>
    %c0_37 = arith.constant 0 : index
    %c0_38 = arith.constant 0 : index
    %62 = vector.load %arg7[%c0_37, %c0_38] : memref<2x128xf32, #tpu.memory_space<vmem>>, vector<2x128xf32>
    tpu.vector_store %arg7[%c0_37, %c0_38], %61 {strides = array<i32>} : memref<2x128xf32, #tpu.memory_space<vmem>>, vector<2x128xf32>,
    return
  }
  func.func @transform_0(%arg0: i32) -> (i32, i32, i32) {
    %c0_i32 = arith.constant 0 : i32
    %c0_i32_0 = arith.constant 0 : i32
    %c0_i32_1 = arith.constant 0 : i32
    return %arg0, %c0_i32, %c0_i32_0 : i32, i32, i32
  }
  func.func @transform_1(%arg0: i32) -> (i32, i32) {
    %c0_i32 = arith.constant 0 : i32
    %c0_i32_0 = arith.constant 0 : i32
    %c0_i32_1 = arith.constant 0 : i32
    return %c0_i32, %c0_i32_0 : i32, i32
  }
  func.func @transform_2(%arg0: i32) -> (i32, i32) {
    %c0_i32 = arith.constant 0 : i32
    %c0_i32_0 = arith.constant 0 : i32
    %c0_i32_1 = arith.constant 0 : i32
    return %c0_i32, %c0_i32_0 : i32, i32
  }
  func.func @transform_3(%arg0: i32) -> (i32, i32) {
    %c0_i32 = arith.constant 0 : i32
    %c0_i32_0 = arith.constant 0 : i32
    %c0_i32_1 = arith.constant 0 : i32
    return %c0_i32, %c0_i32_0 : i32, i32
  }
  func.func @transform_4(%arg0: i32) -> (i32, i32) {
    %c0_i32 = arith.constant 0 : i32
    %c0_i32_0 = arith.constant 0 : i32
    %c0_i32_1 = arith.constant 0 : i32
    return %c0_i32, %c0_i32_0 : i32, i32
  }
  func.func @transform_5(%arg0: i32) -> (i32, i32, i32) {
    %c0_i32 = arith.constant 0 : i32
    %c0_i32_0 = arith.constant 0 : i32
    %c0_i32_1 = arith.constant 0 : i32
    return %arg0, %c0_i32, %c0_i32_0 : i32, i32, i32
  }
  func.func @transform_6(%arg0: i32) -> (i32, i32) {
    %c0_i32 = arith.constant 0 : i32
    %c0_i32_0 = arith.constant 0 : i32
    %c0_i32_1 = arith.constant 0 : i32
    return %c0_i32, %c0_i32_0 : i32, i32
  }
}

module attributes {stable_mosaic.version = 11 : i64} {
  func.func @kernel(%arg0: i32, %arg1: memref<32x128xbf16, #tpu.memory_space<vmem>>, %arg2: memref<2x128xf32, #tpu.memory_space<vmem>>, %arg3: memref<1x128xf32, #tpu.memory_space<vmem>>, %arg4: memref<1x128xf32, #tpu.memory_space<vmem>>, %arg5: memref<128x128xbf16, #tpu.memory_space<vmem>>, %arg6: memref<32x128xbf16, #tpu.memory_space<vmem>>, %arg7: memref<2x128xf32, #tpu.memory_space<vmem>>) attributes {dimension_semantics = [#tpu.dimension_semantics<arbitrary>], iteration_bounds = array<i64: 1>, scalar_prefetch = 0 : i64, scratch_operands = 0 : i64, tpu.core_type = #tpu.core_type<tc>, window_params = [{transform_indices = @transform_0, window_bounds = array<i64: 32, 128>}, {pipeline_mode = #tpu.pipeline_mode<synchronous>, transform_indices = @transform_1, window_bounds = array<i64: 2, 128>}, {pipeline_mode = #tpu.pipeline_mode<synchronous>, transform_indices = @transform_2, window_bounds = array<i64: 1, 128>}, {pipeline_mode = #tpu.pipeline_mode<synchronous>, transform_indices = @transform_3, window_bounds = array<i64: 1, 128>}, {pipeline_mode = #tpu.pipeline_mode<synchronous>, transform_indices = @transform_4, window_bounds = array<i64: 128, 128>}, {transform_indices = @transform_5, window_bounds = array<i64: 32, 128>}, {pipeline_mode = #tpu.pipeline_mode<synchronous>, transform_indices = @transform_6, window_bounds = array<i64: 2, 128>}]} {
    %c0 = arith.constant 0 : index
    %c0_0 = arith.constant 0 : index
    %0 = vector.load %arg2[%c0, %c0_0] : memref<2x128xf32, #tpu.memory_space<vmem>>, vector<2x128xf32>
    %1 = vector.extract_strided_slice %0 {offsets = [0, 0], sizes = [1, 128], strides = [1, 1]} : vector<2x128xf32> to vector<1x128xf32>
    %cst = arith.constant 3.125000e-02 : f32
    %2 = vector.broadcast %cst : f32 to vector<1x128xf32>
    %3 = arith.mulf %1, %2 : vector<1x128xf32>
    %4 = vector.extract_strided_slice %0 {offsets = [1, 0], sizes = [1, 128], strides = [1, 1]} : vector<2x128xf32> to vector<1x128xf32>
    %cst_1 = arith.constant 3.125000e-02 : f32
    %5 = vector.broadcast %cst_1 : f32 to vector<1x128xf32>
    %6 = arith.mulf %4, %5 : vector<1x128xf32>
    %7 = arith.mulf %3, %3 : vector<1x128xf32>
    %8 = arith.subf %6, %7 : vector<1x128xf32>
    %c0_2 = arith.constant 0 : index
    %c0_3 = arith.constant 0 : index
    %9 = vector.load %arg3[%c0_2, %c0_3] : memref<1x128xf32, #tpu.memory_space<vmem>>, vector<1x128xf32>
    %cst_4 = arith.constant 9.99999974E-6 : f32
    %10 = vector.broadcast %cst_4 : f32 to vector<1x128xf32>
    %11 = arith.addf %8, %10 : vector<1x128xf32>
    %12 = math.rsqrt %11 : vector<1x128xf32>
    %13 = arith.mulf %9, %12 : vector<1x128xf32>
    %c0_5 = arith.constant 0 : index
    %c0_6 = arith.constant 0 : index
    %14 = vector.load %arg4[%c0_5, %c0_6] : memref<1x128xf32, #tpu.memory_space<vmem>>, vector<1x128xf32>
    %15 = arith.mulf %3, %13 : vector<1x128xf32>
    %16 = arith.subf %14, %15 : vector<1x128xf32>
    %c0_7 = arith.constant 0 : index
    %c0_8 = arith.constant 0 : index
    %17 = vector.load %arg1[%c0_7, %c0_8] : memref<32x128xbf16, #tpu.memory_space<vmem>>, vector<32x128xbf16>
    %18 = arith.extf %17 : vector<32x128xbf16> to vector<32x128xf32>
    %19 = vector.broadcast %13 : vector<1x128xf32> to vector<32x128xf32>
    %20 = arith.mulf %18, %19 : vector<32x128xf32>
    %21 = vector.broadcast %16 : vector<1x128xf32> to vector<32x128xf32>
    %22 = arith.addf %20, %21 : vector<32x128xf32>
    %cst_9 = arith.constant 0.000000e+00 : f32
    %23 = vector.broadcast %cst_9 : f32 to vector<32x128xf32>
    %24 = arith.maximumf %22, %23 : vector<32x128xf32>
    %25 = arith.truncf %24 : vector<32x128xf32> to vector<32x128xbf16>
    %c0_10 = arith.constant 0 : index
    %c0_11 = arith.constant 0 : index
    %26 = vector.load %arg5[%c0_10, %c0_11] : memref<128x128xbf16, #tpu.memory_space<vmem>>, vector<128x128xbf16>
    %cst_12 = arith.constant dense<0.000000e+00> : vector<32x128xf32>
    %27 = tpu.matmul %25, %26, %cst_12 {dimension_numbers = #tpu.dot_dimension_numbers<[1], [0], [0], [1], [0, 0, 1, 1], [], []>} : vector<32x128xbf16>, vector<128x128xbf16>, vector<32x128xf32> -> vector<32x128xf32>
    %28 = arith.truncf %27 : vector<32x128xf32> to vector<32x128xbf16>
    %c0_13 = arith.constant 0 : index
    %c0_14 = arith.constant 0 : index
    %29 = vector.load %arg6[%c0_13, %c0_14] : memref<32x128xbf16, #tpu.memory_space<vmem>>, vector<32x128xbf16>
    tpu.vector_store %arg6[%c0_13, %c0_14], %28 {strides = array<i32>} : memref<32x128xbf16, #tpu.memory_space<vmem>>, vector<32x128xbf16>,
    %c0_i32 = arith.constant 0 : i32
    %30 = arith.cmpi eq, %arg0, %c0_i32 : i32
    %31 = arith.extui %30 : i1 to i32
    %c0_i32_15 = arith.constant 0 : i32
    %32 = arith.cmpi ne, %31, %c0_i32_15 : i32
    scf.if %32 {
      %cst_22 = arith.constant 0.000000e+00 : f32
      %42 = vector.broadcast %cst_22 : f32 to vector<2x128xf32>
      %c0_23 = arith.constant 0 : index
      %c0_24 = arith.constant 0 : index
      %43 = vector.load %arg7[%c0_23, %c0_24] : memref<2x128xf32, #tpu.memory_space<vmem>>, vector<2x128xf32>
      tpu.vector_store %arg7[%c0_23, %c0_24], %42 {strides = array<i32>} : memref<2x128xf32, #tpu.memory_space<vmem>>, vector<2x128xf32>,
    } else {
    }
    %cst_16 = arith.constant dense<0.000000e+00> : vector<128xf32>
    %33 = vector.multi_reduction <add>, %27, %cst_16 [0] : vector<32x128xf32> to vector<128xf32>
    %34 = vector.shape_cast %33 : vector<128xf32> to vector<1x128xf32>
    %35 = arith.mulf %27, %27 : vector<32x128xf32>
    %cst_17 = arith.constant dense<0.000000e+00> : vector<128xf32>
    %36 = vector.multi_reduction <add>, %35, %cst_17 [0] : vector<32x128xf32> to vector<128xf32>
    %37 = vector.shape_cast %36 : vector<128xf32> to vector<1x128xf32>
    %c0_18 = arith.constant 0 : index
    %c0_19 = arith.constant 0 : index
    %38 = vector.load %arg7[%c0_18, %c0_19] : memref<2x128xf32, #tpu.memory_space<vmem>>, vector<2x128xf32>
    %39 = tpu.concatenate %34, %37 in 0 : vector<1x128xf32>, vector<1x128xf32> -> vector<2x128xf32>
    %40 = arith.addf %38, %39 : vector<2x128xf32>
    %c0_20 = arith.constant 0 : index
    %c0_21 = arith.constant 0 : index
    %41 = vector.load %arg7[%c0_20, %c0_21] : memref<2x128xf32, #tpu.memory_space<vmem>>, vector<2x128xf32>
    tpu.vector_store %arg7[%c0_20, %c0_21], %40 {strides = array<i32>} : memref<2x128xf32, #tpu.memory_space<vmem>>, vector<2x128xf32>,
    return
  }
  func.func @transform_0(%arg0: i32) -> (i32, i32) {
    %c0_i32 = arith.constant 0 : i32
    %c0_i32_0 = arith.constant 0 : i32
    return %arg0, %c0_i32 : i32, i32
  }
  func.func @transform_1(%arg0: i32) -> (i32, i32) {
    %c0_i32 = arith.constant 0 : i32
    %c0_i32_0 = arith.constant 0 : i32
    %c0_i32_1 = arith.constant 0 : i32
    return %c0_i32, %c0_i32_0 : i32, i32
  }
  func.func @transform_2(%arg0: i32) -> (i32, i32) {
    %c0_i32 = arith.constant 0 : i32
    %c0_i32_0 = arith.constant 0 : i32
    %c0_i32_1 = arith.constant 0 : i32
    return %c0_i32, %c0_i32_0 : i32, i32
  }
  func.func @transform_3(%arg0: i32) -> (i32, i32) {
    %c0_i32 = arith.constant 0 : i32
    %c0_i32_0 = arith.constant 0 : i32
    %c0_i32_1 = arith.constant 0 : i32
    return %c0_i32, %c0_i32_0 : i32, i32
  }
  func.func @transform_4(%arg0: i32) -> (i32, i32) {
    %c0_i32 = arith.constant 0 : i32
    %c0_i32_0 = arith.constant 0 : i32
    %c0_i32_1 = arith.constant 0 : i32
    return %c0_i32, %c0_i32_0 : i32, i32
  }
  func.func @transform_5(%arg0: i32) -> (i32, i32) {
    %c0_i32 = arith.constant 0 : i32
    %c0_i32_0 = arith.constant 0 : i32
    return %arg0, %c0_i32 : i32, i32
  }
  func.func @transform_6(%arg0: i32) -> (i32, i32) {
    %c0_i32 = arith.constant 0 : i32
    %c0_i32_0 = arith.constant 0 : i32
    %c0_i32_1 = arith.constant 0 : i32
    return %c0_i32, %c0_i32_0 : i32, i32
  }
}

module attributes {stable_mosaic.version = 11 : i64} {
  func.func @kernel(%arg0: memref<32x128xbf16, #tpu.memory_space<vmem>>, %arg1: memref<2x128xf32, #tpu.memory_space<vmem>>, %arg2: memref<1x128xf32, #tpu.memory_space<vmem>>, %arg3: memref<1x128xf32, #tpu.memory_space<vmem>>, %arg4: memref<128x128xbf16, #tpu.memory_space<vmem>>, %arg5: memref<1x128xf32, #tpu.memory_space<vmem>>, %arg6: memref<2x128xf32, #tpu.memory_space<vmem>>) attributes {dimension_semantics = [], scalar_prefetch = 0 : i64, scratch_operands = 0 : i64, tpu.core_type = #tpu.core_type<tc>} {
    %c0 = arith.constant 0 : index
    %c0_0 = arith.constant 0 : index
    %0 = vector.load %arg1[%c0, %c0_0] : memref<2x128xf32, #tpu.memory_space<vmem>>, vector<2x128xf32>
    %1 = vector.extract_strided_slice %0 {offsets = [0, 0], sizes = [1, 128], strides = [1, 1]} : vector<2x128xf32> to vector<1x128xf32>
    %cst = arith.constant 3.125000e-02 : f32
    %2 = vector.broadcast %cst : f32 to vector<1x128xf32>
    %3 = arith.mulf %1, %2 : vector<1x128xf32>
    %4 = vector.extract_strided_slice %0 {offsets = [1, 0], sizes = [1, 128], strides = [1, 1]} : vector<2x128xf32> to vector<1x128xf32>
    %cst_1 = arith.constant 3.125000e-02 : f32
    %5 = vector.broadcast %cst_1 : f32 to vector<1x128xf32>
    %6 = arith.mulf %4, %5 : vector<1x128xf32>
    %7 = arith.mulf %3, %3 : vector<1x128xf32>
    %8 = arith.subf %6, %7 : vector<1x128xf32>
    %c0_2 = arith.constant 0 : index
    %c0_3 = arith.constant 0 : index
    %9 = vector.load %arg2[%c0_2, %c0_3] : memref<1x128xf32, #tpu.memory_space<vmem>>, vector<1x128xf32>
    %cst_4 = arith.constant 9.99999974E-6 : f32
    %10 = vector.broadcast %cst_4 : f32 to vector<1x128xf32>
    %11 = arith.addf %8, %10 : vector<1x128xf32>
    %12 = math.rsqrt %11 : vector<1x128xf32>
    %13 = arith.mulf %9, %12 : vector<1x128xf32>
    %c0_5 = arith.constant 0 : index
    %c0_6 = arith.constant 0 : index
    %14 = vector.load %arg3[%c0_5, %c0_6] : memref<1x128xf32, #tpu.memory_space<vmem>>, vector<1x128xf32>
    %15 = arith.mulf %3, %13 : vector<1x128xf32>
    %16 = arith.subf %14, %15 : vector<1x128xf32>
    %c0_7 = arith.constant 0 : index
    %c0_8 = arith.constant 0 : index
    %17 = vector.load %arg0[%c0_7, %c0_8] : memref<32x128xbf16, #tpu.memory_space<vmem>>, vector<16x128xbf16>
    %18 = arith.extf %17 : vector<16x128xbf16> to vector<16x128xf32>
    %19 = vector.broadcast %13 : vector<1x128xf32> to vector<16x128xf32>
    %20 = arith.mulf %18, %19 : vector<16x128xf32>
    %21 = vector.broadcast %16 : vector<1x128xf32> to vector<16x128xf32>
    %22 = arith.addf %20, %21 : vector<16x128xf32>
    %cst_9 = arith.constant 0.000000e+00 : f32
    %23 = vector.broadcast %cst_9 : f32 to vector<16x128xf32>
    %24 = arith.maximumf %22, %23 : vector<16x128xf32>
    %cst_10 = arith.constant dense<0.000000e+00> : vector<128xf32>
    %25 = vector.multi_reduction <add>, %24, %cst_10 [0] : vector<16x128xf32> to vector<128xf32>
    %26 = vector.shape_cast %25 : vector<128xf32> to vector<1x128xf32>
    %cst_11 = arith.constant 6.250000e-02 : f32
    %27 = vector.broadcast %cst_11 : f32 to vector<1x128xf32>
    %28 = arith.mulf %26, %27 : vector<1x128xf32>
    %c16 = arith.constant 16 : index
    %c0_12 = arith.constant 0 : index
    %29 = vector.load %arg0[%c16, %c0_12] : memref<32x128xbf16, #tpu.memory_space<vmem>>, vector<16x128xbf16>
    %30 = arith.extf %29 : vector<16x128xbf16> to vector<16x128xf32>
    %31 = vector.broadcast %13 : vector<1x128xf32> to vector<16x128xf32>
    %32 = arith.mulf %30, %31 : vector<16x128xf32>
    %33 = vector.broadcast %16 : vector<1x128xf32> to vector<16x128xf32>
    %34 = arith.addf %32, %33 : vector<16x128xf32>
    %cst_13 = arith.constant 0.000000e+00 : f32
    %35 = vector.broadcast %cst_13 : f32 to vector<16x128xf32>
    %36 = arith.maximumf %34, %35 : vector<16x128xf32>
    %cst_14 = arith.constant dense<0.000000e+00> : vector<128xf32>
    %37 = vector.multi_reduction <add>, %36, %cst_14 [0] : vector<16x128xf32> to vector<128xf32>
    %38 = vector.shape_cast %37 : vector<128xf32> to vector<1x128xf32>
    %cst_15 = arith.constant 6.250000e-02 : f32
    %39 = vector.broadcast %cst_15 : f32 to vector<1x128xf32>
    %40 = arith.mulf %38, %39 : vector<1x128xf32>
    %41 = tpu.concatenate %28, %40 in 0 : vector<1x128xf32>, vector<1x128xf32> -> vector<2x128xf32>
    %42 = arith.truncf %41 : vector<2x128xf32> to vector<2x128xbf16>
    %c0_16 = arith.constant 0 : index
    %c0_17 = arith.constant 0 : index
    %43 = vector.load %arg4[%c0_16, %c0_17] : memref<128x128xbf16, #tpu.memory_space<vmem>>, vector<128x128xbf16>
    %cst_18 = arith.constant dense<0.000000e+00> : vector<2x128xf32>
    %44 = tpu.matmul %42, %43, %cst_18 {dimension_numbers = #tpu.dot_dimension_numbers<[1], [0], [0], [1], [0, 0, 1, 1], [], []>} : vector<2x128xbf16>, vector<128x128xbf16>, vector<2x128xf32> -> vector<2x128xf32>
    %c0_19 = arith.constant 0 : index
    %c0_20 = arith.constant 0 : index
    %45 = vector.load %arg5[%c0_19, %c0_20] : memref<1x128xf32, #tpu.memory_space<vmem>>, vector<1x128xf32>
    %46 = vector.broadcast %45 : vector<1x128xf32> to vector<2x128xf32>
    %47 = arith.addf %44, %46 : vector<2x128xf32>
    %c0_21 = arith.constant 0 : index
    %c0_22 = arith.constant 0 : index
    %48 = vector.load %arg6[%c0_21, %c0_22] : memref<2x128xf32, #tpu.memory_space<vmem>>, vector<2x128xf32>
    tpu.vector_store %arg6[%c0_21, %c0_22], %47 {strides = array<i32>} : memref<2x128xf32, #tpu.memory_space<vmem>>, vector<2x128xf32>,
    return
  }
}

module attributes {stable_mosaic.version = 11 : i64} {
  func.func @kernel(%arg0: i32, %arg1: memref<1x16x128xbf16, #tpu.memory_space<vmem>>, %arg2: memref<2x128xf32, #tpu.memory_space<vmem>>, %arg3: memref<1x128xf32, #tpu.memory_space<vmem>>, %arg4: memref<1x128xf32, #tpu.memory_space<vmem>>, %arg5: memref<1152x128xbf16, #tpu.memory_space<vmem>>, %arg6: memref<1x16x128xbf16, #tpu.memory_space<vmem>>, %arg7: memref<1x16x128xbf16, #tpu.memory_space<vmem>>, %arg8: memref<2x128xf32, #tpu.memory_space<vmem>>, %arg9: memref<16x1152xbf16, #tpu.memory_space<vmem>>) attributes {dimension_semantics = [#tpu.dimension_semantics<arbitrary>], iteration_bounds = array<i64: 2>, scalar_prefetch = 0 : i64, scratch_operands = 1 : i64, tpu.core_type = #tpu.core_type<tc>, window_params = [{transform_indices = @transform_0, window_bounds = array<i64: 1, 16, 128>}, {pipeline_mode = #tpu.pipeline_mode<synchronous>, transform_indices = @transform_1, window_bounds = array<i64: 2, 128>}, {pipeline_mode = #tpu.pipeline_mode<synchronous>, transform_indices = @transform_2, window_bounds = array<i64: 1, 128>}, {pipeline_mode = #tpu.pipeline_mode<synchronous>, transform_indices = @transform_3, window_bounds = array<i64: 1, 128>}, {pipeline_mode = #tpu.pipeline_mode<synchronous>, transform_indices = @transform_4, window_bounds = array<i64: 1152, 128>}, {transform_indices = @transform_5, window_bounds = array<i64: 1, 16, 128>}, {transform_indices = @transform_6, window_bounds = array<i64: 1, 16, 128>}, {pipeline_mode = #tpu.pipeline_mode<synchronous>, transform_indices = @transform_7, window_bounds = array<i64: 2, 128>}]} {
    %c0 = arith.constant 0 : index
    %c0_0 = arith.constant 0 : index
    %c0_1 = arith.constant 0 : index
    %0 = vector.load %arg1[%c0, %c0_0, %c0_1] : memref<1x16x128xbf16, #tpu.memory_space<vmem>>, vector<1x16x128xbf16>
    %1 = vector.shape_cast %0 : vector<1x16x128xbf16> to vector<16x128xbf16>
    %2 = arith.extf %1 : vector<16x128xbf16> to vector<16x128xf32>
    %c0_2 = arith.constant 0 : index
    %c0_3 = arith.constant 0 : index
    %3 = vector.load %arg2[%c0_2, %c0_3] : memref<2x128xf32, #tpu.memory_space<vmem>>, vector<2x128xf32>
    %4 = vector.extract_strided_slice %3 {offsets = [0, 0], sizes = [1, 128], strides = [1, 1]} : vector<2x128xf32> to vector<1x128xf32>
    %cst = arith.constant 3.125000e-02 : f32
    %5 = vector.broadcast %cst : f32 to vector<1x128xf32>
    %6 = arith.mulf %4, %5 : vector<1x128xf32>
    %7 = vector.extract_strided_slice %3 {offsets = [1, 0], sizes = [1, 128], strides = [1, 1]} : vector<2x128xf32> to vector<1x128xf32>
    %cst_4 = arith.constant 3.125000e-02 : f32
    %8 = vector.broadcast %cst_4 : f32 to vector<1x128xf32>
    %9 = arith.mulf %7, %8 : vector<1x128xf32>
    %10 = arith.mulf %6, %6 : vector<1x128xf32>
    %11 = arith.subf %9, %10 : vector<1x128xf32>
    %c0_5 = arith.constant 0 : index
    %c0_6 = arith.constant 0 : index
    %12 = vector.load %arg3[%c0_5, %c0_6] : memref<1x128xf32, #tpu.memory_space<vmem>>, vector<1x128xf32>
    %cst_7 = arith.constant 9.99999974E-6 : f32
    %13 = vector.broadcast %cst_7 : f32 to vector<1x128xf32>
    %14 = arith.addf %11, %13 : vector<1x128xf32>
    %15 = math.rsqrt %14 : vector<1x128xf32>
    %16 = arith.mulf %12, %15 : vector<1x128xf32>
    %c0_8 = arith.constant 0 : index
    %c0_9 = arith.constant 0 : index
    %17 = vector.load %arg4[%c0_8, %c0_9] : memref<1x128xf32, #tpu.memory_space<vmem>>, vector<1x128xf32>
    %18 = arith.mulf %6, %16 : vector<1x128xf32>
    %19 = arith.subf %17, %18 : vector<1x128xf32>
    %20 = vector.broadcast %16 : vector<1x128xf32> to vector<16x128xf32>
    %21 = arith.mulf %2, %20 : vector<16x128xf32>
    %22 = vector.broadcast %19 : vector<1x128xf32> to vector<16x128xf32>
    %23 = arith.addf %21, %22 : vector<16x128xf32>
    %cst_10 = arith.constant 0.000000e+00 : f32
    %24 = vector.broadcast %cst_10 : f32 to vector<16x128xf32>
    %25 = arith.maximumf %23, %24 : vector<16x128xf32>
    %26 = tpu.iota {dimensions = array<i32: 0>} : vector<16x128xi32>
    %c3_i32 = arith.constant 3 : i32
    %27 = vector.broadcast %c3_i32 : i32 to vector<16x128xi32>
    %28 = arith.andi %26, %27 : vector<16x128xi32>
    %c2_i32 = arith.constant 2 : i32
    %29 = vector.broadcast %c2_i32 : i32 to vector<16x128xi32>
    %30 = arith.shrsi %26, %29 : vector<16x128xi32>
    %c5_i32 = arith.constant 5 : i32
    %31 = tpu.dynamic_rotate %25 by %c5_i32 dim 0 : vector<16x128xf32>, i32 -> vector<16x128xf32>
    %c1_i32 = arith.constant 1 : i32
    %32 = vector.broadcast %c1_i32 : i32 to vector<16x128xi32>
    %33 = arith.cmpi sge, %30, %32 : vector<16x128xi32>
    %c1_i32_11 = arith.constant 1 : i32
    %34 = vector.broadcast %c1_i32_11 : i32 to vector<16x128xi32>
    %35 = arith.cmpi sge, %28, %34 : vector<16x128xi32>
    %36 = arith.andi %33, %35 : vector<16x128xi1>
    %cst_12 = arith.constant 0.000000e+00 : f32
    %37 = vector.broadcast %cst_12 : f32 to vector<16x128xf32>
    %38 = arith.select %36, %31, %37 : vector<16x128xi1>, vector<16x128xf32>
    %39 = arith.truncf %38 : vector<16x128xf32> to vector<16x128xbf16>
    %c0_13 = arith.constant 0 : index
    %c0_14 = arith.constant 0 : index
    %40 = vector.load %arg9[%c0_13, %c0_14] : memref<16x1152xbf16, #tpu.memory_space<vmem>>, vector<16x128xbf16>
    tpu.vector_store %arg9[%c0_13, %c0_14], %39 {strides = array<i32>} : memref<16x1152xbf16, #tpu.memory_space<vmem>>, vector<16x128xbf16>,
    %c4_i32 = arith.constant 4 : i32
    %41 = tpu.dynamic_rotate %25 by %c4_i32 dim 0 : vector<16x128xf32>, i32 -> vector<16x128xf32>
    %c1_i32_15 = arith.constant 1 : i32
    %42 = vector.broadcast %c1_i32_15 : i32 to vector<16x128xi32>
    %43 = arith.cmpi sge, %30, %42 : vector<16x128xi32>
    %cst_16 = arith.constant 0.000000e+00 : f32
    %44 = vector.broadcast %cst_16 : f32 to vector<16x128xf32>
    %45 = arith.select %43, %41, %44 : vector<16x128xi1>, vector<16x128xf32>
    %46 = arith.truncf %45 : vector<16x128xf32> to vector<16x128xbf16>
    %c0_17 = arith.constant 0 : index
    %c128 = arith.constant 128 : index
    %47 = vector.load %arg9[%c0_17, %c128] : memref<16x1152xbf16, #tpu.memory_space<vmem>>, vector<16x128xbf16>
    tpu.vector_store %arg9[%c0_17, %c128], %46 {strides = array<i32>} : memref<16x1152xbf16, #tpu.memory_space<vmem>>, vector<16x128xbf16>,
    %c3_i32_18 = arith.constant 3 : i32
    %48 = tpu.dynamic_rotate %25 by %c3_i32_18 dim 0 : vector<16x128xf32>, i32 -> vector<16x128xf32>
    %c1_i32_19 = arith.constant 1 : i32
    %49 = vector.broadcast %c1_i32_19 : i32 to vector<16x128xi32>
    %50 = arith.cmpi sge, %30, %49 : vector<16x128xi32>
    %c2_i32_20 = arith.constant 2 : i32
    %51 = vector.broadcast %c2_i32_20 : i32 to vector<16x128xi32>
    %52 = arith.cmpi sle, %28, %51 : vector<16x128xi32>
    %53 = arith.andi %50, %52 : vector<16x128xi1>
    %cst_21 = arith.constant 0.000000e+00 : f32
    %54 = vector.broadcast %cst_21 : f32 to vector<16x128xf32>
    %55 = arith.select %53, %48, %54 : vector<16x128xi1>, vector<16x128xf32>
    %56 = arith.truncf %55 : vector<16x128xf32> to vector<16x128xbf16>
    %c0_22 = arith.constant 0 : index
    %c256 = arith.constant 256 : index
    %57 = vector.load %arg9[%c0_22, %c256] : memref<16x1152xbf16, #tpu.memory_space<vmem>>, vector<16x128xbf16>
    tpu.vector_store %arg9[%c0_22, %c256], %56 {strides = array<i32>} : memref<16x1152xbf16, #tpu.memory_space<vmem>>, vector<16x128xbf16>,
    %c1_i32_23 = arith.constant 1 : i32
    %58 = tpu.dynamic_rotate %25 by %c1_i32_23 dim 0 : vector<16x128xf32>, i32 -> vector<16x128xf32>
    %c1_i32_24 = arith.constant 1 : i32
    %59 = vector.broadcast %c1_i32_24 : i32 to vector<16x128xi32>
    %60 = arith.cmpi sge, %28, %59 : vector<16x128xi32>
    %cst_25 = arith.constant 0.000000e+00 : f32
    %61 = vector.broadcast %cst_25 : f32 to vector<16x128xf32>
    %62 = arith.select %60, %58, %61 : vector<16x128xi1>, vector<16x128xf32>
    %63 = arith.truncf %62 : vector<16x128xf32> to vector<16x128xbf16>
    %c0_26 = arith.constant 0 : index
    %c384 = arith.constant 384 : index
    %64 = vector.load %arg9[%c0_26, %c384] : memref<16x1152xbf16, #tpu.memory_space<vmem>>, vector<16x128xbf16>
    tpu.vector_store %arg9[%c0_26, %c384], %63 {strides = array<i32>} : memref<16x1152xbf16, #tpu.memory_space<vmem>>, vector<16x128xbf16>,
    %65 = arith.truncf %25 : vector<16x128xf32> to vector<16x128xbf16>
    %c0_27 = arith.constant 0 : index
    %c512 = arith.constant 512 : index
    %66 = vector.load %arg9[%c0_27, %c512] : memref<16x1152xbf16, #tpu.memory_space<vmem>>, vector<16x128xbf16>
    tpu.vector_store %arg9[%c0_27, %c512], %65 {strides = array<i32>} : memref<16x1152xbf16, #tpu.memory_space<vmem>>, vector<16x128xbf16>,
    %c15_i32 = arith.constant 15 : i32
    %67 = tpu.dynamic_rotate %25 by %c15_i32 dim 0 : vector<16x128xf32>, i32 -> vector<16x128xf32>
    %c2_i32_28 = arith.constant 2 : i32
    %68 = vector.broadcast %c2_i32_28 : i32 to vector<16x128xi32>
    %69 = arith.cmpi sle, %28, %68 : vector<16x128xi32>
    %cst_29 = arith.constant 0.000000e+00 : f32
    %70 = vector.broadcast %cst_29 : f32 to vector<16x128xf32>
    %71 = arith.select %69, %67, %70 : vector<16x128xi1>, vector<16x128xf32>
    %72 = arith.truncf %71 : vector<16x128xf32> to vector<16x128xbf16>
    %c0_30 = arith.constant 0 : index
    %c640 = arith.constant 640 : index
    %73 = vector.load %arg9[%c0_30, %c640] : memref<16x1152xbf16, #tpu.memory_space<vmem>>, vector<16x128xbf16>
    tpu.vector_store %arg9[%c0_30, %c640], %72 {strides = array<i32>} : memref<16x1152xbf16, #tpu.memory_space<vmem>>, vector<16x128xbf16>,
    %c13_i32 = arith.constant 13 : i32
    %74 = tpu.dynamic_rotate %25 by %c13_i32 dim 0 : vector<16x128xf32>, i32 -> vector<16x128xf32>
    %c2_i32_31 = arith.constant 2 : i32
    %75 = vector.broadcast %c2_i32_31 : i32 to vector<16x128xi32>
    %76 = arith.cmpi sle, %30, %75 : vector<16x128xi32>
    %c1_i32_32 = arith.constant 1 : i32
    %77 = vector.broadcast %c1_i32_32 : i32 to vector<16x128xi32>
    %78 = arith.cmpi sge, %28, %77 : vector<16x128xi32>
    %79 = arith.andi %76, %78 : vector<16x128xi1>
    %cst_33 = arith.constant 0.000000e+00 : f32
    %80 = vector.broadcast %cst_33 : f32 to vector<16x128xf32>
    %81 = arith.select %79, %74, %80 : vector<16x128xi1>, vector<16x128xf32>
    %82 = arith.truncf %81 : vector<16x128xf32> to vector<16x128xbf16>
    %c0_34 = arith.constant 0 : index
    %c768 = arith.constant 768 : index
    %83 = vector.load %arg9[%c0_34, %c768] : memref<16x1152xbf16, #tpu.memory_space<vmem>>, vector<16x128xbf16>
    tpu.vector_store %arg9[%c0_34, %c768], %82 {strides = array<i32>} : memref<16x1152xbf16, #tpu.memory_space<vmem>>, vector<16x128xbf16>,
    %c12_i32 = arith.constant 12 : i32
    %84 = tpu.dynamic_rotate %25 by %c12_i32 dim 0 : vector<16x128xf32>, i32 -> vector<16x128xf32>
    %c2_i32_35 = arith.constant 2 : i32
    %85 = vector.broadcast %c2_i32_35 : i32 to vector<16x128xi32>
    %86 = arith.cmpi sle, %30, %85 : vector<16x128xi32>
    %cst_36 = arith.constant 0.000000e+00 : f32
    %87 = vector.broadcast %cst_36 : f32 to vector<16x128xf32>
    %88 = arith.select %86, %84, %87 : vector<16x128xi1>, vector<16x128xf32>
    %89 = arith.truncf %88 : vector<16x128xf32> to vector<16x128xbf16>
    %c0_37 = arith.constant 0 : index
    %c896 = arith.constant 896 : index
    %90 = vector.load %arg9[%c0_37, %c896] : memref<16x1152xbf16, #tpu.memory_space<vmem>>, vector<16x128xbf16>
    tpu.vector_store %arg9[%c0_37, %c896], %89 {strides = array<i32>} : memref<16x1152xbf16, #tpu.memory_space<vmem>>, vector<16x128xbf16>,
    %c11_i32 = arith.constant 11 : i32
    %91 = tpu.dynamic_rotate %25 by %c11_i32 dim 0 : vector<16x128xf32>, i32 -> vector<16x128xf32>
    %c2_i32_38 = arith.constant 2 : i32
    %92 = vector.broadcast %c2_i32_38 : i32 to vector<16x128xi32>
    %93 = arith.cmpi sle, %30, %92 : vector<16x128xi32>
    %c2_i32_39 = arith.constant 2 : i32
    %94 = vector.broadcast %c2_i32_39 : i32 to vector<16x128xi32>
    %95 = arith.cmpi sle, %28, %94 : vector<16x128xi32>
    %96 = arith.andi %93, %95 : vector<16x128xi1>
    %cst_40 = arith.constant 0.000000e+00 : f32
    %97 = vector.broadcast %cst_40 : f32 to vector<16x128xf32>
    %98 = arith.select %96, %91, %97 : vector<16x128xi1>, vector<16x128xf32>
    %99 = arith.truncf %98 : vector<16x128xf32> to vector<16x128xbf16>
    %c0_41 = arith.constant 0 : index
    %c1024 = arith.constant 1024 : index
    %100 = vector.load %arg9[%c0_41, %c1024] : memref<16x1152xbf16, #tpu.memory_space<vmem>>, vector<16x128xbf16>
    tpu.vector_store %arg9[%c0_41, %c1024], %99 {strides = array<i32>} : memref<16x1152xbf16, #tpu.memory_space<vmem>>, vector<16x128xbf16>,
    %c0_42 = arith.constant 0 : index
    %c0_43 = arith.constant 0 : index
    %101 = vector.load %arg9[%c0_42, %c0_43] : memref<16x1152xbf16, #tpu.memory_space<vmem>>, vector<16x1152xbf16>
    %c0_44 = arith.constant 0 : index
    %c0_45 = arith.constant 0 : index
    %102 = vector.load %arg5[%c0_44, %c0_45] : memref<1152x128xbf16, #tpu.memory_space<vmem>>, vector<1152x128xbf16>
    %cst_46 = arith.constant dense<0.000000e+00> : vector<16x128xf32>
    %103 = tpu.matmul %101, %102, %cst_46 {dimension_numbers = #tpu.dot_dimension_numbers<[1], [0], [0], [1], [0, 0, 1, 1], [], []>} : vector<16x1152xbf16>, vector<1152x128xbf16>, vector<16x128xf32> -> vector<16x128xf32>
    %c0_47 = arith.constant 0 : index
    %c0_48 = arith.constant 0 : index
    %c0_49 = arith.constant 0 : index
    %104 = vector.load %arg6[%c0_47, %c0_48, %c0_49] : memref<1x16x128xbf16, #tpu.memory_space<vmem>>, vector<1x16x128xbf16>
    %105 = vector.shape_cast %104 : vector<1x16x128xbf16> to vector<16x128xbf16>
    %106 = arith.extf %105 : vector<16x128xbf16> to vector<16x128xf32>
    %107 = arith.addf %103, %106 : vector<16x128xf32>
    %108 = arith.truncf %107 : vector<16x128xf32> to vector<16x128xbf16>
    %c0_50 = arith.constant 0 : index
    %c0_51 = arith.constant 0 : index
    %c0_52 = arith.constant 0 : index
    %109 = vector.load %arg7[%c0_50, %c0_51, %c0_52] : memref<1x16x128xbf16, #tpu.memory_space<vmem>>, vector<1x16x128xbf16>
    %110 = vector.shape_cast %109 : vector<1x16x128xbf16> to vector<16x128xbf16>
    %111 = vector.shape_cast %108 : vector<16x128xbf16> to vector<1x16x128xbf16>
    tpu.vector_store %arg7[%c0_50, %c0_51, %c0_52], %111 {strides = array<i32>} : memref<1x16x128xbf16, #tpu.memory_space<vmem>>, vector<1x16x128xbf16>,
    %c0_i32 = arith.constant 0 : i32
    %112 = arith.cmpi eq, %arg0, %c0_i32 : i32
    %113 = arith.extui %112 : i1 to i32
    %c0_i32_53 = arith.constant 0 : i32
    %114 = arith.cmpi ne, %113, %c0_i32_53 : i32
    scf.if %114 {
      %cst_60 = arith.constant 0.000000e+00 : f32
      %124 = vector.broadcast %cst_60 : f32 to vector<2x128xf32>
      %c0_61 = arith.constant 0 : index
      %c0_62 = arith.constant 0 : index
      %125 = vector.load %arg8[%c0_61, %c0_62] : memref<2x128xf32, #tpu.memory_space<vmem>>, vector<2x128xf32>
      tpu.vector_store %arg8[%c0_61, %c0_62], %124 {strides = array<i32>} : memref<2x128xf32, #tpu.memory_space<vmem>>, vector<2x128xf32>,
    } else {
    }
    %cst_54 = arith.constant dense<0.000000e+00> : vector<128xf32>
    %115 = vector.multi_reduction <add>, %107, %cst_54 [0] : vector<16x128xf32> to vector<128xf32>
    %116 = vector.shape_cast %115 : vector<128xf32> to vector<1x128xf32>
    %117 = arith.mulf %107, %107 : vector<16x128xf32>
    %cst_55 = arith.constant dense<0.000000e+00> : vector<128xf32>
    %118 = vector.multi_reduction <add>, %117, %cst_55 [0] : vector<16x128xf32> to vector<128xf32>
    %119 = vector.shape_cast %118 : vector<128xf32> to vector<1x128xf32>
    %c0_56 = arith.constant 0 : index
    %c0_57 = arith.constant 0 : index
    %120 = vector.load %arg8[%c0_56, %c0_57] : memref<2x128xf32, #tpu.memory_space<vmem>>, vector<2x128xf32>
    %121 = tpu.concatenate %116, %119 in 0 : vector<1x128xf32>, vector<1x128xf32> -> vector<2x128xf32>
    %122 = arith.addf %120, %121 : vector<2x128xf32>
    %c0_58 = arith.constant 0 : index
    %c0_59 = arith.constant 0 : index
    %123 = vector.load %arg8[%c0_58, %c0_59] : memref<2x128xf32, #tpu.memory_space<vmem>>, vector<2x128xf32>
    tpu.vector_store %arg8[%c0_58, %c0_59], %122 {strides = array<i32>} : memref<2x128xf32, #tpu.memory_space<vmem>>, vector<2x128xf32>,
    return
  }
  func.func @transform_0(%arg0: i32) -> (i32, i32, i32) {
    %c0_i32 = arith.constant 0 : i32
    %c0_i32_0 = arith.constant 0 : i32
    %c0_i32_1 = arith.constant 0 : i32
    return %arg0, %c0_i32, %c0_i32_0 : i32, i32, i32
  }
  func.func @transform_1(%arg0: i32) -> (i32, i32) {
    %c0_i32 = arith.constant 0 : i32
    %c0_i32_0 = arith.constant 0 : i32
    %c0_i32_1 = arith.constant 0 : i32
    return %c0_i32, %c0_i32_0 : i32, i32
  }
  func.func @transform_2(%arg0: i32) -> (i32, i32) {
    %c0_i32 = arith.constant 0 : i32
    %c0_i32_0 = arith.constant 0 : i32
    %c0_i32_1 = arith.constant 0 : i32
    return %c0_i32, %c0_i32_0 : i32, i32
  }
  func.func @transform_3(%arg0: i32) -> (i32, i32) {
    %c0_i32 = arith.constant 0 : i32
    %c0_i32_0 = arith.constant 0 : i32
    %c0_i32_1 = arith.constant 0 : i32
    return %c0_i32, %c0_i32_0 : i32, i32
  }
  func.func @transform_4(%arg0: i32) -> (i32, i32) {
    %c0_i32 = arith.constant 0 : i32
    %c0_i32_0 = arith.constant 0 : i32
    %c0_i32_1 = arith.constant 0 : i32
    return %c0_i32, %c0_i32_0 : i32, i32
  }
  func.func @transform_5(%arg0: i32) -> (i32, i32, i32) {
    %c0_i32 = arith.constant 0 : i32
    %c0_i32_0 = arith.constant 0 : i32
    %c0_i32_1 = arith.constant 0 : i32
    return %arg0, %c0_i32, %c0_i32_0 : i32, i32, i32
  }
  func.func @transform_6(%arg0: i32) -> (i32, i32, i32) {
    %c0_i32 = arith.constant 0 : i32
    %c0_i32_0 = arith.constant 0 : i32
    %c0_i32_1 = arith.constant 0 : i32
    return %arg0, %c0_i32, %c0_i32_0 : i32, i32, i32
  }
  func.func @transform_7(%arg0: i32) -> (i32, i32) {
    %c0_i32 = arith.constant 0 : i32
    %c0_i32_0 = arith.constant 0 : i32
    %c0_i32_1 = arith.constant 0 : i32
    return %c0_i32, %c0_i32_0 : i32, i32
  }
}

</mosaic_0001>

<bundles_post_ra>
// kernel: densenet_forward.14
= control target key start
LH: loop header
LB: loop body
LE: loop exit
PB: predicated region body
PF: predicated region fallthrough
CT: control target
= control target key end

     0   :  { %v673_v12 = vmov 1966171168   ;;  %v37_v14 = vlaneseq  ;;  %vm459_vm0 = vcmask 1040384   ;;  %s810_s4 = inlined_call_operand.vmem [shape: bf16[128,128], index: 4, kind: input, shape index: {}]   ;;  %s811_s1 = inlined_call_operand.vmem [shape: f32[2,128], index: 1, kind: input, shape index: {}]   ;;  %s812_s0 = inlined_call_operand.vmem [shape: bf16[128,128], index: 0, kind: input, shape index: {}]   ;;  %s813_s2 = inlined_call_operand.vmem [shape: f32[1,128], index: 2, kind: input, shape index: {}]   ;;  %s814_s3 = inlined_call_operand.vmem [shape: f32[1,128], index: 3, kind: input, shape index: {}]   ;;  %s815_s6 = inlined_call_operand.vmem [shape: f32[2,128], index: 6, kind: output, shape index: {1}]   ;;  %s816_s5 = inlined_call_operand.vmem [shape: bf16[128,128], index: 5, kind: output, shape index: {0}]  }
   0x1   :  { %v663_v0 = vld [vmem:[%s810_s4] sm:$0xff]   ;;  %v664_v1 = vld [vmem:[%s810_s4 + $0x8] sm:$0xff]   ;;  %v665_v2 = vld [vmem:[%s810_s4 + $0x10] sm:$0xff]   ;;  %v35_v13 = vunpack.c.l.s4 %v673_v12 }
   0x2   :  { %613 = vmatprep.subr.bf16.mxu0 %v663_v0  ;;  %645 = vmatprep.subr.bf16.mxu1 %v663_v0  ;;  %v666_v3 = vld [vmem:[%s810_s4 + $0x18] sm:$0xff]   ;;  %v23_v4 = vld [vmem:[%s811_s1] sm:$0x3]  ;;  %v668_v10 = vld [vmem:[%s810_s4 + $0x28] sm:$0xff]   ;;  %v38_v17 = vshrl.u32 %v37_v14, 7 }
   0x3   :  { %614 = vmatpush3.bf16.msra.mxu0 %v663_v0  ;;  %653 = vmatpush3.bf16.msra.mxu1 %v663_v0  ;;  %v725_v5 = vmul.f32 0.0078125, %v23_v4  ;;  %v667_v7 = vld [vmem:[%s810_s4 + $0x20] sm:$0xff]   ;;  %v669_v15 = vld [vmem:[%s810_s4 + $0x30] sm:$0xff]   ;;  %v36_v16 = vunpack.c.0.s8 %v35_v13  ;;  %v670_v18 = vld [vmem:[%s810_s4 + $0x38] sm:$0xff]  }
   0x4   :  { %615 = vmatprep.subr.bf16.mxu0 %v664_v1  ;;  %646 = vmatprep.subr.bf16.mxu1 %v664_v1  ;;  %v512_v23 = vld [vmem:[%s812_s0] sm:$0xff]   ;;  %v583_v25 = vld [vmem:[%s812_s0 + $0x8] sm:$0xff]   ;;  %v584_v26 = vld [vmem:[%s812_s0 + $0x10] sm:$0xff]   ;;  %v89_v28 = vsub.s32 0, %v38_v17 }
   0x5   :  { %v25_v6 = vmul.f32 %v725_v5, %v725_v5  ;;  %v39_v19 = vsub.s32 %v36_v16, %v38_v17  ;;  %v30_v24 = vld [vmem:[%s813_s2] sm:$0x1]  ;;  %v585_v29 = vld [vmem:[%s812_s0 + $0x18] sm:$0xff]   ;;  %v513_v31 = vunpack.c.l.bf16 %v512_v23  ;;  %v514_v32 = vunpack.c.h.bf16 %v512_v23  ;;  %v587_v33 = vld [vmem:[%s812_s0 + $0x28] sm:$0xff]  }
   0x6   :  { %v586_v30 = vld [vmem:[%s812_s0 + $0x20] sm:$0xff]   ;;  %v517_v35 = vunpack.c.l.bf16 %v583_v25  ;;  %v518_v36 = vunpack.c.h.bf16 %v583_v25  ;;  %v521_v37 = vunpack.c.l.bf16 %v584_v26  ;;  %v588_v38 = vld [vmem:[%s812_s0 + $0x30] sm:$0xff]   ;;  %v769_v39 = vld [vmem:[%s812_s0 + $0x38] sm:$0xff]   ;;  %v522_v41 = vunpack.c.h.bf16 %v584_v26 }
   0x7   :  { %616 = vmatpush3.bf16.msra.mxu0 %v664_v1  ;;  %654 = vmatpush3.bf16.msra.mxu1 %v664_v1  ;;  %v27_v8 = vrot.slane %v25_v6, 7  ;;  %v51_v40 = vld [vmem:[%s814_s3] sm:$0x1]  ;;  %v525_v42 = vunpack.c.l.bf16 %v585_v29  ;;  %v526_v43 = vunpack.c.h.bf16 %v585_v29  ;;  %v529_v44 = vunpack.c.l.bf16 %v586_v30 }
   0x8   :  { %617 = vmatprep.subr.bf16.mxu0 %v665_v2  ;;  %647 = vmatprep.subr.bf16.mxu1 %v665_v2  ;;  %v530_v47 = vunpack.c.h.bf16 %v586_v30  ;;  %v533_v48 = vunpack.c.l.bf16 %v587_v33  ;;  %v534_v49 = vunpack.c.h.bf16 %v587_v33  ;;  %v537_v50 = vunpack.c.l.bf16 %v588_v38 }
   0x9   :  { %v29_v9 = vsub.f32 %v725_v5, %v27_v8  ;;  %v538_v51 = vunpack.c.h.bf16 %v588_v38  ;;  %v541_v52 = vunpack.c.l.bf16 %v769_v39 }
   0xb   :  { %618 = vmatpush3.bf16.msra.mxu0 %v665_v2  ;;  %655 = vmatpush3.bf16.msra.mxu1 %v665_v2  ;;  %v31_v11 = vadd.f32 1e-05, %v29_v9 }
   0xc   :  { %619 = vmatprep.subr.bf16.mxu0 %v666_v3  ;;  %648 = vmatprep.subr.bf16.mxu1 %v666_v3 }
   0xd   :  { %671 = vrsqrt.f32 %v31_v11 }
   0xf   :  { %620 = vmatpush3.bf16.msra.mxu0 %v666_v3  ;;  %656 = vmatpush3.bf16.msra.mxu1 %v666_v3 }
  0x10   :  { %621 = vmatprep.subr.bf16.mxu0 %v667_v7  ;;  %649 = vmatprep.subr.bf16.mxu1 %v667_v7 }
  0x13   :  { %622 = vmatpush3.bf16.msra.mxu0 %v667_v7  ;;  %657 = vmatpush3.bf16.msra.mxu1 %v667_v7 }
  0x14   :  { %623 = vmatprep.subr.bf16.mxu0 %v668_v10  ;;  %650 = vmatprep.subr.bf16.mxu1 %v668_v10 }
  0x17   :  { %624 = vmatpush3.bf16.msra.mxu0 %v668_v10  ;;  %658 = vmatpush3.bf16.msra.mxu1 %v668_v10  ;;  %v672_v20 = vpop.eup %671 }
  0x18   :  { %625 = vmatprep.subr.bf16.mxu0 %v669_v15  ;;  %651 = vmatprep.subr.bf16.mxu1 %v669_v15  ;;  %v40_v21 = vrot.slane %v672_v20, %v39_v19  ;;  %v542_v20 = vunpack.c.h.bf16 %v769_v39 }
  0x1a   :  { %v41_v22 = vcombine.high %v40_v21, %v40_v21 }
  0x1b   :  { %626 = vmatpush3.bf16.msra.mxu0 %v669_v15  ;;  %659 = vmatpush3.bf16.msra.mxu1 %v669_v15 }
  0x1c   :  { %627 = vmatprep.subr.bf16.mxu0 %v670_v18  ;;  %652 = vmatprep.subr.bf16.mxu1 %v670_v18  ;;  %v48_v27 = vrot.slane %v41_v22, %v39_v19 }
  0x1e   :  { %v50_v34 = vmul.f32 %v48_v27, %v30_v24 }
  0x1f   :  { %628 = vmatpush3.bf16.msra.mxu0 %v670_v18  ;;  %660 = vmatpush3.bf16.msra.mxu1 %v670_v18 }
  0x20   :  { %v52_v45 = vmul.f32 %v50_v34, %v725_v5  ;;  %v90_v46 = vrot.slane %v50_v34, %v89_v28 }
  0x22   :  { %v53_v53 = vsub.f32 %v51_v40, %v52_v45  ;;  %v92_v54 = vmul.f32 %v513_v31, %v90_v46  ;;  %v93_v55 = vmul.f32 %v514_v32, %v90_v46  ;;  %v94_v56 = vmul.f32 %v517_v35, %v90_v46 }
  0x23   :  { %v95_v57 = vmul.f32 %v518_v36, %v90_v46  ;;  %v96_v58 = vmul.f32 %v521_v37, %v90_v46  ;;  %v97_v59 = vmul.f32 %v522_v41, %v90_v46  ;;  %v98_v60 = vmul.f32 %v525_v42, %v90_v46 }
  0x24   :  { %v112_v61 = vrot.slane %v53_v53, %v89_v28  ;;  %v99_v62 = vmul.f32 %v526_v43, %v90_v46  ;;  %v100_v63 = vmul.f32 %v529_v44, %v90_v46  ;;  %v101_v0 = vmul.f32 %v530_v47, %v90_v46 }
  0x25   :  { %v102_v1 = vmul.f32 %v533_v48, %v90_v46  ;;  %v103_v2 = vmul.f32 %v534_v49, %v90_v46  ;;  %v104_v3 = vmul.f32 %v537_v50, %v90_v46  ;;  %v105_v4 = vmul.f32 %v538_v51, %v90_v46 }
  0x26   :  { %v114_v5 = vadd.f32 %v112_v61, %v92_v54  ;;  %v115_v6 = vadd.f32 %v112_v61, %v93_v55  ;;  %v116_v7 = vadd.f32 %v112_v61, %v94_v56  ;;  %v117_v8 = vadd.f32 %v112_v61, %v95_v57 }
  0x27   :  { %v118_v9 = vadd.f32 %v112_v61, %v96_v58  ;;  %v119_v10 = vadd.f32 %v112_v61, %v97_v59  ;;  %v120_v11 = vadd.f32 %v112_v61, %v98_v60  ;;  %v121_v12 = vadd.f32 %v112_v61, %v99_v62 }
  0x28   :  { %v130_v13 = vmax.f32 %v114_v5, 0.0  ;;  %v131_v14 = vmax.f32 %v115_v6, 0.0  ;;  %v132_v15 = vmax.f32 %v116_v7, 0.0  ;;  %v133_v16 = vmax.f32 %v117_v8, 0.0 }
  0x29   :  { %v134_v17 = vmax.f32 %v118_v9, 0.0  ;;  %v135_v18 = vmax.f32 %v119_v10, 0.0  ;;  %v136_v19 = vmax.f32 %v120_v11, 0.0  ;;  %v122_v23 = vadd.f32 %v112_v61, %v100_v63 }
  0x2a   :  { %v146_v21 = vpack.c.bf16 %v131_v14, %v130_v13  ;;  %v147_v22 = vpack.c.bf16 %v133_v16, %v132_v15  ;;  %v123_v24 = vadd.f32 %v112_v61, %v101_v0  ;;  %v137_v26 = vmax.f32 %v121_v12, 0.0 }
  0x2b   :  { %v148_v25 = vpack.c.bf16 %v135_v18, %v134_v17  ;;  %v124_v27 = vadd.f32 %v112_v61, %v102_v1  ;;  %v125_v28 = vadd.f32 %v112_v61, %v103_v2  ;;  %v138_v29 = vmax.f32 %v122_v23, 0.0 }
  0x2c   :  { %629 = vmatprep.mubr.bf16.mxu0 %v146_v21  ;;  %v139_v30 = vmax.f32 %v123_v24, 0.0  ;;  %v126_v31 = vadd.f32 %v112_v61, %v104_v3  ;;  %v127_v32 = vadd.f32 %v112_v61, %v105_v4  ;;  %v106_v35 = vmul.f32 %v541_v52, %v90_v46 }
  0x2d   :  { %630 = vmatmul.mubr.bf16.vlgmr.msra.gmra.mrb[0].mxu0 %v147_v22  ;;  %v140_v33 = vmax.f32 %v124_v27, 0.0  ;;  %v141_v34 = vmax.f32 %v125_v28, 0.0  ;;  %v107_v36 = vmul.f32 %v542_v20, %v90_v46  ;;  %v149_v44 = vpack.c.bf16 %v137_v26, %v136_v19 }
  0x2e   :  { %633 = vmatprep.mubr.bf16.mxu0 %v148_v25  ;;  %v150_v37 = vpack.c.bf16 %v139_v30, %v138_v29  ;;  %v142_v38 = vmax.f32 %v126_v31, 0.0  ;;  %v143_v39 = vmax.f32 %v127_v32, 0.0  ;;  %v128_v41 = vadd.f32 %v112_v61, %v106_v35 }
  0x2f   :  { %v151_v40 = vpack.c.bf16 %v141_v34, %v140_v33  ;;  %v129_v42 = vadd.f32 %v112_v61, %v107_v36  ;;  %v674_v49 = vmov 0.0  }
  0x30   :  { %637 = vmatprep.mubr.bf16.mxu1 %v150_v37  ;;  %v152_v43 = vpack.c.bf16 %v143_v39, %v142_v38  ;;  %v144_v45 = vmax.f32 %v128_v41, 0.0  ;;  %399 = vst [vmem:[%s815_s6] sm:$0x3] %v674_v49 }
  0x31   :  { %638 = vmatmul.mubr.bf16.vlgmr.msra.gmra.mrb[0].mxu1 %v151_v40  ;;  %v145_v47 = vmax.f32 %v129_v42, 0.0 }
  0x32   :  { %641 = vmatprep.mubr.bf16.mxu1 %v152_v43 }
  0x33   :  { %v153_v48 = vpack.c.bf16 %v145_v47, %v144_v45 }
  0x35   :  { %634 = vmatmul.mubr.bf16.gmra.mrb[4].mxu0 %v149_v44 }
  0x39   :  { %642 = vmatmul.mubr.bf16.gmra.mrb[4].mxu1 %v153_v48 }
 0x100   :  { %v631_v46 = vpop.f32.mrb[0].mxu0 }
 0x101   :  { %v252_v50 = vpop.f32.mrb[1].mxu0  ;;  %v423_v60 = vmul.f32 %v631_v46, %v631_v46 }
 0x102   :  { %v632_v51 = vpop.f32.mrb[2].mxu0  ;;  %v421_v54 = vmul.f32 %v252_v50, %v252_v50 }
 0x103   :  { %v551_v52 = vpack.c.bf16 %v632_v51, %v631_v46  ;;  %v255_v53 = vpop.f32.mrb[3].mxu0  ;;  %v424_v2 = vmul.f32 %v632_v51, %v632_v51 }
 0x104   :  { %v546_v55 = vpack.c.bf16 %v255_v53, %v252_v50  ;;  %v400_v56 = vadd.f32 %v255_v53, %v252_v50  ;;  %v422_v57 = vmul.f32 %v255_v53, %v255_v53  ;;  %v639_v58 = vpop.f32.mrb[0].mxu1 }
 0x105   :  { %590 = vst [vmem:[%s816_s5 + $0x8] sm:$0xff] %v551_v52   ;;  %v284_v59 = vpop.f32.mrb[1].mxu1  ;;  %v431_v36 = vmul.f32 %v639_v58, %v639_v58 }
 0x106   :  { %547 = vst [vmem:[%s816_s5] sm:$0xff] %v546_v55   ;;  %v401_v61 = vadd.f32 %v631_v46, %v400_v56  ;;  %v437_v62 = vadd.f32 %v422_v57, %v421_v54  ;;  %v640_v63 = vpop.f32.mrb[2].mxu1  ;;  %v429_v24 = vmul.f32 %v284_v59, %v284_v59 }
 0x107   :  { %v571_v0 = vpack.c.bf16 %v640_v63, %v639_v58  ;;  %v287_v1 = vpop.f32.mrb[3].mxu1  ;;  %v432_v39 = vmul.f32 %v640_v63, %v640_v63 }
 0x108   :  { %v438_v3 = vadd.f32 %v437_v62, %v423_v60  ;;  %v635_v4 = vpop.f32.mrb[4].mxu0  ;;  %v402_v5 = vadd.f32 %v632_v51, %v401_v61  ;;  %v566_v6 = vpack.c.bf16 %v287_v1, %v284_v59  ;;  %v430_v35 = vmul.f32 %v287_v1, %v287_v1 }
 0x109   :  { %v268_v7 = vpop.f32.mrb[5].mxu0  ;;  %594 = vst [vmem:[%s816_s5 + $0x28] sm:$0xff] %v571_v0   ;;  %v427_v20 = vmul.f32 %v635_v4, %v635_v4 }
 0x10a   :  { %v403_v8 = vadd.f32 %v402_v5, %v268_v7  ;;  %v425_v9 = vmul.f32 %v268_v7, %v268_v7  ;;  %v439_v10 = vadd.f32 %v438_v3, %v424_v2  ;;  %v636_v11 = vpop.f32.mrb[6].mxu0  ;;  %593 = vst [vmem:[%s816_s5 + $0x20] sm:$0xff] %v566_v6   ;;  %v458_v3 = vld [vmem:[%s815_s6] sm:$0x3] }
 0x10b   :  { %v561_v12 = vpack.c.bf16 %v636_v11, %v635_v4  ;;  %v271_v13 = vpop.f32.mrb[7].mxu0  ;;  %v428_v27 = vmul.f32 %v636_v11, %v636_v11 }
 0x10c   :  { %v440_v14 = vadd.f32 %v439_v10, %v425_v9  ;;  %v556_v15 = vpack.c.bf16 %v271_v13, %v268_v7  ;;  %v404_v16 = vadd.f32 %v403_v8, %v271_v13  ;;  %v426_v17 = vmul.f32 %v271_v13, %v271_v13  ;;  %v643_v18 = vpop.f32.mrb[4].mxu1 }
 0x10d   :  { %592 = vst [vmem:[%s816_s5 + $0x18] sm:$0xff] %v561_v12   ;;  %v300_v19 = vpop.f32.mrb[5].mxu1  ;;  %v435_v49 = vmul.f32 %v643_v18, %v643_v18 }
 0x10e   :  { %591 = vst [vmem:[%s816_s5 + $0x10] sm:$0xff] %v556_v15   ;;  %v405_v21 = vadd.f32 %v635_v4, %v404_v16  ;;  %v441_v22 = vadd.f32 %v440_v14, %v426_v17  ;;  %v644_v23 = vpop.f32.mrb[6].mxu1  ;;  %v433_v42 = vmul.f32 %v300_v19, %v300_v19 }
 0x10f   :  { %v581_v25 = vpack.c.bf16 %v644_v23, %v643_v18  ;;  %v303_v26 = vpop.f32.mrb[7].mxu1  ;;  %v436_v51 = vmul.f32 %v644_v23, %v644_v23 }
 0x110   :  { %v442_v28 = vadd.f32 %v441_v22, %v427_v20  ;;  %v406_v29 = vadd.f32 %v636_v11, %v405_v21  ;;  %v576_v30 = vpack.c.bf16 %v303_v26, %v300_v19  ;;  %v434_v48 = vmul.f32 %v303_v26, %v303_v26 }
 0x111   :  { %596 = vst [vmem:[%s816_s5 + $0x38] sm:$0xff] %v581_v25  }
 0x112   :  { %v407_v31 = vadd.f32 %v406_v29, %v284_v59  ;;  %v443_v32 = vadd.f32 %v442_v28, %v428_v27  ;;  %595 = vst [vmem:[%s816_s5 + $0x30] sm:$0xff] %v576_v30  }
 0x114   :  { %v444_v33 = vadd.f32 %v443_v32, %v429_v24  ;;  %v408_v34 = vadd.f32 %v407_v31, %v287_v1 }
 0x116   :  { %v409_v37 = vadd.f32 %v639_v58, %v408_v34  ;;  %v445_v38 = vadd.f32 %v444_v33, %v430_v35 }
 0x118   :  { %v446_v40 = vadd.f32 %v445_v38, %v431_v36  ;;  %v410_v41 = vadd.f32 %v640_v63, %v409_v37 }
 0x11a   :  { %v411_v43 = vadd.f32 %v410_v41, %v300_v19  ;;  %v447_v44 = vadd.f32 %v446_v40, %v432_v39 }
 0x11c   :  { %v448_v45 = vadd.f32 %v447_v44, %v433_v42  ;;  %v412_v47 = vadd.f32 %v411_v43, %v303_v26 }
 0x11e   :  { %v413_v46 = vadd.f32 %v643_v18, %v412_v47  ;;  %v449_v50 = vadd.f32 %v448_v45, %v434_v48 }
 0x120   :  { %v414_v52 = vadd.f32 %v644_v23, %v413_v46  ;;  %v450_v53 = vadd.f32 %v449_v50, %v435_v49 }
 0x122   :  { %v415_v54 = vrot.slane %v414_v52, 4  ;;  %v451_v55 = vadd.f32 %v450_v53, %v436_v51 }
 0x124   :  { %v416_v56 = vadd.f32 %v415_v54, %v414_v52  ;;  %v452_v57 = vrot.slane %v451_v55, 4 }
 0x126   :  { %v417_v58 = vrot.slane %v416_v56, 2  ;;  %v453_v59 = vadd.f32 %v452_v57, %v451_v55 }
 0x128   :  { %v418_v60 = vadd.f32 %v417_v58, %v416_v56  ;;  %v454_v61 = vrot.slane %v453_v59, 2 }
 0x12a   :  { %v419_v62 = vrot.slane %v418_v60, 1  ;;  %v455_v63 = vadd.f32 %v454_v61, %v453_v59 }
 0x12c   :  { %v456_v0 = vrot.slane %v455_v63, 1  ;;  %v420_v1 = vadd.f32 %v419_v62, %v418_v60 }
 0x12e   :  { %v457_v2 = vadd.f32 %v456_v0, %v455_v63 }
 0x130   :  { %v460_v4 = vsel %vm459_vm0, %v420_v1, %v457_v2 }
 0x131   :  { %v461_v5 = vadd.f32 %v460_v4, %v458_v3 }
 0x133   :  { %462 = vst [vmem:[%s815_s6] sm:$0x3] %v461_v5 }

// kernel: densenet_forward.13
= control target key start
LH: loop header
LB: loop body
LE: loop exit
PB: predicated region body
PF: predicated region fallthrough
CT: control target
= control target key end

     0   :  { %s1814_s18 = smov 0   ;;  %s3052_s0 = inlined_call_operand.vmem [shape: bf16[2,256,128], index: 0, kind: input, shape index: {}]   ;;  %s3053_s1 = inlined_call_operand.vmem [shape: f32[2,128], index: 1, kind: input, shape index: {}]   ;;  %s3054_s2 = inlined_call_operand.vmem [shape: f32[1,128], index: 2, kind: input, shape index: {}]   ;;  %s3055_s3 = inlined_call_operand.vmem [shape: f32[1,128], index: 3, kind: input, shape index: {}]   ;;  %s3056_s4 = inlined_call_operand.vmem [shape: bf16[2,64,128], index: 4, kind: output, shape index: {0}]   ;;  %s3057_s5 = inlined_call_operand.vmem [shape: f32[2,128], index: 5, kind: output, shape index: {1}]  }
   0x1 LB: > { %s1820_s19 = sadd.s32 4294967295, %s1780_s18   ;;  %p1633_p0 = scmp.ge.s32.totalorder %s1780_s18, 1  ;;  %s1780_s18 = sphi %s1814_s18, %s16_s18  }
   0x2   : > { %p185_p1 = scmp.lt.s32.totalorder %s1780_s18, 3 }
   0x4   : > { %p186_p2 = pnand %p1633_p0, %p185_p1 }
   0x6   : > { %189 = sbr.rel (%p186_p2) target bundleno = 240 (0xf0), region = 36 }
   0xd   : > { %p213_p3 = scmp.lt.s32.totalorder %s1820_s19, 1  ;;  %v223_v0 = vld [vmem:[%s3053_s1] sm:$0x3]  ;;  %v1782_v5 = vmov 1966171168   ;;  %v237_v7 = vlaneseq  ;;  %p1646_p4 = scmp.ne.s32.totalorder %s1820_s19, 0 }
   0xe   : > { %v1828_v1 = vmul.f32 0.001953125, %v223_v0  ;;  %v235_v6 = vunpack.c.l.s4 %v1782_v5  ;;  %v230_v0 = vld [vmem:[%s3054_s2] sm:$0x1] }
   0xf   : > { %s1831_s22 = scalar_select %p213_p3, %s1820_s19, 1  ;;  %v1842_v10 = vshrl.u32 %v237_v7, 7  ;;  %v251_v52 = vld [vmem:[%s3055_s3] sm:$0x1] }
  0x10   : > { %v225_v2 = vmul.f32 %v1828_v1, %v1828_v1  ;;  %v236_v9 = vunpack.c.0.s8 %v235_v6 }
  0x11   : > { %s1649_s23 = sshll.u32 %s1831_s22, 7  ;;  %v321_v15 = vsub.s32 0, %v1842_v10  ;;  %v459_v16 = vand.u32 15, %v1842_v10  ;;  %v491_v17 = vshra.s32 %v1842_v10, 4  ;;  %v1863_v19 = vadd.s32 8, %v1842_v10  ;;  %s1650_s6 = sshll.u32 %s1831_s22, 5 }
  0x12   : > { %v227_v3 = vrot.slane %v225_v2, 7  ;;  %s1840_s26 = scalar_lea.vmem %s3052_s0, %s1649_s23  ;;  %v239_v20 = vsub.s32 %v236_v9, %v1842_v10  ;;  %v1872_v24 = vadd.s32 32, %v1842_v10  ;;  %v1891_v37 = vadd.s32 40, %v1842_v10  ;;  %s222_s9 = scalar_lea.vmem %s3056_s4, %s1650_s6 }
  0x13   : > { %v1845_v11 = vld [vmem:[%s1840_s26] sm:$0xff]   ;;  %v1848_v12 = vld [vmem:[%s1840_s26 + $0x8] sm:$0xff]   ;;  %v1851_v13 = vld [vmem:[%s1840_s26 + $0x70] sm:$0xff]   ;;  %v460_v33 = vand.u32 15, %v1863_v19  ;;  %v492_v35 = vshra.s32 %v1863_v19, 4  ;;  %v1894_v38 = vadd.s32 64, %v1842_v10 }
  0x14   : > { %v229_v4 = vsub.f32 %v1828_v1, %v227_v3  ;;  %v1854_v14 = vld [vmem:[%s1840_s26 + $0x78] sm:$0xff]   ;;  %v1860_v18 = vld [vmem:[%s1840_s26 + $0x10] sm:$0xff]   ;;  %v1661_v21 = vunpack.c.l.bf16 %v1845_v11  ;;  %v1662_v22 = vunpack.c.h.bf16 %v1845_v11  ;;  %v1665_v25 = vunpack.c.l.bf16 %v1848_v12  ;;  %v1879_v29 = vld [vmem:[%s1840_s26 + $0x20] sm:$0xff]  }
  0x15   : > { %v1869_v23 = vld [vmem:[%s1840_s26 + $0x18] sm:$0xff]   ;;  %v1666_v26 = vunpack.c.h.bf16 %v1848_v12  ;;  %v1718_v27 = vunpack.c.h.bf16 %v1851_v13  ;;  %v1721_v28 = vunpack.c.l.bf16 %v1854_v14  ;;  %v1722_v30 = vunpack.c.h.bf16 %v1854_v14  ;;  %v1886_v34 = vld [vmem:[%s1840_s26 + $0x28] sm:$0xff]   ;;  %v1901_v43 = vld [vmem:[%s1840_s26 + $0x30] sm:$0xff]  }
  0x16   : > { %v231_v8 = vadd.f32 1e-05, %v229_v4  ;;  %v1669_v31 = vunpack.c.l.bf16 %v1860_v18  ;;  %v1670_v32 = vunpack.c.h.bf16 %v1860_v18  ;;  %v1673_v36 = vunpack.c.l.bf16 %v1869_v23  ;;  %v1910_v49 = vld [vmem:[%s1840_s26 + $0x38] sm:$0xff]   ;;  %v1922_v58 = vld [vmem:[%s1840_s26 + $0x40] sm:$0xff]   ;;  %v1925_v59 = vld [vmem:[%s1840_s26 + $0x48] sm:$0xff]  }
  0x17   : > { %v1674_v39 = vunpack.c.h.bf16 %v1869_v23  ;;  %v463_v40 = vand.u32 15, %v1872_v24  ;;  %v1677_v41 = vunpack.c.l.bf16 %v1879_v29  ;;  %v1678_v42 = vunpack.c.h.bf16 %v1879_v29  ;;  %v1988_v62 = vld [vmem:[%s1840_s26 + $0x60] sm:$0xff]  }
  0x18   : > { %1771 = vrsqrt.f32 %v231_v8  ;;  %v3059_v45 = vshra.s32 %v1872_v24, 4  ;;  %v1681_v46 = vunpack.c.l.bf16 %v1886_v34  ;;  %v1907_v48 = vadd.s32 72, %v1842_v10 }
  0x19   : > { %v1915_v53 = vadd.s32 96, %v1842_v10  ;;  %v1930_v63 = vadd.s32 104, %v1842_v10  ;;  %v1939_v5 = vadd.s32 128, %v1842_v10  ;;  %v1953_v4 = vadd.s32 136, %v1842_v10 }
  0x1a   : > { %v1956_v57 = vadd.s32 160, %v1842_v10  ;;  %vm1975_vm0 = vcmp.ge.s32.totalorder %v491_v17, 1  ;;  %vm1981_vm1 = vcmp.ge.s32.totalorder %v459_v16, 1  ;;  %vm1992_vm2 = vcmp.le.s32.totalorder %v491_v17, 14 }
  0x1b   : > { %vm555_vm3 = vcmp.lt.s32.totalorder %v1842_v10, 1  ;;  %vm844_vm4 = vcmp.lt.s32.totalorder %v1842_v10, 7  ;;  %vm2062_vm5 = vcmp.ge.s32.totalorder %v492_v35, 1  ;;  %vm2068_vm6 = vcmp.le.s32.totalorder %v460_v33, 14  ;;  %vm652_vm10 = vmand %vm1975_vm0, %vm1981_vm1 }
  0x1c   : > { %vm2080_vm7 = vcmp.ge.s32.totalorder %v3059_v45, 1  ;;  %vm2086_vm8 = vcmp.ge.s32.totalorder %v463_v40, 1  ;;  %vm2105_vm9 = vcmp.le.s32.totalorder %v492_v35, 14  ;;  %vm1165_vm11 = vmand %vm1992_vm2, %vm1981_vm1 }
  0x1d   : > { %vm910_vm13 = vmand %vm2062_vm5, %vm2068_vm6 }
  0x1e   : > { %vm656_vm14 = vmand %vm2080_vm7, %vm2086_vm8 }
  0x22   : > { %v1772_v44 = vpop.eup %1771 }
  0x23   : > { %v240_v50 = vrot.slane %v1772_v44, %v239_v20  ;;  %v1945_v44 = vld [vmem:[%s1840_s26 + $0x50] sm:$0xff]  }
  0x25   : > { %v241_v60 = vcombine.high %v240_v50, %v240_v50  ;;  %v1948_v50 = vld [vmem:[%s1840_s26 + $0x58] sm:$0xff]  }
  0x27   : > { %v248_v6 = vrot.slane %v241_v60, %v239_v20 }
  0x29   : > { %v250_v20 = vmul.f32 %v248_v6, %v230_v0 }
  0x2b   : > { %v252_v0 = vmul.f32 %v250_v20, %v1828_v1  ;;  %v1971_v6 = vrot.slane %v250_v20, %v321_v15 }
  0x2d   : > { %v253_v3 = vsub.f32 %v251_v52, %v252_v0  ;;  %v324_v1 = vmul.f32 %v1661_v21, %v1971_v6  ;;  %v325_v17 = vmul.f32 %v1662_v22, %v1971_v6  ;;  %v326_v47 = vmul.f32 %v1665_v25, %v1971_v6 }
  0x2e   : > { %v327_v7 = vmul.f32 %v1666_v26, %v1971_v6  ;;  %v353_v52 = vmul.f32 %v1718_v27, %v1971_v6  ;;  %v354_v21 = vmul.f32 %v1721_v28, %v1971_v6  ;;  %v355_v11 = vmul.f32 %v1722_v30, %v1971_v6 }
  0x2f   : > { %v2025_v22 = vrot.slane %v253_v3, %v321_v15  ;;  %v328_v12 = vmul.f32 %v1669_v31, %v1971_v6  ;;  %v2033_v13 = vmul.f32 %v1670_v32, %v1971_v6  ;;  %v2039_v14 = vmul.f32 %v1673_v36, %v1971_v6 }
  0x30   : > { %v2044_v15 = vmul.f32 %v1674_v39, %v1971_v6  ;;  %v2049_v26 = vmul.f32 %v1677_v41, %v1971_v6  ;;  %v2054_v18 = vmul.f32 %v1678_v42, %v1971_v6  ;;  %v2093_v0 = vmul.f32 %v1681_v46, %v1971_v6 }
  0x31   : > { %v362_v27 = vadd.f32 %v2025_v22, %v324_v1  ;;  %v363_v28 = vadd.f32 %v2025_v22, %v325_v17  ;;  %v364_v30 = vadd.f32 %v2025_v22, %v326_v47  ;;  %v365_v23 = vadd.f32 %v2025_v22, %v327_v7 }
  0x32   : > { %v391_v32 = vadd.f32 %v2025_v22, %v353_v52  ;;  %v392_v36 = vadd.f32 %v2025_v22, %v354_v21  ;;  %v393_v39 = vadd.f32 %v2025_v22, %v355_v11  ;;  %v366_v41 = vadd.f32 %v2025_v22, %v328_v12 }
  0x33   : > { %v394_v42 = vmax.f32 %v362_v27, 0.0  ;;  %v395_v47 = vmax.f32 %v363_v28, 0.0  ;;  %v2076_v3 = vmax.f32 %v364_v30, 0.0  ;;  %v2095_v1 = vmax.f32 %v365_v23, 0.0 }
  0x34   : > { %v2097_v17 = vmax.f32 %v391_v32, 0.0  ;;  %v2099_v52 = vmax.f32 %v392_v36, 0.0  ;;  %v2101_v21 = vmax.f32 %v393_v39, 0.0  ;;  %v2110_v46 = vmax.f32 %v366_v41, 0.0 }
  0x35   : > { %v523_v11 = vrot.slane %v394_v42, 7  ;;  %v524_v12 = vrot.slane %v395_v47, 7  ;;  %v525_v27 = vrot.slane %v2076_v3, 7  ;;  %v812_v19 = vrot.slane %v394_v42, 1 }
  0x36   : > { %3081 = vst [vmem:[#allocation4_spill] sm:$0xff] %v2097_v17  ;;  %3082 = vst [vmem:[#allocation5_spill] sm:$0xff] %v2101_v21  ;;  %v3058_v28 = vrot.slane %v2097_v17, 7  ;;  %v553_v30 = vrot.slane %v2099_v52, 7  ;;  %v554_v23 = vrot.slane %v2101_v21, 7  ;;  %v748_v35 = vsel %vm1975_vm0, %v2099_v52, 0.0 }
  0x37   : > { %v813_v32 = vrot.slane %v395_v47, 1  ;;  %v814_v36 = vrot.slane %v2076_v3, 1  ;;  %v815_v39 = vrot.slane %v2095_v1, 1  ;;  %v3063_v60 = vrot.slane %v2099_v52, 1 }
  0x38   : > { %v2132_v41 = vsel %vm555_vm3, %v3058_v28, %v553_v30  ;;  %v587_v25 = vsel %vm555_vm3, %v554_v23, %v523_v11  ;;  %v843_v16 = vrot.slane %v2101_v21, 1  ;;  %v585_v61 = vsel %vm555_vm3, %v524_v12, %v525_v27 }
  0x39   : > { %3085 = vst [vmem:[#allocation6_spill] sm:$0xff] %v2132_v41  ;;  %v684_v2 = vsel %vm652_vm10, %v2132_v41, 0.0  ;;  %v2143_v55 = vsel %vm844_vm4, %v814_v36, %v815_v39  ;;  %v875_v28 = vsel %vm844_vm4, %v812_v19, %v813_v32  ;;  %v1005_v51 = vsel %vm1981_vm1, %v587_v25, 0.0  ;;  %vm1326_vm10 = vmand %vm2105_vm9, %vm2068_vm6 }
  0x3a   : > { %v716_v56 = vmax.f32 %v394_v42, %v684_v2  ;;  %v2151_v54 = vsel %vm844_vm4, %v3063_v60, %v843_v16  ;;  %v1197_v45 = vsel %vm1165_vm11, %v585_v61, 0.0  ;;  %v3086_v41 = vshra.s32 %v1872_v24, 4 }
  0x3b   : > { %v941_v2 = vsel %vm1975_vm0, %v2151_v54, 0.0  ;;  %v1261_v42 = vsel %vm1992_vm2, %v2076_v3, 0.0  ;;  %v526_v60 = vrot.slane %v2095_v1, 7  ;;  %v2170_v9 = vsel %vm555_vm3, %v553_v30, %v554_v23 }
  0x3c   : > { %vm2157_vm12 = vcmp.le.s32.totalorder %v3086_v41, 14  ;;  %3089 = vst [vmem:[#allocation7_spill] sm:$0xff] %v2170_v9  ;;  %v780_v25 = vmax.f32 %v716_v56, %v748_v35  ;;  %v1357_v24 = vsel %vm1992_vm2, %v2143_v55, 0.0  ;;  %v685_v8 = vsel %vm2062_vm5, %v2170_v9, 0.0 }
  0x3d   : > { %v749_v41 = vsel %vm2062_vm5, %v2101_v21, 0.0  ;;  %v586_v56 = vsel %vm555_vm3, %v523_v11, %v524_v12  ;;  %v717_v30 = vmax.f32 %v395_v47, %v685_v8  ;;  %v816_v20 = vrot.slane %v2110_v46, 1 }
  0x3e   : > { %v874_v23 = vsel %vm844_vm4, %v813_v32, %v814_v36  ;;  %v973_v35 = vmax.f32 %v780_v25, %v941_v2  ;;  %v2192_v9 = vsel %vm555_vm3, %v525_v27, %v526_v60  ;;  %v2196_v21 = vsel %vm844_vm4, %v843_v16, %v812_v19 }
  0x3f   : > { %3090 = vst [vmem:[#allocation8_spill] sm:$0xff] %v2196_v21  ;;  %v1070_v31 = vsel %vm2068_vm6, %v874_v23, 0.0  ;;  %v3091_v47 = vand.u32 15, %v1891_v37  ;;  %v781_v12 = vmax.f32 %v717_v30, %v749_v41  ;;  %v2212_v27 = vsel %vm844_vm4, %v815_v39, %v816_v20  ;;  %vm1169_vm6 = vmand %vm2157_vm12, %vm2086_vm8 }
  0x40   : > { %v942_v16 = vsel %vm910_vm13, %v2196_v21, 0.0  ;;  %v1198_v19 = vsel %vm2105_vm9, %v2192_v9, 0.0  ;;  %v3094_v32 = vshra.s32 %v1891_v37, 4  ;;  %v1037_v2 = vmax.f32 %v973_v35, %v1005_v51 }
  0x41   : > { %vm2206_vm15 = vcmp.le.s32.totalorder %v3091_v47, 14  ;;  %v1262_v25 = vsel %vm2105_vm9, %v2095_v1, 0.0  ;;  %v367_v39 = vadd.f32 %v2025_v22, %v2033_v13  ;;  %v368_v8 = vadd.f32 %v2025_v22, %v2039_v14 }
  0x42   : > { %vm2220_vm0 = vcmp.ge.s32.totalorder %v3094_v32, 1  ;;  %v974_v41 = vmax.f32 %v781_v12, %v942_v16  ;;  %v369_v30 = vadd.f32 %v2025_v22, %v2044_v15  ;;  %v527_v23 = vrot.slane %v2110_v46, 7 }
  0x43   : > { %v688_v47 = vsel %vm656_vm14, %v585_v61, 0.0  ;;  %v3097_v32 = vshra.s32 %v1894_v38, 4  ;;  %v3100_v35 = vand.u32 15, %v1894_v38  ;;  %v1101_v14 = vmax.f32 %v1037_v2, %v875_v28 }
  0x44   : > { %v399_v12 = vmax.f32 %v367_v39, 0.0  ;;  %v2246_v16 = vmax.f32 %v368_v8, 0.0  ;;  %v720_v15 = vmax.f32 %v2110_v46, %v688_v47  ;;  %v3103_v61 = vshra.s32 %v1891_v37, 4 }
  0x45   : > { %vm2236_vm1 = vcmp.ge.s32.totalorder %v3097_v32, 1  ;;  %vm2242_vm2 = vcmp.ge.s32.totalorder %v3100_v35, 1  ;;  %v1038_v32 = vmax.f32 %v974_v41, %v586_v56  ;;  %v2259_v35 = vmax.f32 %v369_v30, 0.0 }
  0x46   : > { %vm2251_vm5 = vcmp.le.s32.totalorder %v3103_v61, 14  ;;  %v583_v28 = vsel %vm555_vm3, %v526_v60, %v527_v23  ;;  %v752_v46 = vsel %vm2080_vm7, %v2076_v3, 0.0  ;;  %v1229_v37 = vmax.f32 %v1101_v14, %v1197_v45  ;;  %vm660_vm11 = vmand %vm2236_vm1, %vm2242_vm2 }
  0x47   : > { %v528_v2 = vrot.slane %v399_v12, 7  ;;  %v529_v39 = vrot.slane %v2246_v16, 7  ;;  %v784_v8 = vmax.f32 %v720_v15, %v752_v46  ;;  %v1102_v56 = vmax.f32 %v1038_v32, %v1070_v31 }
  0x48   : > { %v817_v41 = vrot.slane %v399_v12, 1  ;;  %v818_v29 = vrot.slane %v2246_v16, 1  ;;  %v819_v40 = vrot.slane %v2259_v35, 1  ;;  %v1293_v60 = vmax.f32 %v1229_v37, %v1261_v42 }
  0x49   : > { %v1358_v30 = vsel %vm1326_vm10, %v2212_v27, 0.0  ;;  %v945_v45 = vsel %vm2080_vm7, %v2143_v55, 0.0  ;;  %v1009_v3 = vsel %vm2086_vm8, %v583_v28, 0.0  ;;  %v1230_v31 = vmax.f32 %v1102_v56, %v1198_v19  ;;  %vm914_vm8 = vmand %vm2220_vm0, %vm2206_vm15 }
  0x4a   : > { %v581_v47 = vsel %vm555_vm3, %v528_v2, %v529_v39  ;;  %v2283_v14 = vsel %vm844_vm4, %v818_v29, %v819_v40  ;;  %v977_v15 = vmax.f32 %v784_v8, %v945_v45  ;;  %v1389_v61 = vmax.f32 %v1293_v60, %v1357_v24  ;;  %vm1330_vm10 = vmand %vm2251_vm5, %vm2206_vm15 }
  0x4b   : > { %v871_v42 = vsel %vm844_vm4, %v816_v20, %v817_v41  ;;  %v1201_v32 = vsel %vm1169_vm6, %v581_v47, 0.0  ;;  %v1265_v55 = vsel %vm2157_vm12, %v2246_v16, 0.0  ;;  %v3106_v7 = vshra.s32 %v1894_v38, 4 }
  0x4c   : > { %v1294_v19 = vmax.f32 %v1230_v31, %v1262_v25  ;;  %v1041_v28 = vmax.f32 %v977_v15, %v1009_v3  ;;  %v370_v46 = vadd.f32 %v2025_v22, %v2049_v26  ;;  %v530_v24 = vrot.slane %v2259_v35, 7  ;;  %1421 = vst [vmem:[#allocation2] sm:$0xff] %v1389_v61 }
  0x4d   : > { %vm2292_vm7 = vcmp.le.s32.totalorder %v3106_v7, 14  ;;  %v1361_v38 = vsel %vm2157_vm12, %v2283_v14, 0.0  ;;  %v582_v20 = vsel %vm555_vm3, %v527_v23, %v528_v2  ;;  %v689_v25 = vsel %vm2220_vm0, %v2192_v9, 0.0 }
  0x4e   : > { %v870_v26 = vsel %vm844_vm4, %v817_v41, %v818_v29  ;;  %v1390_v37 = vmax.f32 %v1294_v19, %v1358_v30  ;;  %v1105_v8 = vmax.f32 %v1041_v28, %v871_v42  ;;  %v2313_v56 = vmax.f32 %v370_v46, 0.0 }
  0x4f   : > { %v753_v60 = vsel %vm2220_vm0, %v2095_v1, 0.0  ;;  %v3109_v17 = vand.u32 15, %v1907_v48  ;;  %v580_v9 = vsel %vm555_vm3, %v529_v39, %v530_v24  ;;  %v721_v23 = vmax.f32 %v399_v12, %v689_v25 }
  0x50   : > { %v946_v2 = vsel %vm914_vm8, %v2212_v27, 0.0  ;;  %v1074_v41 = vsel %vm2206_vm15, %v870_v26, 0.0  ;;  %v3112_v1 = vshra.s32 %v1907_v48, 4  ;;  %1422 = vst [vmem:[#allocation2 + $0x8] sm:$0xff] %v1390_v37  ;;  %v1233_v29 = vmax.f32 %v1105_v8, %v1201_v32  ;;  %vm1173_vm15 = vmand %vm2292_vm7, %vm2242_vm2 }
  0x51   : > { %vm2320_vm9 = vcmp.le.s32.totalorder %v3109_v17, 14  ;;  %v820_v12 = vrot.slane %v2313_v56, 1  ;;  %v1202_v27 = vsel %vm2251_vm5, %v580_v9, 0.0  ;;  %v3115_v39 = vunpack.c.h.bf16 %v1886_v34 }
  0x52   : > { %vm2335_vm12 = vcmp.ge.s32.totalorder %v3112_v1, 1  ;;  %v785_v3 = vmax.f32 %v721_v23, %v753_v60  ;;  %v371_v31 = vadd.f32 %v2025_v22, %v2054_v18  ;;  %v372_v15 = vadd.f32 %v2025_v22, %v2093_v0 }
  0x53   : > { %v335_v30 = vmul.f32 %v3115_v39, %v1971_v6  ;;  %v531_v61 = vrot.slane %v2313_v56, 7  ;;  %v1297_v42 = vmax.f32 %v1233_v29, %v1265_v55  ;;  %v1266_v32 = vsel %vm2251_vm5, %v2259_v35, 0.0 }
  0x54   : > { %v692_v19 = vsel %vm660_vm11, %v581_v47, 0.0  ;;  %v3116_v34 = vshra.s32 %v1915_v53, 4  ;;  %v3119_v18 = vand.u32 15, %v1915_v53  ;;  %v868_v55 = vsel %vm844_vm4, %v819_v40, %v820_v12 }
  0x55   : > { %v373_v7 = vadd.f32 %v2025_v22, %v335_v30  ;;  %v978_v46 = vmax.f32 %v785_v3, %v946_v2  ;;  %v403_v25 = vmax.f32 %v371_v31, 0.0  ;;  %v2368_v26 = vmax.f32 %v372_v15, 0.0 }
  0x56   : > { %vm2356_vm13 = vcmp.ge.s32.totalorder %v3116_v34, 1  ;;  %vm2362_vm14 = vcmp.ge.s32.totalorder %v3119_v18, 1  ;;  %v3122_v47 = vmov %v3112_v1  ;;  %v1393_v8 = vmax.f32 %v1297_v42, %v1361_v38 }
  0x57   : > { %vm2372_vm0 = vcmp.le.s32.totalorder %v3122_v47, 14  ;;  %v2380_v60 = vmax.f32 %v373_v7, 0.0  ;;  %v579_v40 = vsel %vm555_vm3, %v530_v24, %v531_v61  ;;  %v724_v17 = vmax.f32 %v2313_v56, %v692_v19  ;;  %vm664_vm5 = vmand %vm2356_vm13, %vm2362_vm14 }
  0x58   : > { %v1042_v23 = vmax.f32 %v978_v46, %v582_v20  ;;  %v532_v2 = vrot.slane %v403_v25, 7  ;;  %v533_v48 = vrot.slane %v2368_v26, 7  ;;  %v756_v38 = vsel %vm2236_vm1, %v2246_v16, 0.0  ;;  %1425 = vst [vmem:[#allocation2 + $0x20] sm:$0xff] %v1393_v8 }
  0x59   : > { %v788_v11 = vmax.f32 %v724_v17, %v756_v38  ;;  %v821_v1 = vrot.slane %v403_v25, 1  ;;  %v822_v21 = vrot.slane %v2368_v26, 1  ;;  %v823_v29 = vrot.slane %v2380_v60, 1 }
  0x5a   : > { %v1106_v24 = vmax.f32 %v1042_v23, %v1074_v41  ;;  %v1362_v20 = vsel %vm1330_vm10, %v868_v55, 0.0  ;;  %v949_v56 = vsel %vm2236_vm1, %v2283_v14, 0.0  ;;  %v1013_v16 = vsel %vm2242_vm2, %v579_v40, 0.0  ;;  %vm918_vm1 = vmand %vm2335_vm12, %vm2320_vm9 }
  0x5b   : > { %v577_v39 = vsel %vm555_vm3, %v532_v2, %v533_v48  ;;  %v2404_v30 = vsel %vm844_vm4, %v822_v21, %v823_v29  ;;  %v867_v3 = vsel %vm844_vm4, %v820_v12, %v821_v1  ;;  %v981_v31 = vmax.f32 %v788_v11, %v949_v56  ;;  %vm1334_vm10 = vmand %vm2372_vm0, %vm2320_vm9 }
  0x5c   : > { %v1234_v41 = vmax.f32 %v1106_v24, %v1202_v27  ;;  %v1205_v15 = vsel %vm1173_vm15, %v577_v39, 0.0  ;;  %v1269_v51 = vsel %vm2292_vm7, %v2368_v26, 0.0  ;;  %v3125_v13 = vunpack.c.l.bf16 %v1901_v43 }
  0x5d   : > { %v1045_v42 = vmax.f32 %v981_v31, %v1013_v16  ;;  %v1365_v12 = vsel %vm2292_vm7, %v2404_v30, 0.0  ;;  %v534_v27 = vrot.slane %v2380_v60, 7  ;;  %v693_v7 = vsel %vm2335_vm12, %v580_v9, 0.0 }
  0x5e   : > { %v336_v14 = vmul.f32 %v3125_v13, %v1971_v6  ;;  %v1298_v19 = vmax.f32 %v1234_v41, %v1266_v32  ;;  %v725_v18 = vmax.f32 %v403_v25, %v693_v7  ;;  %v757_v46 = vsel %vm2335_vm12, %v2259_v35, 0.0 }
  0x5f   : > { %v3126_v47 = vshra.s32 %v1915_v53, 4  ;;  %v1109_v33 = vmax.f32 %v1045_v42, %v867_v3  ;;  %v578_v40 = vsel %vm555_vm3, %v531_v61, %v532_v2  ;;  %v866_v9 = vsel %vm844_vm4, %v821_v1, %v822_v21 }
  0x60   : > { %v374_v34 = vadd.f32 %v2025_v22, %v336_v14  ;;  %v950_v32 = vsel %vm918_vm1, %v868_v55, 0.0  ;;  %v1394_v17 = vmax.f32 %v1298_v19, %v1362_v20  ;;  %v2442_v35 = vsel %vm555_vm3, %v533_v48, %v534_v27 }
  0x61   : > { %vm2430_vm2 = vcmp.le.s32.totalorder %v3126_v47, 14  ;;  %v789_v53 = vmax.f32 %v725_v18, %v757_v46  ;;  %v1237_v36 = vmax.f32 %v1109_v33, %v1205_v15  ;;  %v1078_v61 = vsel %vm2320_vm9, %v866_v9, 0.0 }
  0x62   : > { %v2438_v25 = vmax.f32 %v374_v34, 0.0  ;;  %v1206_v55 = vsel %vm2372_vm0, %v2442_v35, 0.0  ;;  %v3129_v23 = vunpack.c.h.bf16 %v1901_v43  ;;  %v3130_v48 = vand.u32 15, %v1930_v63  ;;  %1426 = vst [vmem:[#allocation2 + $0x28] sm:$0xff] %v1394_v17  ;;  %vm1177_vm9 = vmand %vm2430_vm2, %vm2362_vm14 }
  0x63   : > { %v982_v1 = vmax.f32 %v789_v53, %v950_v32  ;;  %v3133_v21 = vunpack.c.l.bf16 %v1910_v49  ;;  %v3134_v20 = vunpack.c.h.bf16 %v1910_v49  ;;  %v3135_v43 = vshra.s32 %v1930_v63, 4 }
  0x64   : > { %v337_v2 = vmul.f32 %v3129_v23, %v1971_v6  ;;  %vm2458_vm6 = vcmp.le.s32.totalorder %v3130_v48, 14  ;;  %v824_v11 = vrot.slane %v2438_v25, 1  ;;  %v1301_v3 = vmax.f32 %v1237_v36, %v1269_v51 }
  0x65   : > { %v338_v24 = vmul.f32 %v3133_v21, %v1971_v6  ;;  %v339_v56 = vmul.f32 %v3134_v20, %v1971_v6  ;;  %vm2471_vm7 = vcmp.ge.s32.totalorder %v3135_v43, 1  ;;  %v535_v41 = vrot.slane %v2438_v25, 7 }
  0x66   : > { %v375_v31 = vadd.f32 %v2025_v22, %v337_v2  ;;  %v696_v15 = vsel %vm664_vm5, %v577_v39, 0.0  ;;  %v3138_v13 = vshra.s32 %v1939_v5, 4  ;;  %v3141_v49 = vand.u32 15, %v1939_v5 }
  0x67   : > { %v1046_v7 = vmax.f32 %v982_v1, %v578_v40  ;;  %v1270_v51 = vsel %vm2372_vm0, %v2380_v60, 0.0  ;;  %v376_v19 = vadd.f32 %v2025_v22, %v338_v24  ;;  %v377_v39 = vadd.f32 %v2025_v22, %v339_v56 }
  0x68   : > { %vm2479_vm8 = vcmp.ge.s32.totalorder %v3138_v13, 1  ;;  %vm2485_vm11 = vcmp.ge.s32.totalorder %v3141_v49, 1  ;;  %v1397_v34 = vmax.f32 %v1301_v3, %v1365_v12  ;;  %v864_v18 = vsel %vm844_vm4, %v823_v29, %v824_v11 }
  0x69   : > { %v407_v46 = vmax.f32 %v375_v31, 0.0  ;;  %v575_v47 = vsel %vm555_vm3, %v534_v27, %v535_v41  ;;  %v3144_v33 = vmov %v3135_v43  ;;  %v1110_v9 = vmax.f32 %v1046_v7, %v1078_v61  ;;  %vm668_vm0 = vmand %vm2479_vm8, %vm2485_vm11 }
  0x6a   : > { %vm2500_vm12 = vcmp.le.s32.totalorder %v3144_v33, 14  ;;  %v2508_v12 = vmax.f32 %v376_v19, 0.0  ;;  %v2510_v32 = vmax.f32 %v377_v39, 0.0  ;;  %v728_v29 = vmax.f32 %v2438_v25, %v696_v15  ;;  %1429 = vst [vmem:[#allocation2 + $0x40] sm:$0xff] %v1397_v34 }
  0x6b   : > { %v536_v27 = vrot.slane %v407_v46, 7  ;;  %v760_v63 = vsel %vm2356_vm13, %v2368_v26, 0.0  ;;  %v825_v17 = vrot.slane %v407_v46, 1  ;;  %v953_v45 = vsel %vm2356_vm13, %v2404_v30, 0.0  ;;  %vm922_vm13 = vmand %vm2471_vm7, %vm2458_vm6 }
  0x6c   : > { %v1238_v53 = vmax.f32 %v1110_v9, %v1206_v55  ;;  %v537_v37 = vrot.slane %v2508_v12, 7  ;;  %v792_v36 = vmax.f32 %v728_v29, %v760_v63  ;;  %v826_v61 = vrot.slane %v2508_v12, 1 }
  0x6d   : > { %v1366_v23 = vsel %vm1334_vm10, %v864_v18, 0.0  ;;  %v827_v25 = vrot.slane %v2510_v32, 1  ;;  %v1017_v2 = vsel %vm2362_vm14, %v575_v47, 0.0  ;;  %v2529_v28 = vadd.s32 168, %v1842_v10 }
  0x6e   : > { %v1302_v26 = vmax.f32 %v1238_v53, %v1270_v51  ;;  %v863_v30 = vsel %vm844_vm4, %v824_v11, %v825_v17  ;;  %v985_v55 = vmax.f32 %v792_v36, %v953_v45  ;;  %v3147_v48 = vunpack.c.l.bf16 %v1922_v58 }
  0x6f   : > { %v573_v21 = vsel %vm555_vm3, %v536_v27, %v537_v37  ;;  %v2542_v0 = vsel %vm844_vm4, %v826_v61, %v827_v25  ;;  %v1273_v24 = vsel %vm2430_vm2, %v2508_v12, 0.0  ;;  %v538_v11 = vrot.slane %v2510_v32, 7 }
  0x70   : > { %v340_v1 = vmul.f32 %v3147_v48, %v1971_v6  ;;  %v1398_v20 = vmax.f32 %v1302_v26, %v1366_v23  ;;  %v1049_v56 = vmax.f32 %v985_v55, %v1017_v2  ;;  %v1209_v43 = vsel %vm1177_vm9, %v573_v21, 0.0 }
  0x71   : > { %v574_v31 = vsel %vm555_vm3, %v535_v41, %v536_v27  ;;  %v697_v15 = vsel %vm2471_vm7, %v2442_v35, 0.0  ;;  %v761_v13 = vsel %vm2471_vm7, %v2380_v60, 0.0  ;;  %v862_v49 = vsel %vm844_vm4, %v825_v17, %v826_v61  ;;  %vm1338_vm7 = vmand %vm2500_vm12, %vm2458_vm6 }
  0x72   : > { %v378_v3 = vadd.f32 %v2025_v22, %v340_v1  ;;  %v3148_v7 = vshra.s32 %v1939_v5, 4  ;;  %1430 = vst [vmem:[#allocation2 + $0x48] sm:$0xff] %v1398_v20  ;;  %v1113_v19 = vmax.f32 %v1049_v56, %v863_v30  ;;  %v1369_v41 = vsel %vm2430_vm2, %v2542_v0, 0.0 }
  0x73   : > { %v2574_v35 = vsel %vm555_vm3, %v537_v37, %v538_v11  ;;  %v729_v60 = vmax.f32 %v407_v46, %v697_v15  ;;  %v954_v16 = vsel %vm922_vm13, %v864_v18, 0.0  ;;  %v1082_v39 = vsel %vm2458_vm6, %v862_v49, 0.0 }
  0x74   : > { %vm2565_vm14 = vcmp.le.s32.totalorder %v3148_v7, 14  ;;  %v2580_v5 = vmax.f32 %v378_v3, 0.0  ;;  %v3151_v8 = vunpack.c.h.bf16 %v1922_v58  ;;  %v3152_v47 = vand.u32 15, %v1953_v4 }
  0x75   : > { %v1241_v46 = vmax.f32 %v1113_v19, %v1209_v43  ;;  %v793_v9 = vmax.f32 %v729_v60, %v761_v13  ;;  %v1210_v29 = vsel %vm2500_vm12, %v2574_v35, 0.0  ;;  %v3155_v18 = vunpack.c.l.bf16 %v1925_v59  ;;  %vm1181_vm9 = vmand %vm2565_vm14, %vm2485_vm11 }
  0x76   : > { %v341_v34 = vmul.f32 %v3151_v8, %v1971_v6  ;;  %vm2589_vm15 = vcmp.le.s32.totalorder %v3152_v47, 14  ;;  %v3156_v63 = vshra.s32 %v1953_v4, 4  ;;  %v3159_v17 = vunpack.c.h.bf16 %v1925_v59 }
  0x77   : > { %v342_v27 = vmul.f32 %v3155_v18, %v1971_v6  ;;  %v539_v37 = vrot.slane %v2580_v5, 7  ;;  %v700_v36 = vsel %vm668_vm0, %v573_v21, 0.0  ;;  %v1305_v61 = vmax.f32 %v1241_v46, %v1273_v24 }
  0x78   : > { %vm2601_vm1 = vcmp.ge.s32.totalorder %v3156_v63, 1  ;;  %v343_v45 = vmul.f32 %v3159_v17, %v1971_v6  ;;  %v379_v53 = vadd.f32 %v2025_v22, %v341_v34  ;;  %v986_v23 = vmax.f32 %v793_v9, %v954_v16 }
  0x79   : > { %v1274_v2 = vsel %vm2500_vm12, %v2510_v32, 0.0  ;;  %v380_v26 = vadd.f32 %v2025_v22, %v342_v27  ;;  %v3160_v30 = vshra.s32 %v1956_v57, 4  ;;  %v3163_v59 = vand.u32 15, %v1956_v57  ;;  %vm926_vm6 = vmand %vm2601_vm1, %vm2589_vm15 }
  0x7a   : > { %v828_v1 = vrot.slane %v2580_v5, 1  ;;  %v381_v21 = vadd.f32 %v2025_v22, %v343_v45  ;;  %v411_v24 = vmax.f32 %v379_v53, 0.0  ;;  %v571_v20 = vsel %vm555_vm3, %v538_v11, %v539_v37  ;;  %v2643_v11 = vld [vmem:[%s1840_s26 + $0x68] sm:$0xff]  }
  0x7b   : > { %vm2616_vm2 = vcmp.ge.s32.totalorder %v3160_v30, 1  ;;  %vm2622_vm5 = vcmp.ge.s32.totalorder %v3163_v59, 1  ;;  %v1401_v56 = vmax.f32 %v1305_v61, %v1369_v41  ;;  %v1050_v43 = vmax.f32 %v986_v23, %v574_v31 }
  0x7c   : > { %v2630_v3 = vmax.f32 %v380_v26, 0.0  ;;  %v732_v15 = vmax.f32 %v2580_v5, %v700_v36  ;;  %v2637_v13 = vmax.f32 %v381_v21, 0.0  ;;  %v540_v49 = vrot.slane %v411_v24, 7 }
  0x7d   : > { %v764_v7 = vsel %vm2479_vm8, %v2508_v12, 0.0  ;;  %v829_v19 = vrot.slane %v411_v24, 1  ;;  %1433 = vst [vmem:[#allocation2 + $0x60] sm:$0xff] %v1401_v56  ;;  %v1114_v31 = vmax.f32 %v1050_v43, %v1082_v39  ;;  %v3166_v16 = vmov %v3156_v63 }
  0x7e   : > { %v541_v41 = vrot.slane %v2630_v3, 7  ;;  %v796_v60 = vmax.f32 %v732_v15, %v764_v7  ;;  %v830_v5 = vrot.slane %v2630_v3, 1  ;;  %vm2649_vm10 = vcmp.le.s32.totalorder %v3166_v16, 14 }
  0x7f   : > { %v860_v12 = vsel %vm844_vm4, %v827_v25, %v828_v1  ;;  %v831_v34 = vrot.slane %v2637_v13, 1  ;;  %v957_v39 = vsel %vm2479_vm8, %v2542_v0, 0.0  ;;  %v1021_v47 = vsel %vm2485_vm11, %v571_v20, 0.0  ;;  %vm672_vm11 = vmand %vm2616_vm2, %vm2622_vm5 }
  0x80   : > { %v1242_v46 = vmax.f32 %v1114_v31, %v1210_v29  ;;  %v1370_v4 = vsel %vm1338_vm7, %v860_v12, 0.0  ;;  %v989_v9 = vmax.f32 %v796_v60, %v957_v39  ;;  %v1713_v25 = vunpack.c.l.bf16 %v2643_v11  ;;  %vm1342_vm12 = vmand %vm2649_vm10, %vm2589_vm15 }
  0x81   : > { %v569_v14 = vsel %vm555_vm3, %v540_v49, %v541_v41  ;;  %v859_v0 = vsel %vm844_vm4, %v828_v1, %v829_v19  ;;  %v1277_v38 = vsel %vm2565_vm14, %v2630_v3, 0.0  ;;  %v3169_v40 = vunpack.c.l.bf16 %v1945_v44 }
  0x82   : > { %v1306_v42 = vmax.f32 %v1242_v46, %v1274_v2  ;;  %v857_v18 = vsel %vm844_vm4, %v830_v5, %v831_v34  ;;  %v1053_v27 = vmax.f32 %v989_v9, %v1021_v47  ;;  %v542_v63 = vrot.slane %v2637_v13, 7 }
  0x83   : > { %v344_v29 = vmul.f32 %v3169_v40, %v1971_v6  ;;  %v1213_v17 = vsel %vm1181_vm9, %v569_v14, 0.0  ;;  %v701_v53 = vsel %vm2601_vm1, %v2574_v35, 0.0  ;;  %v765_v36 = vsel %vm2601_vm1, %v2510_v32, 0.0 }
  0x84   : > { %v1402_v61 = vmax.f32 %v1306_v42, %v1370_v4  ;;  %v1117_v23 = vmax.f32 %v1053_v27, %v859_v0  ;;  %v733_v2 = vmax.f32 %v411_v24, %v701_v53  ;;  %v858_v26 = vsel %vm844_vm4, %v829_v19, %v830_v5 }
  0x85   : > { %v382_v45 = vadd.f32 %v2025_v22, %v344_v29  ;;  %vm2703_vm8 = vcmp.le.s32.totalorder %v3160_v30, 14  ;;  %v1373_v1 = vsel %vm2565_vm14, %v857_v18, 0.0  ;;  %v570_v32 = vsel %vm555_vm3, %v539_v37, %v540_v49 }
  0x86   : > { %v958_v58 = vsel %vm926_vm6, %v860_v12, 0.0  ;;  %1434 = vst [vmem:[#allocation2 + $0x68] sm:$0xff] %v1402_v61  ;;  %v1245_v57 = vmax.f32 %v1117_v23, %v1213_v17  ;;  %v2719_v21 = vsel %vm555_vm3, %v541_v41, %v542_v63  ;;  %v797_v24 = vmax.f32 %v733_v2, %v765_v36  ;;  %vm1185_vm13 = vmand %vm2703_vm8, %vm2622_vm5 }
  0x87   : > { %v2709_v35 = vmax.f32 %v382_v45, 0.0  ;;  %v3172_v51 = vunpack.c.h.bf16 %v1945_v44  ;;  %v1086_v37 = vsel %vm2589_vm15, %v858_v26, 0.0  ;;  %v3173_v56 = vunpack.c.l.bf16 %v1948_v50 }
  0x88   : > { %v3174_v15 = vunpack.c.h.bf16 %v1948_v50  ;;  %v1309_v19 = vmax.f32 %v1245_v57, %v1277_v38  ;;  %v990_v31 = vmax.f32 %v797_v24, %v958_v58  ;;  %v704_v60 = vsel %vm672_vm11, %v569_v14, 0.0 }
  0x89   : > { %v345_v20 = vmul.f32 %v3172_v51, %v1971_v6  ;;  %v346_v43 = vmul.f32 %v3173_v56, %v1971_v6  ;;  %v543_v7 = vrot.slane %v2709_v35, 7  ;;  %v832_v44 = vrot.slane %v2709_v35, 1 }
  0x8a   : > { %v347_v49 = vmul.f32 %v3174_v15, %v1971_v6  ;;  %v1214_v5 = vsel %vm2649_vm10, %v2719_v21, 0.0  ;;  %v1405_v39 = vmax.f32 %v1309_v19, %v1373_v1  ;;  %v1054_v50 = vmax.f32 %v990_v31, %v570_v32 }
  0x8b   : > { %v383_v41 = vadd.f32 %v2025_v22, %v345_v20  ;;  %v384_v16 = vadd.f32 %v2025_v22, %v346_v43  ;;  %v567_v46 = vsel %vm555_vm3, %v542_v63, %v543_v7  ;;  %v736_v14 = vmax.f32 %v2709_v35, %v704_v60 }
  0x8c   : > { %v385_v12 = vadd.f32 %v2025_v22, %v347_v49  ;;  %v768_v0 = vsel %vm2616_vm2, %v2630_v3, 0.0  ;;  %1437 = vst [vmem:[#allocation2 + $0x80] sm:$0xff] %v1405_v39  ;;  %v1118_v38 = vmax.f32 %v1054_v50, %v1086_v37  ;;  %v961_v42 = vsel %vm2616_vm2, %v857_v18, 0.0 }
  0x8d   : > { %v415_v47 = vmax.f32 %v383_v41, 0.0  ;;  %v2742_v4 = vmax.f32 %v384_v16, 0.0  ;;  %v856_v27 = vsel %vm844_vm4, %v831_v34, %v832_v44  ;;  %v1278_v3 = vsel %vm2649_vm10, %v2637_v13, 0.0 }
  0x8e   : > { %v2744_v9 = vmax.f32 %v385_v12, 0.0  ;;  %v800_v33 = vmax.f32 %v736_v14, %v768_v0  ;;  %v1246_v17 = vmax.f32 %v1118_v38, %v1214_v5  ;;  %v1025_v55 = vsel %vm2622_vm5, %v567_v46, 0.0 }
  0x8f   : > { %v544_v40 = vrot.slane %v415_v47, 7  ;;  %v833_v29 = vrot.slane %v415_v47, 1  ;;  %v545_v63 = vrot.slane %v2742_v4, 7  ;;  %v834_v45 = vrot.slane %v2742_v4, 1 }
  0x90   : > { %v835_v53 = vrot.slane %v2744_v9, 1  ;;  %v1374_v18 = vsel %vm1342_vm12, %v856_v27, 0.0  ;;  %v993_v36 = vmax.f32 %v800_v33, %v961_v42  ;;  %v3175_v8 = vunpack.c.l.bf16 %v1988_v62 }
  0x91   : > { %v1714_v61 = vunpack.c.h.bf16 %v2643_v11  ;;  %v1310_v23 = vmax.f32 %v1246_v17, %v1278_v3  ;;  %v2778_v2 = vsel %vm555_vm3, %v544_v40, %v545_v63  ;;  %v855_v26 = vsel %vm844_vm4, %v832_v44, %v833_v29 }
  0x92   : > { %v348_v34 = vmul.f32 %v3175_v8, %v1971_v6  ;;  %v480_v30 = vand.u32 15, %v2529_v28  ;;  %v1057_v48 = vmax.f32 %v993_v36, %v1025_v55  ;;  %v512_v35 = vshra.s32 %v2529_v28, 4  ;;  %v1773_v36 = vld [vmem:[%s1840_s26 + $0x70] sm:$0xff]  }
  0x93   : > { %v546_v32 = vrot.slane %v2744_v9, 7  ;;  %v1406_v58 = vmax.f32 %v1310_v23, %v1374_v18  ;;  %v2788_v57 = vsel %vm844_vm4, %v834_v45, %v835_v53  ;;  %v1217_v24 = vsel %vm1185_vm13, %v2778_v2, 0.0 }
  0x94   : > { %v386_v1 = vadd.f32 %v2025_v22, %v348_v34  ;;  %vm2791_vm14 = vcmp.le.s32.totalorder %v480_v30, 14  ;;  %v1121_v20 = vmax.f32 %v1057_v48, %v855_v26  ;;  %vm2797_vm0 = vcmp.ge.s32.totalorder %v512_v35, 1 }
  0x95   : > { %v854_v28 = vsel %vm844_vm4, %v833_v29, %v834_v45  ;;  %1438 = vst [vmem:[#allocation2 + $0x88] sm:$0xff] %v1406_v58  ;;  %v1281_v43 = vsel %vm2703_vm8, %v2742_v4, 0.0  ;;  %v1377_v15 = vsel %vm2703_vm8, %v2788_v57, 0.0  ;;  %v705_v49 = vsel %vm2797_vm0, %v2719_v21, 0.0  ;;  %vm930_vm15 = vmand %vm2797_vm0, %vm2791_vm14 }
  0x96   : > { %v2795_v37 = vmax.f32 %v386_v1, 0.0  ;;  %v769_v19 = vsel %vm2797_vm0, %v2637_v13, 0.0  ;;  %v1249_v31 = vmax.f32 %v1121_v20, %v1217_v24  ;;  %v2821_v41 = vsel %vm555_vm3, %v545_v63, %v546_v32 }
  0x97   : > { %v566_v59 = vsel %vm555_vm3, %v543_v7, %v544_v40  ;;  %v737_v60 = vmax.f32 %v415_v47, %v705_v49  ;;  %v962_v44 = vsel %vm930_vm15, %v856_v27, 0.0  ;;  %v1090_v21 = vsel %vm2791_vm14, %v854_v28, 0.0 }
  0x98   : > { %v3180_v13 = vunpack.c.h.bf16 %v1988_v62  ;;  %v350_v16 = vmul.f32 %v1713_v25, %v1971_v6  ;;  %v1313_v12 = vmax.f32 %v1249_v31, %v1281_v43  ;;  %v836_v50 = vrot.slane %v2795_v37, 1 }
  0x99   : > { %v801_v39 = vmax.f32 %v737_v60, %v769_v19  ;;  %v351_v46 = vmul.f32 %v1714_v61, %v1971_v6  ;;  %vm2835_vm1 = vcmp.le.s32.totalorder %v512_v35, 14  ;;  %v451_v62 = vadd.s32 192, %v1842_v10 }
  0x9a   : > { %v349_v5 = vmul.f32 %v3180_v13, %v1971_v6  ;;  %v388_v14 = vadd.f32 %v2025_v22, %v350_v16  ;;  %v1409_v0 = vmax.f32 %v1313_v12, %v1377_v15  ;;  %vm1346_vm2 = vmand %vm2835_vm1, %vm2791_vm14  ;;  %v547_v25 = vrot.slane %v2795_v37, 7 }
  0x9b   : > { %v994_v38 = vmax.f32 %v801_v39, %v962_v44  ;;  %v389_v11 = vadd.f32 %v2025_v22, %v351_v46  ;;  %v483_v42 = vand.u32 15, %v451_v62  ;;  %v515_v27 = vshra.s32 %v451_v62, 4 }
  0x9c   : > { %v387_v47 = vadd.f32 %v2025_v22, %v349_v5  ;;  %v2848_v29 = vmax.f32 %v388_v14, 0.0  ;;  %1441 = vst [vmem:[#allocation2 + $0xa0] sm:$0xff] %v1409_v0  ;;  %v852_v3 = vsel %vm844_vm4, %v835_v53, %v836_v50  ;;  %v1218_v33 = vsel %vm2835_vm1, %v2821_v41, 0.0 }
  0x9d   : > { %v1058_v63 = vmax.f32 %v994_v38, %v566_v59  ;;  %v1282_v17 = vsel %vm2835_vm1, %v2744_v9, 0.0  ;;  %v1378_v45 = vsel %vm1346_vm2, %v852_v3, 0.0  ;;  %vm2858_vm5 = vcmp.ge.s32.totalorder %v515_v27, 1 }
  0x9e   : > { %v419_v40 = vmax.f32 %v387_v47, 0.0  ;;  %vm2862_vm7 = vcmp.ge.s32.totalorder %v483_v42, 1  ;;  %v1717_v53 = vunpack.c.l.bf16 %v1773_v36  ;;  %v2867_v34 = vmax.f32 %v389_v11, 0.0 }
  0x9f   : > { %v1122_v8 = vmax.f32 %v1058_v63, %v1090_v21  ;;  %v549_v23 = vrot.slane %v2848_v29, 7  ;;  %vm676_vm10 = vmand %vm2858_vm5, %vm2862_vm7  ;;  %v563_v26 = vsel %vm555_vm3, %v546_v32, %v547_v25  ;;  %v772_v48 = vsel %vm2858_vm5, %v2742_v4, 0.0 }
  0xa0   : > { %v548_v61 = vrot.slane %v419_v40, 7  ;;  %v708_v30 = vsel %vm676_vm10, %v2778_v2, 0.0  ;;  %v837_v1 = vrot.slane %v419_v40, 1  ;;  %v838_v24 = vrot.slane %v2848_v29, 1 }
  0xa1   : > { %v1250_v35 = vmax.f32 %v1122_v8, %v1218_v33  ;;  %v740_v58 = vmax.f32 %v2795_v37, %v708_v30  ;;  %v839_v51 = vrot.slane %v2867_v34, 1  ;;  %v965_v20 = vsel %vm2858_vm5, %v2788_v57, 0.0  ;;  %v3195_v33 = vld [vmem:[#allocation4_spill] sm:$0xff] }
  0xa2   : > { %vm2886_vm9 = vcmp.le.s32.totalorder %v515_v27, 14  ;;  %v352_v2 = vmul.f32 %v1717_v53, %v1971_v6  ;;  %v452_v4 = vadd.s32 200, %v1842_v10  ;;  %v561_v37 = vsel %vm555_vm3, %v548_v61, %v549_v23 }
  0xa3   : > { %v1314_v56 = vmax.f32 %v1250_v35, %v1282_v17  ;;  %v804_v28 = vmax.f32 %v740_v58, %v772_v48  ;;  %v1029_v43 = vsel %vm2862_vm7, %v563_v26, 0.0  ;;  %v2899_v31 = vsel %vm844_vm4, %v838_v24, %v839_v51  ;;  %vm1189_vm6 = vmand %vm2886_vm9, %vm2862_vm7 }
  0xa4   : > { %v390_v15 = vadd.f32 %v2025_v22, %v352_v2  ;;  %v484_v49 = vand.u32 15, %v452_v4  ;;  %v516_v57 = vshra.s32 %v452_v4, 4  ;;  %v851_v6 = vsel %vm844_vm4, %v836_v50, %v837_v1 }
  0xa5   : > { %v1410_v19 = vmax.f32 %v1314_v56, %v1378_v45  ;;  %v997_v59 = vmax.f32 %v804_v28, %v965_v20  ;;  %v550_v22 = vrot.slane %v2867_v34, 7  ;;  %v1285_v5 = vsel %vm2886_vm9, %v2848_v29, 0.0  ;;  %v3202_v28 = vld [vmem:[#allocation6_spill] sm:$0xff] }
  0xa6   : > { %v2907_v60 = vmax.f32 %v390_v15, 0.0  ;;  %vm2910_vm8 = vcmp.ge.s32.totalorder %v516_v57, 1  ;;  %vm2914_vm11 = vcmp.le.s32.totalorder %v484_v49, 14  ;;  %v1221_v39 = vsel %vm1189_vm6, %v561_v37, 0.0 }
  0xa7   : > { %1442 = vst [vmem:[#allocation2 + $0xa8] sm:$0xff] %v1410_v19  ;;  %v1061_v13 = vmax.f32 %v997_v59, %v1029_v43  ;;  %v709_v16 = vsel %vm2910_vm8, %v2821_v41, 0.0  ;;  %v773_v12 = vsel %vm2910_vm8, %v2744_v9, 0.0  ;;  %vm934_vm12 = vmand %vm2910_vm8, %vm2914_vm11  ;;  %v1381_v50 = vsel %vm2886_vm9, %v2899_v31, 0.0 }
  0xa8   : > { %v562_v46 = vsel %vm555_vm3, %v547_v25, %v548_v61  ;;  %v741_v7 = vmax.f32 %v419_v40, %v709_v16  ;;  %v850_v41 = vsel %vm844_vm4, %v837_v1, %v838_v24  ;;  %v966_v14 = vsel %vm934_vm12, %v852_v3, 0.0 }
  0xa9   : > { %v1125_v47 = vmax.f32 %v1061_v13, %v851_v6  ;;  %v455_v9 = vadd.s32 224, %v1842_v10  ;;  %v560_v62 = vsel %vm555_vm3, %v549_v23, %v550_v22  ;;  %v840_v38 = vrot.slane %v2907_v60, 1 }
  0xaa   : > { %v805_v0 = vmax.f32 %v741_v7, %v773_v12  ;;  %v551_v11 = vrot.slane %v2907_v60, 7  ;;  %vm2943_vm13 = vcmp.le.s32.totalorder %v516_v57, 14  ;;  %v1094_v3 = vsel %vm2914_vm11, %v850_v41, 0.0  ;;  %v3210_v41 = vld [vmem:[#allocation5_spill] sm:$0xff] }
  0xab   : > { %v1253_v42 = vmax.f32 %v1125_v47, %v1221_v39  ;;  %v487_v25 = vand.u32 15, %v455_v9  ;;  %v519_v40 = vshra.s32 %v455_v9, 4  ;;  %v841_v17 = vrot.slane %v3195_v33, 1  ;;  %vm1350_vm14 = vmand %vm2943_vm13, %vm2914_vm11 }
  0xac   : > { %v998_v63 = vmax.f32 %v805_v0, %v966_v14  ;;  %v456_v45 = vadd.s32 232, %v1842_v10  ;;  %v848_v8 = vsel %vm844_vm4, %v839_v51, %v840_v38  ;;  %v1222_v23 = vsel %vm2943_vm13, %v560_v62, 0.0 }
  0xad   : > { %v1317_v55 = vmax.f32 %v1253_v42, %v1285_v5  ;;  %vm2955_vm0 = vcmp.ge.s32.totalorder %v519_v40, 1  ;;  %vm2959_vm15 = vcmp.ge.s32.totalorder %v487_v25, 1  ;;  %vm2963_vm1 = vcmp.le.s32.totalorder %v519_v40, 14  ;;  %v1453_v40 = vld [vmem:[#allocation2] ss:$2 sm:$0xff] }
  0xae   : > { %v1062_v61 = vmax.f32 %v998_v63, %v562_v46  ;;  %v559_v26 = vsel %vm555_vm3, %v550_v22, %v551_v11  ;;  %vm680_vm2 = vmand %vm2955_vm0, %vm2959_vm15  ;;  %v1286_v48 = vsel %vm2943_vm13, %v2867_v34, 0.0  ;;  %v776_v35 = vsel %vm2955_vm0, %v2848_v29, 0.0  ;;  %v1456_v63 = vld [vmem:[#allocation2 + $0x20] ss:$2 sm:$0xff] }
  0xaf   : > { %v1413_v30 = vmax.f32 %v1317_v55, %v1381_v50  ;;  %v712_v1 = vsel %vm680_vm2, %v561_v37, 0.0  ;;  %vm1193_vm5 = vmand %vm2963_vm1, %vm2959_vm15  ;;  %v1382_v24 = vsel %vm1350_vm14, %v848_v8, 0.0  ;;  %v847_v20 = vsel %vm844_vm4, %v840_v38, %v841_v17  ;;  %v3209_v50 = vld [vmem:[#allocation7_spill] sm:$0xff]  ;;  %v1468_v55 = vld [vmem:[#allocation2 + $0xa0] ss:$2 sm:$0xff] }
  0xb0   : > { %v1126_v58 = vmax.f32 %v1062_v61, %v1094_v3  ;;  %v744_v51 = vmax.f32 %v2907_v60, %v712_v1  ;;  %v969_v32 = vsel %vm2955_vm0, %v2899_v31, 0.0  ;;  %v1033_v29 = vsel %vm2959_vm15, %v559_v26, 0.0 }
  0xb1   : > { %1445 = vst [vmem:[#allocation2 + $0xc0] sm:$0xff] %v1413_v30  ;;  %v488_v2 = vand.u32 15, %v456_v45  ;;  %v520_v4 = vshra.s32 %v456_v45, 4  ;;  %v1225_v43 = vsel %vm1193_vm5, %v3202_v28, 0.0  ;;  %v1289_v15 = vsel %vm2963_vm1, %v2099_v52, 0.0 }
  0xb2   : > { %v1254_v56 = vmax.f32 %v1126_v58, %v1222_v23  ;;  %v808_v37 = vmax.f32 %v744_v51, %v776_v35  ;;  %v1385_v59 = vsel %vm2963_vm1, %v2151_v54, 0.0  ;;  %v3205_v22 = vrot.slane %v2099_v52, 1  ;;  %v1465_v45 = vld [vmem:[#allocation2 + $0x80] ss:$2 sm:$0xff] }
  0xb3   : > { %vm617_vm7 = vcmp.ge.s32.totalorder %v520_v4, 1  ;;  %vm2999_vm10 = vcmp.le.s32.totalorder %v488_v2, 14  ;;  %vm3014_vm6 = vcmp.le.s32.totalorder %v520_v4, 14  ;;  %v3208_v16 = vrot.slane %v3195_v33, 7 }
  0xb4   : > { %v1318_v57 = vmax.f32 %v1254_v56, %v1286_v48  ;;  %v1001_v19 = vmax.f32 %v808_v37, %v969_v32  ;;  %v713_v31 = vsel %vm617_vm7, %v560_v62, 0.0  ;;  %v777_v6 = vsel %vm617_vm7, %v2867_v34, 0.0  ;;  %vm938_vm9 = vmand %vm617_vm7, %vm2999_vm10 }
  0xb5   : > { %v745_v60 = vmax.f32 %v3195_v33, %v713_v31  ;;  %v846_v44 = vsel %vm844_vm4, %v841_v17, %v3205_v22  ;;  %v970_v5 = vsel %vm938_vm9, %v848_v8, 0.0  ;;  %v558_v12 = vsel %vm555_vm3, %v551_v11, %v3208_v16  ;;  %vm1354_vm3 = vmand %vm3014_vm6, %vm2999_vm10  ;;  %v3211_v11 = vld [vmem:[#allocation8_spill] sm:$0xff] }
  0xb6   : > { %v1414_v13 = vmax.f32 %v1318_v57, %v1382_v24  ;;  %v1065_v34 = vmax.f32 %v1001_v19, %v1033_v29  ;;  %v1098_v52 = vsel %vm2999_vm10, %v846_v44, 0.0  ;;  %v1226_v46 = vsel %vm3014_vm6, %v3209_v50, 0.0  ;;  %v1459_v33 = vld [vmem:[#allocation2 + $0x40] ss:$2 sm:$0xff] }
  0xb7   : > { %v809_v54 = vmax.f32 %v745_v60, %v777_v6  ;;  %v1290_v14 = vsel %vm3014_vm6, %v3210_v41, 0.0  ;;  %v1386_v42 = vsel %vm1354_vm3, %v3211_v11, 0.0  ;;  %v1726_v3 = vpack.c.bf16 %v1456_v63, %v1453_v40  ;;  %v1462_v17 = vld [vmem:[#allocation2 + $0x60] ss:$2 sm:$0xff] }
  0xb8   : > { %1446 = vst [vmem:[#allocation2 + $0xc8] sm:$0xff] %v1414_v13  ;;  %v1129_v39 = vmax.f32 %v1065_v34, %v847_v20  ;;  %v1731_v53 = vpack.c.bf16 %v1462_v17, %v1459_v33  ;;  %v1736_v8 = vpack.c.bf16 %v1468_v55, %v1465_v45  ;;  %v1783_v23 = vmov (!%p1646_p4), 0.0  }
  0xb9   : > { %v1002_v7 = vmax.f32 %v809_v54, %v970_v5  ;;  %1727 = vst [vmem:[%s222_s9] sm:$0xff] %v1726_v3   ;;  %1528 = vst [vmem:[%s3057_s5] sm:$0x3] (!%p1646_p4), %v1783_v23 }
  0xba   : > { %v1257_v47 = vmax.f32 %v1129_v39, %v1225_v43  ;;  %1758 = vst [vmem:[%s222_s9 + $0x8] sm:$0xff] %v1731_v53   ;;  %1759 = vst [vmem:[%s222_s9 + $0x10] sm:$0xff] %v1736_v8  }
  0xbb   : > { %v1066_v9 = vmax.f32 %v1002_v7, %v558_v12 }
  0xbc   : > { %v1321_v10 = vmax.f32 %v1257_v47, %v1289_v15 }
  0xbd   : > { %v1130_v62 = vmax.f32 %v1066_v9, %v1098_v52 }
  0xbe   : > { %v1417_v0 = vmax.f32 %v1321_v10, %v1385_v59 }
  0xbf   : > { %v1258_v38 = vmax.f32 %v1130_v62, %v1226_v46  ;;  %v1471_v18 = vld [vmem:[#allocation2 + $0xc0] ss:$2 sm:$0xff] }
  0xc0   : > { %1449 = vst [vmem:[#allocation2 + $0xe0] sm:$0xff] %v1417_v0 }
  0xc1   : > { %v1322_v27 = vmax.f32 %v1258_v38, %v1290_v14 }
  0xc3   : > { %v1418_v25 = vmax.f32 %v1322_v27, %v1386_v42 }
  0xc5   : > { %1450 = vst [vmem:[#allocation2 + $0xe8] sm:$0xff] %v1418_v25 }
  0xc9   : > { %1527 = sbr.rel (%p1646_p4) target bundleno = 208 (0xd0), region = 40 }
  0xcc   : > { %v1474_v36 = vld [vmem:[#allocation2 + $0xe0] ss:$2 sm:$0xff] }
  0xcd   : > { %v1741_v61 = vpack.c.bf16 %v1474_v36, %v1471_v18 }
  0xcf   : > { %1760 = vst [vmem:[%s222_s9 + $0x18] sm:$0xff] %v1741_v61  }
  0xd0 PF: > { %v1529_v26 = vadd.f32 %v1456_v63, %v1453_v40  ;;  %v1542_v30 = vmul.f32 %v1453_v40, %v1453_v40  ;;  %v1543_v48 = vmul.f32 %v1456_v63, %v1456_v63  ;;  %v1544_v1 = vmul.f32 %v1459_v33, %v1459_v33  ;;  %v1563_v39 = vld [vmem:[%s3057_s5] sm:$0x3] }
  0xd1   : > { %v1545_v58 = vmul.f32 %v1462_v17, %v1462_v17  ;;  %v1546_v20 = vmul.f32 %v1465_v45, %v1465_v45  ;;  %v1547_v2 = vmul.f32 %v1468_v55, %v1468_v55  ;;  %v1548_v37 = vmul.f32 %v1471_v18, %v1471_v18 }
  0xd2   : > { %v1530_v35 = vadd.f32 %v1529_v26, %v1459_v33  ;;  %v1550_v24 = vadd.f32 %v1543_v48, %v1542_v30  ;;  %v1549_v15 = vmul.f32 %v1474_v36, %v1474_v36  ;;  %vm1564_vm4 = vcmask 1040384  }
  0xd4   : > { %v1531_v51 = vadd.f32 %v1530_v35, %v1462_v17  ;;  %v1551_v32 = vadd.f32 %v1550_v24, %v1544_v1 }
  0xd6   : > { %v1532_v29 = vadd.f32 %v1531_v51, %v1465_v45  ;;  %v1552_v4 = vadd.f32 %v1551_v32, %v1545_v58 }
  0xd8   : > { %v1533_v56 = vadd.f32 %v1532_v29, %v1468_v55  ;;  %v1553_v28 = vadd.f32 %v1552_v4, %v1546_v20 }
  0xda   : > { %v1534_v43 = vadd.f32 %v1533_v56, %v1471_v18  ;;  %v1554_v49 = vadd.f32 %v1553_v28, %v1547_v2 }
  0xdc   : > { %v1535_v57 = vadd.f32 %v1534_v43, %v1474_v36  ;;  %v1555_v19 = vadd.f32 %v1554_v49, %v1548_v37 }
  0xde   : > { %v1536_v31 = vrot.slane %v1535_v57, 4  ;;  %v1556_v6 = vadd.f32 %v1555_v19, %v1549_v15 }
  0xe0   : > { %v1537_v59 = vadd.f32 %v1536_v31, %v1535_v57  ;;  %v1557_v60 = vrot.slane %v1556_v6, 4 }
  0xe2   : > { %v1538_v22 = vrot.slane %v1537_v59, 2  ;;  %v1558_v44 = vadd.f32 %v1557_v60, %v1556_v6 }
  0xe4   : > { %v1539_v21 = vadd.f32 %v1538_v22, %v1537_v59  ;;  %v1559_v13 = vrot.slane %v1558_v44, 2 }
  0xe6   : > { %v1540_v34 = vrot.slane %v1539_v21, 1  ;;  %v1560_v5 = vadd.f32 %v1559_v13, %v1558_v44 }
  0xe8   : > { %v1541_v16 = vadd.f32 %v1540_v34, %v1539_v21  ;;  %v1561_v12 = vrot.slane %v1560_v5, 1 }
  0xea   : > { %v1562_v54 = vadd.f32 %v1561_v12, %v1560_v5 }
  0xec   : > { %v1565_v52 = vsel %vm1564_vm4, %v1541_v16, %v1562_v54 }
  0xed   : > { %v1566_v50 = vadd.f32 %v1565_v52, %v1563_v39 }
  0xef   : > { %1567 = vst [vmem:[%s3057_s5] sm:$0x3] %v1566_v50 }
  0xf0 PF: > { %s16_s18 = sadd.s32 1, %s1780_s18  }
  0xf1   : > { %p13_p5 = scmp.ge.s32.totalorder %s16_s18, 4  }
  0xf3   :  { %15 = sbr.rel (!%p13_p5) target bundleno = 1 (0x1), region = 85 }

// kernel: densenet_forward.15
= control target key start
LH: loop header
LB: loop body
LE: loop exit
PB: predicated region body
PF: predicated region fallthrough
CT: control target
= control target key end

     0   :  { %s2358_s24 = smov 0   ;;  %s3382_s0 = inlined_call_operand.vmem [shape: bf16[2,64,128], index: 0, kind: input, shape index: {}]   ;;  %s3383_s1 = inlined_call_operand.vmem [shape: f32[2,128], index: 1, kind: input, shape index: {}]   ;;  %s3384_s2 = inlined_call_operand.vmem [shape: f32[1,128], index: 2, kind: input, shape index: {}]   ;;  %s3385_s3 = inlined_call_operand.vmem [shape: f32[1,128], index: 3, kind: input, shape index: {}]   ;;  %s3386_s4 = inlined_call_operand.vmem [shape: bf16[1152,128], index: 4, kind: input, shape index: {}]   ;;  %s3387_s5 = inlined_call_operand.vmem [shape: bf16[2,64,128], index: 5, kind: input, shape index: {}, may-alias: {5,6}]   ;;  %s3388_s6 = inlined_call_operand.vmem [shape: bf16[2,64,128], index: 6, kind: output, shape index: {0}, may-alias: {5,6}]   ;;  %s3389_s7 = inlined_call_operand.vmem [shape: f32[2,128], index: 7, kind: output, shape index: {1}]  }
   0x1 LB: > { %s2364_s25 = sadd.s32 4294967295, %s2314_s24   ;;  %p1754_p0 = scmp.ge.s32.totalorder %s2314_s24, 1  ;;  %s2314_s24 = sphi %s2358_s24, %s18_s24  }
   0x2   : > { %p245_p1 = scmp.lt.s32.totalorder %s2314_s24, 3 }
   0x4   : > { %p246_p2 = pnand %p1754_p0, %p245_p1 }
   0x6   : > { %249 = sbr.rel (%p246_p2) target bundleno = 386 (0x182), region = 44 }
   0xd   : > { %v2234_v0 = vld [vmem:[%s3386_s4 + $0x40] sm:$0xff]   ;;  %v2238_v4 = vld [vmem:[%s3386_s4 + $0x48] sm:$0xff]   ;;  %v2242_v8 = vld [vmem:[%s3386_s4 + $0x50] sm:$0xff]   ;;  %p282_p3 = scmp.lt.s32.totalorder %s2364_s25, 1  ;;  %v328_v40 = vlaneseq  ;;  %v2316_v41 = vmov 1966171168  }
   0xe   : > { %v2235_v1 = vld [vmem:[%s3386_s4 + $0xc0] sm:$0xff]   ;;  %2012 = vmatprep.subr.bf16.mxu0 %v2234_v0  ;;  %v2239_v5 = vld [vmem:[%s3386_s4 + $0xc8] sm:$0xff]   ;;  %v2243_v9 = vld [vmem:[%s3386_s4 + $0xd0] sm:$0xff]   ;;  %v326_v42 = vunpack.c.l.s4 %v2316_v41  ;;  %p1841_p4 = scmp.ne.s32.totalorder %s2364_s25, 0 }
   0xf   : > { %v2236_v2 = vld [vmem:[%s3386_s4] sm:$0xff]   ;;  %2052 = vmatprep.subr.bf16.mxu1 %v2235_v1  ;;  %v2240_v6 = vld [vmem:[%s3386_s4 + $0x8] sm:$0xff]   ;;  %v2244_v10 = vld [vmem:[%s3386_s4 + $0x10] sm:$0xff]   ;;  %v2474_v43 = vshrl.u32 %v328_v40, 7  ;;  %s283_s10 = scalar_select %p282_p3, %s2364_s25, 1 }
  0x10   : > { %v2237_v3 = vld [vmem:[%s3386_s4 + $0x80] sm:$0xff]   ;;  %2013 = vmatpush3.bf16.msra.mxu0 %v2236_v2  ;;  %v2241_v7 = vld [vmem:[%s3386_s4 + $0x88] sm:$0xff]   ;;  %v2245_v11 = vld [vmem:[%s3386_s4 + $0x90] sm:$0xff]   ;;  %v327_v44 = vunpack.c.0.s8 %v326_v42 }
  0x11   : > { %2053 = vmatpush3.bf16.msra.mxu1 %v2237_v3  ;;  %2014 = vmatprep.subr.bf16.mxu0 %v2238_v4  ;;  %v2246_v12 = vld [vmem:[%s3386_s4 + $0x58] sm:$0xff]   ;;  %v2250_v16 = vld [vmem:[%s3386_s4 + $0x60] sm:$0xff]   ;;  %v2254_v20 = vld [vmem:[%s3386_s4 + $0x68] sm:$0xff]   ;;  %v2478_v45 = vadd.s32 8, %v2474_v43  ;;  %s2480_s11 = sshll.u32 %s283_s10, 5  ;;  %v3400_v47 = vshra.s32 %v2474_v43, 3 }
  0x12   : > { %2054 = vmatprep.subr.bf16.mxu1 %v2239_v5  ;;  %v2247_v13 = vld [vmem:[%s3386_s4 + $0xd8] sm:$0xff]   ;;  %v2251_v17 = vld [vmem:[%s3386_s4 + $0xe0] sm:$0xff]   ;;  %v2255_v21 = vld [vmem:[%s3386_s4 + $0xe8] sm:$0xff]   ;;  %v330_v46 = vsub.s32 %v327_v44, %v2474_v43  ;;  %v390_v49 = vand.u32 7, %v2474_v43  ;;  %v2487_v50 = vadd.s32 16, %v2474_v43  ;;  %s286_s14 = scalar_lea.vmem %s3382_s0, %s2480_s11  ;;  %v2494_v52 = vadd.s32 24, %v2474_v43  ;;  %s3350_s17 = scalar_lea.vmem %s3387_s5, %s2480_s11 }
  0x13   : > { %v2248_v14 = vld [vmem:[%s3386_s4 + $0x18] sm:$0xff]   ;;  %v2252_v18 = vld [vmem:[%s3386_s4 + $0x20] sm:$0xff]   ;;  %v2256_v22 = vld [vmem:[%s3386_s4 + $0x28] sm:$0xff]   ;;  %v3399_v48 = vshra.s32 %v2478_v45, 3  ;;  %v348_v54 = vsub.s32 0, %v2474_v43  ;;  %vm2499_vm0 = vcmp.ge.s32.totalorder %v3400_v47, 1  ;;  %s296_s20 = scalar_lea.vmem %s3388_s6, %s2480_s11 }
  0x14   : > { %2015 = vmatpush3.bf16.msra.mxu0 %v2240_v6  ;;  %v2249_v15 = vld [vmem:[%s3386_s4 + $0x98] sm:$0xff]   ;;  %v2253_v19 = vld [vmem:[%s3386_s4 + $0xa0] sm:$0xff]   ;;  %v2257_v23 = vld [vmem:[%s3386_s4 + $0xa8] sm:$0xff]   ;;  %v391_v57 = vand.u32 7, %v2478_v45  ;;  %vm2510_vm2 = vcmp.ge.s32.totalorder %v390_v49, 1  ;;  %v3398_v62 = vshra.s32 %v2487_v50, 3 }
  0x15   : > { %2055 = vmatpush3.bf16.msra.mxu1 %v2241_v7  ;;  %2016 = vmatprep.subr.bf16.mxu0 %v2242_v8  ;;  %v2258_v24 = vld [vmem:[%s3386_s4 + $0x70] sm:$0xff]   ;;  %v2262_v28 = vld [vmem:[%s3386_s4 + $0x78] sm:$0xff]   ;;  %v314_v32 = vld [vmem:[%s3383_s1] sm:$0x3]  ;;  %vm2505_vm1 = vcmp.ge.s32.totalorder %v3399_v48, 1  ;;  %v3397_v1 = vshra.s32 %v2494_v52, 3 }
  0x16   : > { %2056 = vmatprep.subr.bf16.mxu1 %v2243_v9  ;;  %v2259_v25 = vld [vmem:[%s3386_s4 + $0xf0] sm:$0xff]   ;;  %v2263_v29 = vld [vmem:[%s3386_s4 + $0xf8] sm:$0xff]   ;;  %v315_v33 = vmul.f32 0.0078125, %v314_v32  ;;  %v2266_v34 = vld [vmem:[%s3386_s4 + $0x140] sm:$0xff]   ;;  %v392_v3 = vand.u32 7, %v2487_v50  ;;  %vm2520_vm3 = vcmp.ge.s32.totalorder %v391_v57, 1 }
  0x17   : > { %v2260_v26 = vld [vmem:[%s3386_s4 + $0x30] sm:$0xff]   ;;  %v2264_v30 = vld [vmem:[%s3386_s4 + $0x38] sm:$0xff]   ;;  %v2267_v36 = vld [vmem:[%s3386_s4 + $0x1c0] sm:$0xff]   ;;  %vm2524_vm4 = vcmp.le.s32.totalorder %v390_v49, 6  ;;  %v3432_v6 = vmov 0  ;;  %vm2528_vm5 = vcmp.le.s32.totalorder %v391_v57, 6 }
  0x18   : > { %2017 = vmatpush3.bf16.msra.mxu0 %v2244_v10  ;;  %v2261_v27 = vld [vmem:[%s3386_s4 + $0xb0] sm:$0xff]   ;;  %v2265_v31 = vld [vmem:[%s3386_s4 + $0xb8] sm:$0xff]   ;;  %v316_v35 = vmul.f32 %v315_v33, %v315_v33  ;;  %v1856_v58 = vld [vmem:[%s286_s14] sm:$0xff]   ;;  %v3433_v6 = vsel %vm2524_vm4, 4294967295, %v3432_v6  ;;  %v3434_v7 = vmov 0  ;;  %v393_v8 = vand.u32 7, %v2494_v52 }
  0x19   : > { %2057 = vmatpush3.bf16.msra.mxu1 %v2245_v11  ;;  %2018 = vmatprep.subr.bf16.mxu0 %v2246_v12  ;;  %v1909_v59 = vld [vmem:[%s286_s14 + $0x18] sm:$0xff]   ;;  %v321_v63 = vld [vmem:[%s3384_s2] sm:$0x1]  ;;  %v1907_v0 = vld [vmem:[%s286_s14 + $0x8] sm:$0xff]   ;;  %v3435_v7 = vsel %vm2528_vm5, 4294967295, %v3434_v7  ;;  %v1857_v9 = vunpack.c.l.bf16 %v1856_v58  ;;  %vm2538_vm6 = vcmp.ge.s32.totalorder %v3398_v62, 1 }
  0x1a   : > { %2058 = vmatprep.subr.bf16.mxu1 %v2247_v13  ;;  %v318_v37 = vrot.slane %v316_v35, 7  ;;  %v1908_v4 = vld [vmem:[%s286_s14 + $0x10] sm:$0xff]   ;;  %v1869_v10 = vunpack.c.l.bf16 %v1909_v59  ;;  %v1870_v11 = vunpack.c.h.bf16 %v1909_v59  ;;  %v1858_v13 = vunpack.c.h.bf16 %v1856_v58  ;;  %vm439_vm12 = vmand %vm2499_vm0, %vm2510_vm2  ;;  %v2270_v56 = vld [vmem:[%s3386_s4 + $0x148] sm:$0xff]  }
  0x1b   : > { %vm2544_vm7 = vcmp.ge.s32.totalorder %v3397_v1, 1  ;;  %vm2548_vm8 = vcmp.ge.s32.totalorder %v392_v3, 1  ;;  %vm2556_vm10 = vcmp.ge.s32.totalorder %v393_v8, 1  ;;  %vm440_vm14 = vmand %vm2505_vm1, %vm2520_vm3  ;;  %vm2576_vm15 = vcmp.le.s32.totalorder %v392_v3, 6  ;;  %v2281_v47 = vld [vmem:[%s3386_s4 + $0x198] sm:$0xff]  }
  0x1c   : > { %2019 = vmatpush3.bf16.msra.mxu0 %v2248_v14  ;;  %v320_v38 = vsub.f32 %v315_v33, %v318_v37  ;;  %v342_v14 = vld [vmem:[%s3385_s3] sm:$0x1]  ;;  %vm2585_vm13 = vcmp.le.s32.totalorder %v393_v8, 6  ;;  %vm505_vm11 = vmand %vm2505_vm1, %vm2528_vm5  ;;  %v3527_v5 = vmov 0 }
  0x1d   : > { %2059 = vmatpush3.bf16.msra.mxu1 %v2249_v15  ;;  %2020 = vmatprep.subr.bf16.mxu0 %v2250_v16  ;;  %v1861_v15 = vunpack.c.l.bf16 %v1907_v0  ;;  %v1862_v16 = vunpack.c.h.bf16 %v1907_v0  ;;  %vm2600_vm9 = vmpackc.low %vm440_vm14, %vm439_vm12 }
  0x1e   : > { %2060 = vmatprep.subr.bf16.mxu1 %v2251_v17  ;;  %v322_v39 = vadd.f32 1e-05, %v320_v38  ;;  %vm3450_vm14 = vmand %vm2499_vm0, %vm2524_vm4 }
  0x1f   : > { %vm2625_vm5 = vmpackc.low %vm505_vm11, %vm3450_vm14  ;;  %vm3454_vm11 = vcmp.lt.s32.totalorder %v2474_v43, 1 }
  0x20   : > { %2021 = vmatpush3.bf16.msra.mxu0 %v2252_v18  ;;  %2306 = vrsqrt.f32 %v322_v39  ;;  %v3446_v39 = vmov 0  ;;  %vm441_vm14 = vmand %vm2538_vm6, %vm2548_vm8 }
  0x21   : > { %2061 = vmatpush3.bf16.msra.mxu1 %v2253_v19  ;;  %2022 = vmatprep.subr.bf16.mxu0 %v2254_v20  ;;  %v1865_v19 = vunpack.c.l.bf16 %v1908_v4  ;;  %v3447_v39 = vsel %vm2585_vm13, 4294967295, %v3446_v39  ;;  %vm3453_vm12 = vmpackc.low %vm2505_vm1, %vm2499_vm0 }
  0x22   : > { %2062 = vmatprep.subr.bf16.mxu1 %v2255_v21  ;;  %vm3455_vm4 = vmmov %vm3454_vm11 }
  0x23   : > { %vm442_vm0 = vmand %vm2544_vm7, %vm2556_vm10 }
  0x24   : > { %2023 = vmatpush3.bf16.msra.mxu0 %v2256_v22  ;;  %v3440_v22 = vmov 0  ;;  %vm3456_vm1 = vmmov %vm3455_vm4 }
  0x25   : > { %2063 = vmatpush3.bf16.msra.mxu1 %v2257_v23  ;;  %2024 = vmatprep.subr.bf16.mxu0 %v2258_v24  ;;  %v3441_v22 = vsel %vm2548_vm8, 4294967295, %v3440_v22  ;;  %v1866_v23 = vunpack.c.h.bf16 %v1908_v4  ;;  %v2553_v24 = vadd.s32 32, %v2474_v43  ;;  %v3470_v4 = vmov 0 }
  0x26   : > { %2064 = vmatprep.subr.bf16.mxu1 %v2259_v25  ;;  %v3442_v25 = vmov 0 }
  0x27   : > { %v3443_v25 = vsel %vm2556_vm10, 4294967295, %v3442_v25  ;;  %v3395_v37 = vshra.s32 %v2553_v24, 3  ;;  %v394_v41 = vand.u32 7, %v2553_v24 }
  0x28   : > { %2025 = vmatpush3.bf16.msra.mxu0 %v2260_v26  ;;  %v2561_v26 = vadd.s32 40, %v2474_v43 }
  0x29   : > { %2065 = vmatpush3.bf16.msra.mxu1 %v2261_v27  ;;  %2026 = vmatprep.subr.bf16.mxu0 %v2262_v28 }
  0x2a   : > { %2066 = vmatprep.subr.bf16.mxu1 %v2263_v29  ;;  %v2307_v51 = vpop.eup %2306  ;;  %v3394_v40 = vshra.s32 %v2561_v26, 3 }
  0x2b   : > { %v331_v53 = vrot.slane %v2307_v51, %v330_v46 }
  0x2c   : > { %2027 = vmatpush3.bf16.msra.mxu0 %v2264_v30 }
  0x2d   : > { %2067 = vmatpush3.bf16.msra.mxu1 %v2265_v31  ;;  %2092 = vmatprep.subr.bf16.mxu0 %v2266_v34  ;;  %v332_v60 = vcombine.high %v331_v53, %v331_v53 }
  0x2e   : > { %2132 = vmatprep.subr.bf16.mxu1 %v2267_v36  ;;  %v3444_v36 = vmov 0 }
  0x2f   : > { %v339_v2 = vrot.slane %v332_v60, %v330_v46  ;;  %v3445_v36 = vsel %vm2576_vm15, 4294967295, %v3444_v36 }
  0x31   : > { %v341_v12 = vmul.f32 %v339_v2, %v321_v63 }
  0x33   : > { %v343_v20 = vmul.f32 %v341_v12, %v315_v33  ;;  %v349_v21 = vrot.slane %v341_v12, %v348_v54 }
  0x35   : > { %v344_v27 = vsub.f32 %v342_v14, %v343_v20  ;;  %v351_v28 = vmul.f32 %v1857_v9, %v349_v21  ;;  %v357_v29 = vmul.f32 %v1869_v10, %v349_v21  ;;  %v358_v30 = vmul.f32 %v1870_v11, %v349_v21  ;;  %v2268_v14 = vld [vmem:[%s3386_s4 + $0x100] sm:$0xff]  }
  0x36   : > { %v352_v31 = vmul.f32 %v1858_v13, %v349_v21  ;;  %v353_v32 = vmul.f32 %v1861_v15, %v349_v21  ;;  %v354_v33 = vmul.f32 %v1862_v16, %v349_v21  ;;  %v355_v34 = vmul.f32 %v1865_v19, %v349_v21 }
  0x37   : > { %v363_v35 = vrot.slane %v344_v27, %v348_v54  ;;  %v356_v38 = vmul.f32 %v1866_v23, %v349_v21 }
  0x39   : > { %v365_v42 = vadd.f32 %v363_v35, %v351_v28  ;;  %v371_v44 = vadd.f32 %v363_v35, %v357_v29  ;;  %v372_v46 = vadd.f32 %v363_v35, %v358_v30  ;;  %v366_v49 = vadd.f32 %v363_v35, %v352_v31 }
  0x3a   : > { %v367_v53 = vadd.f32 %v363_v35, %v353_v32  ;;  %v368_v54 = vadd.f32 %v363_v35, %v354_v33  ;;  %v369_v57 = vadd.f32 %v363_v35, %v355_v34  ;;  %v370_v58 = vadd.f32 %v363_v35, %v356_v38  ;;  %v2269_v32 = vld [vmem:[%s3386_s4 + $0x180] sm:$0xff]  }
  0x3b   : > { %v2604_v59 = vmax.f32 %v365_v42, 0.0  ;;  %v2606_v60 = vmax.f32 %v371_v44, 0.0  ;;  %v2608_v63 = vmax.f32 %v372_v46, 0.0  ;;  %v2610_v0 = vmax.f32 %v366_v49, 0.0  ;;  %v2271_v44 = vld [vmem:[%s3386_s4 + $0x1c8] sm:$0xff]  }
  0x3c   : > { %v2616_v2 = vmax.f32 %v367_v53, 0.0  ;;  %v2618_v3 = vmax.f32 %v368_v54, 0.0  ;;  %v2629_v8 = vmax.f32 %v369_v57, 0.0  ;;  %v2631_v9 = vmax.f32 %v370_v58, 0.0  ;;  %v2272_v54 = vld [vmem:[%s3386_s4 + $0x108] sm:$0xff]  }
  0x3d   : > { %v2635_v10 = vpack.c.bf16 %v2604_v59, %v2608_v63  ;;  %v406_v11 = vrot.slane %v2604_v59, 7  ;;  %v412_v12 = vrot.slane %v2606_v60, 7  ;;  %v413_v13 = vrot.slane %v2608_v63, 7 }
  0x3e   : > { %v407_v15 = vrot.slane %v2610_v0, 7  ;;  %v408_v16 = vrot.slane %v2616_v2, 7  ;;  %v409_v19 = vrot.slane %v2618_v3, 7  ;;  %v479_v20 = vrot.slane %v2604_v59, 1 }
  0x3f   : > { %1918 = vmatprep.mubr.msk.bf16.mxu0 %vm3453_vm12, %v2635_v10  ;;  %v2665_v21 = vsel %vm3454_vm11, %v412_v12, %v413_v13  ;;  %v422_v23 = vsel %vm3455_vm4, %v413_v13, %v406_v11  ;;  %v480_v27 = vrot.slane %v2610_v0, 1  ;;  %v3406_v28 = vrot.slane %v2608_v63, 1  ;;  %vm3457_vm4 = vmmov %vm3456_vm1  ;;  %v2273_v13 = vld [vmem:[%s3386_s4 + $0x188] sm:$0xff]  }
  0x40   : > { %v2679_v55 = vpack.c.bf16 %v422_v23, %v2665_v21  ;;  %v2683_v29 = vsel %vm3456_vm1, %v408_v16, %v409_v19  ;;  %v420_v30 = vsel %vm3457_vm4, %v407_v15, %v408_v16  ;;  %vm3458_vm12 = vmmov %vm3456_vm1  ;;  %vm3459_vm11 = vcmp.lt.s32.totalorder %v2474_v43, 7 }
  0x41   : > { %v421_v31 = vsel %vm3458_vm12, %v406_v11, %v407_v15  ;;  %v1947_v34 = vpack.c.bf16 %v2683_v29, %v420_v30  ;;  %v2695_v35 = vsel %vm3459_vm11, %v479_v20, %v480_v27  ;;  %vm1946_vm1 = vmpackc.low %vm2556_vm10, %vm2548_vm8  ;;  %v395_v38 = vand.u32 7, %v2561_v26  ;;  %v2286_v15 = vld [vmem:[%s3386_s4 + $0x168] sm:$0xff]  }
  0x42   : > { %v1941_v33 = vpack.c.bf16 %v421_v31, %v422_v23  ;;  %1921 = vmatmul.mubr.msk.bf16.vlgmr.msra.gmra.mrb[0].mxu0 %vm2600_vm9, %v2679_v55  ;;  %vm3460_vm4 = vmmov %vm3459_vm11  ;;  %v2716_v46 = vpack.c.bf16 %v2616_v2, %v2610_v0  ;;  %v481_v49 = vrot.slane %v2616_v2, 1  ;;  %v482_v53 = vrot.slane %v2618_v3, 1 }
  0x43   : > { %v2709_v42 = vsel %vm3460_vm4, %v3406_v28, %v479_v20  ;;  %vm506_vm9 = vmand %vm2538_vm6, %vm2576_vm15  ;;  %2093 = vmatpush3.bf16.msra.mxu0 %v2268_v14  ;;  %vm2742_vm4 = vcmp.ge.s32.totalorder %v3395_v37, 1  ;;  %v410_v58 = vrot.slane %v2629_v8, 7  ;;  %v411_v11 = vrot.slane %v2631_v9, 7  ;;  %v2274_v14 = vld [vmem:[%s3386_s4 + $0x150] sm:$0xff]  }
  0x44   : > { %vm3461_vm12 = vmpackc.low %vm2520_vm3, %vm2510_vm2  ;;  %v2731_v51 = vpack.c.bf16 %v2695_v35, %v2709_v42  ;;  %2094 = vmatprep.subr.bf16.mxu0 %v2270_v56  ;;  %vm2762_vm11 = vcmp.ge.s32.totalorder %v3394_v40, 1  ;;  %v2275_v20 = vld [vmem:[%s3386_s4 + $0x1d0] sm:$0xff]   ;;  %v2793_v23 = vadd.s32 48, %v2474_v43  ;;  %v2796_v56 = vadd.s32 56, %v2474_v43 }
  0x45   : > { %1942 = vmatprep.mubr.msk.bf16.mxu1 %vm3461_vm12, %v1941_v33  ;;  %vm3465_vm12 = vmpackc.low %vm2544_vm7, %vm2538_vm6  ;;  %v2798_v33 = vpack.c.bf16 %v420_v30, %v421_v31  ;;  %v2276_v31 = vld [vmem:[%s3386_s4 + $0x110] sm:$0xff]   ;;  %v483_v62 = vrot.slane %v2629_v8, 1  ;;  %v484_v48 = vrot.slane %v2631_v9, 1  ;;  %v3495_v28 = vmov 0 }
  0x46   : > { %3462 = vst [vmem:[#allocation3_spill] sm:$0xff] %v2731_v51  ;;  %1924 = vmatprep.mubr.msk.bf16.mxu0 %vm3465_vm12, %v2716_v46  ;;  %1945 = vmatmul.mubr.msk.bf16.vlgmr.msra.gmra.mrb[0].mxu1 %vm2625_vm5, %v2731_v51  ;;  %vm2779_vm12 = vmpackc.low %vm442_vm0, %vm441_vm14  ;;  %vm2788_vm5 = vcmp.ge.s32.totalorder %v394_v41, 1  ;;  %vm3472_vm14 = vcmp.lt.s32.totalorder %v2474_v43, 7  ;;  %v397_v16 = vand.u32 7, %v2796_v56  ;;  %v3502_v57 = vmov 0 }
  0x47   : > { %v3471_v4 = vsel %vm2788_vm5, 4294967295, %v3470_v4  ;;  %2133 = vmatpush3.bf16.msra.mxu1 %v2269_v32  ;;  %1948 = vmatprep.mubr.msk.bf16.mxu1 %vm1946_vm1, %v1947_v34  ;;  %v2809_v40 = vsel %vm3472_vm14, %v481_v49, %v482_v53  ;;  %vm3473_vm0 = vmmov %vm3472_vm14  ;;  %vm2832_vm14 = vcmp.ge.s32.totalorder %v395_v38, 1  ;;  %v2277_v32 = vld [vmem:[%s3386_s4 + $0x190] sm:$0xff]   ;;  %v2278_v34 = vld [vmem:[%s3386_s4 + $0x158] sm:$0xff]   ;;  %v3504_v30 = vmov 0 }
  0x48   : > { %v2813_v37 = vsel %vm3473_vm0, %v480_v27, %v481_v49  ;;  %vm3474_vm1 = vmand %vm2544_vm7, %vm2585_vm13  ;;  %v3477_v27 = vmov 0  ;;  %2134 = vmatprep.subr.bf16.mxu1 %v2271_v44  ;;  %2095 = vmatpush3.bf16.msra.mxu0 %v2272_v54  ;;  %vm3479_vm7 = vcmp.lt.s32.totalorder %v2474_v43, 1  ;;  %v2856_v44 = vpack.c.bf16 %v2629_v8, %v2618_v3 }
  0x49   : > { %vm2825_vm10 = vmpackc.low %vm3474_vm1, %vm506_vm9  ;;  %v3478_v27 = vsel %vm2832_vm14, 4294967295, %v3477_v27  ;;  %v418_v17 = vsel %vm3479_vm7, %v409_v19, %v410_v58  ;;  %2096 = vmatprep.subr.bf16.mxu0 %v2274_v14  ;;  %vm2864_vm1 = vcmp.le.s32.totalorder %v394_v41, 6  ;;  %v3483_v49 = vmov 0 }
  0x4a   : > { %vm1928_vm6 = vmpackc.low %vm2762_vm11, %vm2742_vm4  ;;  %v2874_v54 = vpack.c.bf16 %v2809_v40, %v2813_v37  ;;  %v3405_v41 = vshra.s32 %v2793_v23, 3  ;;  %v396_v14 = vand.u32 7, %v2793_v23  ;;  %1927 = vmatmul.mubr.msk.bf16.gmra.mrb[4].mxu0 %vm2779_vm12, %v2798_v33  ;;  %vm3493_vm13 = vcmp.lt.s32.totalorder %v2474_v43, 7 }
  0x4b   : > { %vm3480_vm9 = vmmov %vm3479_vm7  ;;  %vm2868_vm7 = vcmp.le.s32.totalorder %v395_v38, 6  ;;  %v3404_v38 = vshra.s32 %v2796_v56, 3  ;;  %2135 = vmatpush3.bf16.msra.mxu1 %v2273_v13  ;;  %v2280_v13 = vld [vmem:[%s3386_s4 + $0x118] sm:$0xff]   ;;  %1930 = vmatprep.mubr.msk.bf16.mxu0 %vm1928_vm6, %v2856_v44 }
  0x4c   : > { %v2846_v18 = vsel %vm3480_vm9, %v410_v58, %v411_v11  ;;  %v3484_v49 = vsel %vm2868_vm7, 4294967295, %v3483_v49  ;;  %v2279_v58 = vld [vmem:[%s3386_s4 + $0x1d8] sm:$0xff]   ;;  %vm444_vm9 = vmand %vm2762_vm11, %vm2832_vm14  ;;  %2136 = vmatprep.subr.bf16.mxu1 %v2275_v20  ;;  %2097 = vmatpush3.bf16.msra.mxu0 %v2276_v31  ;;  %v2282_v20 = vld [vmem:[%s3386_s4 + $0x160] sm:$0xff]   ;;  %vm2922_vm12 = vcmp.ge.s32.totalorder %v3405_v41, 1 }
  0x4d   : > { %v1953_v1 = vpack.c.bf16 %v2846_v18, %v418_v17  ;;  %2098 = vmatprep.subr.bf16.mxu0 %v2278_v34  ;;  %vm2928_vm6 = vcmp.ge.s32.totalorder %v3404_v38, 1  ;;  %vm3492_vm8 = vmpackc.low %vm2832_vm14, %vm2788_vm5  ;;  %v2959_v38 = vsel %vm3493_vm13, %v483_v62, %v484_v48  ;;  %vm3501_vm14 = vcmp.lt.s32.totalorder %v2474_v43, 1  ;;  %v2297_v31 = vld [vmem:[%s3386_s4 + $0x1b8] sm:$0xff]  }
  0x4e   : > { %1951 = vmatmul.mubr.msk.bf16.gmra.mrb[4].mxu1 %vm2825_vm10, %v2874_v54  ;;  %vm3489_vm10 = vmand %vm2742_vm4, %vm2788_vm5  ;;  %v3517_v34 = vshra.s32 %v2478_v45, 3  ;;  %v2295_v45 = vld [vmem:[%s3386_s4 + $0x1f8] sm:$0xff]  }
  0x4f   : > { %2137 = vmatpush3.bf16.msra.mxu1 %v2277_v32  ;;  %vm2945_vm0 = vmpackc.low %vm444_vm9, %vm3489_vm10  ;;  %v2950_v32 = vpack.c.bf16 %v418_v17, %v2683_v29  ;;  %1954 = vmatprep.mubr.msk.bf16.mxu1 %vm3492_vm8, %v1953_v1  ;;  %vm2967_vm10 = vcmp.ge.s32.totalorder %v396_v14, 1  ;;  %v2283_v1 = vld [vmem:[%s3386_s4 + $0x1e0] sm:$0xff]   ;;  %v3010_v17 = vpack.c.bf16 %v2606_v60, %v2631_v9 }
  0x50   : > { %vm3494_vm9 = vmmov %vm3493_vm13  ;;  %v3496_v28 = vsel %vm2967_vm10, 4294967295, %v3495_v28  ;;  %2138 = vmatprep.subr.bf16.mxu1 %v2279_v58  ;;  %2099 = vmatpush3.bf16.msra.mxu0 %v2280_v13  ;;  %v2284_v29 = vld [vmem:[%s3386_s4 + $0x120] sm:$0xff]   ;;  %v485_v13 = vrot.slane %v2606_v60, 1 }
  0x51   : > { %v2965_v41 = vsel %vm3494_vm9, %v482_v53, %v483_v62  ;;  %vm3497_vm8 = vmand %vm2742_vm4, %vm2864_vm1  ;;  %v416_v53 = vsel %vm3501_vm14, %v411_v11, %v412_v12  ;;  %vm2997_vm4 = vcmp.ge.s32.totalorder %v397_v16, 1  ;;  %2100 = vmatprep.subr.bf16.mxu0 %v2282_v20  ;;  %v2285_v11 = vld [vmem:[%s3386_s4 + $0x1a0] sm:$0xff]   ;;  %v2288_v20 = vld [vmem:[%s3386_s4 + $0x128] sm:$0xff]   ;;  %vm3055_vm14 = vcmp.le.s32.totalorder %v397_v16, 6 }
  0x52   : > { %vm3498_vm13 = vmand %vm2762_vm11, %vm2868_vm7  ;;  %v3503_v57 = vsel %vm2997_vm4, 4294967295, %v3502_v57  ;;  %v3014_v12 = vpack.c.bf16 %v2959_v38, %v2965_v41  ;;  %1933 = vmatmul.mubr.msk.bf16.gmra.mrb[8].mxu0 %vm2945_vm0, %v2950_v32  ;;  %v1959_v58 = vpack.c.bf16 %v2665_v21, %v416_v53  ;;  %v2290_v21 = vld [vmem:[%s3386_s4 + $0x170] sm:$0xff]   ;;  %v2289_v16 = vld [vmem:[%s3386_s4 + $0x1a8] sm:$0xff]   ;;  %v3511_v62 = vrot.slane %v2608_v63, 1 }
  0x53   : > { %vm2984_vm9 = vmpackc.low %vm3498_vm13, %vm3497_vm8  ;;  %2139 = vmatpush3.bf16.msra.mxu1 %v2281_v47  ;;  %v2287_v47 = vld [vmem:[%s3386_s4 + $0x1e8] sm:$0xff]   ;;  %vm3042_vm13 = vcmp.le.s32.totalorder %v396_v14, 6  ;;  %v1968_v61 = vpack.c.bf16 %v2965_v41, %v2809_v40  ;;  %v2301_v40 = vld [vmem:[%s3386_s4 + $0x218] sm:$0xff]  }
  0x54   : > { %vm1934_vm11 = vmpackc.low %vm2928_vm6, %vm2922_vm12  ;;  %2140 = vmatprep.subr.bf16.mxu1 %v2283_v1  ;;  %2101 = vmatpush3.bf16.msra.mxu0 %v2284_v29  ;;  %v3505_v30 = vsel %vm3042_vm13, 4294967295, %v3504_v30  ;;  %v3506_v1 = vmov 0  ;;  %v3075_v29 = vpack.c.bf16 %v416_v53, %v2846_v18  ;;  %v2291_v18 = vld [vmem:[%s3386_s4 + $0x1f0] sm:$0xff]   ;;  %v2294_v53 = vld [vmem:[%s3386_s4 + $0x178] sm:$0xff]  }
  0x55   : > { %vm446_vm8 = vmand %vm2928_vm6, %vm2997_vm4  ;;  %2102 = vmatprep.subr.bf16.mxu0 %v2286_v15  ;;  %1936 = vmatprep.mubr.msk.bf16.mxu0 %vm1934_vm11, %v3010_v17  ;;  %v3507_v1 = vsel %vm3055_vm14, 4294967295, %v3506_v1  ;;  %v2299_v14 = vld [vmem:[%s3386_s4 + $0x208] sm:$0xff]  }
  0x56   : > { %vm1958_vm0 = vmpackc.low %vm2997_vm4, %vm2967_vm10  ;;  %1957 = vmatmul.mubr.msk.bf16.gmra.mrb[8].mxu1 %vm2984_vm9, %v3014_v12  ;;  %vm3512_vm9 = vcmp.lt.s32.totalorder %v2474_v43, 7 }
  0x57   : > { %vm3508_vm4 = vmand %vm2922_vm12, %vm2967_vm10  ;;  %2141 = vmatpush3.bf16.msra.mxu1 %v2285_v11  ;;  %1960 = vmatprep.mubr.msk.bf16.mxu1 %vm1958_vm0, %v1959_v58  ;;  %v3081_v15 = vsel %vm3512_vm9, %v485_v13, %v3511_v62  ;;  %v1965_v11 = vpack.c.bf16 %v2813_v37, %v2695_v35  ;;  %v3514_v58 = vshra.s32 %v2474_v43, 3  ;;  %v2293_v43 = vld [vmem:[%s3386_s4 + $0x1b0] sm:$0xff]   ;;  %v2296_v37 = vld [vmem:[%s3386_s4 + $0x138] sm:$0xff]  }
  0x58   : > { %vm3067_vm5 = vmpackc.low %vm446_vm8, %vm3508_vm4  ;;  %2142 = vmatprep.subr.bf16.mxu1 %v2287_v47  ;;  %2103 = vmatpush3.bf16.msra.mxu0 %v2288_v20  ;;  %v3518_v47 = vmov 0  ;;  %v2298_v35 = vld [vmem:[%s3386_s4 + $0x200] sm:$0xff]  }
  0x59   : > { %vm3513_vm4 = vmmov %vm3512_vm9  ;;  %2104 = vmatprep.subr.bf16.mxu0 %v2290_v21  ;;  %vm3108_vm0 = vcmp.le.s32.totalorder %v3514_v58, 6  ;;  %vm3520_vm9 = vnez %v3433_v6  ;;  %v544_v21 = vpack.c.bf16 %v2610_v0, %v2604_v59  ;;  %v3523_v59 = vshra.s32 %v2487_v50, 3  ;;  %v2300_v50 = vld [vmem:[%s3386_s4 + $0x210] sm:$0xff]   ;;  %v2305_v6 = vld [vmem:[%s3386_s4 + $0x238] sm:$0xff]  }
  0x5a   : > { %v3085_v51 = vsel %vm3513_vm4, %v484_v48, %v485_v13  ;;  %vm511_vm8 = vmand %vm2928_vm6, %vm3055_vm14  ;;  %v2292_v48 = vld [vmem:[%s3386_s4 + $0x130] sm:$0xff]   ;;  %vm3114_vm6 = vcmp.le.s32.totalorder %v3517_v34, 6  ;;  %vm3521_vm4 = vnez %v3435_v7  ;;  %1939 = vmatmul.mubr.msk.bf16.gmra.mrb[12].mxu0 %vm3067_vm5, %v3075_v29  ;;  %v3524_v0 = vmov 0  ;;  %v3564_v7 = vld [vmem:[#allocation3_spill] sm:$0xff] }
  0x5b   : > { %v3519_v47 = vsel %vm3114_vm6, 4294967295, %v3518_v47  ;;  %v3120_v20 = vpack.c.bf16 %v3081_v15, %v3085_v51  ;;  %vm1964_vm11 = vmpackc.low %vm3521_vm4, %vm3520_vm9  ;;  %2143 = vmatpush3.bf16.msra.mxu1 %v2289_v16 }
  0x5c   : > { %vm3522_vm10 = vmand %vm2922_vm12, %vm3042_vm13  ;;  %2144 = vmatprep.subr.bf16.mxu1 %v2291_v18  ;;  %2105 = vmatpush3.bf16.msra.mxu0 %v2292_v48 }
  0x5d   : > { %vm1961_vm14 = vmpackc.low %vm511_vm8, %vm3522_vm10  ;;  %2106 = vmatprep.subr.bf16.mxu0 %v2294_v53  ;;  %1966 = vmatprep.mubr.msk.bf16.mxu0 %vm1964_vm11, %v1965_v11 }
  0x5e   : > { %vm1976_vm5 = vmpackc.low %vm3114_vm6, %vm3108_vm0  ;;  %1963 = vmatmul.mubr.msk.bf16.gmra.mrb[12].mxu1 %vm1961_vm14, %v3120_v20 }
  0x5f   : > { %2145 = vmatpush3.bf16.msra.mxu1 %v2293_v43  ;;  %vm576_vm12 = vmand %vm3108_vm0, %vm2510_vm2  ;;  %1978 = vmatprep.mubr.msk.bf16.mxu1 %vm1976_vm5, %v2716_v46  ;;  %vm3172_vm2 = vcmp.le.s32.totalorder %v3523_v59, 6  ;;  %v3526_v46 = vshra.s32 %v2494_v52, 3  ;;  %v545_v52 = vpack.c.bf16 %v2618_v3, %v2616_v2  ;;  %v1971_v2 = vpack.c.bf16 %v3085_v51, %v2959_v38 }
  0x60   : > { %2146 = vmatprep.subr.bf16.mxu1 %v2295_v45  ;;  %2107 = vmatpush3.bf16.msra.mxu0 %v2296_v37  ;;  %vm577_vm10 = vmand %vm3114_vm6, %vm2520_vm3  ;;  %v3525_v0 = vsel %vm3172_vm2, 4294967295, %v3524_v0  ;;  %vm3529_vm3 = vnez %v3447_v39  ;;  %v3533_v3 = vmov 0  ;;  %vm3538_vm6 = vnez %v3471_v4  ;;  %v1911_v37 = vld [vmem:[%s3350_s17 + $0x10] sm:$0xff]  }
  0x61   : > { %2184 = vmatprep.subr.bf16.mxu0 %v2298_v35  ;;  %vm3178_vm14 = vcmp.le.s32.totalorder %v3526_v46, 6  ;;  %vm1967_vm11 = vmpackc.low %vm3529_vm3, %vm2576_vm15  ;;  %v3540_v51 = vshra.s32 %v2793_v23, 3  ;;  %v547_v23 = vpack.c.bf16 %v2608_v63, %v2606_v60  ;;  %v1881_v59 = vunpack.c.l.bf16 %v1911_v37 }
  0x62   : > { %v3528_v5 = vsel %vm3178_vm14, 4294967295, %v3527_v5  ;;  %vm1979_vm8 = vmpackc.low %vm577_vm10, %vm576_vm12  ;;  %vm3530_vm12 = vnez %v3441_v22  ;;  %v3532_v22 = vshra.s32 %v2553_v24, 3  ;;  %v2302_v24 = vld [vmem:[%s3386_s4 + $0x220] sm:$0xff]  }
  0x63   : > { %2147 = vmatpush3.bf16.msra.mxu1 %v2297_v31  ;;  %1431 = vmatmul.mubr.bf16.vlgmr.msra.gmra.mrb[16].mxu0 %v544_v21  ;;  %vm1982_vm5 = vmpackc.low %vm3178_vm14, %vm3172_vm2 }
  0x64   : > { %2208 = vmatprep.subr.bf16.mxu1 %v2298_v35  ;;  %2185 = vmatpush3.bf16.msra.mxu0 %v2298_v35  ;;  %vm578_vm10 = vmand %vm3172_vm2, %vm3530_vm12  ;;  %vm3557_vm2 = vnez %v3447_v39  ;;  %v1872_v39 = vld [vmem:[%s3350_s17] sm:$0xff]  }
  0x65   : > { %2186 = vmatprep.subr.bf16.mxu0 %v2299_v14  ;;  %1969 = vmatprep.mubr.msk.bf16.mxu0 %vm1967_vm11, %v1968_v61  ;;  %vm3531_vm11 = vnez %v3443_v25  ;;  %v3536_v25 = vmov 0  ;;  %vm1970_vm12 = vmpackc.low %vm2868_vm7, %vm2864_vm1  ;;  %v1873_v63 = vunpack.c.l.bf16 %v1872_v39 }
  0x66   : > { %1981 = vmatmul.mubr.msk.bf16.vlgmr.msra.gmra.mrb[16].mxu1 %vm1979_vm8, %v2798_v33  ;;  %vm579_vm3 = vmand %vm3178_vm14, %vm3531_vm11  ;;  %vm3212_vm8 = vcmp.le.s32.totalorder %v3532_v22, 6  ;;  %v3535_v33 = vshra.s32 %v2561_v26, 3  ;;  %v546_v26 = vpack.c.bf16 %v2631_v9, %v2629_v8  ;;  %v2303_v8 = vld [vmem:[%s3386_s4 + $0x228] sm:$0xff]   ;;  %v1974_v9 = vpack.c.bf16 %v2709_v42, %v3081_v15  ;;  %v2304_v42 = vld [vmem:[%s3386_s4 + $0x230] sm:$0xff]  }
  0x67   : > { %2216 = vmatpush3.bf16.msra.mxu1 %v2298_v35  ;;  %1984 = vmatprep.mubr.msk.bf16.mxu1 %vm1982_vm5, %v2856_v44  ;;  %v3534_v3 = vsel %vm3212_vm8, 4294967295, %v3533_v3  ;;  %vm1985_vm11 = vmpackc.low %vm579_vm3, %vm578_vm10  ;;  %vm3539_vm3 = vnez %v3478_v27  ;;  %v3543_v44 = vshra.s32 %v2796_v56, 3 }
  0x68   : > { %2209 = vmatprep.subr.bf16.mxu1 %v2299_v14  ;;  %2187 = vmatpush3.bf16.msra.mxu0 %v2299_v14  ;;  %vm3218_vm5 = vcmp.le.s32.totalorder %v3535_v33, 6  ;;  %vm580_vm7 = vmand %vm3212_vm8, %vm3538_vm6 }
  0x69   : > { %2188 = vmatprep.subr.bf16.mxu0 %v2300_v50  ;;  %v3537_v25 = vsel %vm3218_vm5, 4294967295, %v3536_v25  ;;  %vm1988_vm14 = vmpackc.low %vm3218_vm5, %vm3212_vm8  ;;  %vm3253_vm6 = vcmp.le.s32.totalorder %v3543_v44, 6 }
  0x6a   : > { %vm581_vm10 = vmand %vm3218_vm5, %vm3539_vm3 }
  0x6b   : > { %2217 = vmatpush3.bf16.msra.mxu1 %v2299_v14  ;;  %1439 = vmatmul.mubr.bf16.gmra.mrb[20].mxu0 %v545_v52  ;;  %vm616_vm8 = vmand %vm3108_vm0, %vm3520_vm9  ;;  %vm3553_vm0 = vnez %v3484_v49  ;;  %vm3554_vm9 = vnez %v3537_v25  ;;  %v1882_v52 = vunpack.c.h.bf16 %v1911_v37 }
  0x6c   : > { %2210 = vmatprep.subr.bf16.mxu1 %v2300_v50  ;;  %2189 = vmatpush3.bf16.msra.mxu0 %v2300_v50 }
  0x6d   : > { %2190 = vmatprep.subr.bf16.mxu0 %v2301_v40  ;;  %1972 = vmatprep.mubr.msk.bf16.mxu0 %vm1970_vm12, %v1971_v2  ;;  %vm3247_vm12 = vcmp.le.s32.totalorder %v3540_v51, 6 }
  0x6e   : > { %1987 = vmatmul.mubr.msk.bf16.gmra.mrb[20].mxu1 %vm1985_vm11, %v2950_v32  ;;  %vm3257_vm11 = vmpackc.low %vm581_vm10, %vm580_vm7  ;;  %vm3549_vm10 = vnez %v3496_v28 }
  0x6f   : > { %2218 = vmatpush3.bf16.msra.mxu1 %v2300_v50  ;;  %1990 = vmatprep.mubr.msk.bf16.mxu1 %vm1988_vm14, %v3010_v17  ;;  %vm3548_vm14 = vnez %v3507_v1  ;;  %vm1994_vm7 = vmpackc.low %vm3253_vm6, %vm3247_vm12  ;;  %v1910_v17 = vld [vmem:[%s3350_s17 + $0x8] sm:$0xff]  }
  0x70   : > { %2211 = vmatprep.subr.bf16.mxu1 %v2301_v40  ;;  %2191 = vmatpush3.bf16.msra.mxu0 %v2301_v40  ;;  %vm1973_vm3 = vmpackc.low %vm3548_vm14, %vm3042_vm13  ;;  %vm3550_vm14 = vnez %v3503_v57  ;;  %v1877_v62 = vunpack.c.l.bf16 %v1910_v17  ;;  %v1878_v11 = vunpack.c.h.bf16 %v1910_v17 }
  0x71   : > { %2192 = vmatprep.subr.bf16.mxu0 %v2302_v24 }
  0x73   : > { %2219 = vmatpush3.bf16.msra.mxu1 %v2301_v40  ;;  %1447 = vmatmul.mubr.bf16.gmra.mrb[24].mxu0 %v546_v26  ;;  %v1912_v26 = vld [vmem:[%s3350_s17 + $0x18] sm:$0xff]  }
  0x74   : > { %2212 = vmatprep.subr.bf16.mxu1 %v2302_v24  ;;  %2193 = vmatpush3.bf16.msra.mxu0 %v2302_v24 }
  0x75   : > { %2194 = vmatprep.subr.bf16.mxu0 %v2303_v8  ;;  %1975 = vmatprep.mubr.msk.bf16.mxu0 %vm1973_vm3, %v1974_v9  ;;  %vm3551_vm3 = vnez %v3519_v47 }
  0x76   : > { %1993 = vmatmul.mubr.msk.bf16.gmra.mrb[24].mxu1 %vm3257_vm11, %v3075_v29  ;;  %vm617_vm13 = vmand %vm3551_vm3, %vm3521_vm4  ;;  %vm3552_vm11 = vnez %v3534_v3 }
  0x77   : > { %2220 = vmatpush3.bf16.msra.mxu1 %v2302_v24  ;;  %1996 = vmatprep.mubr.msk.bf16.mxu1 %vm1994_vm7, %v2635_v10  ;;  %vm620_vm5 = vmand %vm3552_vm11, %vm2864_vm1 }
  0x78   : > { %2213 = vmatprep.subr.bf16.mxu1 %v2303_v8  ;;  %2195 = vmatpush3.bf16.msra.mxu0 %v2303_v8  ;;  %vm621_vm7 = vmand %vm3554_vm9, %vm3553_vm0 }
  0x79   : > { %2196 = vmatprep.subr.bf16.mxu0 %v2304_v42  ;;  %vm2000_vm15 = vmpackc.low %vm617_vm13, %vm616_vm8  ;;  %vm3558_vm13 = vnez %v3528_v5 }
  0x7a   : > { %vm3555_vm4 = vmand %vm3247_vm12, %vm3549_vm10  ;;  %vm3559_vm10 = vnez %v3505_v30 }
  0x7b   : > { %2221 = vmatpush3.bf16.msra.mxu1 %v2303_v8  ;;  %1455 = vmatmul.mubr.bf16.gmra.mrb[28].mxu0 %v547_v23  ;;  %vm3556_vm1 = vmand %vm3253_vm6, %vm3550_vm14  ;;  %vm3560_vm14 = vnez %v3507_v1  ;;  %v1885_v8 = vunpack.c.l.bf16 %v1912_v26 }
  0x7c   : > { %vm1997_vm3 = vmpackc.low %vm3556_vm1, %vm3555_vm4  ;;  %2214 = vmatprep.subr.bf16.mxu1 %v2304_v42  ;;  %2197 = vmatpush3.bf16.msra.mxu0 %v2304_v42 }
  0x7d   : > { %vm2006_vm11 = vmpackc.low %vm621_vm7, %vm620_vm5  ;;  %2198 = vmatprep.subr.bf16.mxu0 %v2305_v6  ;;  %2200 = vmatprep.mubr.msk.bf16.mxu0 %vm2000_vm15, %v2874_v54  ;;  %vm3562_vm15 = vnez %v3445_v36 }
  0x7e   : > { %vm619_vm8 = vmand %vm3558_vm13, %vm3557_vm2  ;;  %1999 = vmatmul.mubr.msk.bf16.gmra.mrb[28].mxu1 %vm1997_vm3, %v2679_v55  ;;  %vm3561_vm2 = vnez %v3525_v0  ;;  %v1874_v55 = vunpack.c.h.bf16 %v1872_v39 }
  0x7f   : > { %vm622_vm0 = vmand %vm3247_vm12, %vm3559_vm10  ;;  %2222 = vmatpush3.bf16.msra.mxu1 %v2304_v42  ;;  %2204 = vmatprep.mubr.msk.bf16.mxu1 %vm2006_vm11, %v3120_v20 }
  0x80   : > { %vm623_vm5 = vmand %vm3253_vm6, %vm3560_vm14  ;;  %2215 = vmatprep.subr.bf16.mxu1 %v2305_v6  ;;  %2199 = vmatpush3.bf16.msra.mxu0 %v2305_v6 }
  0x81   : > { %vm3563_vm9 = vmand %vm3561_vm2, %vm3562_vm15 }
  0x82   : > { %vm2003_vm7 = vmpackc.low %vm619_vm8, %vm3563_vm9 }
  0x83   : > { %2223 = vmatpush3.bf16.msra.mxu1 %v2305_v6  ;;  %2201 = vmatmul.mubr.msk.bf16.vlgmr.msra.gmra.mrb[32].mxu0 %vm2003_vm7, %v3014_v12  ;;  %vm2009_vm12 = vmpackc.low %vm623_vm5, %vm622_vm0 }
  0x86   : > { %2205 = vmatmul.mubr.msk.bf16.vlgmr.msra.gmra.mrb[32].mxu1 %vm2009_vm12, %v3564_v7  ;;  %v1886_v7 = vunpack.c.h.bf16 %v1912_v26 }
 0x115   : > { %v2028_v60 = vpop.f32.mrb[0].mxu0 }
 0x116   : > { %v2029_v10 = vpop.f32.mrb[1].mxu0 }
 0x117   : > { %v2030_v36 = vadd.f32 %v2029_v10, %v2028_v60  ;;  %v2031_v28 = vpop.f32.mrb[2].mxu0 }
 0x118   : > { %v2032_v19 = vpop.f32.mrb[3].mxu0 }
 0x119   : > { %v2068_v56 = vpop.f32.mrb[0].mxu1  ;;  %v1303_v49 = vadd.f32 %v2030_v36, %v1873_v63  ;;  %v2033_v38 = vadd.f32 %v2032_v19, %v2031_v28 }
 0x11a   : > { %v2069_v54 = vpop.f32.mrb[1].mxu1 }
 0x11b   : > { %v2070_v32 = vadd.f32 %v2069_v54, %v2068_v56  ;;  %v2071_v57 = vpop.f32.mrb[2].mxu1  ;;  %v1306_v12 = vadd.f32 %v2033_v38, %v1874_v55 }
 0x11c   : > { %v2072_v30 = vpop.f32.mrb[3].mxu1 }
 0x11d   : > { %v3354_v1 = vadd.f32 %v2070_v32, %v1303_v49  ;;  %v2073_v16 = vadd.f32 %v2072_v30, %v2071_v57  ;;  %v2034_v29 = vpop.f32.mrb[4].mxu0 }
 0x11e   : > { %v2035_v18 = vpop.f32.mrb[5].mxu0 }
 0x11f   : > { %v3356_v15 = vadd.f32 %v2073_v16, %v1306_v12  ;;  %v2036_v48 = vadd.f32 %v2035_v18, %v2034_v29  ;;  %v2037_v53 = vpop.f32.mrb[6].mxu0 }
 0x120   : > { %v2038_v13 = vpop.f32.mrb[7].mxu0 }
 0x121   : > { %v2074_v58 = vpop.f32.mrb[4].mxu1  ;;  %v1311_v34 = vadd.f32 %v2036_v48, %v1877_v62  ;;  %v2039_v20 = vadd.f32 %v2038_v13, %v2037_v53 }
 0x122   : > { %v2075_v47 = vpop.f32.mrb[5].mxu1 }
 0x123   : > { %v2076_v43 = vadd.f32 %v2075_v47, %v2074_v58  ;;  %v2077_v45 = vpop.f32.mrb[6].mxu1  ;;  %v1314_v35 = vadd.f32 %v2039_v20, %v1878_v11 }
 0x124   : > { %v2078_v31 = vpop.f32.mrb[7].mxu1 }
 0x125   : > { %v1376_v21 = vadd.f32 %v2076_v43, %v1311_v34  ;;  %v2079_v14 = vadd.f32 %v2078_v31, %v2077_v45  ;;  %v2040_v61 = vpop.f32.mrb[8].mxu0 }
 0x126   : > { %v2041_v46 = vpop.f32.mrb[9].mxu0 }
 0x127   : > { %v3359_v0 = vadd.f32 %v2079_v14, %v1314_v35  ;;  %v2042_v5 = vadd.f32 %v2041_v46, %v2040_v61  ;;  %v2043_v50 = vpop.f32.mrb[10].mxu0 }
 0x128   : > { %v2044_v2 = vpop.f32.mrb[11].mxu0 }
 0x129   : > { %v2080_v40 = vpop.f32.mrb[8].mxu1  ;;  %v1319_v22 = vadd.f32 %v2042_v5, %v1881_v59  ;;  %v2045_v33 = vadd.f32 %v2044_v2, %v2043_v50 }
 0x12a   : > { %v2081_v3 = vpop.f32.mrb[9].mxu1 }
 0x12b   : > { %v2082_v25 = vadd.f32 %v2081_v3, %v2080_v40  ;;  %v2083_v24 = vpop.f32.mrb[10].mxu1  ;;  %v1322_v51 = vadd.f32 %v2045_v33, %v1882_v52 }
 0x12c   : > { %v2084_v4 = vpop.f32.mrb[11].mxu1 }
 0x12d   : > { %v1384_v44 = vadd.f32 %v2082_v25, %v1319_v22  ;;  %v2085_v27 = vadd.f32 %v2084_v4, %v2083_v24  ;;  %v2046_v41 = vpop.f32.mrb[12].mxu0 }
 0x12e   : > { %v2047_v42 = vpop.f32.mrb[13].mxu0 }
 0x12f   : > { %v1387_v9 = vadd.f32 %v2085_v27, %v1322_v51  ;;  %v2048_v23 = vadd.f32 %v2047_v42, %v2046_v41  ;;  %v2049_v6 = vpop.f32.mrb[14].mxu0 }
 0x130   : > { %v2050_v60 = vpop.f32.mrb[15].mxu0 }
 0x131   : > { %v2086_v39 = vpop.f32.mrb[12].mxu1  ;;  %v1327_v63 = vadd.f32 %v2048_v23, %v1885_v8  ;;  %v2051_v36 = vadd.f32 %v2050_v60, %v2049_v6 }
 0x132   : > { %v2087_v10 = vpop.f32.mrb[13].mxu1 }
 0x133   : > { %v2088_v28 = vadd.f32 %v2087_v10, %v2086_v39  ;;  %v2089_v55 = vpop.f32.mrb[14].mxu1  ;;  %v1330_v56 = vadd.f32 %v2051_v36, %v1886_v7 }
 0x134   : > { %v2090_v19 = vpop.f32.mrb[15].mxu1 }
 0x135   : > { %v1392_v49 = vadd.f32 %v2088_v28, %v1327_v63  ;;  %v2091_v54 = vadd.f32 %v2090_v19, %v2089_v55 }
 0x136   : > { %v2108_v38 = vpop.f32.mrb[16].mxu0 }
 0x137   : > { %v1395_v32 = vadd.f32 %v2091_v54, %v1330_v56  ;;  %v2109_v57 = vpop.f32.mrb[17].mxu0 }
 0x138   : > { %v2110_v17 = vadd.f32 %v2109_v57, %v2108_v38  ;;  %v2111_v12 = vpop.f32.mrb[18].mxu0 }
 0x139   : > { %v2148_v30 = vpop.f32.mrb[16].mxu1  ;;  %v2112_v16 = vpop.f32.mrb[19].mxu0 }
 0x13a   : > { %v1433_v29 = vadd.f32 %v2110_v17, %v3354_v1  ;;  %v2149_v62 = vpop.f32.mrb[17].mxu1  ;;  %v2113_v18 = vadd.f32 %v2112_v16, %v2111_v12 }
 0x13b   : > { %v2150_v48 = vadd.f32 %v2149_v62, %v2148_v30  ;;  %v2151_v53 = vpop.f32.mrb[18].mxu1 }
 0x13c   : > { %v1436_v11 = vadd.f32 %v2113_v18, %v3356_v15  ;;  %v2152_v58 = vpop.f32.mrb[19].mxu1 }
 0x13d   : > { %v2153_v13 = vadd.f32 %v2152_v58, %v2151_v53  ;;  %v1498_v34 = vadd.f32 %v2150_v48, %v1433_v29 }
 0x13e   : > { %v2114_v47 = vpop.f32.mrb[20].mxu0 }
 0x13f   : > { %v2115_v20 = vpop.f32.mrb[21].mxu0  ;;  %v1501_v43 = vadd.f32 %v2153_v13, %v1436_v11 }
 0x140   : > { %v2116_v45 = vadd.f32 %v2115_v20, %v2114_v47  ;;  %v2117_v37 = vpop.f32.mrb[22].mxu0 }
 0x141   : > { %v2154_v35 = vpop.f32.mrb[20].mxu1  ;;  %v2118_v31 = vpop.f32.mrb[23].mxu0 }
 0x142   : > { %v1441_v14 = vadd.f32 %v2116_v45, %v1376_v21  ;;  %v2155_v61 = vpop.f32.mrb[21].mxu1  ;;  %v2119_v59 = vadd.f32 %v2118_v31, %v2117_v37  ;;  %v2317_v31 = vmov (!%p1841_p4), 0.0  }
 0x143   : > { %v2156_v1 = vadd.f32 %v2155_v61, %v2154_v35  ;;  %v2157_v46 = vpop.f32.mrb[22].mxu1  ;;  %1637 = vst [vmem:[%s3389_s7] sm:$0x3] (!%p1841_p4), %v2317_v31 }
 0x144   : > { %v1444_v5 = vadd.f32 %v2119_v59, %v3359_v0  ;;  %v2158_v50 = vpop.f32.mrb[23].mxu1 }
 0x145   : > { %v2159_v52 = vadd.f32 %v2158_v50, %v2157_v46  ;;  %v1506_v15 = vadd.f32 %v2156_v1, %v1441_v14 }
 0x146   : > { %v2120_v40 = vpop.f32.mrb[24].mxu0 }
 0x147   : > { %v2121_v2 = vpop.f32.mrb[25].mxu0  ;;  %v1509_v22 = vadd.f32 %v2159_v52, %v1444_v5 }
 0x148   : > { %v2122_v3 = vadd.f32 %v2121_v2, %v2120_v40  ;;  %v2123_v33 = vpop.f32.mrb[26].mxu0 }
 0x149   : > { %v2160_v25 = vpop.f32.mrb[24].mxu1  ;;  %v2124_v24 = vpop.f32.mrb[27].mxu0 }
 0x14a   : > { %v1449_v26 = vadd.f32 %v2122_v3, %v1384_v44  ;;  %v2161_v51 = vpop.f32.mrb[25].mxu1  ;;  %v2125_v4 = vadd.f32 %v2124_v24, %v2123_v33 }
 0x14b   : > { %v2162_v21 = vadd.f32 %v2161_v51, %v2160_v25  ;;  %v2163_v27 = vpop.f32.mrb[26].mxu1 }
 0x14c   : > { %v1452_v41 = vadd.f32 %v2125_v4, %v1387_v9  ;;  %v2164_v8 = vpop.f32.mrb[27].mxu1 }
 0x14d   : > { %v2165_v42 = vadd.f32 %v2164_v8, %v2163_v27  ;;  %v1514_v23 = vadd.f32 %v2162_v21, %v1449_v26 }
 0x14e   : > { %v2126_v0 = vpop.f32.mrb[28].mxu0 }
 0x14f   : > { %v2127_v6 = vpop.f32.mrb[29].mxu0  ;;  %v1517_v7 = vadd.f32 %v2165_v42, %v1452_v41 }
 0x150   : > { %v2128_v39 = vadd.f32 %v2127_v6, %v2126_v0  ;;  %v2129_v60 = vpop.f32.mrb[30].mxu0 }
 0x151   : > { %v2166_v63 = vpop.f32.mrb[28].mxu1  ;;  %v2130_v10 = vpop.f32.mrb[31].mxu0 }
 0x152   : > { %v1457_v36 = vadd.f32 %v2128_v39, %v1392_v49  ;;  %v2167_v28 = vpop.f32.mrb[29].mxu1  ;;  %v2131_v55 = vadd.f32 %v2130_v10, %v2129_v60 }
 0x153   : > { %v2168_v44 = vadd.f32 %v2167_v28, %v2166_v63  ;;  %v2169_v56 = vpop.f32.mrb[30].mxu1 }
 0x154   : > { %v1460_v19 = vadd.f32 %v2131_v55, %v1395_v32  ;;  %v2170_v54 = vpop.f32.mrb[31].mxu1 }
 0x155   : > { %v2171_v38 = vadd.f32 %v2170_v54, %v2169_v56  ;;  %v1522_v9 = vadd.f32 %v2168_v44, %v1457_v36 }
 0x156   : > { %v2202_v57 = vpop.f32.mrb[32].mxu0 }
 0x157   : > { %v1571_v17 = vadd.f32 %v2202_v57, %v1506_v15  ;;  %v1562_v12 = vpop.f32.mrb[33].mxu0  ;;  %v1525_v30 = vadd.f32 %v2171_v38, %v1460_v19 }
 0x158   : > { %v1563_v16 = vadd.f32 %v1562_v12, %v1498_v34  ;;  %v2203_v29 = vpop.f32.mrb[34].mxu0 }
 0x159   : > { %v2206_v62 = vpop.f32.mrb[32].mxu1  ;;  %v1574_v18 = vadd.f32 %v2203_v29, %v1509_v22  ;;  %v1565_v48 = vpop.f32.mrb[35].mxu0 }
 0x15a   : > { %v1587_v49 = vadd.f32 %v2206_v62, %v1522_v9  ;;  %v1578_v53 = vpop.f32.mrb[33].mxu1  ;;  %v1566_v11 = vadd.f32 %v1565_v48, %v1501_v43 }
 0x15b   : > { %v1895_v32 = vpack.c.bf16 %v1574_v18, %v1571_v17  ;;  %v1579_v58 = vadd.f32 %v1578_v53, %v1514_v23  ;;  %v2207_v13 = vpop.f32.mrb[34].mxu1  ;;  %1636 = sbr.rel (%p1841_p4) target bundleno = 354 (0x162), region = 48 }
 0x15c   : > { %v1890_v47 = vpack.c.bf16 %v1566_v11, %v1563_v16  ;;  %v1590_v20 = vadd.f32 %v2207_v13, %v1525_v30  ;;  %v1581_v45 = vpop.f32.mrb[35].mxu1 }
 0x15d   : > { %1913 = vst [vmem:[%s296_s20 + $0x8] sm:$0xff] %v1895_v32   ;;  %v1582_v37 = vadd.f32 %v1581_v45, %v1517_v7 }
 0x15e   : > { %1891 = vst [vmem:[%s296_s20] sm:$0xff] %v1890_v47   ;;  %v1905_v34 = vpack.c.bf16 %v1590_v20, %v1587_v49 }
 0x15f   : > { %v1900_v35 = vpack.c.bf16 %v1582_v37, %v1579_v58 }
 0x160   : > { %1915 = vst [vmem:[%s296_s20 + $0x18] sm:$0xff] %v1905_v34  }
 0x161   : > { %1914 = vst [vmem:[%s296_s20 + $0x10] sm:$0xff] %v1900_v35  }
 0x162 PF: > { %v1638_v43 = vadd.f32 %v1566_v11, %v1563_v16  ;;  %v1651_v14 = vmul.f32 %v1563_v16, %v1563_v16  ;;  %v1652_v61 = vmul.f32 %v1566_v11, %v1566_v11  ;;  %v1653_v59 = vmul.f32 %v1571_v17, %v1571_v17  ;;  %v1672_v28 = vld [vmem:[%s3389_s7] sm:$0x3] }
 0x163   : > { %v1654_v46 = vmul.f32 %v1574_v18, %v1574_v18  ;;  %v1655_v52 = vmul.f32 %v1579_v58, %v1579_v58  ;;  %v1656_v2 = vmul.f32 %v1582_v37, %v1582_v37  ;;  %v1657_v33 = vmul.f32 %v1587_v49, %v1587_v49 }
 0x164   : > { %v1639_v1 = vadd.f32 %v1638_v43, %v1571_v17  ;;  %v1659_v5 = vadd.f32 %v1652_v61, %v1651_v14  ;;  %v1658_v26 = vmul.f32 %v1590_v20, %v1590_v20  ;;  %vm1673_vm6 = vcmask 1040384  }
 0x166   : > { %v1640_v50 = vadd.f32 %v1639_v1, %v1574_v18  ;;  %v1660_v15 = vadd.f32 %v1659_v5, %v1653_v59 }
 0x168   : > { %v1641_v40 = vadd.f32 %v1640_v50, %v1579_v58  ;;  %v1661_v22 = vadd.f32 %v1660_v15, %v1654_v46 }
 0x16a   : > { %v1642_v3 = vadd.f32 %v1641_v40, %v1582_v37  ;;  %v1662_v25 = vadd.f32 %v1661_v22, %v1655_v52 }
 0x16c   : > { %v1643_v24 = vadd.f32 %v1642_v3, %v1587_v49  ;;  %v1663_v51 = vadd.f32 %v1662_v25, %v1656_v2 }
 0x16e   : > { %v1644_v4 = vadd.f32 %v1643_v24, %v1590_v20  ;;  %v1664_v21 = vadd.f32 %v1663_v51, %v1657_v33 }
 0x170   : > { %v1645_v27 = vrot.slane %v1644_v4, 4  ;;  %v1665_v41 = vadd.f32 %v1664_v21, %v1658_v26 }
 0x172   : > { %v1646_v8 = vadd.f32 %v1645_v27, %v1644_v4  ;;  %v1666_v42 = vrot.slane %v1665_v41, 4 }
 0x174   : > { %v1647_v23 = vrot.slane %v1646_v8, 2  ;;  %v1667_v0 = vadd.f32 %v1666_v42, %v1665_v41 }
 0x176   : > { %v1648_v6 = vadd.f32 %v1647_v23, %v1646_v8  ;;  %v1668_v7 = vrot.slane %v1667_v0, 2 }
 0x178   : > { %v1649_v39 = vrot.slane %v1648_v6, 1  ;;  %v1669_v60 = vadd.f32 %v1668_v7, %v1667_v0 }
 0x17a   : > { %v1650_v63 = vadd.f32 %v1649_v39, %v1648_v6  ;;  %v1670_v10 = vrot.slane %v1669_v60, 1 }
 0x17c   : > { %v1671_v36 = vadd.f32 %v1670_v10, %v1669_v60 }
 0x17e   : > { %v1674_v55 = vsel %vm1673_vm6, %v1650_v63, %v1671_v36 }
 0x17f   : > { %v1675_v44 = vadd.f32 %v1674_v55, %v1672_v28 }
 0x181   : > { %1676 = vst [vmem:[%s3389_s7] sm:$0x3] %v1675_v44 }
 0x182 PF: > { %s18_s24 = sadd.s32 1, %s2314_s24  }
 0x183   : > { %p15_p5 = scmp.ge.s32.totalorder %s18_s24, 4  }
 0x185   :  { %17 = sbr.rel (!%p15_p5) target bundleno = 1 (0x1), region = 89 }

// kernel: densenet_forward.18
= control target key start
LH: loop header
LB: loop body
LE: loop exit
PB: predicated region body
PF: predicated region fallthrough
CT: control target
= control target key end

     0   :  { %s757_s21 = smov 0   ;;  %s846_s0 = inlined_call_operand.vmem [shape: bf16[2,64,128], index: 0, kind: input, shape index: {}]   ;;  %s847_s1 = inlined_call_operand.vmem [shape: f32[2,128], index: 1, kind: input, shape index: {}]   ;;  %s848_s2 = inlined_call_operand.vmem [shape: f32[1,128], index: 2, kind: input, shape index: {}]   ;;  %s849_s3 = inlined_call_operand.vmem [shape: f32[1,128], index: 3, kind: input, shape index: {}]   ;;  %s850_s4 = inlined_call_operand.vmem [shape: bf16[128,128], index: 4, kind: input, shape index: {}]   ;;  %s851_s5 = inlined_call_operand.vmem [shape: bf16[2,16,128], index: 5, kind: output, shape index: {0}]   ;;  %s852_s6 = inlined_call_operand.vmem [shape: f32[2,128], index: 6, kind: output, shape index: {1}]  }
   0x1 LB: > { %s763_s22 = sadd.s32 4294967295, %s716_s21   ;;  %p613_p0 = scmp.ge.s32.totalorder %s716_s21, 1  ;;  %s716_s21 = sphi %s757_s21, %s17_s21  }
   0x2   : > { %p210_p1 = scmp.lt.s32.totalorder %s716_s21, 3 }
   0x4   : > { %p211_p2 = pnand %p613_p0, %p210_p1 }
   0x5   : > { %v700_v0 = vld [vmem:[%s850_s4] sm:$0xff] (!%p211_p2)   ;;  %v718_v1 = vmov (!%p211_p2), 0.0   ;;  %v701_v2 = vld [vmem:[%s850_s4 + $0x8] sm:$0xff] (!%p211_p2)   ;;  %vm719_vm0 = vmmov (!%p211_p2), 0   ;;  %v702_v3 = vld [vmem:[%s850_s4 + $0x10] sm:$0xff] (!%p211_p2)   ;;  %v265_v15 = vlaneseq (!%p211_p2)  ;;  %p240_p3 = scmp.lt.s32.totalorder (!%p211_p2), %s763_s22, 1 }
   0x6   : > { %214 = sbr.rel (%p211_p2) target bundleno = 315 (0x13b), region = 40  ;;  %668 = vmatprep.subr.bf16.mxu0 (!%p211_p2), %v718_v1  ;;  %684 = vmatprep.mubr.msk.bf16.mxu0 (!%p211_p2), %vm719_vm0, %v718_v1  ;;  %v251_v4 = vld [vmem:[%s847_s1] sm:$0x3] (!%p211_p2)  ;;  %v703_v6 = vld [vmem:[%s850_s4 + $0x18] sm:$0xff] (!%p211_p2)   ;;  %v705_v12 = vld [vmem:[%s850_s4 + $0x28] sm:$0xff] (!%p211_p2)   ;;  %p628_p4 = scmp.ne.s32.totalorder (!%p211_p2), %s763_s22, 0 }
   0x7   : > { %669 = vmatpush3.bf16.msra.mxu0 (!%p211_p2), %v700_v0  ;;  %v252_v5 = vmul.f32 (!%p211_p2), 0.0078125, %v251_v4  ;;  %v704_v9 = vld [vmem:[%s850_s4 + $0x20] sm:$0xff] (!%p211_p2)   ;;  %v720_v13 = vmov (!%p211_p2), 1966171168   ;;  %v706_v16 = vld [vmem:[%s850_s4 + $0x30] sm:$0xff] (!%p211_p2)   ;;  %v792_v18 = vshrl.u32 (!%p211_p2), %v265_v15, 7 }
   0x8   : > { %670 = vmatprep.subr.bf16.mxu0 (!%p211_p2), %v718_v1  ;;  %v263_v14 = vunpack.c.l.s4 (!%p211_p2), %v720_v13  ;;  %v707_v19 = vld [vmem:[%s850_s4 + $0x38] sm:$0xff] (!%p211_p2)   ;;  %v258_v24 = vld [vmem:[%s848_s2] sm:$0x1] (!%p211_p2) }
   0x9   : > { %v253_v7 = vmul.f32 (!%p211_p2), %v252_v5, %v252_v5  ;;  %v301_v30 = vsub.s32 (!%p211_p2), 0, %v792_v18  ;;  %v279_v35 = vld [vmem:[%s849_s3] sm:$0x1] (!%p211_p2)  ;;  %vm344_vm1 = vcmp.lt.s32.totalorder (!%p211_p2), %v792_v18, 7 }
   0xa   : > { %v264_v17 = vunpack.c.0.s8 (!%p211_p2), %v263_v14 }
   0xb   : > { %671 = vmatpush3.bf16.msra.mxu0 (!%p211_p2), %v701_v2  ;;  %v255_v8 = vrot.slane (!%p211_p2), %v253_v7, 7 }
   0xc   : > { %672 = vmatprep.subr.bf16.mxu0 (!%p211_p2), %v718_v1  ;;  %v267_v20 = vsub.s32 (!%p211_p2), %v264_v17, %v792_v18 }
   0xd   : > { %v257_v10 = vsub.f32 %v252_v5, %v255_v8  ;;  %s795_s15 = scalar_select %p240_p3, %s763_s22, 1 }
   0xf   : > { %673 = vmatpush3.bf16.msra.mxu0 %v702_v3  ;;  %v259_v11 = vadd.f32 1e-05, %v257_v10  ;;  %s631_s18 = sshll.u32 %s795_s15, 5  ;;  %s632_s28 = sshll.u32 %s795_s15, 3 }
  0x10   : > { %674 = vmatprep.subr.bf16.mxu0 %v718_v1  ;;  %s244_s23 = scalar_lea.vmem %s846_s0, %s631_s18  ;;  %s249_s7 = scalar_lea.vmem %s851_s5, %s632_s28 }
  0x11   : > { %708 = vrsqrt.f32 %v259_v11  ;;  %v636_v25 = vld [vmem:[%s244_s23] sm:$0xff]   ;;  %v656_v26 = vld [vmem:[%s244_s23 + $0x8] sm:$0xff]   ;;  %v657_v28 = vld [vmem:[%s244_s23 + $0x10] sm:$0xff]  }
  0x12   : > { %v658_v29 = vld [vmem:[%s244_s23 + $0x18] sm:$0xff]   ;;  %v637_v32 = vunpack.c.l.bf16 %v636_v25  ;;  %v638_v33 = vunpack.c.h.bf16 %v636_v25  ;;  %v641_v34 = vunpack.c.l.bf16 %v656_v26  ;;  %v642_v36 = vunpack.c.h.bf16 %v656_v26 }
  0x13   : > { %675 = vmatpush3.bf16.msra.mxu0 %v703_v6  ;;  %v645_v37 = vunpack.c.l.bf16 %v657_v28  ;;  %v646_v38 = vunpack.c.h.bf16 %v657_v28  ;;  %v649_v39 = vunpack.c.l.bf16 %v658_v29  ;;  %v650_v41 = vunpack.c.h.bf16 %v658_v29 }
  0x14   : > { %676 = vmatprep.subr.bf16.mxu0 %v718_v1 }
  0x17   : > { %677 = vmatpush3.bf16.msra.mxu0 %v704_v9 }
  0x18   : > { %678 = vmatprep.subr.bf16.mxu0 %v718_v1 }
  0x1b   : > { %679 = vmatpush3.bf16.msra.mxu0 %v705_v12  ;;  %v709_v21 = vpop.eup %708 }
  0x1c   : > { %680 = vmatprep.subr.bf16.mxu0 %v718_v1  ;;  %v268_v22 = vrot.slane %v709_v21, %v267_v20 }
  0x1e   : > { %v269_v23 = vcombine.high %v268_v22, %v268_v22 }
  0x1f   : > { %681 = vmatpush3.bf16.msra.mxu0 %v706_v16 }
  0x20   : > { %682 = vmatprep.subr.bf16.mxu0 %v718_v1  ;;  %v276_v27 = vrot.slane %v269_v23, %v267_v20 }
  0x22   : > { %v278_v31 = vmul.f32 %v276_v27, %v258_v24 }
  0x23   : > { %683 = vmatpush3.bf16.msra.mxu0 %v707_v19 }
  0x24   : > { %v280_v40 = vmul.f32 %v278_v31, %v252_v5  ;;  %v302_v42 = vrot.slane %v278_v31, %v301_v30 }
  0x26   : > { %v281_v43 = vsub.f32 %v279_v35, %v280_v40  ;;  %v304_v44 = vmul.f32 %v637_v32, %v302_v42  ;;  %v305_v45 = vmul.f32 %v638_v33, %v302_v42  ;;  %v306_v46 = vmul.f32 %v641_v34, %v302_v42 }
  0x27   : > { %v307_v47 = vmul.f32 %v642_v36, %v302_v42  ;;  %v308_v48 = vmul.f32 %v645_v37, %v302_v42  ;;  %v309_v49 = vmul.f32 %v646_v38, %v302_v42  ;;  %v310_v50 = vmul.f32 %v649_v39, %v302_v42 }
  0x28   : > { %v311_v51 = vmul.f32 %v650_v41, %v302_v42  ;;  %v316_v52 = vrot.slane %v281_v43, %v301_v30 }
  0x2a   : > { %v318_v53 = vadd.f32 %v316_v52, %v304_v44  ;;  %v319_v54 = vadd.f32 %v316_v52, %v305_v45  ;;  %v320_v55 = vadd.f32 %v316_v52, %v306_v46  ;;  %v321_v56 = vadd.f32 %v316_v52, %v307_v47 }
  0x2b   : > { %v322_v57 = vadd.f32 %v316_v52, %v308_v48  ;;  %v323_v58 = vadd.f32 %v316_v52, %v309_v49  ;;  %v324_v59 = vadd.f32 %v316_v52, %v310_v50  ;;  %v325_v60 = vadd.f32 %v316_v52, %v311_v51 }
  0x2c   : > { %v326_v61 = vmax.f32 %v318_v53, 0.0  ;;  %v327_v62 = vmax.f32 %v319_v54, 0.0  ;;  %v328_v63 = vmax.f32 %v320_v55, 0.0  ;;  %v329_v0 = vmax.f32 %v321_v56, 0.0 }
  0x2d   : > { %v330_v1 = vmax.f32 %v322_v57, 0.0  ;;  %v331_v2 = vmax.f32 %v323_v58, 0.0  ;;  %v332_v3 = vmax.f32 %v324_v59, 0.0  ;;  %v333_v4 = vmax.f32 %v325_v60, 0.0 }
  0x2e   : > { %v334_v5 = vrot.slane %v326_v61, 1  ;;  %v335_v6 = vrot.slane %v327_v62, 1  ;;  %v336_v7 = vrot.slane %v328_v63, 1  ;;  %v337_v8 = vrot.slane %v329_v0, 1 }
  0x2f   : > { %v338_v9 = vrot.slane %v330_v1, 1  ;;  %v339_v10 = vrot.slane %v331_v2, 1  ;;  %v340_v11 = vrot.slane %v332_v3, 1  ;;  %v341_v12 = vrot.slane %v333_v4, 1 }
  0x30   : > { %v349_v13 = vsel %vm344_vm1, %v336_v7, %v337_v8  ;;  %v350_v14 = vsel %vm344_vm1, %v335_v6, %v336_v7  ;;  %v351_v15 = vsel %vm344_vm1, %v334_v5, %v335_v6  ;;  %v721_v49 = vmov (!%p628_p4), 0.0  }
  0x31   : > { %v345_v16 = vsel %vm344_vm1, %v340_v11, %v341_v12  ;;  %v346_v17 = vsel %vm344_vm1, %v339_v10, %v340_v11  ;;  %v347_v19 = vsel %vm344_vm1, %v338_v9, %v339_v10  ;;  %v348_v20 = vsel %vm344_vm1, %v337_v8, %v338_v9  ;;  %526 = vst [vmem:[%s852_s6] sm:$0x3] (!%p628_p4), %v721_v49 }
  0x32   : > { %v352_v21 = vsel %vm344_vm1, %v341_v12, %v334_v5  ;;  %v353_v22 = vadd.f32 %v351_v15, %v326_v61  ;;  %v355_v23 = vadd.f32 %v349_v13, %v328_v63  ;;  %v357_v24 = vadd.f32 %v347_v19, %v330_v1 }
  0x33   : > { %v359_v25 = vadd.f32 %v345_v16, %v332_v3 }
  0x34   : > { %v361_v26 = vadd.f32 %v353_v22, %v327_v62  ;;  %v363_v27 = vadd.f32 %v355_v23, %v329_v0  ;;  %v365_v28 = vadd.f32 %v357_v24, %v331_v2 }
  0x35   : > { %v367_v29 = vadd.f32 %v359_v25, %v333_v4 }
  0x36   : > { %v369_v30 = vadd.f32 %v361_v26, %v350_v14  ;;  %v371_v31 = vadd.f32 %v363_v27, %v348_v20  ;;  %v373_v32 = vadd.f32 %v365_v28, %v346_v17 }
  0x37   : > { %v375_v33 = vadd.f32 %v367_v29, %v352_v21 }
  0x38   : > { %v377_v34 = vmul.f32 0.25, %v369_v30  ;;  %v379_v35 = vmul.f32 0.25, %v371_v31  ;;  %v381_v36 = vmul.f32 0.25, %v373_v32 }
  0x39   : > { %v383_v37 = vmul.f32 0.25, %v375_v33 }
  0x3a   : > { %385 = vst [vmem:[#allocation2] sm:$0xff] %v377_v34  ;;  %387 = vst [vmem:[#allocation2 + $0x10] sm:$0xff] %v379_v35 }
  0x3b   : > { %389 = vst [vmem:[#allocation2 + $0x20] sm:$0xff] %v381_v36  ;;  %391 = vst [vmem:[#allocation2 + $0x30] sm:$0xff] %v383_v37 }
  0x41   : > { %v393_v18 = vld [vmem:[#allocation2] ss:$2 sm:$0xf]  ;;  %v396_v38 = vld [vmem:[#allocation2 + $0x10] ss:$2 sm:$0xf] }
  0x42   : > { %394 = vst [vmem:[#allocation3] sm:$0xf] %v393_v18  ;;  %397 = vst [vmem:[#allocation3 + $0x4] sm:$0xf] %v396_v38 }
  0x43   : > { %v399_v39 = vld [vmem:[#allocation2 + $0x20] ss:$2 sm:$0xf]  ;;  %v402_v40 = vld [vmem:[#allocation2 + $0x30] ss:$2 sm:$0xf] }
  0x44   : > { %400 = vst [vmem:[#allocation3 + $0x8] sm:$0xf] %v399_v39  ;;  %403 = vst [vmem:[#allocation3 + $0xc] sm:$0xf] %v402_v40 }
  0x49   : > { %v404_v41 = vld [vmem:[#allocation3] sm:$0xff] }
  0x4b   : > { %v405_v42 = vld [vmem:[#allocation3 + $0x8] sm:$0xff] }
  0x4c   : > { %v406_v43 = vpack.c.bf16 %v405_v42, %v404_v41 }
  0x4e   : > { %685 = vmatmul.mubr.bf16.vlgmr.msra.gmra.mrb[0].mxu0 %v406_v43 }
 0x120   : > { %525 = sbr.rel (%p628_p4) target bundleno = 295 (0x127), region = 44 }
 0x121   : > { %v505_v44 = vpop.f32.mrb[0].mxu0 }
 0x122   : > { %v686_v45 = vpop.f32.mrb[1].mxu0 }
 0x123   : > { %v508_v46 = vpop.f32.mrb[2].mxu0 }
 0x124   : > { %v654_v47 = vpack.c.bf16 %v508_v46, %v505_v44  ;;  %v687_v48 = vpop.f32.mrb[3].mxu0 }
 0x126   : > { %655 = vst [vmem:[%s249_s7] sm:$0xff] %v654_v47  }
 0x127 PF: > { %v527_v50 = vadd.f32 %v508_v46, %v505_v44  ;;  %v534_v51 = vmul.f32 %v505_v44, %v505_v44  ;;  %v535_v52 = vmul.f32 %v508_v46, %v508_v46  ;;  %vm544_vm2 = vcmask 1040384   ;;  %v543_v2 = vld [vmem:[%s852_s6] sm:$0x3] }
 0x129   : > { %v528_v53 = vrot.slane %v527_v50, 4  ;;  %v536_v54 = vadd.f32 %v535_v52, %v534_v51 }
 0x12b   : > { %v529_v55 = vadd.f32 %v528_v53, %v527_v50  ;;  %v537_v56 = vrot.slane %v536_v54, 4 }
 0x12d   : > { %v530_v57 = vrot.slane %v529_v55, 2  ;;  %v538_v58 = vadd.f32 %v537_v56, %v536_v54 }
 0x12f   : > { %v531_v59 = vadd.f32 %v530_v57, %v529_v55  ;;  %v539_v60 = vrot.slane %v538_v58, 2 }
 0x131   : > { %v532_v61 = vrot.slane %v531_v59, 1  ;;  %v540_v62 = vadd.f32 %v539_v60, %v538_v58 }
 0x133   : > { %v533_v63 = vadd.f32 %v532_v61, %v531_v59  ;;  %v541_v0 = vrot.slane %v540_v62, 1 }
 0x135   : > { %v542_v1 = vadd.f32 %v541_v0, %v540_v62 }
 0x137   : > { %v545_v3 = vsel %vm544_vm2, %v533_v63, %v542_v1 }
 0x138   : > { %v546_v4 = vadd.f32 %v545_v3, %v543_v2 }
 0x13a   : > { %547 = vst [vmem:[%s852_s6] sm:$0x3] %v546_v4 }
 0x13b PF: > { %s17_s21 = sadd.s32 1, %s716_s21  }
 0x13c   : > { %p14_p5 = scmp.ge.s32.totalorder %s17_s21, 4  }
 0x13e   :  { %16 = sbr.rel (!%p14_p5) target bundleno = 1 (0x1), region = 85 }

// kernel: densenet_forward.12
= control target key start
LH: loop header
LB: loop body
LE: loop exit
PB: predicated region body
PF: predicated region fallthrough
CT: control target
= control target key end

     0   :  { %s4560_s12 = smov 0   ;;  %s7825_s0 = inlined_call_operand.vmem [shape: bf16[2,256,128], index: 0, kind: input, shape index: {}]   ;;  %s7826_s1 = inlined_call_operand.vmem [shape: bf16[1152,128], index: 1, kind: input, shape index: {}]   ;;  %s7827_s2 = inlined_call_operand.vmem [shape: bf16[2,256,128], index: 2, kind: output, shape index: {0}]   ;;  %s7828_s3 = inlined_call_operand.vmem [shape: f32[2,128], index: 3, kind: output, shape index: {1}]  }
   0x1 LB: > { %s4566_s13 = sadd.s32 4294967295, %s4536_s12   ;;  %p3207_p0 = scmp.ge.s32.totalorder %s4536_s12, 1  ;;  %s4536_s12 = sphi %s4560_s12, %s14_s12  }
   0x2   : > { %p135_p1 = scmp.lt.s32.totalorder %s4536_s12, 3 }
   0x4   : > { %p136_p2 = pnand %p3207_p0, %p135_p1 }
   0x6   : > { %139 = sbr.rel (%p136_p2) target bundleno = 641 (0x281), region = 28 }
   0xd   : > { %v4426_v0 = vld [vmem:[%s7826_s1 + $0x40] sm:$0xff]   ;;  %v234_v1 = vlaneseq  ;;  %v4428_v3 = vld [vmem:[%s7826_s1 + $0x48] sm:$0xff]   ;;  %p159_p3 = scmp.lt.s32.totalorder %s4566_s13, 1  ;;  %v4430_v6 = vld [vmem:[%s7826_s1 + $0x50] sm:$0xff]   ;;  %v8124_v29 = vmov 0  ;;  %v8127_v30 = vmov 0 }
   0xe   : > { %v4427_v2 = vld [vmem:[%s7826_s1] sm:$0xff]   ;;  %3848 = vmatprep.subr.bf16.mxu0 %v4426_v0  ;;  %4368 = vmatprep.subr.bf16.mxu1 %v4426_v0  ;;  %v4429_v4 = vld [vmem:[%s7826_s1 + $0x8] sm:$0xff]   ;;  %v4431_v7 = vld [vmem:[%s7826_s1 + $0x10] sm:$0xff]   ;;  %v8132_v45 = vmov 0  ;;  %v8137_v51 = vmov 0  ;;  %v8274_v18 = vmov 0 }
   0xf   : > { %3849 = vmatpush3.bf16.msra.mxu0 %v4427_v2  ;;  %4376 = vmatpush3.bf16.msra.mxu1 %v4427_v2  ;;  %v4583_v5 = vshrl.u32 %v234_v1, 7  ;;  %s4589_s24 = scalar_select %p159_p3, %s4566_s13, 1  ;;  %v4432_v9 = vld [vmem:[%s7826_s1 + $0x58] sm:$0xff]   ;;  %v4434_v13 = vld [vmem:[%s7826_s1 + $0x60] sm:$0xff]   ;;  %v4436_v20 = vld [vmem:[%s7826_s1 + $0x68] sm:$0xff]  }
  0x10   : > { %3850 = vmatprep.subr.bf16.mxu0 %v4428_v3  ;;  %4369 = vmatprep.subr.bf16.mxu1 %v4428_v3  ;;  %v4433_v11 = vld [vmem:[%s7826_s1 + $0x18] sm:$0xff]   ;;  %v4435_v14 = vld [vmem:[%s7826_s1 + $0x20] sm:$0xff]   ;;  %v4437_v31 = vld [vmem:[%s7826_s1 + $0x28] sm:$0xff]   ;;  %p3332_p4 = scmp.ne.s32.totalorder %s4566_s13, 0 }
  0x11   : > { %v4595_v8 = vadd.s32 8, %v4583_v5  ;;  %s3335_s29 = sshll.u32 %s4589_s24, 7  ;;  %v7838_v10 = vshra.s32 %v4583_v5, 4  ;;  %v4620_v15 = vadd.s32 192, %v4583_v5  ;;  %v4629_v17 = vadd.s32 200, %v4583_v5  ;;  %v4438_v34 = vld [vmem:[%s7826_s1 + $0x70] sm:$0xff]  }
  0x12   : > { %s4617_s11 = scalar_lea.vmem %s7825_s0, %s3335_s29  ;;  %v267_v32 = vand.u32 15, %v4583_v5  ;;  %vm7833_vm6 = vcmp.lt.s32.totalorder %v4583_v5, 1  ;;  %v4439_v37 = vld [vmem:[%s7826_s1 + $0x30] sm:$0xff]   ;;  %v4712_v43 = vadd.s32 16, %v4583_v5  ;;  %v4723_v46 = vadd.s32 24, %v4583_v5  ;;  %v4440_v48 = vld [vmem:[%s7826_s1 + $0x78] sm:$0xff]   ;;  %s7573_s4 = scalar_lea.vmem %s7827_s2, %s3335_s29 }
  0x13   : > { %3851 = vmatpush3.bf16.msra.mxu0 %v4429_v4  ;;  %4377 = vmatpush3.bf16.msra.mxu1 %v4429_v4  ;;  %8114 = vst [vmem:[#allocation3_spill] sm:$0xff] %v4595_v8  ;;  %v7837_v12 = vshra.s32 %v4595_v8, 4  ;;  %8115 = vst [vmem:[#allocation4_spill] sm:$0xff] %v4620_v15  ;;  %vm4624_vm0 = vcmp.ge.s32.totalorder %v7838_v10, 1  ;;  %v7832_v19 = vshra.s32 %v4620_v15, 4  ;;  %v4642_v21 = vld [vmem:[%s4617_s11 + $0x78] sm:$0xff]  }
  0x14   : > { %3852 = vmatprep.subr.bf16.mxu0 %v4430_v6  ;;  %4370 = vmatprep.subr.bf16.mxu1 %v4430_v6  ;;  %8118 = vst [vmem:[#allocation5_spill] sm:$0xff] %v4629_v17  ;;  %8121 = vst [vmem:[#allocation6_spill] sm:$0xff] %v4642_v21  ;;  %v4645_v22 = vld [vmem:[%s4617_s11 + $0x58] sm:$0xff]   ;;  %v7831_v23 = vshra.s32 %v4629_v17, 4  ;;  %v7863_v24 = vunpack.c.l.bf16 %v4642_v21  ;;  %v7862_v25 = vunpack.c.h.bf16 %v4642_v21  ;;  %v4652_v27 = vld [vmem:[%s4617_s11 + $0x70] sm:$0xff]   ;;  %v291_v36 = vand.u32 15, %v4620_v15 }
  0x15   : > { %vm4633_vm1 = vcmp.ge.s32.totalorder %v7837_v12, 1  ;;  %8122 = vst [vmem:[#allocation7_spill] sm:$0xff] %v4645_v22  ;;  %v7847_v26 = vunpack.c.l.bf16 %v4645_v22  ;;  %8123 = vst [vmem:[#allocation8_spill] sm:$0xff] %v4652_v27  ;;  %v7845_v28 = vunpack.c.h.bf16 %v4645_v22  ;;  %vm4661_vm3 = vcmp.ge.s32.totalorder %v7832_v19, 1  ;;  %v4680_v33 = vld [vmem:[%s4617_s11 + $0x54] sm:$0xf] }
  0x16   : > { %vm3464_vm2 = vmpackc.low %vm4633_vm1, %vm4624_vm0  ;;  %v8125_v29 = vsel %vm4661_vm3, 4294967295, %v8124_v29  ;;  %vm4667_vm4 = vcmp.ge.s32.totalorder %v7831_v23, 1  ;;  %8130 = vst [vmem:[#allocation11_spill] sm:$0xff] %v4680_v33  ;;  %v361_v35 = vrot.slane %v7863_v24, 7  ;;  %v4694_v38 = vrot.slane %v7862_v25, 7  ;;  %v4441_v50 = vld [vmem:[%s7826_s1 + $0x38] sm:$0xff]  }
  0x17   : > { %3853 = vmatpush3.bf16.msra.mxu0 %v4431_v7  ;;  %4378 = vmatpush3.bf16.msra.mxu1 %v4431_v7  ;;  %8126 = vst [vmem:[#allocation9_spill] sm:$0xff] %v8125_v29  ;;  %v8128_v30 = vsel %vm4667_vm4, 4294967295, %v8127_v30  ;;  %vm3536_vm5 = vmpackc.low %vm4667_vm4, %vm4661_vm3  ;;  %v353_v39 = vrot.slane %v7847_v26, 7  ;;  %v7836_v40 = vunpack.c.h.bf16 %v4652_v27  ;;  %v4708_v41 = vrot.slane %v7845_v28, 7  ;;  %v4444_v57 = vld [vmem:[%s7826_s1 + $0xc0] sm:$0xff]   ;;  %v4453_v10 = vld [vmem:[%s7826_s1 + $0x90] sm:$0xff]  }
  0x18   : > { %3854 = vmatprep.subr.bf16.mxu0 %v4432_v9  ;;  %4371 = vmatprep.subr.bf16.mxu1 %v4432_v9  ;;  %8129 = vst [vmem:[#allocation10_spill] sm:$0xff] %v8128_v30  ;;  %v7839_v42 = vunpack.c.l.bf16 %v4680_v33  ;;  %8131 = vst [vmem:[#allocation12_spill] sm:$0xff] %v4712_v43  ;;  %vm4718_vm7 = vcmp.ge.s32.totalorder %v267_v32, 1  ;;  %v4726_v47 = vadd.s32 208, %v4583_v5  ;;  %vm4738_vm8 = vcmp.ge.s32.totalorder %v291_v36, 1  ;;  %v4763_v58 = vld [vmem:[%s4617_s11] sm:$0xff]  }
  0x19   : > { %3466 = vmatprep.mubr.msk.bf16.mxu0 %vm3464_vm2, %v4642_v21  ;;  %3538 = vmatprep.mubr.msk.bf16.mxu1 %vm3536_vm5, %v4645_v22  ;;  %v4716_v44 = vrot.slane %v7836_v40, 7  ;;  %v8133_v45 = vsel %vm4718_vm7, 4294967295, %v8132_v45  ;;  %8135 = vst [vmem:[#allocation14_spill] sm:$0xff] %v4723_v46  ;;  %v8138_v51 = vsel %vm4738_vm8, 4294967295, %v8137_v51  ;;  %v7835_v52 = vshra.s32 %v4712_v43, 4  ;;  %vm460_vm9 = vmand %vm4624_vm0, %vm4718_vm7  ;;  %v4772_v63 = vld [vmem:[%s4617_s11 + $0x60] sm:$0xff]  }
  0x1a   : > { %8134 = vst [vmem:[#allocation13_spill] sm:$0xff] %v8133_v45  ;;  %8136 = vst [vmem:[#allocation15_spill] sm:$0xff] %v4726_v47  ;;  %v4733_v49 = vrot.slane %v7839_v42, 7  ;;  %v4744_v53 = vadd.s32 216, %v4583_v5  ;;  %v364_v54 = vsel %vm7833_vm6, %v361_v35, %v4694_v38  ;;  %v372_v56 = vsel %vm7833_vm6, %v353_v39, %v4708_v41  ;;  %v4447_v1 = vld [vmem:[%s7826_s1 + $0x140] sm:$0xff]  }
  0x1b   : > { %3855 = vmatpush3.bf16.msra.mxu0 %v4433_v11  ;;  %4379 = vmatpush3.bf16.msra.mxu1 %v4433_v11  ;;  %8139 = vst [vmem:[#allocation16_spill] sm:$0xff] %v8138_v51  ;;  %v365_v55 = vsel %vm7833_vm6, %v4716_v44, %v361_v35  ;;  %8141 = vst [vmem:[#allocation18_spill] sm:$0xff] %v4763_v58  ;;  %v7834_v59 = vshra.s32 %v4723_v46, 4  ;;  %v7861_v61 = vunpack.c.l.bf16 %v4763_v58  ;;  %v7856_v62 = vunpack.c.h.bf16 %v4763_v58  ;;  %v4449_v32 = vld [vmem:[%s7826_s1 + $0x100] sm:$0xff]   ;;  %v5652_v51 = vld [vmem:[%s4617_s11 + $0x38] sm:$0xff]  }
  0x1c   : > { %3856 = vmatprep.subr.bf16.mxu0 %v4434_v13  ;;  %4372 = vmatprep.subr.bf16.mxu1 %v4434_v13  ;;  %8140 = vst [vmem:[#allocation17_spill] sm:$0xff] %v4744_v53  ;;  %v373_v60 = vsel %vm7833_vm6, %v4733_v49, %v353_v39  ;;  %8142 = vst [vmem:[#allocation19_spill] sm:$0xff] %v4772_v63  ;;  %v7830_v0 = vshra.s32 %v4726_v47, 4  ;;  %v7844_v2 = vunpack.c.l.bf16 %v4772_v63  ;;  %v7840_v3 = vunpack.c.h.bf16 %v4772_v63 }
  0x1d   : > { %vm484_vm10 = vmand %vm4661_vm3, %vm4738_vm8  ;;  %v7829_v4 = vshra.s32 %v4744_v53, 4  ;;  %v269_v6 = vand.u32 15, %v4712_v43  ;;  %v4786_v7 = vpack.c.bf16 %v364_v54, %v365_v55  ;;  %v331_v9 = vrot.slane %v7861_v61, 7  ;;  %v4448_v54 = vld [vmem:[%s7826_s1 + $0x88] sm:$0xff]  }
  0x1e   : > { %v4792_v11 = vrot.slane %v7856_v62, 7  ;;  %vm4796_vm11 = vcmp.ge.s32.totalorder %v7835_v52, 1  ;;  %v8144_v13 = vmov 0  ;;  %vm4807_vm12 = vmpackc.low %vm4633_vm1, %vm460_vm9  ;;  %vm4821_vm13 = vcmp.ge.s32.totalorder %v7834_v59, 1 }
  0x1f   : > { %3857 = vmatpush3.bf16.msra.mxu0 %v4435_v14  ;;  %4380 = vmatpush3.bf16.msra.mxu1 %v4435_v14  ;;  %8143 = vst [vmem:[#allocation20_spill] sm:$0xff] %v4786_v7  ;;  %v8145_v13 = vsel %vm4796_vm11, 4294967295, %v8144_v13  ;;  %v355_v35 = vrot.slane %v7844_v2, 7  ;;  %v4829_v36 = vrot.slane %v7840_v3, 7  ;;  %vm3539_vm14 = vmpackc.low %vm4667_vm4, %vm484_vm10  ;;  %vm4840_vm15 = vcmp.ge.s32.totalorder %v7830_v0, 1 }
  0x20   : > { %3858 = vmatprep.subr.bf16.mxu0 %v4436_v20  ;;  %4373 = vmatprep.subr.bf16.mxu1 %v4436_v20  ;;  %v4811_v20 = vpack.c.bf16 %v372_v56, %v373_v60  ;;  %vm4846_vm2 = vcmp.ge.s32.totalorder %v7829_v4, 1  ;;  %v8154_v39 = vmov 0  ;;  %vm4853_vm5 = vcmp.ge.s32.totalorder %v269_v6, 1  ;;  %vm3470_vm9 = vmpackc.low %vm4821_vm13, %vm4796_vm11  ;;  %v4872_v60 = vld [vmem:[%s4617_s11 + $0x8] sm:$0xff]  }
  0x21   : > { %v8155_v39 = vsel %vm4846_vm2, 4294967295, %v8154_v39  ;;  %v394_v55 = vsel %vm7833_vm6, %v331_v9, %v4792_v11  ;;  %v395_v56 = vsel %vm7833_vm6, %v4694_v38, %v331_v9  ;;  %8160 = vst [vmem:[#allocation25_spill] sm:$0xff] %v4872_v60  ;;  %vm3542_vm10 = vmpackc.low %vm4846_vm2, %vm4840_vm15  ;;  %v370_v38 = vsel %vm7833_vm6, %v355_v35, %v4829_v36 }
  0x22   : > { %8148 = vst [vmem:[#allocation21_spill] sm:$0xff] %v4811_v20  ;;  %8156 = vst [vmem:[#allocation23_spill] sm:$0xff] %v8155_v39  ;;  %v7854_v6 = vunpack.c.l.bf16 %v4872_v60  ;;  %v7849_v9 = vunpack.c.h.bf16 %v4872_v60  ;;  %v4891_v4 = vadd.s32 32, %v4583_v5  ;;  %v371_v14 = vsel %vm7833_vm6, %v4708_v41, %v355_v35  ;;  %v4452_v35 = vld [vmem:[%s7826_s1 + $0xd0] sm:$0xff]  }
  0x23   : > { %3859 = vmatpush3.bf16.msra.mxu0 %v4437_v31  ;;  %4381 = vmatpush3.bf16.msra.mxu1 %v4437_v31  ;;  %v4445_v31 = vld [vmem:[%s7826_s1 + $0x80] sm:$0xff]   ;;  %v8163_v0 = vmov 0  ;;  %v4905_v23 = vadd.s32 40, %v4583_v5  ;;  %v4918_v41 = vpack.c.bf16 %v394_v55, %v395_v56  ;;  %v4943_v52 = vadd.s32 224, %v4583_v5 }
  0x24   : > { %3860 = vmatprep.subr.bf16.mxu0 %v4438_v34  ;;  %4374 = vmatprep.subr.bf16.mxu1 %v4438_v34  ;;  %v8149_v34 = vmov 0  ;;  %8162 = vst [vmem:[#allocation27_spill] sm:$0xff] %v4891_v4  ;;  %v4939_v56 = vrot.slane %v7849_v9, 7  ;;  %v4956_v12 = vpack.c.bf16 %v370_v38, %v371_v14  ;;  %v4968_v42 = vadd.s32 232, %v4583_v5  ;;  %v4454_v14 = vld [vmem:[%s7826_s1 + $0xd8] sm:$0xff]   ;;  %v4458_v38 = vld [vmem:[%s7826_s1 + $0xe0] sm:$0xff]  }
  0x25   : > { %v8150_v34 = vsel %vm4821_vm13, 4294967295, %v8149_v34  ;;  %8166 = vst [vmem:[#allocation29_spill] sm:$0xff] %v4905_v23  ;;  %8167 = vst [vmem:[#allocation30_spill] sm:$0xff] %v4918_v41  ;;  %v7846_v55 = vshra.s32 %v4905_v23, 4  ;;  %v271_v28 = vand.u32 15, %v4891_v4  ;;  %v8179_v9 = vmov 0 }
  0x26   : > { %8168 = vst [vmem:[#allocation31_spill] sm:$0xff] %v4943_v52  ;;  %8171 = vst [vmem:[#allocation32_spill] sm:$0xff] %v4956_v12  ;;  %v7860_v2 = vshra.s32 %v4968_v42, 4  ;;  %v8187_v62 = vmov 0  ;;  %v5085_v25 = vadd.s32 240, %v4583_v5  ;;  %v5101_v61 = vadd.s32 248, %v4583_v5 }
  0x27   : > { %3861 = vmatpush3.bf16.msra.mxu0 %v4439_v37  ;;  %4382 = vmatpush3.bf16.msra.mxu1 %v4439_v37  ;;  %v8151_v37 = vmov 0  ;;  %8174 = vst [vmem:[#allocation33_spill] sm:$0xff] %v4968_v42  ;;  %vm4988_vm3 = vcmp.ge.s32.totalorder %v7846_v55, 1  ;;  %v4461_v55 = vld [vmem:[%s7826_s1 + $0x108] sm:$0xff]   ;;  %v8209_v26 = vunpack.c.l.bf16 %v4652_v27  ;;  %v8211_v15 = vmov 0  ;;  %v4476_v42 = vld [vmem:[%s7826_s1 + $0x158] sm:$0xff]  }
  0x28   : > { %3862 = vmatprep.subr.bf16.mxu0 %v4440_v48  ;;  %4375 = vmatprep.subr.bf16.mxu1 %v4440_v48  ;;  %v8152_v37 = vsel %vm4840_vm15, 4294967295, %v8151_v37  ;;  %v4446_v48 = vld [vmem:[%s7826_s1 + $0xc8] sm:$0xff]   ;;  %8203 = vst [vmem:[#allocation43_spill] sm:$0xff] %v5085_v25  ;;  %8207 = vst [vmem:[#allocation45_spill] sm:$0xff] %v5101_v61  ;;  %v8287_v39 = vmov 0  ;;  %v8372_v33 = vunpack.c.h.bf16 %v5652_v51 }
  0x29   : > { %8153 = vst [vmem:[#allocation22_spill] sm:$0xff] %v8152_v37 }
  0x2b   : > { %3863 = vmatpush3.bf16.msra.mxu0 %v4441_v50  ;;  %4383 = vmatpush3.bf16.msra.mxu1 %v4441_v50  ;;  %v8157_v50 = vmov 0 }
  0x2c   : > { %3960 = vmatprep.subr.bf16.mxu1 %v4444_v57  ;;  %4072 = vmatprep.subr.bf16.mxu0 %v4447_v1  ;;  %v8158_v50 = vsel %vm4853_vm5, 4294967295, %v8157_v50  ;;  %v293_v57 = vand.u32 15, %v4726_v47  ;;  %v4875_v1 = vld [vmem:[%s4617_s11 + $0x68] sm:$0xff]  }
  0x2d   : > { %8159 = vst [vmem:[#allocation24_spill] sm:$0xff] %v8158_v50  ;;  %8161 = vst [vmem:[#allocation26_spill] sm:$0xff] %v4875_v1  ;;  %v7843_v19 = vunpack.c.l.bf16 %v4875_v1  ;;  %v7851_v59 = vunpack.c.h.bf16 %v4875_v1  ;;  %v8283_v50 = vmov 0 }
  0x2e   : > { %3469 = vmatmul.mubr.msk.bf16.vlgmr.msra.gmra.mrb[0].mxu0 %vm4807_vm12, %v4786_v7  ;;  %3541 = vmatmul.mubr.msk.bf16.vlgmr.msra.gmra.mrb[0].mxu1 %vm3539_vm14, %v4811_v20  ;;  %vm462_vm12 = vmand %vm4796_vm11, %vm4853_vm5  ;;  %vm4900_vm14 = vcmp.ge.s32.totalorder %v293_v57, 1  ;;  %v333_v57 = vrot.slane %v7854_v6, 7  ;;  %v297_v7 = vand.u32 15, %v5085_v25  ;;  %vm8225_vm11 = vcmp.lt.s32.totalorder %v4583_v5, 1  ;;  %v5539_v20 = vld [vmem:[%s4617_s11 + $0x30] sm:$0xff]  }
  0x2f   : > { %3961 = vmatpush3.bf16.msra.mxu1 %v4445_v31  ;;  %4073 = vmatpush3.bf16.msra.mxu0 %v4449_v32  ;;  %v8164_v0 = vsel %vm4900_vm14, 4294967295, %v8163_v0  ;;  %v4459_v31 = vld [vmem:[%s7826_s1 + $0x148] sm:$0xff]   ;;  %v268_v32 = vand.u32 15, %v4595_v8  ;;  %vm486_vm6 = vmand %vm4840_vm15, %vm4900_vm14  ;;  %v357_v3 = vrot.slane %v7843_v19, 7  ;;  %v4995_v19 = vrot.slane %v7851_v59, 7 }
  0x30   : > { %8165 = vst [vmem:[#allocation28_spill] sm:$0xff] %v8164_v0  ;;  %3962 = vmatprep.subr.bf16.mxu1 %v4446_v48  ;;  %3472 = vmatprep.mubr.msk.bf16.mxu0 %vm3470_vm9, %v4763_v58  ;;  %v7842_v48 = vshra.s32 %v4891_v4, 4  ;;  %vm4952_vm9 = vmpackc.low %vm4821_vm13, %vm462_vm12  ;;  %v8218_v4 = vmov 0  ;;  %v5182_v8 = vadd.s32 64, %v4583_v5  ;;  %v8295_v0 = vunpack.c.h.bf16 %v4872_v60 }
  0x31   : > { %3544 = vmatprep.mubr.msk.bf16.mxu1 %vm3542_vm10, %v4772_v63  ;;  %4074 = vmatprep.subr.bf16.mxu0 %v4459_v31  ;;  %v8172_v31 = vmov 0  ;;  %vm4979_vm12 = vmpackc.low %vm4846_vm2, %vm486_vm6  ;;  %vm5007_vm15 = vcmp.le.s32.totalorder %v268_v32, 14  ;;  %vm8185_vm6 = vcmp.lt.s32.totalorder %v4583_v5, 1  ;;  %v295_v32 = vand.u32 15, %v4943_v52 }
  0x32   : > { %vm4963_vm10 = vcmp.ge.s32.totalorder %v7842_v48, 1  ;;  %v8177_v48 = vmov 0  ;;  %v8180_v9 = vsel %vm5007_vm15, 4294967295, %v8179_v9  ;;  %v392_v59 = vsel %vm8185_vm6, %v333_v57, %v4939_v56  ;;  %vm8186_vm14 = vmmov %vm8185_vm6  ;;  %8230 = vst [vmem:[#allocation50_spill] sm:$0xff] %v5182_v8 }
  0x33   : > { %v8173_v31 = vsel %vm4963_vm10, 4294967295, %v8172_v31  ;;  %3963 = vmatpush3.bf16.msra.mxu1 %v4448_v54  ;;  %v8178_v48 = vsel %vm4988_vm3, 4294967295, %v8177_v48  ;;  %v7855_v54 = vshra.s32 %v4943_v52, 4  ;;  %8181 = vst [vmem:[#allocation34_spill] sm:$0xff] %v8180_v9  ;;  %v393_v6 = vsel %vm8186_vm14, %v4792_v11, %v333_v57  ;;  %vm8195_vm4 = vmpackc.low %vm4988_vm3, %vm4963_vm10  ;;  %4075 = vmatpush3.bf16.msra.mxu0 %v4461_v55 }
  0x34   : > { %3964 = vmatprep.subr.bf16.mxu1 %v4452_v35  ;;  %v8182_v35 = vmov 0  ;;  %vm5035_vm6 = vcmp.ge.s32.totalorder %v7860_v2, 1  ;;  %vm5039_vm14 = vcmp.ge.s32.totalorder %v271_v28, 1  ;;  %v8190_v11 = vmov 0 }
  0x35   : > { %vm5013_vm2 = vcmp.ge.s32.totalorder %v7855_v54, 1  ;;  %v4455_v54 = vld [vmem:[%s7826_s1 + $0x98] sm:$0xff]   ;;  %v8188_v62 = vsel %vm5035_vm6, 4294967295, %v8187_v62  ;;  %v8191_v11 = vsel %vm5039_vm14, 4294967295, %v8190_v11  ;;  %vm5062_vm8 = vcmp.ge.s32.totalorder %v295_v32, 1 }
  0x36   : > { %v8183_v35 = vsel %vm5013_vm2, 4294967295, %v8182_v35  ;;  %3475 = vmatmul.mubr.msk.bf16.gmra.mrb[4].mxu0 %vm4952_vm9, %v4918_v41  ;;  %3547 = vmatmul.mubr.msk.bf16.gmra.mrb[4].mxu1 %vm4979_vm12, %v4956_v12  ;;  %8189 = vst [vmem:[#allocation36_spill] sm:$0xff] %v8188_v62  ;;  %8192 = vst [vmem:[#allocation37_spill] sm:$0xff] %v8191_v11  ;;  %vm8193_vm9 = vcmp.lt.s32.totalorder %v4583_v5, 1  ;;  %v8196_v28 = vmov 0  ;;  %v5080_v32 = vpack.c.bf16 %v392_v59, %v393_v6  ;;  %v4460_v59 = vld [vmem:[%s7826_s1 + $0xa0] sm:$0xff]  }
  0x37   : > { %8184 = vst [vmem:[#allocation35_spill] sm:$0xff] %v8183_v35  ;;  %v368_v40 = vsel %vm8193_vm9, %v357_v3, %v4995_v19  ;;  %vm8194_vm12 = vmmov %vm8193_vm9  ;;  %3965 = vmatpush3.bf16.msra.mxu1 %v4453_v10  ;;  %3478 = vmatprep.mubr.msk.bf16.mxu0 %vm8195_vm4, %v4872_v60  ;;  %v8197_v28 = vsel %vm5062_vm8, 4294967295, %v8196_v28  ;;  %v5070_v10 = vadd.s32 48, %v4583_v5  ;;  %v359_v52 = vrot.slane %v8209_v26, 7  ;;  %v4480_v12 = vld [vmem:[%s7826_s1 + $0x188] sm:$0xff]  }
  0x38   : > { %v369_v57 = vsel %vm8194_vm12, %v4829_v36, %v357_v3  ;;  %vm3548_vm9 = vmpackc.low %vm5035_vm6, %vm5013_vm2  ;;  %8198 = vst [vmem:[#allocation38_spill] sm:$0xff] %v8197_v28  ;;  %v5067_v3 = vld [vmem:[%s4617_s11 + $0x10] sm:$0xff]   ;;  %v5073_v36 = vadd.s32 56, %v4583_v5  ;;  %3966 = vmatprep.subr.bf16.mxu1 %v4454_v14  ;;  %v7882_v26 = vshra.s32 %v5085_v25, 4  ;;  %v8227_v25 = vmov 0 }
  0x39   : > { %8199 = vst [vmem:[#allocation39_spill] sm:$0xff] %v5067_v3  ;;  %8200 = vst [vmem:[#allocation40_spill] sm:$0xff] %v5070_v10  ;;  %3550 = vmatprep.mubr.msk.bf16.mxu1 %vm3548_vm9, %v4875_v1  ;;  %v7870_v2 = vunpack.c.l.bf16 %v5067_v3  ;;  %v5093_v24 = vpack.c.bf16 %v368_v40, %v369_v57  ;;  %v4462_v40 = vld [vmem:[%s7826_s1 + $0xe8] sm:$0xff]   ;;  %v8208_v55 = vunpack.c.h.bf16 %v5067_v3  ;;  %v8210_v47 = vshra.s32 %v5070_v10, 4  ;;  %v4469_v14 = vld [vmem:[%s7826_s1 + $0x150] sm:$0xff]  }
  0x3a   : > { %8201 = vst [vmem:[#allocation41_spill] sm:$0xff] %v5073_v36  ;;  %vm464_vm4 = vmand %vm4963_vm10, %vm5039_vm14  ;;  %v8237_v35 = vunpack.c.h.bf16 %v4642_v21  ;;  %4076 = vmatprep.subr.bf16.mxu0 %v4469_v14  ;;  %v8247_v28 = vmov 0  ;;  %v623_v29 = vrot.slane %v8295_v0, 1  ;;  %v4485_v0 = vld [vmem:[%s7826_s1 + $0x168] sm:$0xff]  }
  0x3b   : > { %8202 = vst [vmem:[#allocation42_spill] sm:$0xff] %v5080_v32  ;;  %vm5089_vm12 = vmpackc.low %vm4988_vm3, %vm464_vm4  ;;  %v335_v57 = vrot.slane %v7870_v2, 7  ;;  %v5114_v6 = vrot.slane %v8208_v55, 7  ;;  %3967 = vmatpush3.bf16.msra.mxu1 %v4455_v54  ;;  %v8213_v2 = vshra.s32 %v5073_v36, 4  ;;  %v8216_v54 = vunpack.c.l.bf16 %v4642_v21  ;;  %v4498_v55 = vld [vmem:[%s7826_s1 + $0x1e0] sm:$0xff]  }
  0x3c   : > { %8206 = vst [vmem:[#allocation44_spill] sm:$0xff] %v5093_v24  ;;  %vm488_vm9 = vmand %vm5013_vm2, %vm5062_vm8  ;;  %vm5123_vm8 = vcmp.ge.s32.totalorder %v8210_v47, 1  ;;  %3968 = vmatprep.subr.bf16.mxu1 %v4458_v38  ;;  %v273_v47 = vand.u32 15, %v5070_v10  ;;  %vm5149_vm4 = vcmp.ge.s32.totalorder %v7882_v26, 1  ;;  %v8222_v38 = vmov 0 }
  0x3d   : > { %vm3551_vm2 = vmpackc.low %vm5035_vm6, %vm488_vm9  ;;  %v8212_v15 = vsel %vm5123_vm8, 4294967295, %v8211_v15  ;;  %vm5129_vm10 = vcmp.ge.s32.totalorder %v8213_v2, 1  ;;  %v5137_v43 = vrot.slane %v8216_v54, 1  ;;  %v4463_v2 = vld [vmem:[%s7826_s1 + $0xa8] sm:$0xff]   ;;  %v8219_v4 = vsel %vm5149_vm4, 4294967295, %v8218_v4 }
  0x3e   : > { %vm3482_vm9 = vmpackc.low %vm5129_vm10, %vm5123_vm8  ;;  %8220 = vst [vmem:[#allocation47_spill] sm:$0xff] %v8219_v4  ;;  %v8221_v54 = vshra.s32 %v5101_v61, 4  ;;  %3481 = vmatmul.mubr.msk.bf16.gmra.mrb[8].mxu0 %vm5089_vm12, %v5080_v32  ;;  %3553 = vmatmul.mubr.msk.bf16.gmra.mrb[8].mxu1 %vm3551_vm2, %v5093_v24  ;;  %vm5174_vm13 = vcmp.ge.s32.totalorder %v273_v47, 1  ;;  %vm5195_vm12 = vcmp.ge.s32.totalorder %v297_v7, 1  ;;  %v8233_v47 = vmov 0  ;;  %v4467_v7 = vld [vmem:[%s7826_s1 + $0xb0] sm:$0xff]  }
  0x3f   : > { %8217 = vst [vmem:[#allocation46_spill] sm:$0xff] %v5137_v43  ;;  %vm8226_vm14 = vmmov %vm8225_vm11  ;;  %v8228_v25 = vsel %vm5174_vm13, 4294967295, %v8227_v25  ;;  %3969 = vmatpush3.bf16.msra.mxu1 %v4460_v59  ;;  %3484 = vmatprep.mubr.msk.bf16.mxu0 %vm3482_vm9, %v5067_v3  ;;  %v8234_v47 = vsel %vm5195_vm12, 4294967295, %v8233_v47  ;;  %v5200_v59 = vadd.s32 72, %v4583_v5  ;;  %v651_v62 = vrot.slane %v8237_v35, 1  ;;  %v4471_v35 = vld [vmem:[%s7826_s1 + $0x110] sm:$0xff]  }
  0x40   : > { %vm5155_vm6 = vcmp.ge.s32.totalorder %v8221_v54, 1  ;;  %v390_v54 = vsel %vm8225_vm11, %v335_v57, %v5114_v6  ;;  %v391_v26 = vsel %vm8226_vm14, %v4939_v56, %v335_v57  ;;  %8229 = vst [vmem:[#allocation49_spill] sm:$0xff] %v8228_v25  ;;  %vm466_vm11 = vmand %vm5123_vm8, %vm5174_vm13  ;;  %3970 = vmatprep.subr.bf16.mxu1 %v4462_v40  ;;  %v5234_v21 = vadd.s32 88, %v4583_v5  ;;  %v5256_v24 = vld [vmem:[%s4617_s11 + $0x18] sm:$0xff]   ;;  %4077 = vmatpush3.bf16.msra.mxu0 %v4471_v35 }
  0x41   : > { %v8223_v38 = vsel %vm5155_vm6, 4294967295, %v8222_v38  ;;  %vm3554_vm3 = vmpackc.low %vm5155_vm6, %vm5149_vm4  ;;  %8235 = vst [vmem:[#allocation51_spill] sm:$0xff] %v8234_v47  ;;  %v8240_v4 = vunpack.c.l.bf16 %v4763_v58  ;;  %v5251_v40 = vpack.c.bf16 %v390_v54, %v391_v26  ;;  %v4468_v26 = vld [vmem:[%s7826_s1 + $0xf8] sm:$0xff]   ;;  %v7908_v54 = vunpack.c.l.bf16 %v5256_v24  ;;  %4078 = vmatprep.subr.bf16.mxu0 %v4476_v42 }
  0x42   : > { %8224 = vst [vmem:[#allocation48_spill] sm:$0xff] %v8223_v38  ;;  %vm8231_vm2 = vmmov %vm8226_vm14  ;;  %3556 = vmatprep.mubr.msk.bf16.mxu1 %vm3554_vm3, %v4652_v27  ;;  %v8273_v16 = vshra.s32 %v5234_v21, 4  ;;  %v5395_v42 = vadd.s32 96, %v4583_v5 }
  0x43   : > { %v366_v56 = vsel %vm8231_vm2, %v359_v52, %v4716_v44  ;;  %vm8232_vm14 = vmmov %vm8231_vm2  ;;  %8236 = vst [vmem:[#allocation52_spill] sm:$0xff] %v5200_v59  ;;  %v5231_v44 = vadd.s32 80, %v4583_v5  ;;  %v5238_v47 = vrot.slane %v8240_v4, 1  ;;  %v8246_v4 = vshra.s32 %v5182_v8, 4  ;;  %3971 = vmatpush3.bf16.msra.mxu1 %v4463_v2 }
  0x44   : > { %v367_v57 = vsel %vm8232_vm14, %v4995_v19, %v359_v52  ;;  %v4466_v19 = vld [vmem:[%s7826_s1 + $0xf0] sm:$0xff]   ;;  %v275_v52 = vand.u32 15, %v5182_v8  ;;  %vm490_vm2 = vmand %vm5149_vm4, %vm5195_vm12  ;;  %8239 = vst [vmem:[#allocation54_spill] sm:$0xff] %v5234_v21  ;;  %v8254_v2 = vmov 0  ;;  %v337_v35 = vrot.slane %v7908_v54, 7 }
  0x45   : > { %8238 = vst [vmem:[#allocation53_spill] sm:$0xff] %v5231_v44  ;;  %vm5247_vm3 = vmpackc.low %vm5129_vm10, %vm466_vm11  ;;  %v5253_v61 = vpack.c.bf16 %v366_v56, %v367_v57  ;;  %vm5260_vm14 = vcmp.ge.s32.totalorder %v8246_v4, 1  ;;  %v7910_v56 = vunpack.c.h.bf16 %v5256_v24  ;;  %v8251_v57 = vshra.s32 %v5200_v59, 4  ;;  %3972 = vmatprep.subr.bf16.mxu1 %v4466_v19 }
  0x46   : > { %8243 = vst [vmem:[#allocation55_spill] sm:$0xff] %v5251_v40  ;;  %8245 = vst [vmem:[#allocation57_spill] sm:$0xff] %v5256_v24  ;;  %v8248_v28 = vsel %vm5260_vm14, 4294967295, %v8247_v28  ;;  %vm5285_vm4 = vcmp.ge.s32.totalorder %v275_v52, 1  ;;  %3487 = vmatmul.mubr.msk.bf16.gmra.mrb[12].mxu0 %vm5247_vm3, %v5251_v40  ;;  %v270_v52 = vand.u32 15, %v4723_v46  ;;  %vm8263_vm3 = vcmp.lt.s32.totalorder %v4583_v5, 1 }
  0x47   : > { %8244 = vst [vmem:[#allocation56_spill] sm:$0xff] %v5253_v61  ;;  %vm5266_vm11 = vmpackc.low %vm5155_vm6, %vm490_vm2  ;;  %vm5277_vm9 = vcmp.ge.s32.totalorder %v8251_v57, 1  ;;  %v8255_v2 = vsel %vm5285_vm4, 4294967295, %v8254_v2  ;;  %v338_v38 = vrot.slane %v7910_v56, 7  ;;  %vm7919_vm6 = vmmov 1   ;;  %v5301_v57 = vld [vmem:[%s4617_s11 + $0x20] sm:$0xff]   ;;  %3973 = vmatpush3.bf16.msra.mxu1 %v4467_v7 }
  0x48   : > { %8256 = vst [vmem:[#allocation58_spill] sm:$0xff] %v8255_v2  ;;  %vm5296_vm12 = vmpackc.low %vm7919_vm6, %vm4718_vm7  ;;  %vm8260_vm2 = vcmp.lt.s32.totalorder %v4583_v5, 7  ;;  %3559 = vmatmul.mubr.msk.bf16.gmra.mrb[12].mxu1 %vm5266_vm11, %v5253_v61  ;;  %v8265_v46 = vunpack.c.h.bf16 %v4763_v58  ;;  %3974 = vmatprep.subr.bf16.mxu1 %v4468_v26  ;;  %v8270_v14 = vshra.s32 %v5231_v44, 4  ;;  %v8271_v7 = vmov 0 }
  0x49   : > { %8259 = vst [vmem:[#allocation59_spill] sm:$0xff] %v5301_v57  ;;  %v653_v54 = vsel %vm8260_vm2, %v5137_v43, %v651_v62  ;;  %vm8261_vm8 = vmmov %vm8260_vm2  ;;  %v4470_v43 = vld [vmem:[%s7826_s1 + $0xb8] sm:$0xff]   ;;  %3562 = vmatprep.mubr.msk.bf16.mxu1 %vm5296_vm12, %v4918_v41  ;;  %v8276_v41 = vunpack.c.l.bf16 %v4872_v60  ;;  %vm8291_vm7 = vnez %v8150_v34  ;;  %v272_v34 = vand.u32 15, %v4905_v23 }
  0x4a   : > { %v684_v56 = vsel %vm8261_vm8, %v651_v62, %v5238_v47  ;;  %vm8262_vm8 = vmpackc.low %vm5277_vm9, %vm5260_vm14  ;;  %v388_v62 = vsel %vm8263_vm3, %v337_v35, %v338_v38  ;;  %v621_v45 = vrot.slane %v8265_v46, 1  ;;  %v4477_v46 = vld [vmem:[%s7826_s1 + $0x118] sm:$0xff]   ;;  %8280 = vst [vmem:[#allocation62_spill] sm:$0xff] %v5395_v42  ;;  %v8343_v8 = vunpack.c.h.bf16 %v5539_v20 }
  0x4b   : > { %3490 = vmatprep.mubr.msk.bf16.mxu0 %vm8262_vm8, %v5256_v24  ;;  %vm8264_vm11 = vmmov %vm8263_vm3  ;;  %v5364_v19 = vpack.c.bf16 %v684_v56, %v653_v54  ;;  %vm5368_vm3 = vcmp.ge.s32.totalorder %v8270_v14, 1  ;;  %v5380_v61 = vrot.slane %v8276_v41, 1  ;;  %v4474_v56 = vld [vmem:[%s7826_s1 + $0x180] sm:$0xff]   ;;  %4079 = vmatpush3.bf16.msra.mxu0 %v4477_v46  ;;  %v5398_v41 = vadd.s32 104, %v4583_v5 }
  0x4c   : > { %v389_v37 = vsel %vm8264_vm11, %v5114_v6, %v337_v35  ;;  %vm468_vm2 = vmand %vm5260_vm14, %vm5285_vm4  ;;  %v4473_v6 = vld [vmem:[%s7826_s1 + $0x1c0] sm:$0xff]   ;;  %v277_v35 = vand.u32 15, %v5231_v44  ;;  %v8272_v7 = vsel %vm5368_vm3, 4294967295, %v8271_v7  ;;  %vm5374_vm11 = vcmp.ge.s32.totalorder %v8273_v16, 1  ;;  %3975 = vmatpush3.bf16.msra.mxu1 %v4470_v43  ;;  %v5418_v43 = vld [vmem:[%s4617_s11 + $0x28] sm:$0xff]  }
  0x4d   : > { %vm8266_vm12 = vmand %vm4633_vm1, %vm5007_vm15  ;;  %8269 = vst [vmem:[#allocation60_spill] sm:$0xff] %v5364_v19  ;;  %v8275_v18 = vsel %vm5374_vm11, 4294967295, %v8274_v18  ;;  %v5382_v54 = vpack.c.bf16 %v388_v62, %v389_v37  ;;  %v8281_v62 = vunpack.c.l.bf16 %v5301_v57  ;;  %v8282_v46 = vunpack.c.h.bf16 %v5301_v57  ;;  %4184 = vmatprep.subr.bf16.mxu1 %v4473_v6  ;;  %v4481_v6 = vld [vmem:[%s7826_s1 + $0x160] sm:$0xff]  }
  0x4e   : > { %vm5360_vm8 = vmpackc.low %vm8266_vm12, %vm4624_vm0  ;;  %vm5413_vm12 = vcmp.le.s32.totalorder %v270_v52, 14  ;;  %8286 = vst [vmem:[#allocation64_spill] sm:$0xff] %v5418_v43  ;;  %v4479_v52 = vld [vmem:[%s7826_s1 + $0x1c8] sm:$0xff]   ;;  %vm8294_vm15 = vcmp.lt.s32.totalorder %v4583_v5, 7  ;;  %4080 = vmatprep.subr.bf16.mxu0 %v4481_v6  ;;  %v8317_v23 = vunpack.c.l.bf16 %v5418_v43  ;;  %v8318_v53 = vunpack.c.h.bf16 %v5418_v43 }
  0x4f   : > { %8277 = vst [vmem:[#allocation61_spill] sm:$0xff] %v5382_v54  ;;  %vm5390_vm0 = vmpackc.low %vm7919_vm6, %vm4853_vm5  ;;  %v339_v37 = vrot.slane %v8281_v62, 7  ;;  %v5411_v16 = vrot.slane %v8282_v46, 7  ;;  %v8284_v50 = vsel %vm5413_vm12, 4294967295, %v8283_v50  ;;  %vm8290_vm5 = vcmp.lt.s32.totalorder %v4583_v5, 7  ;;  %v4482_v62 = vld [vmem:[%s7826_s1 + $0x120] sm:$0xff]  }
  0x50   : > { %vm3491_vm1 = vmpackc.low %vm5277_vm9, %vm468_vm2  ;;  %8285 = vst [vmem:[#allocation63_spill] sm:$0xff] %v8284_v50  ;;  %vm5424_vm2 = vcmp.ge.s32.totalorder %v277_v35, 1  ;;  %3565 = vmatmul.mubr.msk.bf16.vlgmr.msra.gmra.mrb[16].mxu1 %vm5360_vm8, %v5364_v19  ;;  %v682_v35 = vsel %vm8290_vm5, %v621_v45, %v5380_v61  ;;  %vm8292_vm8 = vcmp.lt.s32.totalorder %v4583_v5, 1  ;;  %v683_v46 = vsel %vm8294_vm15, %v5238_v47, %v621_v45  ;;  %4081 = vmatpush3.bf16.msra.mxu0 %v4482_v62 }
  0x51   : > { %vm3494_vm6 = vmpackc.low %vm5374_vm11, %vm5368_vm3  ;;  %v8288_v39 = vsel %vm5424_vm2, 4294967295, %v8287_v39  ;;  %3493 = vmatmul.mubr.msk.bf16.gmra.mrb[16].mxu0 %vm3491_vm1, %v5382_v54  ;;  %4185 = vmatpush3.bf16.msra.mxu1 %v4474_v56  ;;  %v386_v26 = vsel %vm8292_vm8, %v339_v37, %v5411_v16  ;;  %v279_v45 = vand.u32 15, %v5395_v42  ;;  %v5482_v47 = vadd.s32 112, %v4583_v5 }
  0x52   : > { %8289 = vst [vmem:[#allocation65_spill] sm:$0xff] %v8288_v39  ;;  %3496 = vmatprep.mubr.msk.bf16.mxu0 %vm3494_vm6, %v5301_v57  ;;  %vm8293_vm5 = vmmov %vm8292_vm8  ;;  %3568 = vmatprep.mubr.msk.bf16.mxu1 %vm5390_vm0, %v5080_v32  ;;  %vm8296_vm6 = vnez %v8191_v11  ;;  %vm8297_vm8 = vmmov 1   ;;  %vm8301_vm15 = vnez %v8145_v13  ;;  %v8308_v56 = vshra.s32 %v5398_v41, 4 }
  0x53   : > { %v387_v19 = vsel %vm8293_vm5, %v338_v38, %v339_v37  ;;  %vm5476_vm5 = vmpackc.low %vm8297_vm8, %vm8296_vm6  ;;  %4186 = vmatprep.subr.bf16.mxu1 %v4479_v52  ;;  %8300 = vst [vmem:[#allocation66_spill] sm:$0xff] %v5482_v47  ;;  %v8305_v37 = vshra.s32 %v5395_v42, 4  ;;  %v8306_v52 = vmov 0  ;;  %v8309_v13 = vmov 0  ;;  %4082 = vmatprep.subr.bf16.mxu0 %v4485_v0 }
  0x54   : > { %vm8302_vm0 = vmand %vm8291_vm7, %vm5413_vm12  ;;  %vm5506_vm14 = vcmp.ge.s32.totalorder %v8308_v56, 1  ;;  %v5512_v11 = vadd.s32 120, %v4583_v5  ;;  %v8311_v32 = vunpack.c.l.bf16 %v5067_v3  ;;  %v5529_v6 = vpack.c.bf16 %v682_v35, %v683_v46  ;;  %v4488_v46 = vld [vmem:[%s7826_s1 + $0x190] sm:$0xff]  }
  0x55   : > { %vm5494_vm1 = vmpackc.low %vm8302_vm0, %vm8301_vm15  ;;  %vm5500_vm6 = vcmp.ge.s32.totalorder %v8305_v37, 1  ;;  %v8310_v13 = vsel %vm5506_vm14, 4294967295, %v8309_v13  ;;  %v5527_v37 = vpack.c.bf16 %v386_v26, %v387_v19  ;;  %v341_v42 = vrot.slane %v8317_v23, 7  ;;  %4187 = vmatpush3.bf16.msra.mxu1 %v4480_v12 }
  0x56   : > { %v8307_v52 = vsel %vm5500_vm6, 4294967295, %v8306_v52  ;;  %v624_v44 = vrot.slane %v8311_v32, 1  ;;  %vm8312_vm7 = vmand %vm5368_vm3, %vm5424_vm2  ;;  %8316 = vst [vmem:[#allocation68_spill] sm:$0xff] %v5529_v6  ;;  %v4486_v32 = vld [vmem:[%s7826_s1 + $0x1d0] sm:$0xff]   ;;  %v342_v30 = vrot.slane %v8318_v53, 7  ;;  %v8319_v19 = vmov 0 }
  0x57   : > { %vm5523_vm15 = vmpackc.low %vm5374_vm11, %vm8312_vm7  ;;  %8315 = vst [vmem:[#allocation67_spill] sm:$0xff] %v5527_v37  ;;  %vm5545_vm7 = vcmp.ge.s32.totalorder %v279_v45, 1  ;;  %v7950_v23 = vshra.s32 %v5482_v47, 4  ;;  %4188 = vmatprep.subr.bf16.mxu1 %v4486_v32  ;;  %v4487_v53 = vld [vmem:[%s7826_s1 + $0x128] sm:$0xff]   ;;  %vm5553_vm12 = vcmp.le.s32.totalorder %v272_v34, 14  ;;  %v8321_v12 = vmov 0 }
  0x58   : > { %vm3500_vm0 = vmpackc.low %vm5506_vm14, %vm5500_vm6  ;;  %v8320_v19 = vsel %vm5545_vm7, 4294967295, %v8319_v19  ;;  %v8322_v12 = vsel %vm5553_vm12, 4294967295, %v8321_v12  ;;  %v7951_v62 = vshra.s32 %v5512_v11, 4  ;;  %v8324_v35 = vunpack.c.h.bf16 %v5067_v3  ;;  %3571 = vmatmul.mubr.msk.bf16.gmra.mrb[20].mxu1 %vm5494_vm1, %v5529_v6  ;;  %4083 = vmatpush3.bf16.msra.mxu0 %v4487_v53 }
  0x59   : > { %8323 = vst [vmem:[#allocation69_spill] sm:$0xff] %v8322_v12  ;;  %3499 = vmatmul.mubr.msk.bf16.gmra.mrb[20].mxu0 %vm5523_vm15, %v5527_v37  ;;  %vm8325_vm3 = vcmp.lt.s32.totalorder %v4583_v5, 7  ;;  %3574 = vmatprep.mubr.msk.bf16.mxu1 %vm5476_vm5, %v5251_v40  ;;  %vm8326_vm11 = vcmp.lt.s32.totalorder %v4583_v5, 1  ;;  %vm8328_vm1 = vcmp.lt.s32.totalorder %v4583_v5, 7  ;;  %v8329_v38 = vunpack.c.l.bf16 %v5256_v24 }
  0x5a   : > { %v625_v26 = vrot.slane %v8324_v35, 1  ;;  %v680_v45 = vsel %vm8325_vm3, %v623_v29, %v624_v44  ;;  %3502 = vmatprep.mubr.msk.bf16.mxu0 %vm3500_vm0, %v5418_v43  ;;  %v384_v56 = vsel %vm8326_vm11, %v341_v42, %v342_v30  ;;  %vm8327_vm15 = vmmov %vm8326_vm11  ;;  %v681_v32 = vsel %vm8328_vm1, %v5380_v61, %v623_v29  ;;  %4189 = vmatpush3.bf16.msra.mxu1 %v4488_v46 }
  0x5b   : > { %v385_v14 = vsel %vm8327_vm15, %v5411_v16, %v341_v42  ;;  %vm472_vm3 = vmand %vm5500_vm6, %vm5545_vm7  ;;  %v274_v35 = vand.u32 15, %v5073_v36  ;;  %v5592_v34 = vrot.slane %v8329_v38, 1  ;;  %vm8330_vm11 = vnez %v8178_v48  ;;  %v4490_v16 = vld [vmem:[%s7826_s1 + $0x170] sm:$0xff]  }
  0x5c   : > { %vm5600_vm0 = vcmp.ge.s32.totalorder %v7950_v23, 1  ;;  %v281_v29 = vand.u32 15, %v5482_v47  ;;  %v5606_v61 = vadd.s32 128, %v4583_v5  ;;  %v4491_v38 = vld [vmem:[%s7826_s1 + $0x130] sm:$0xff]   ;;  %vm5616_vm15 = vcmp.ge.s32.totalorder %v7951_v62, 1  ;;  %vm5623_vm1 = vmpackc.low %vm8297_vm8, %vm5174_vm13  ;;  %4084 = vmatprep.subr.bf16.mxu0 %v4490_v16 }
  0x5d   : > { %v5628_v46 = vadd.s32 136, %v4583_v5  ;;  %vm5637_vm5 = vmpackc.low %vm5506_vm14, %vm472_vm3  ;;  %v5641_v0 = vpack.c.bf16 %v384_v56, %v385_v14  ;;  %v5643_v40 = vpack.c.bf16 %v680_v45, %v681_v32  ;;  %v8342_v47 = vunpack.c.l.bf16 %v5539_v20  ;;  %4085 = vmatpush3.bf16.msra.mxu0 %v4491_v38  ;;  %v4496_v38 = vld [vmem:[%s7826_s1 + $0x178] sm:$0xff]  }
  0x5e   : > { %8333 = vst [vmem:[#allocation70_spill] sm:$0xff] %v5606_v61  ;;  %v5649_v25 = vrot.slane %v8343_v8, 7  ;;  %vm8344_vm13 = vnez %v8173_v31  ;;  %vm8345_vm3 = vmand %vm8330_vm11, %vm5553_vm12  ;;  %vm5661_vm14 = vcmp.le.s32.totalorder %v274_v35, 14  ;;  %v8346_v45 = vmov 0  ;;  %v4493_v8 = vld [vmem:[%s7826_s1 + $0x1d8] sm:$0xff]   ;;  %4086 = vmatprep.subr.bf16.mxu0 %v4496_v38 }
  0x5f   : > { %8340 = vst [vmem:[#allocation71_spill] sm:$0xff] %v5641_v0  ;;  %8341 = vst [vmem:[#allocation72_spill] sm:$0xff] %v5643_v40  ;;  %v343_v3 = vrot.slane %v8342_v47, 7  ;;  %v8347_v45 = vsel %vm5661_vm14, 4294967295, %v8346_v45  ;;  %vm5672_vm2 = vcmp.ge.s32.totalorder %v281_v29, 1  ;;  %v8349_v31 = vmov 0  ;;  %4190 = vmatprep.subr.bf16.mxu1 %v4493_v8 }
  0x60   : > { %vm3575_vm6 = vmpackc.low %vm8345_vm3, %vm8344_vm13  ;;  %8348 = vst [vmem:[#allocation73_spill] sm:$0xff] %v8347_v45  ;;  %v8350_v31 = vsel %vm5672_vm2, 4294967295, %v8349_v31  ;;  %v7967_v48 = vshra.s32 %v5606_v61, 4  ;;  %v4494_v47 = vld [vmem:[%s7826_s1 + $0x198] sm:$0xff]   ;;  %vm8351_vm13 = vcmp.lt.s32.totalorder %v4583_v5, 7  ;;  %v7968_v14 = vshra.s32 %v5628_v46, 4 }
  0x61   : > { %v679_v56 = vsel %vm8351_vm13, %v624_v44, %v625_v26  ;;  %v8352_v32 = vunpack.c.h.bf16 %v5256_v24  ;;  %3505 = vmatmul.mubr.msk.bf16.gmra.mrb[24].mxu0 %vm5637_vm5, %v5641_v0  ;;  %3577 = vmatmul.mubr.msk.bf16.gmra.mrb[24].mxu1 %vm3575_vm6, %v5643_v40  ;;  %vm8353_vm11 = vcmp.lt.s32.totalorder %v4583_v5, 1  ;;  %v678_v16 = vsel %vm8351_vm13, %v625_v26, %v5592_v34  ;;  %vm724_vm7 = vmand %vm5129_vm10, %vm5661_vm14  ;;  %v5728_v8 = vld [vmem:[%s4617_s11 + $0x40] sm:$0xff]  }
  0x62   : > { %v382_v29 = vsel %vm8353_vm11, %v343_v3, %v5649_v25  ;;  %vm8354_vm3 = vmmov %vm8353_vm11  ;;  %3580 = vmatprep.mubr.msk.bf16.mxu1 %vm5623_vm1, %v5382_v54  ;;  %v283_v62 = vand.u32 15, %v5606_v61  ;;  %v276_v26 = vand.u32 15, %v5200_v59  ;;  %vm5723_vm1 = vcmp.ge.s32.totalorder %v7967_v48, 1  ;;  %4191 = vmatpush3.bf16.msra.mxu1 %v4494_v47  ;;  %v4497_v47 = vld [vmem:[%s7826_s1 + $0x138] sm:$0xff]  }
  0x63   : > { %v627_v35 = vrot.slane %v8352_v32, 1  ;;  %v383_v44 = vsel %vm8354_vm3, %v342_v30, %v343_v3  ;;  %vm8355_vm6 = vmpackc.low %vm5616_vm15, %vm5600_vm0  ;;  %v8356_v53 = vmov 0  ;;  %vm5732_vm11 = vcmp.ge.s32.totalorder %v7968_v14, 1  ;;  %4087 = vmatpush3.bf16.msra.mxu0 %v4497_v47  ;;  %v4499_v47 = vld [vmem:[%s7826_s1 + $0x1a0] sm:$0xff]   ;;  %4192 = vmatprep.subr.bf16.mxu1 %v4498_v55  ;;  %v4501_v3 = vld [vmem:[%s7826_s1 + $0x1e8] sm:$0xff]  }
  0x64   : > { %3508 = vmatprep.mubr.msk.bf16.mxu0 %vm8355_vm6, %v5539_v20  ;;  %vm474_vm5 = vmand %vm5600_vm0, %vm5672_vm2  ;;  %v8357_v53 = vsel %vm5723_vm1, 4294967295, %v8356_v53  ;;  %v8358_v32 = vmov 0  ;;  %v5744_v48 = vadd.s32 144, %v4583_v5  ;;  %v5747_v30 = vadd.s32 152, %v4583_v5 }
  0x65   : > { %v8359_v32 = vsel %vm5732_vm11, 4294967295, %v8358_v32  ;;  %vm5739_vm3 = vmpackc.low %vm8297_vm8, %vm5285_vm4  ;;  %v8363_v14 = vunpack.c.l.bf16 %v5301_v57  ;;  %v5765_v24 = vpack.c.bf16 %v382_v29, %v383_v44  ;;  %v5767_v38 = vpack.c.bf16 %v678_v16, %v679_v56 }
  0x66   : > { %8362 = vst [vmem:[#allocation74_spill] sm:$0xff] %v5744_v48  ;;  %vm5761_vm13 = vmpackc.low %vm5616_vm15, %vm474_vm5  ;;  %vm8368_vm6 = vnez %v8212_v15  ;;  %v8371_v2 = vunpack.c.l.bf16 %v5652_v51  ;;  %v346_v29 = vrot.slane %v8372_v33, 7  ;;  %vm5784_vm5 = vcmp.ge.s32.totalorder %v283_v62, 1  ;;  %4193 = vmatpush3.bf16.msra.mxu1 %v4499_v47 }
  0x67   : > { %v628_v54 = vrot.slane %v8363_v14, 1  ;;  %8366 = vst [vmem:[#allocation75_spill] sm:$0xff] %v5765_v24  ;;  %8367 = vst [vmem:[#allocation76_spill] sm:$0xff] %v5767_v38  ;;  %v8373_v56 = vmov 0  ;;  %v8375_v44 = vunpack.c.l.bf16 %v4645_v22  ;;  %v8377_v33 = vmov 0  ;;  %4194 = vmatprep.subr.bf16.mxu1 %v4501_v3 }
  0x68   : > { %vm5776_vm4 = vmpackc.low %vm724_vm7, %vm8368_vm6  ;;  %v345_v59 = vrot.slane %v8371_v2, 7  ;;  %v8374_v56 = vsel %vm5784_vm5, 4294967295, %v8373_v56  ;;  %v8376_v2 = vunpack.c.h.bf16 %v4645_v22  ;;  %vm5804_vm7 = vcmp.le.s32.totalorder %v276_v26, 14  ;;  %v5821_v26 = vld [vmem:[%s7826_s1 + $0x200] sm:$0xff]  }
  0x69   : > { %v5794_v16 = vrot.slane %v8375_v44, 1  ;;  %v8378_v33 = vsel %vm5804_vm7, 4294967295, %v8377_v33  ;;  %v8380_v44 = vunpack.c.l.bf16 %v4772_v63  ;;  %v8381_v62 = vunpack.c.h.bf16 %v5301_v57  ;;  %3511 = vmatmul.mubr.msk.bf16.gmra.mrb[28].mxu0 %vm5761_vm13, %v5765_v24  ;;  %3583 = vmatmul.mubr.msk.bf16.gmra.mrb[28].mxu1 %vm5776_vm4, %v5767_v38  ;;  %vm476_vm6 = vmand %vm5723_vm1, %vm5784_vm5 }
  0x6a   : > { %v5798_v45 = vrot.slane %v8376_v2, 1  ;;  %8379 = vst [vmem:[#allocation77_spill] sm:$0xff] %v8378_v33  ;;  %v8382_v10 = vunpack.c.l.bf16 %v5418_v43  ;;  %vm8383_vm10 = vcmp.lt.s32.totalorder %v4583_v5, 7  ;;  %vm8385_vm13 = vmpackc.low %vm5732_vm11, %vm5723_vm1  ;;  %3586 = vmatprep.mubr.msk.bf16.mxu1 %vm5739_vm3, %v5527_v37  ;;  %vm8386_vm4 = vcmp.lt.s32.totalorder %v4583_v5, 1  ;;  %4320 = vmatprep.subr.bf16.mxu0 %v5821_v26 }
  0x6b   : > { %v5814_v15 = vrot.slane %v8380_v44, 1  ;;  %v629_v36 = vrot.slane %v8381_v62, 1  ;;  %v676_v55 = vsel %vm8383_vm10, %v627_v35, %v628_v54  ;;  %vm8384_vm14 = vmmov %vm8383_vm10  ;;  %3514 = vmatprep.mubr.msk.bf16.mxu0 %vm8385_vm13, %v5652_v51  ;;  %v380_v61 = vsel %vm8386_vm4, %v345_v59, %v346_v29 }
  0x6c   : > { %v5827_v17 = vrot.slane %v8382_v10, 1  ;;  %v677_v10 = vsel %vm8384_vm14, %v5592_v34, %v627_v35  ;;  %vm8387_vm10 = vmmov %vm8386_vm4  ;;  %v8388_v34 = vunpack.c.l.bf16 %v5728_v8  ;;  %v285_v62 = vand.u32 15, %v5744_v48 }
  0x6d   : > { %v381_v14 = vsel %vm8387_vm10, %v5649_v25, %v345_v59  ;;  %vm726_vm14 = vmand %vm5277_vm9, %vm5804_vm7  ;;  %v8389_v44 = vunpack.c.h.bf16 %v4772_v63  ;;  %v8390_v2 = vunpack.c.h.bf16 %v5728_v8  ;;  %v278_v59 = vand.u32 15, %v5234_v21  ;;  %v4502_v21 = vld [vmem:[%s7826_s1 + $0x1a8] sm:$0xff]  }
  0x6e   : > { %v347_v35 = vrot.slane %v8388_v34, 7  ;;  %v5876_v37 = vadd.s32 160, %v4583_v5  ;;  %vm5886_vm3 = vmpackc.low %vm5732_vm11, %vm476_vm6  ;;  %v8397_v47 = vshra.s32 %v5747_v30, 4  ;;  %v5903_v57 = vadd.s32 168, %v4583_v5  ;;  %4195 = vmatpush3.bf16.msra.mxu1 %v4502_v21 }
  0x6f   : > { %v645_v22 = vrot.slane %v8389_v44, 1  ;;  %v5872_v25 = vrot.slane %v8390_v2, 7  ;;  %v8394_v2 = vshra.s32 %v5744_v48, 4  ;;  %v8395_v44 = vmov 0 }
  0x70   : > { %8391 = vst [vmem:[#allocation78_spill] sm:$0xff] %v5876_v37  ;;  %vm5898_vm4 = vcmp.ge.s32.totalorder %v8397_v47, 1  ;;  %v8400_v48 = vunpack.c.l.bf16 %v4875_v1  ;;  %v8401_v38 = vunpack.c.h.bf16 %v4875_v1  ;;  %v5912_v12 = vpack.c.bf16 %v380_v61, %v381_v14 }
  0x71   : > { %vm5892_vm13 = vcmp.ge.s32.totalorder %v8394_v2, 1  ;;  %vm8403_vm6 = vnez %v8248_v28  ;;  %v5925_v47 = vpack.c.bf16 %v676_v55, %v677_v10  ;;  %vm8407_vm12 = vnez %v8288_v39  ;;  %v5944_v55 = vld [vmem:[%s4617_s11 + $0x48] sm:$0xff]  }
  0x72   : > { %v8396_v44 = vsel %vm5892_vm13, 4294967295, %v8395_v44  ;;  %v646_v2 = vrot.slane %v8400_v48, 1  ;;  %v647_v60 = vrot.slane %v8401_v38, 1  ;;  %8402 = vst [vmem:[#allocation79_spill] sm:$0xff] %v5912_v12  ;;  %vm5921_vm10 = vmpackc.low %vm726_vm14, %vm8403_vm6  ;;  %vm8410_vm11 = vcmp.lt.s32.totalorder %v4583_v5, 1  ;;  %3517 = vmatmul.mubr.msk.bf16.gmra.mrb[32].mxu0 %vm5886_vm3, %v5912_v12 }
  0x73   : > { %8406 = vst [vmem:[#allocation80_spill] sm:$0xff] %v5925_v47  ;;  %vm5930_vm1 = vmpackc.low %vm8297_vm8, %vm8407_vm12  ;;  %v379_v28 = vsel %vm8410_vm11, %v346_v29, %v347_v35  ;;  %vm5936_vm5 = vcmp.ge.s32.totalorder %v285_v62, 1  ;;  %v8411_v4 = vmov 0  ;;  %vm8413_vm9 = vcmp.lt.s32.totalorder %v4583_v5, 7  ;;  %v4504_v62 = vld [vmem:[%s7826_s1 + $0x1f0] sm:$0xff]   ;;  %3589 = vmatmul.mubr.msk.bf16.gmra.mrb[32].mxu1 %vm5921_vm10, %v5925_v47 }
  0x74   : > { %v8412_v4 = vsel %vm5936_vm5, 4294967295, %v8411_v4  ;;  %v674_v38 = vsel %vm8413_vm9, %v629_v36, %v5827_v17  ;;  %vm3518_vm14 = vmpackc.low %vm5898_vm4, %vm5892_vm13  ;;  %vm5955_vm12 = vcmp.le.s32.totalorder %v278_v59, 14  ;;  %v8416_v61 = vmov 0  ;;  %3592 = vmatprep.mubr.msk.bf16.mxu1 %vm5930_vm1, %v5641_v0  ;;  %4196 = vmatprep.subr.bf16.mxu1 %v4504_v62  ;;  %v4507_v0 = vld [vmem:[%s7826_s1 + $0x1f8] sm:$0xff]  }
  0x75   : > { %vm8414_vm6 = vmmov %vm8410_vm11  ;;  %v8417_v61 = vsel %vm5955_vm12, 4294967295, %v8416_v61  ;;  %v8011_v14 = vshra.s32 %v5876_v37, 4  ;;  %v8418_v1 = vunpack.c.l.bf16 %v4652_v27  ;;  %v8420_v33 = vunpack.c.h.bf16 %v5418_v43  ;;  %3520 = vmatprep.mubr.msk.bf16.mxu0 %vm3518_vm14, %v5728_v8  ;;  %v6100_v43 = vld [vmem:[%s4617_s11 + $0x50] sm:$0xf] }
  0x76   : > { %v378_v10 = vsel %vm8414_vm6, %v347_v35, %v5872_v25  ;;  %vm8415_vm11 = vmmov %vm8413_vm9  ;;  %v8013_v35 = vshra.s32 %v5903_v57, 4  ;;  %vm8423_vm3 = vnez %v8275_v18  ;;  %v8426_v48 = vmov 0 }
  0x77   : > { %v675_v29 = vsel %vm8415_vm11, %v628_v54, %v629_v36  ;;  %v5965_v39 = vrot.slane %v8418_v1, 1  ;;  %v631_v36 = vrot.slane %v8420_v33, 1  ;;  %v8421_v54 = vunpack.c.l.bf16 %v5539_v20  ;;  %vm478_vm9 = vmand %vm5892_vm13, %vm5936_vm5  ;;  %v4505_v33 = vld [vmem:[%s7826_s1 + $0x1b0] sm:$0xff]  }
  0x78   : > { %v5998_v34 = vpack.c.bf16 %v378_v10, %v379_v28  ;;  %v6004_v3 = vpack.c.bf16 %v674_v38, %v675_v29  ;;  %vm8425_vm6 = vmmov %vm8415_vm11  ;;  %vm6013_vm14 = vcmp.ge.s32.totalorder %v8011_v14, 1  ;;  %v280_v28 = vand.u32 15, %v5398_v41  ;;  %4197 = vmatpush3.bf16.msra.mxu1 %v4505_v33 }
  0x79   : > { %8419 = vst [vmem:[#allocation81_spill] sm:$0xff] %v5965_v39  ;;  %v5972_v59 = vrot.slane %v8421_v54, 1  ;;  %v287_v54 = vand.u32 15, %v5876_v37  ;;  %v660_v1 = vsel %vm8425_vm6, %v5798_v45, %v5814_v15  ;;  %v8427_v48 = vsel %vm6013_vm14, 4294967295, %v8426_v48  ;;  %vm8428_vm1 = vmmov %vm8425_vm6  ;;  %4198 = vmatprep.subr.bf16.mxu1 %v4507_v0 }
  0x7a   : > { %8422 = vst [vmem:[#allocation82_spill] sm:$0xff] %v5998_v34  ;;  %8424 = vst [vmem:[#allocation83_spill] sm:$0xff] %v6004_v3  ;;  %v661_v38 = vsel %vm8428_vm1, %v5794_v16, %v5798_v45  ;;  %vm6037_vm10 = vcmp.ge.s32.totalorder %v8013_v35, 1  ;;  %v8432_v14 = vmov 0  ;;  %v6042_v45 = vadd.s32 176, %v4583_v5 }
  0x7b   : > { %vm8429_vm11 = vmmov %vm8428_vm1  ;;  %v8433_v14 = vsel %vm6037_vm10, 4294967295, %v8432_v14  ;;  %v6045_v62 = vadd.s32 184, %v4583_v5  ;;  %v6047_v21 = vpack.c.bf16 %v660_v1, %v661_v38  ;;  %v8439_v1 = vunpack.c.l.bf16 %v5944_v55 }
  0x7c   : > { %v658_v10 = vsel %vm8429_vm11, %v645_v22, %v646_v2  ;;  %vm6031_vm6 = vmpackc.low %vm5898_vm4, %vm478_vm9  ;;  %8434 = vst [vmem:[#allocation84_spill] sm:$0xff] %v6042_v45  ;;  %vm8435_vm9 = vnez %v8272_v7  ;;  %v8440_v33 = vunpack.c.h.bf16 %v5944_v55  ;;  %vm8441_vm7 = vcmp.lt.s32.totalorder %v4583_v5, 7  ;;  %v4508_v7 = vld [vmem:[%s7826_s1 + $0x1b8] sm:$0xff]  }
  0x7d   : > { %vm8436_vm1 = vmand %vm8423_vm3, %vm5955_vm12  ;;  %v349_v38 = vrot.slane %v8439_v1, 7  ;;  %v659_v37 = vsel %vm8441_vm7, %v5814_v15, %v645_v22  ;;  %vm8442_vm3 = vnez %v8320_v19  ;;  %v8445_v1 = vmov 0  ;;  %4199 = vmatpush3.bf16.msra.mxu1 %v4508_v7  ;;  %3523 = vmatmul.mubr.msk.bf16.gmra.mrb[36].mxu0 %vm6031_vm6, %v5998_v34 }
  0x7e   : > { %vm6059_vm11 = vmpackc.low %vm8436_vm1, %vm8435_vm9  ;;  %v350_v27 = vrot.slane %v8440_v33, 7  ;;  %vm6080_vm1 = vcmp.ge.s32.totalorder %v287_v54, 1  ;;  %v6084_v33 = vpack.c.bf16 %v658_v10, %v659_v37  ;;  %v656_v22 = vsel %vm8441_vm7, %v647_v60, %v5965_v39 }
  0x7f   : > { %vm6076_vm9 = vmpackc.low %vm8297_vm8, %vm8442_vm3  ;;  %v8446_v1 = vsel %vm6080_vm1, 4294967295, %v8445_v1  ;;  %vm6095_vm13 = vcmp.le.s32.totalorder %v280_v28, 14  ;;  %v8448_v54 = vmov 0  ;;  %v8026_v10 = vshra.s32 %v6042_v45, 4  ;;  %3595 = vmatmul.mubr.msk.bf16.gmra.mrb[36].mxu1 %vm6059_vm11, %v6004_v3 }
  0x80   : > { %vm8447_vm12 = vmmov %vm8441_vm7  ;;  %v8449_v54 = vsel %vm6095_vm13, 4294967295, %v8448_v54  ;;  %v8027_v39 = vshra.s32 %v6045_v62, 4  ;;  %3598 = vmatprep.mubr.msk.bf16.mxu1 %vm6076_vm9, %v5765_v24  ;;  %vm8450_vm6 = vcmp.lt.s32.totalorder %v4583_v5, 1  ;;  %v222_v28 = vunpack.c.l.bf16 %v6100_v43  ;;  %v4529_v24 = vld [vmem:[%s4617_s11 + $0x54] sm:$0xf] }
  0x81   : > { %v657_v15 = vsel %vm8447_vm12, %v646_v2, %v647_v60  ;;  %vm3524_vm3 = vmpackc.low %vm6037_vm10, %vm6013_vm14  ;;  %v672_v60 = vsel %vm8441_vm7, %v631_v36, %v5972_v59  ;;  %v376_v0 = vsel %vm8450_vm6, %v349_v38, %v350_v27  ;;  %v289_v29 = vand.u32 15, %v6042_v45 }
  0x82   : > { %v6102_v37 = vpack.c.bf16 %v656_v22, %v657_v15  ;;  %vm480_vm12 = vmand %vm6013_vm14, %vm6080_vm1  ;;  %3526 = vmatprep.mubr.msk.bf16.mxu0 %vm3524_vm3, %v5944_v55  ;;  %vm8453_vm3 = vnez %v8310_v13  ;;  %v282_v13 = vand.u32 15, %v5512_v11  ;;  %v8461_v18 = vunpack.c.l.bf16 %v5652_v51 }
  0x83   : > { %vm8451_vm11 = vmmov %vm8450_vm6  ;;  %vm6145_vm6 = vcmp.ge.s32.totalorder %v8026_v10, 1  ;;  %v6170_v45 = vcombine.low %v6100_v43, %v4529_v24  ;;  %v8477_v7 = vunpack.c.l.bf16 %v5728_v8  ;;  %v8493_v63 = vmov 0  ;;  %v4509_v43 = vld [vmem:[%s7826_s1 + $0x218] sm:$0xff]  }
  0x84   : > { %v377_v2 = vsel %vm8451_vm11, %v5872_v25, %v349_v38  ;;  %vm8452_vm14 = vmmov %vm8441_vm7  ;;  %v634_v22 = vrot.slane %v8461_v18, 1  ;;  %v8536_v25 = vmov 0 }
  0x85   : > { %v673_v35 = vsel %vm8452_vm14, %v5827_v17, %v631_v36  ;;  %vm730_vm7 = vmand %vm8453_vm3, %vm6095_vm13  ;;  %vm6151_vm14 = vcmp.ge.s32.totalorder %v8027_v39, 1  ;;  %v8460_v36 = vunpack.c.h.bf16 %v5539_v20  ;;  %v6160_v15 = vpack.c.bf16 %v376_v0, %v377_v2 }
  0x86   : > { %vm6139_vm9 = vmpackc.low %vm6037_vm10, %vm480_vm12  ;;  %vm8463_vm12 = vnez %v8307_v52  ;;  %v6164_v10 = vpack.c.bf16 %v672_v60, %v673_v35  ;;  %v351_v39 = vrot.slane %v222_v28, 7  ;;  %vm6179_vm10 = vcmp.ge.s32.totalorder %v289_v29, 1 }
  0x87   : > { %v633_v38 = vrot.slane %v8460_v36, 1  ;;  %8462 = vst [vmem:[#allocation85_spill] sm:$0xff] %v6160_v15  ;;  %vm3599_vm11 = vmpackc.low %vm730_vm7, %vm8463_vm12  ;;  %v8465_v52 = vmov 0  ;;  %vm6183_vm7 = vcmp.le.s32.totalorder %v282_v13, 14  ;;  %v8467_v60 = vmov 0  ;;  %3529 = vmatmul.mubr.msk.bf16.gmra.mrb[40].mxu0 %vm6139_vm9, %v6160_v15 }
  0x88   : > { %8464 = vst [vmem:[#allocation86_spill] sm:$0xff] %v6164_v10  ;;  %vm3602_vm3 = vmpackc.low %vm8297_vm8, %vm5672_vm2  ;;  %v8466_v52 = vsel %vm6179_vm10, 4294967295, %v8465_v52  ;;  %v8468_v60 = vsel %vm6183_vm7, 4294967295, %v8467_v60  ;;  %3601 = vmatmul.mubr.msk.bf16.gmra.mrb[40].mxu1 %vm3599_vm11, %v6164_v10  ;;  %vm8469_vm12 = vcmp.lt.s32.totalorder %v4583_v5, 7  ;;  %vm8470_vm2 = vcmp.lt.s32.totalorder %v4583_v5, 1 }
  0x89   : > { %vm3530_vm13 = vmpackc.low %vm6151_vm14, %vm6145_vm6  ;;  %v670_v24 = vsel %vm8469_vm12, %v633_v38, %v634_v22  ;;  %3604 = vmatprep.mubr.msk.bf16.mxu1 %vm3602_vm3, %v5912_v12  ;;  %v374_v0 = vsel %vm8470_vm2, %v351_v39, %v4733_v49  ;;  %v636_v23 = vrot.slane %v8477_v7, 1  ;;  %v8479_v13 = vmov 0 }
  0x8a   : > { %3532 = vmatprep.mubr.msk.bf16.mxu0 %vm3530_vm13, %v6170_v45  ;;  %vm8471_vm1 = vmmov %vm8470_vm2  ;;  %vm8473_vm2 = vnez %v8180_v9  ;;  %v8514_v17 = vmov 0  ;;  %v4513_v9 = vld [vmem:[%s7826_s1 + $0x238] sm:$0xff]   ;;  %v8625_v12 = vmov 0 }
  0x8b   : > { %v375_v2 = vsel %vm8471_vm1, %v350_v27, %v351_v39  ;;  %vm482_vm9 = vmand %vm6145_vm6, %vm6179_vm10  ;;  %v284_v27 = vand.u32 15, %v5628_v46 }
  0x8c   : > { %vm8472_vm11 = vmmov %vm8469_vm12  ;;  %v6217_v49 = vpack.c.bf16 %v374_v0, %v375_v2  ;;  %vm8478_vm12 = vnez %v8374_v56  ;;  %v8485_v2 = vunpack.c.l.bf16 %v5944_v55  ;;  %v8654_v56 = vld [vmem:[#allocation51_spill] sm:$0xff] }
  0x8d   : > { %v671_v35 = vsel %vm8472_vm11, %v5972_v59, %v633_v38  ;;  %vm732_vm13 = vmand %vm5616_vm15, %vm6183_vm7  ;;  %v8476_v59 = vunpack.c.h.bf16 %v5652_v51  ;;  %v286_v38 = vand.u32 15, %v5747_v30 }
  0x8e   : > { %vm3656_vm3 = vmpackc.low %vm8473_vm2, %vm8297_vm8  ;;  %8474 = vst [vmem:[#allocation87_spill] sm:$0xff] %v6217_v49  ;;  %v6219_v39 = vpack.c.bf16 %v670_v24, %v671_v35  ;;  %vm6230_vm2 = vcmp.le.s32.totalorder %v284_v27, 14  ;;  %v8484_v24 = vunpack.c.h.bf16 %v5728_v8  ;;  %v638_v35 = vrot.slane %v8485_v2, 1 }
  0x8f   : > { %vm3533_vm1 = vmpackc.low %vm6151_vm14, %vm482_vm9  ;;  %v635_v29 = vrot.slane %v8476_v59, 1  ;;  %v8480_v13 = vsel %vm6230_vm2, 4294967295, %v8479_v13  ;;  %vm8481_vm9 = vcmp.lt.s32.totalorder %v4583_v5, 7  ;;  %v288_v27 = vand.u32 15, %v5903_v57 }
  0x90   : > { %8475 = vst [vmem:[#allocation88_spill] sm:$0xff] %v6219_v39  ;;  %vm3605_vm15 = vmpackc.low %vm732_vm13, %vm5600_vm0  ;;  %3535 = vmatmul.mubr.msk.bf16.gmra.mrb[44].mxu0 %vm3533_vm1, %v6217_v49  ;;  %vm8483_vm13 = vnez %v8359_v32  ;;  %v637_v0 = vrot.slane %v8484_v24, 1  ;;  %v4503_v32 = vld [vmem:[%s7826_s1 + $0x208] sm:$0xff]  }
  0x91   : > { %vm3608_vm11 = vmpackc.low %vm8297_vm8, %vm8478_vm12  ;;  %3607 = vmatmul.mubr.msk.bf16.gmra.mrb[44].mxu1 %vm3605_vm15, %v6219_v39  ;;  %3658 = vmatprep.mubr.msk.bf16.mxu0 %vm3656_vm3, %v5529_v6  ;;  %v668_v42 = vsel %vm8481_vm9, %v635_v29, %v636_v23  ;;  %vm8486_vm3 = vnez %v8357_v53  ;;  %vm6255_vm15 = vcmp.le.s32.totalorder %v286_v38, 14  ;;  %v8500_v38 = vmov 0  ;;  %v8503_v24 = vld [vmem:[#allocation76_spill] sm:$0xff]  ;;  %v8520_v6 = vld [vmem:[#allocation73_spill] sm:$0xff] }
  0x92   : > { %3610 = vmatprep.mubr.msk.bf16.mxu1 %vm3608_vm11, %v5998_v34  ;;  %vm8482_vm0 = vmmov %vm8481_vm9  ;;  %vm8489_vm9 = vnez %v8284_v50  ;;  %v8556_v50 = vld [vmem:[#allocation17_spill] sm:$0xff]  ;;  %v8586_v34 = vmov 0 }
  0x93   : > { %v669_v36 = vsel %vm8482_vm0, %v634_v22, %v635_v29  ;;  %vm734_vm7 = vmand %vm8483_vm13, %vm6230_vm2  ;;  %v8487_v22 = vmov 0  ;;  %vm8490_vm13 = vcmp.lt.s32.totalorder %v4583_v5, 7  ;;  %v4506_v29 = vld [vmem:[%s7826_s1 + $0x210] sm:$0xff]  }
  0x94   : > { %v6247_v18 = vpack.c.bf16 %v668_v42, %v669_v36  ;;  %vm3611_vm1 = vmpackc.low %vm734_vm7, %vm8486_vm3  ;;  %v8488_v22 = vsel %vm6255_vm15, 4294967295, %v8487_v22  ;;  %v666_v53 = vsel %vm8490_vm13, %v637_v0, %v638_v35  ;;  %v640_v36 = vrot.slane %v222_v28, 1  ;;  %v8502_v28 = vld [vmem:[#allocation25_spill] sm:$0xff] }
  0x95   : > { %vm3614_vm11 = vmpackc.low %vm8297_vm8, %vm5936_vm5 }
  0x96   : > { %vm3659_vm0 = vmpackc.low %vm8489_vm9, %vm8297_vm8  ;;  %vm6287_vm9 = vcmp.le.s32.totalorder %v288_v27, 14 }
  0x97   : > { %vm736_vm7 = vmand %vm5898_vm4, %vm6255_vm15  ;;  %v8494_v63 = vsel %vm6287_vm9, 4294967295, %v8493_v63 }
  0x98   : > { %2416 = vmatmul.mubr.bf16.vlgmr.msra.gmra.mrb[48].mxu0 %v4763_v58  ;;  %vm8491_vm3 = vmmov %vm8490_vm13  ;;  %v8557_v58 = vld [vmem:[#allocation58_spill] sm:$0xff] }
  0x99   : > { %3613 = vmatmul.mubr.msk.bf16.gmra.mrb[48].mxu1 %vm3611_vm1, %v6247_v18  ;;  %4321 = vmatpush3.bf16.msra.mxu0 %v5821_v26  ;;  %v667_v59 = vsel %vm8491_vm3, %v636_v23, %v637_v0  ;;  %vm8492_vm1 = vnez %v8396_v44  ;;  %v290_v26 = vand.u32 15, %v6045_v62  ;;  %v8496_v23 = vunpack.c.h.bf16 %v5944_v55  ;;  %v8497_v44 = vld [vmem:[#allocation69_spill] sm:$0xff] }
  0x9a   : > { %3616 = vmatprep.mubr.msk.bf16.mxu1 %vm3614_vm11, %v6160_v15  ;;  %3661 = vmatprep.mubr.msk.bf16.mxu0 %vm3659_vm0, %v5643_v40  ;;  %vm3617_vm4 = vmpackc.low %vm736_vm7, %vm8492_vm1  ;;  %v6292_v7 = vpack.c.bf16 %v666_v53, %v667_v59  ;;  %vm8495_vm11 = vnez %v8446_v1  ;;  %vm8498_vm7 = vnez %v8497_v44  ;;  %vm8499_vm3 = vnez %v8433_v14 }
  0x9b   : > { %4322 = vmatprep.subr.bf16.mxu0 %v4503_v32  ;;  %vm3620_vm0 = vmpackc.low %vm8297_vm8, %vm8495_vm11  ;;  %v639_v42 = vrot.slane %v8496_v23, 1  ;;  %vm6308_vm15 = vcmp.le.s32.totalorder %v290_v26, 14  ;;  %v8516_v26 = vld [vmem:[#allocation41_spill] sm:$0xff]  ;;  %v8518_v23 = vmov 0  ;;  %v8546_v44 = vmov 0 }
  0x9c   : > { %vm3662_vm13 = vmpackc.low %vm8498_vm7, %vm8297_vm8  ;;  %v8501_v38 = vsel %vm6308_vm15, 4294967295, %v8500_v38  ;;  %vm8504_vm7 = vcmp.lt.s32.totalorder %v4583_v5, 7  ;;  %v294_v40 = vand.u32 15, %v8556_v50  ;;  %v8561_v53 = vmov 0 }
  0x9d   : > { %4323 = vmatpush3.bf16.msra.mxu0 %v4503_v32  ;;  %vm738_vm1 = vmand %vm8499_vm3, %vm6287_vm9  ;;  %v664_v14 = vsel %vm8504_vm7, %v639_v42, %v640_v36  ;;  %vm8506_vm9 = vnez %v8427_v48  ;;  %v8509_v32 = vld [vmem:[#allocation5_spill] sm:$0xff]  ;;  %v4510_v48 = vld [vmem:[%s7826_s1 + $0x220] sm:$0xff]   ;;  %v8565_v50 = vmov 0 }
  0x9e   : > { %4324 = vmatprep.subr.bf16.mxu0 %v4506_v29  ;;  %vm8505_vm3 = vmmov %vm8504_vm7  ;;  %v292_v27 = vand.u32 15, %v8509_v32  ;;  %vm8521_vm7 = vnez %v8520_v6 }
  0x9f   : > { %v665_v0 = vsel %vm8505_vm3, %v638_v35, %v639_v42  ;;  %vm6325_vm11 = vmpackc.low %vm738_vm1, %vm8506_vm9  ;;  %v8512_v35 = vld [vmem:[#allocation40_spill] sm:$0xff] }
  0xa0   : > { %2424 = vmatmul.mubr.bf16.gmra.mrb[52].mxu0 %v8502_v28  ;;  %v8513_v59 = vshra.s32 %v8512_v35, 4  ;;  %v6356_v42 = vpack.c.bf16 %v664_v14, %v665_v0  ;;  %v8524_v35 = vld [vmem:[#allocation11_spill] sm:$0xff]  ;;  %v8532_v0 = vld [vmem:[#allocation77_spill] sm:$0xff] }
  0xa1   : > { %3619 = vmatmul.mubr.msk.bf16.gmra.mrb[52].mxu1 %vm3617_vm4, %v6292_v7  ;;  %3664 = vmatprep.mubr.msk.bf16.mxu0 %vm3662_vm13, %v8503_v24  ;;  %vm740_vm4 = vmand %vm6151_vm14, %vm6308_vm15  ;;  %v8542_v24 = vmov 0 }
  0xa2   : > { %3622 = vmatprep.mubr.msk.bf16.mxu1 %vm3620_vm0, %v6217_v49  ;;  %4325 = vmatpush3.bf16.msra.mxu0 %v4506_v29  ;;  %vm6337_vm0 = vmpackc.low %vm8297_vm8, %vm6179_vm10  ;;  %vm6346_vm9 = vcmp.le.s32.totalorder %v8513_v59, 14  ;;  %v8517_v29 = vshra.s32 %v8516_v26, 4  ;;  %v8525_v59 = vunpack.c.l.bf16 %v8524_v35  ;;  %vm8533_vm10 = vnez %v8532_v0  ;;  %v4511_v35 = vld [vmem:[%s7826_s1 + $0x228] sm:$0xff]   ;;  %v8596_v26 = vld [vmem:[#allocation23_spill] sm:$0xff] }
  0xa3   : > { %4326 = vmatprep.subr.bf16.mxu0 %v4509_v43  ;;  %v8515_v17 = vsel %vm6346_vm9, 4294967295, %v8514_v17  ;;  %vm6361_vm13 = vmpackc.low %vm8521_vm7, %vm8297_vm8  ;;  %vm6387_vm7 = vcmp.le.s32.totalorder %v292_v27, 14  ;;  %v8540_v27 = vld [vmem:[#allocation50_spill] sm:$0xff] }
  0xa4   : > { %vm6352_vm14 = vcmp.le.s32.totalorder %v8517_v29, 14  ;;  %v641_v32 = vrot.slane %v8525_v59, 1  ;;  %vm6369_vm1 = vmpackc.low %vm740_vm4, %vm6145_vm6  ;;  %v8528_v29 = vld [vmem:[#allocation16_spill] sm:$0xff]  ;;  %v8537_v25 = vsel %vm6387_vm7, 4294967295, %v8536_v25  ;;  %v8538_v59 = vld [vmem:[#allocation49_spill] sm:$0xff]  ;;  %vm8552_vm6 = vcmp.lt.s32.totalorder %v4583_v5, 7 }
  0xa5   : > { %v8519_v23 = vsel %vm6352_vm14, 4294967295, %v8518_v23  ;;  %vm8529_vm3 = vnez %v8528_v29  ;;  %vm6383_vm2 = vmpackc.low %vm8533_vm10, %vm8297_vm8  ;;  %vm8539_vm4 = vnez %v8538_v59  ;;  %v8541_v29 = vshra.s32 %v8540_v27, 4  ;;  %v8548_v59 = vld [vmem:[#allocation39_spill] sm:$0xff]  ;;  %v8600_v49 = vld [vmem:[#allocation66_spill] sm:$0xff] }
  0xa6   : > { %vm6376_vm15 = vmpackc.low %vm8297_vm8, %vm8529_vm3  ;;  %4327 = vmatpush3.bf16.msra.mxu0 %v4509_v43  ;;  %v8544_v43 = vld [vmem:[#allocation52_spill] sm:$0xff]  ;;  %v8549_v27 = vmov 0  ;;  %v8601_v14 = vshra.s32 %v8600_v49, 4  ;;  %v8669_v49 = vld [vmem:[#allocation13_spill] sm:$0xff] }
  0xa7   : > { %4328 = vmatprep.subr.bf16.mxu0 %v4510_v48  ;;  %vm1091_vm3 = vmand %vm6346_vm9, %vm8539_vm4  ;;  %vm6404_vm10 = vcmp.le.s32.totalorder %v8541_v29, 14  ;;  %v8545_v15 = vshra.s32 %v8544_v43, 4  ;;  %v8551_v29 = vld [vmem:[#allocation21_spill] sm:$0xff]  ;;  %v8554_v43 = vld [vmem:[#allocation10_spill] sm:$0xff] }
  0xa8   : > { %v8543_v24 = vsel %vm6404_vm10, 4294967295, %v8542_v24  ;;  %2432 = vmatmul.mubr.bf16.gmra.mrb[56].mxu0 %v8548_v59  ;;  %vm6420_vm4 = vmpackc.low %vm6352_vm14, %vm1091_vm3  ;;  %vm8555_vm3 = vnez %v8554_v43  ;;  %vm8577_vm14 = vnez %v8417_v61 }
  0xa9   : > { %vm6410_vm5 = vcmp.le.s32.totalorder %v8545_v15, 14  ;;  %3625 = vmatmul.mubr.msk.bf16.gmra.mrb[56].mxu1 %vm6325_vm11, %v6356_v42  ;;  %v8550_v27 = vsel %vm6420_vm4, 4294967295, %v8549_v27  ;;  %3667 = vmatprep.mubr.msk.bf16.mxu0 %vm6361_vm13, %v5925_v47  ;;  %v662_v15 = vsel %vm8552_vm6, %v641_v32, %v5794_v16  ;;  %vm8553_vm11 = vmmov %vm8552_vm6  ;;  %vm8558_vm13 = vnez %v8557_v58  ;;  %v4512_v16 = vld [vmem:[%s7826_s1 + $0x230] sm:$0xff]  }
  0xaa   : > { %v8547_v44 = vsel %vm6410_vm5, 4294967295, %v8546_v44  ;;  %3628 = vmatprep.mubr.msk.bf16.mxu1 %vm6337_vm0, %v8551_v29  ;;  %v663_v2 = vsel %vm8553_vm11, %v640_v36, %v641_v32  ;;  %vm742_vm4 = vmand %vm8555_vm3, %vm6387_vm7  ;;  %4329 = vmatpush3.bf16.msra.mxu0 %v4510_v48  ;;  %v8559_v36 = vld [vmem:[#allocation53_spill] sm:$0xff]  ;;  %v8563_v48 = vld [vmem:[#allocation54_spill] sm:$0xff]  ;;  %v8567_v29 = vmov 0 }
  0xab   : > { %4330 = vmatprep.subr.bf16.mxu0 %v4511_v35  ;;  %vm1093_vm6 = vmand %vm6404_vm10, %vm8558_vm13  ;;  %v8560_v32 = vshra.s32 %v8559_v36, 4  ;;  %v8564_v43 = vshra.s32 %v8563_v48, 4  ;;  %v6463_v58 = vpack.c.bf16 %v662_v15, %v663_v2  ;;  %v8569_v47 = vld [vmem:[#allocation9_spill] sm:$0xff]  ;;  %v8634_v36 = vld [vmem:[#allocation36_spill] sm:$0xff]  ;;  %v8639_v15 = vmov 0 }
  0xac   : > { %vm6467_vm13 = vmpackc.low %vm6410_vm5, %vm1093_vm6  ;;  %vm8570_vm0 = vnez %v8569_v47  ;;  %v8580_v47 = vmov 0  ;;  %v8582_v2 = vld [vmem:[#allocation65_spill] sm:$0xff]  ;;  %v8637_v48 = vld [vmem:[#allocation74_spill] sm:$0xff] }
  0xad   : > { %vm6453_vm11 = vcmp.le.s32.totalorder %v8560_v32, 14  ;;  %vm6459_vm3 = vcmp.le.s32.totalorder %v8564_v43, 14  ;;  %v8568_v29 = vsel %vm6467_vm13, 4294967295, %v8567_v29  ;;  %vm6473_vm7 = vmpackc.low %vm742_vm4, %vm8570_vm0  ;;  %v8573_v32 = vld [vmem:[#allocation28_spill] sm:$0xff]  ;;  %vm6491_vm13 = vcmp.le.s32.totalorder %v294_v40, 14  ;;  %v8584_v43 = vld [vmem:[#allocation62_spill] sm:$0xff] }
  0xae   : > { %v8562_v53 = vsel %vm6453_vm11, 4294967295, %v8561_v53  ;;  %v8566_v50 = vsel %vm6459_vm3, 4294967295, %v8565_v50  ;;  %vm8574_vm10 = vnez %v8573_v32  ;;  %vm6487_vm6 = vmpackc.low %vm8577_vm14, %vm8297_vm8  ;;  %v8581_v47 = vsel %vm6491_vm13, 4294967295, %v8580_v47  ;;  %4331 = vmatpush3.bf16.msra.mxu0 %v4511_v35 }
  0xaf   : > { %vm6480_vm9 = vmpackc.low %vm8297_vm8, %vm8574_vm10  ;;  %4332 = vmatprep.subr.bf16.mxu0 %v4512_v16  ;;  %vm8583_vm0 = vnez %v8582_v2  ;;  %v8585_v32 = vshra.s32 %v8584_v43, 4  ;;  %v8588_v40 = vshra.s32 %v5398_v41, 4  ;;  %v8589_v35 = vmov 0  ;;  %v8591_v2 = vld [vmem:[#allocation57_spill] sm:$0xff]  ;;  %v8595_v41 = vld [vmem:[#allocation32_spill] sm:$0xff] }
  0xb0   : > { %vm1095_vm10 = vmand %vm6453_vm11, %vm8583_vm0  ;;  %2440 = vmatmul.mubr.bf16.gmra.mrb[60].mxu0 %v8591_v2  ;;  %v8598_v43 = vld [vmem:[#allocation33_spill] sm:$0xff] }
  0xb1   : > { %vm6505_vm14 = vcmp.le.s32.totalorder %v8585_v32, 14  ;;  %vm6511_vm5 = vcmp.le.s32.totalorder %v8588_v40, 14  ;;  %3631 = vmatmul.mubr.msk.bf16.gmra.mrb[60].mxu1 %vm6369_vm1, %v6463_v58  ;;  %vm6524_vm0 = vmpackc.low %vm6459_vm3, %vm1095_vm10  ;;  %v8592_v32 = vmov 0  ;;  %3670 = vmatprep.mubr.msk.bf16.mxu0 %vm6383_vm2, %v6004_v3  ;;  %vm8597_vm1 = vnez %v8596_v26 }
  0xb2   : > { %v8587_v34 = vsel %vm6505_vm14, 4294967295, %v8586_v34  ;;  %v8590_v35 = vsel %vm6511_vm5, 4294967295, %v8589_v35  ;;  %v8593_v32 = vsel %vm6524_vm0, 4294967295, %v8592_v32  ;;  %3634 = vmatprep.mubr.msk.bf16.mxu1 %vm6376_vm15, %v8595_v41  ;;  %vm744_vm4 = vmand %vm8597_vm1, %vm6491_vm13  ;;  %4333 = vmatpush3.bf16.msra.mxu0 %v4512_v16  ;;  %v296_v40 = vand.u32 15, %v8598_v43  ;;  %v8610_v43 = vld [vmem:[#allocation22_spill] sm:$0xff] }
  0xb3   : > { %8594 = vst [vmem:[#allocation25_spill] sm:$0xff] %v8593_v32  ;;  %vm8599_vm0 = vnez %v8320_v19  ;;  %4334 = vmatprep.subr.bf16.mxu0 %v4513_v9  ;;  %vm6549_vm2 = vcmp.le.s32.totalorder %v8601_v14, 14  ;;  %v8602_v41 = vmov 0  ;;  %v8604_v16 = vshra.s32 %v5512_v11, 4  ;;  %v8614_v14 = vld [vmem:[#allocation38_spill] sm:$0xff] }
  0xb4   : > { %vm1097_vm15 = vmand %vm6505_vm14, %vm8599_vm0  ;;  %v8603_v41 = vsel %vm6549_vm2, 4294967295, %v8602_v41  ;;  %v8605_v26 = vmov 0  ;;  %v8607_v19 = vmov 0  ;;  %vm8611_vm0 = vnez %v8610_v43  ;;  %v8674_v11 = vld [vmem:[#allocation78_spill] sm:$0xff] }
  0xb5   : > { %vm6555_vm1 = vcmp.le.s32.totalorder %v8604_v16, 14  ;;  %vm6561_vm10 = vmpackc.low %vm6511_vm5, %vm1097_vm15  ;;  %vm8615_vm14 = vnez %v8614_v14  ;;  %v8618_v16 = vld [vmem:[#allocation70_spill] sm:$0xff]  ;;  %v8620_v43 = vmov 0  ;;  %v8623_v14 = vmov 0 }
  0xb6   : > { %v8606_v26 = vsel %vm6555_vm1, 4294967295, %v8605_v26  ;;  %v8608_v19 = vsel %vm6561_vm10, 4294967295, %v8607_v19  ;;  %vm6567_vm13 = vmpackc.low %vm744_vm4, %vm8611_vm0  ;;  %4335 = vmatpush3.bf16.msra.mxu0 %v4513_v9  ;;  %v8619_v3 = vshra.s32 %v8618_v16, 4  ;;  %vm6594_vm0 = vcmp.le.s32.totalorder %v296_v40, 14  ;;  %v8628_v9 = vld [vmem:[#allocation59_spill] sm:$0xff] }
  0xb7   : > { %8609 = vst [vmem:[#allocation40_spill] sm:$0xff] %v8608_v19  ;;  %vm6574_vm11 = vmpackc.low %vm8297_vm8, %vm8615_vm14  ;;  %v8622_v19 = vshra.s32 %v5628_v46, 4  ;;  %v8626_v12 = vsel %vm6594_vm0, 4294967295, %v8625_v12  ;;  %vm8627_vm14 = vnez %v8350_v31  ;;  %v8629_v46 = vmov 0  ;;  %v8633_v31 = vld [vmem:[#allocation45_spill] sm:$0xff] }
  0xb8   : > { %vm6584_vm10 = vcmp.le.s32.totalorder %v8619_v3, 14  ;;  %vm1099_vm15 = vmand %vm6549_vm2, %vm8627_vm14  ;;  %2448 = vmatmul.mubr.bf16.gmra.mrb[64].mxu0 %v8628_v9  ;;  %v8632_v3 = vld [vmem:[#allocation44_spill] sm:$0xff]  ;;  %v298_v40 = vand.u32 15, %v8633_v31  ;;  %v8641_v16 = vshra.s32 %v5747_v30, 4  ;;  %v8642_v31 = vmov 0 }
  0xb9   : > { %v8621_v43 = vsel %vm6584_vm10, 4294967295, %v8620_v43  ;;  %vm6590_vm4 = vcmp.le.s32.totalorder %v8622_v19, 14  ;;  %3637 = vmatmul.mubr.msk.bf16.gmra.mrb[64].mxu1 %vm6473_vm7, %v6047_v21  ;;  %vm6608_vm5 = vmpackc.low %vm6555_vm1, %vm1099_vm15  ;;  %3673 = vmatprep.mubr.msk.bf16.mxu0 %vm6487_vm6, %v6164_v10  ;;  %vm8635_vm7 = vnez %v8634_v36  ;;  %v8638_v19 = vshra.s32 %v8637_v48, 4  ;;  %v8644_v36 = vld [vmem:[#allocation35_spill] sm:$0xff]  ;;  %v8665_v10 = vld [vmem:[#allocation48_spill] sm:$0xff] }
  0xba   : > { %v8624_v14 = vsel %vm6590_vm4, 4294967295, %v8623_v14  ;;  %v8630_v46 = vsel %vm6608_vm5, 4294967295, %v8629_v46  ;;  %3640 = vmatprep.mubr.msk.bf16.mxu1 %vm6480_vm9, %v8632_v3  ;;  %vm746_vm15 = vmand %vm8635_vm7, %vm6594_vm0  ;;  %vm8636_vm5 = vnez %v8449_v54  ;;  %vm6638_vm6 = vcmp.le.s32.totalorder %v8641_v16, 14 }
  0xbb   : > { %8631 = vst [vmem:[#allocation41_spill] sm:$0xff] %v8630_v46  ;;  %vm3674_vm9 = vmpackc.low %vm8636_vm5, %vm8297_vm8  ;;  %vm6632_vm2 = vcmp.le.s32.totalorder %v8638_v19, 14  ;;  %v8643_v31 = vsel %vm6638_vm6, 4294967295, %v8642_v31  ;;  %vm8645_vm14 = vnez %v8644_v36  ;;  %vm6652_vm1 = vcmp.le.s32.totalorder %v298_v40, 14  ;;  %v8681_v46 = vld [vmem:[#allocation3_spill] sm:$0xff]  ;;  %v8715_v19 = vld [vmem:[#allocation84_spill] sm:$0xff] }
  0xbc   : > { %v8640_v15 = vsel %vm6632_vm2, 4294967295, %v8639_v15  ;;  %vm1101_vm7 = vmand %vm6584_vm10, %vm8478_vm12  ;;  %v8648_v48 = vmov 0  ;;  %v8651_v30 = vmov 0  ;;  %vm8655_vm3 = vnez %v8654_v56  ;;  %v8664_v56 = vld [vmem:[#allocation64_spill] sm:$0xff] }
  0xbd   : > { %vm6648_vm0 = vmpackc.low %vm746_vm15, %vm8645_vm14  ;;  %v8649_v48 = vsel %vm6652_vm1, 4294967295, %v8648_v48  ;;  %vm8658_vm15 = vnez %v8468_v60  ;;  %v8659_v40 = vmov 0  ;;  %v8661_v16 = vshra.s32 %v4583_v5, 4 }
  0xbe   : > { %8650 = vst [vmem:[#allocation73_spill] sm:$0xff] %v8649_v48  ;;  %vm6658_vm5 = vmpackc.low %vm6590_vm4, %vm1101_vm7  ;;  %v8662_v36 = vmov 0  ;;  %vm8666_vm14 = vnez %v8665_v10  ;;  %v8671_v10 = vmov 0  ;;  %v8682_v48 = vshra.s32 %v8681_v46, 4 }
  0xbf   : > { %v8652_v30 = vsel %vm6658_vm5, 4294967295, %v8651_v30  ;;  %vm6665_vm12 = vmpackc.low %vm8297_vm8, %vm8655_vm3  ;;  %vm6682_vm7 = vcmp.le.s32.totalorder %v8661_v16, 14  ;;  %vm8668_vm5 = vnez %v8412_v4  ;;  %v8675_v16 = vshra.s32 %v8674_v11, 4 }
  0xc0   : > { %8653 = vst [vmem:[#allocation11_spill] sm:$0xff] %v8652_v30  ;;  %vm6676_vm10 = vmpackc.low %vm8658_vm15, %vm8297_vm8  ;;  %v8663_v36 = vsel %vm6682_vm7, 4294967295, %v8662_v36  ;;  %2456 = vmatmul.mubr.bf16.gmra.mrb[68].mxu0 %v8664_v56  ;;  %v8667_v30 = vld [vmem:[#allocation56_spill] sm:$0xff]  ;;  %v8678_v4 = vshra.s32 %v5903_v57, 4  ;;  %v8683_v32 = vmov 0  ;;  %v8688_v11 = vmov 0 }
  0xc1   : > { %v8660_v40 = vsel %vm6676_vm10, 4294967295, %v8659_v40  ;;  %3643 = vmatmul.mubr.msk.bf16.gmra.mrb[68].mxu1 %vm6567_vm13, %v6084_v33  ;;  %vm748_vm3 = vmand %vm8666_vm14, %vm6652_vm1  ;;  %3676 = vmatprep.mubr.msk.bf16.mxu0 %vm3674_vm9, %v6219_v39  ;;  %vm8670_vm13 = vnez %v8669_v49  ;;  %v8679_v39 = vmov 0  ;;  %vm6726_vm9 = vcmp.le.s32.totalorder %v8682_v48, 14  ;;  %v8691_v57 = vld [vmem:[#allocation8_spill] sm:$0xff] }
  0xc2   : > { %3646 = vmatprep.mubr.msk.bf16.mxu1 %vm6574_vm11, %v8667_v30  ;;  %vm1103_vm4 = vmand %vm6632_vm2, %vm8668_vm5  ;;  %vm6714_vm11 = vcmp.le.s32.totalorder %v8675_v16, 14  ;;  %v8676_v30 = vmov 0  ;;  %vm6720_vm5 = vcmp.le.s32.totalorder %v8678_v4, 14  ;;  %v8684_v32 = vsel %vm6726_vm9, 4294967295, %v8683_v32  ;;  %v8746_v49 = vld [vmem:[#allocation12_spill] sm:$0xff] }
  0xc3   : > { %vm6708_vm10 = vmpackc.low %vm6638_vm6, %vm1103_vm4  ;;  %v8677_v30 = vsel %vm6714_vm11, 4294967295, %v8676_v30  ;;  %v8680_v39 = vsel %vm6720_vm5, 4294967295, %v8679_v39  ;;  %vm8685_vm4 = vnez %v8520_v6  ;;  %vm8686_vm14 = vnez %v8519_v23  ;;  %v8838_v6 = vld [vmem:[#allocation76_spill] sm:$0xff] }
  0xc4   : > { %v8672_v10 = vsel %vm6708_vm10, 4294967295, %v8671_v10  ;;  %vm1252_vm15 = vmand %vm8686_vm14, %vm8685_vm4  ;;  %vm8687_vm10 = vnez %v8515_v17  ;;  %v8692_v16 = vunpack.c.h.bf16 %v8691_v57  ;;  %v8695_v46 = vmov 0 }
  0xc5   : > { %8673 = vst [vmem:[#allocation77_spill] sm:$0xff] %v8672_v10  ;;  %vm6736_vm1 = vmpackc.low %vm1252_vm15, %vm8687_vm10  ;;  %v8693_v10 = vld [vmem:[#allocation47_spill] sm:$0xff]  ;;  %vm8697_vm15 = vnez %v8480_v13  ;;  %v8703_v48 = vmov 0 }
  0xc6   : > { %v8689_v11 = vsel %vm6736_vm1, 4294967295, %v8688_v11  ;;  %v649_v4 = vrot.slane %v8692_v16, 1  ;;  %vm8694_vm2 = vnez %v8693_v10  ;;  %vm6755_vm10 = vmpackc.low %vm8697_vm15, %vm8297_vm8  ;;  %vm8701_vm1 = vnez %v8547_v44  ;;  %v8709_v10 = vld [vmem:[#allocation46_spill] sm:$0xff]  ;;  %v8711_v16 = vld [vmem:[#allocation81_spill] sm:$0xff] }
  0xc7   : > { %8690 = vst [vmem:[#allocation49_spill] sm:$0xff] %v8689_v11  ;;  %vm6744_vm6 = vmpackc.low %vm748_vm3, %vm8694_vm2  ;;  %vm8700_vm2 = vnez %v8532_v0  ;;  %vm8706_vm15 = vnez %v8446_v1  ;;  %v8707_v0 = vld [vmem:[#allocation20_spill] sm:$0xff]  ;;  %v8713_v1 = vmov 0  ;;  %v8717_v11 = vmov 0 }
  0xc8   : > { %v8696_v46 = vsel %vm6744_vm6, 4294967295, %v8695_v46  ;;  %vm1254_vm14 = vmand %vm8701_vm1, %vm8700_vm2  ;;  %vm8702_vm6 = vnez %v8543_v24  ;;  %2464 = vmatmul.mubr.bf16.gmra.mrb[72].mxu0 %v5539_v20  ;;  %vm8710_vm2 = vcmp.lt.s32.totalorder %v4583_v5, 7  ;;  %v8725_v5 = vmov 0 }
  0xc9   : > { %vm6769_vm4 = vmpackc.low %vm1254_vm14, %vm8702_vm6  ;;  %3649 = vmatmul.mubr.msk.bf16.gmra.mrb[72].mxu1 %vm6648_vm0, %v6102_v37  ;;  %vm8708_vm14 = vnez %v8660_v40  ;;  %v654_v3 = vsel %vm8710_vm2, %v649_v4, %v8709_v10  ;;  %v8719_v40 = vshra.s32 %v6045_v62, 4  ;;  %v8720_v10 = vmov 0 }
  0xca   : > { %v8704_v48 = vsel %vm6769_vm4, 4294967295, %v8703_v48  ;;  %vm1105_vm3 = vmand %vm6714_vm11, %vm8706_vm15  ;;  %3652 = vmatprep.mubr.msk.bf16.mxu1 %vm6665_vm12, %v8707_v0  ;;  %3679 = vmatprep.mubr.msk.bf16.mxu0 %vm8708_vm14, %v6247_v18  ;;  %v8716_v0 = vshra.s32 %v8715_v19, 4  ;;  %vm8722_vm14 = vnez %v8417_v61  ;;  %v8733_v62 = vmov 0  ;;  %v8766_v19 = vld [vmem:[#allocation27_spill] sm:$0xff]  ;;  %v8770_v61 = vld [vmem:[#allocation29_spill] sm:$0xff] }
  0xcb   : > { %8705 = vst [vmem:[#allocation50_spill] sm:$0xff] %v8704_v48  ;;  %vm8712_vm0 = vmmov %vm8710_vm2  ;;  %vm6807_vm15 = vcmp.le.s32.totalorder %v8719_v40, 14  ;;  %vm8723_vm2 = vnez %v8566_v50  ;;  %vm8735_vm6 = vnez %v8466_v52  ;;  %v8743_v52 = vmov 0 }
  0xcc   : > { %v655_v48 = vsel %vm8712_vm0, %v8711_v16, %v649_v4  ;;  %vm6795_vm4 = vmpackc.low %vm6720_vm5, %vm1105_vm3  ;;  %vm6801_vm12 = vcmp.le.s32.totalorder %v8716_v0, 14  ;;  %v8721_v10 = vsel %vm6807_vm15, 4294967295, %v8720_v10  ;;  %vm8724_vm0 = vnez %v8562_v53 }
  0xcd   : > { %v8714_v1 = vsel %vm6795_vm4, 4294967295, %v8713_v1  ;;  %v8718_v11 = vsel %vm6801_vm12, 4294967295, %v8717_v11  ;;  %vm1256_vm3 = vmand %vm8723_vm2, %vm8722_vm14  ;;  %v6821_v4 = vpack.c.bf16 %v654_v3, %v655_v48  ;;  %vm8732_vm2 = vnez %v8587_v34  ;;  %v8759_v3 = vld [vmem:[#allocation24_spill] sm:$0xff] }
  0xce   : > { %vm6817_vm4 = vmpackc.low %vm1256_vm3, %vm8724_vm0  ;;  %vm8730_vm3 = vnez %v8449_v54  ;;  %v8737_v54 = vmov 0  ;;  %v8757_v0 = vmov 0  ;;  %v8764_v16 = vmov 0 }
  0xcf   : > { %v8726_v5 = vsel %vm6817_vm4, 4294967295, %v8725_v5  ;;  %vm8727_vm1 = vmand %vm6682_vm7, %vm8670_vm13  ;;  %vm8731_vm4 = vnez %v8590_v35  ;;  %v8767_v40 = vshra.s32 %v8766_v19, 4 }
  0xd0   : > { %vm6834_vm14 = vmpackc.low %vm6726_vm9, %vm8727_vm1  ;;  %vm8736_vm1 = vnez %v8696_v46  ;;  %2472 = vmatmul.mubr.bf16.gmra.mrb[76].mxu0 %v5652_v51  ;;  %v8747_v46 = vshra.s32 %v8746_v49, 4  ;;  %v8771_v49 = vshra.s32 %v8770_v61, 4 }
  0xd1   : > { %vm1258_vm0 = vmand %vm8731_vm4, %vm8730_vm3  ;;  %3655 = vmatmul.mubr.msk.bf16.gmra.mrb[76].mxu1 %vm8736_vm1, %v6821_v4  ;;  %3682 = vmatprep.mubr.msk.bf16.mxu0 %vm6755_vm10, %v6292_v7  ;;  %vm8741_vm1 = vnez %v8606_v26  ;;  %vm8745_vm10 = vnez %v8488_v22 }
  0xd2   : > { %vm6844_vm11 = vmpackc.low %vm1258_vm0, %vm8732_vm2  ;;  %vm8740_vm0 = vnez %v8468_v60  ;;  %vm6886_vm4 = vcmp.le.s32.totalorder %v8747_v46, 14  ;;  %v8750_v60 = vld [vmem:[#allocation14_spill] sm:$0xff] }
  0xd3   : > { %v8734_v62 = vsel %vm6844_vm11, 4294967295, %v8733_v62  ;;  %vm1107_vm13 = vmand %vm6801_vm12, %vm8735_vm6 }
  0xd4   : > { %vm6858_vm3 = vmpackc.low %vm6807_vm15, %vm1107_vm13  ;;  %vm8742_vm13 = vnez %v8603_v41 }
  0xd5   : > { %v8738_v54 = vsel %vm6858_vm3, 4294967295, %v8737_v54  ;;  %vm8739_vm6 = vmpackc.low %vm6726_vm9, %vm6682_vm7  ;;  %vm8756_vm7 = vnez %v8621_v43 }
  0xd6   : > { %3706 = vmatprep.mubr.msk.bf16.mxu1 %vm8739_vm6, %v8502_v28  ;;  %vm1260_vm11 = vmand %vm8741_vm1, %vm8740_vm0  ;;  %v8751_v28 = vshra.s32 %v8750_v60, 4  ;;  %vm8755_vm0 = vnez %v8624_v14  ;;  %vm8760_vm1 = vnez %v8759_v3  ;;  %v8779_v60 = vld [vmem:[#allocation55_spill] sm:$0xff]  ;;  %v8785_v3 = vld [vmem:[#allocation61_spill] sm:$0xff] }
  0xd7   : > { %vm6877_vm2 = vmpackc.low %vm1260_vm11, %vm8742_vm13  ;;  %vm8754_vm11 = vnez %v8480_v13  ;;  %v8761_v13 = vld [vmem:[#allocation42_spill] sm:$0xff] }
  0xd8   : > { %v8744_v52 = vsel %vm6877_vm2, 4294967295, %v8743_v52  ;;  %vm3683_vm3 = vmpackc.low %vm8745_vm10, %vm8297_vm8  ;;  %vm6892_vm6 = vcmp.le.s32.totalorder %v8751_v28, 14  ;;  %2480 = vmatmul.mubr.bf16.gmra.mrb[80].mxu0 %v5728_v8  ;;  %v8781_v28 = vmov 0 }
  0xd9   : > { %vm1262_vm2 = vmand %vm8755_vm0, %vm8754_vm11  ;;  %3709 = vmatmul.mubr.msk.bf16.vlgmr.msra.gmra.mrb[80].mxu1 %vm6834_vm14, %v8761_v13  ;;  %3685 = vmatprep.mubr.msk.bf16.mxu0 %vm3683_vm3, %v6356_v42  ;;  %vm6934_vm14 = vcmp.le.s32.totalorder %v8767_v40, 14  ;;  %vm6940_vm3 = vcmp.le.s32.totalorder %v8771_v49, 14 }
  0xda   : > { %vm6902_vm9 = vmpackc.low %vm1262_vm2, %vm8756_vm7  ;;  %vm8762_vm2 = vnez %v8643_v31 }
  0xdb   : > { %v8758_v0 = vsel %vm6902_vm9, 4294967295, %v8757_v0  ;;  %vm3710_vm13 = vmpackc.low %vm6892_vm6, %vm6886_vm4  ;;  %vm8763_vm9 = vnez %v8640_v15 }
  0xdc   : > { %vm1087_vm12 = vmand %vm6886_vm4, %vm8760_vm1  ;;  %3712 = vmatprep.mubr.msk.bf16.mxu1 %vm3710_vm13, %v8548_v59  ;;  %vm8774_vm13 = vnez %v8494_v63  ;;  %v8776_v59 = vmov 0  ;;  %v8783_v63 = vld [vmem:[#allocation37_spill] sm:$0xff] }
  0xdd   : > { %vm1264_vm11 = vmand %vm8762_vm2, %vm8745_vm10  ;;  %vm8778_vm2 = vnez %v8501_v38  ;;  %v8791_v38 = vld [vmem:[#allocation67_spill] sm:$0xff] }
  0xde   : > { %vm6926_vm7 = vmpackc.low %vm1264_vm11, %vm8763_vm9  ;;  %vm8775_vm11 = vnez %v8677_v30 }
  0xdf   : > { %v8765_v16 = vsel %vm6926_vm7, 4294967295, %v8764_v16  ;;  %vm3713_vm1 = vmpackc.low %vm6892_vm6, %vm1087_vm12 }
  0xe0   : > { %vm1266_vm10 = vmand %vm6720_vm5, %vm8774_vm13  ;;  %2488 = vmatmul.mubr.bf16.gmra.mrb[84].mxu0 %v5944_v55 }
  0xe1   : > { %vm6950_vm12 = vmpackc.low %vm1266_vm10, %vm8775_vm11  ;;  %3715 = vmatmul.mubr.msk.bf16.gmra.mrb[84].mxu1 %vm3713_vm1, %v8779_v60  ;;  %vm8780_vm10 = vnez %v8718_v11  ;;  %v8824_v60 = vld [vmem:[#allocation6_spill] sm:$0xff] }
  0xe2   : > { %v8777_v59 = vsel %vm6950_vm12, 4294967295, %v8776_v59  ;;  %vm3686_vm7 = vmpackc.low %vm8774_vm13, %vm8297_vm8  ;;  %vm8784_vm13 = vnez %v8783_v63  ;;  %v8826_v63 = vld [vmem:[#allocation41_spill] sm:$0xff] }
  0xe3   : > { %vm3716_vm9 = vmpackc.low %vm6940_vm3, %vm6934_vm14  ;;  %3688 = vmatprep.mubr.msk.bf16.mxu0 %vm3686_vm7, %v6463_v58  ;;  %vm8786_vm7 = vnez %v8519_v23  ;;  %v8798_v23 = vld [vmem:[#allocation71_spill] sm:$0xff] }
  0xe4   : > { %vm1268_vm5 = vmand %vm6807_vm15, %vm8778_vm2  ;;  %3718 = vmatprep.mubr.msk.bf16.mxu1 %vm3716_vm9, %v8591_v2  ;;  %v8790_v2 = vld [vmem:[#allocation7_spill] sm:$0xff] }
  0xe5   : > { %vm6969_vm12 = vmpackc.low %vm1268_vm5, %vm8780_vm10  ;;  %vm8787_vm5 = vnez %v8515_v17  ;;  %v8797_v17 = vld [vmem:[#allocation19_spill] sm:$0xff] }
  0xe6   : > { %v8782_v28 = vsel %vm6969_vm12, 4294967295, %v8781_v28  ;;  %vm1089_vm11 = vmand %vm6934_vm14, %vm8784_vm13 }
  0xe7   : > { %vm3719_vm15 = vmpackc.low %vm6940_vm3, %vm1089_vm11  ;;  %vm8789_vm11 = vnez %v8537_v25 }
  0xe8   : > { %vm3689_vm1 = vmpackc.low %vm8778_vm2, %vm8297_vm8  ;;  %2496 = vmatmul.mubr.bf16.gmra.mrb[88].mxu0 %v6170_v45  ;;  %vm8792_vm2 = vnez %v8550_v27  ;;  %v8806_v27 = vld [vmem:[#allocation25_spill] sm:$0xff] }
  0xe9   : > { %3721 = vmatmul.mubr.msk.bf16.gmra.mrb[88].mxu1 %vm3719_vm15, %v8785_v3  ;;  %3691 = vmatprep.mubr.msk.bf16.mxu0 %vm3689_vm1, %v6047_v21  ;;  %vm8788_vm9 = vmpackc.low %vm8786_vm7, %vm8787_vm5  ;;  %vm8793_vm15 = vnez %v8547_v44  ;;  %vm8794_vm1 = vnez %v8543_v24  ;;  %vm8796_vm7 = vnez %v8581_v47  ;;  %v8804_v44 = vld [vmem:[#allocation26_spill] sm:$0xff]  ;;  %v8805_v24 = vld [vmem:[#allocation75_spill] sm:$0xff] }
  0xea   : > { %3724 = vmatprep.mubr.msk.bf16.mxu1 %vm8788_vm9, %v8628_v9  ;;  %vm3692_vm13 = vmpackc.low %vm8789_vm11, %vm8297_vm8  ;;  %vm8799_vm9 = vnez %v8568_v29  ;;  %v8814_v29 = vld [vmem:[#allocation40_spill] sm:$0xff] }
  0xeb   : > { %vm8795_vm12 = vmpackc.low %vm8793_vm15, %vm8794_vm1  ;;  %vm8807_vm1 = vnez %v8806_v27  ;;  %v8830_v3 = vld [vmem:[#allocation72_spill] sm:$0xff] }
  0xec   : > { %vm3695_vm5 = vmpackc.low %vm8796_vm7, %vm8297_vm8 }
  0xf0   : > { %2504 = vmatmul.mubr.bf16.gmra.mrb[92].mxu0 %v8790_v2 }
  0xf1   : > { %3727 = vmatmul.mubr.msk.bf16.gmra.mrb[92].mxu1 %vm8792_vm2, %v8791_v38  ;;  %3694 = vmatprep.mubr.msk.bf16.mxu0 %vm3692_vm13, %v6084_v33  ;;  %vm8800_vm13 = vnez %v8566_v50  ;;  %vm8801_vm2 = vnez %v8562_v53  ;;  %v8813_v50 = vld [vmem:[#allocation79_spill] sm:$0xff]  ;;  %v8816_v53 = vld [vmem:[#allocation60_spill] sm:$0xff] }
  0xf2   : > { %3730 = vmatprep.mubr.msk.bf16.mxu1 %vm8795_vm12, %v8664_v56  ;;  %vm8802_vm11 = vmpackc.low %vm8800_vm13, %vm8801_vm2  ;;  %vm8803_vm12 = vnez %v8626_v12  ;;  %vm8815_vm2 = vnez %v8814_v29 }
  0xf3   : > { %vm3698_vm15 = vmpackc.low %vm8803_vm12, %vm8297_vm8 }
  0xf8   : > { %2512 = vmatmul.mubr.bf16.gmra.mrb[96].mxu0 %v8797_v17 }
  0xf9   : > { %3733 = vmatmul.mubr.msk.bf16.gmra.mrb[96].mxu1 %vm8799_vm9, %v8798_v23  ;;  %3697 = vmatprep.mubr.msk.bf16.mxu0 %vm3695_vm5, %v6102_v37  ;;  %vm8808_vm5 = vnez %v8590_v35  ;;  %vm8809_vm9 = vnez %v8587_v34  ;;  %v8820_v35 = vld [vmem:[#allocation34_spill] sm:$0xff] }
  0xfa   : > { %3736 = vmatprep.mubr.msk.bf16.mxu1 %vm8802_vm11, %v5539_v20  ;;  %vm8810_vm7 = vmpackc.low %vm8808_vm5, %vm8809_vm9  ;;  %v8811_v20 = vld [vmem:[#allocation73_spill] sm:$0xff]  ;;  %vm8823_vm9 = vnez %v8663_v36  ;;  %v8831_v36 = vld [vmem:[#allocation63_spill] sm:$0xff] }
  0xfb   : > { %vm8812_vm11 = vnez %v8811_v20 }
  0xfc   : > { %vm3701_vm13 = vmpackc.low %vm8812_vm11, %vm8297_vm8  ;;  %vm8822_vm8 = vnez %v8684_v32  ;;  %v8825_v32 = vld [vmem:[#allocation82_spill] sm:$0xff] }
 0x100   : > { %2520 = vmatmul.mubr.bf16.gmra.mrb[100].mxu0 %v8804_v44 }
 0x101   : > { %3739 = vmatmul.mubr.msk.bf16.gmra.mrb[100].mxu1 %vm8807_vm1, %v8805_v24  ;;  %3700 = vmatprep.mubr.msk.bf16.mxu0 %vm3698_vm15, %v6821_v4  ;;  %vm8817_vm15 = vnez %v8606_v26  ;;  %vm8818_vm1 = vnez %v8603_v41  ;;  %v3864_v34 = vpop.f32.mrb[0].mxu0  ;;  %v8833_v24 = vld [vmem:[#allocation69_spill] sm:$0xff] }
 0x102   : > { %3742 = vmatprep.mubr.msk.bf16.mxu1 %vm8810_vm7, %v5652_v51  ;;  %vm8819_vm12 = vmpackc.low %vm8817_vm15, %vm8818_vm1  ;;  %v3936_v51 = vpop.f32.mrb[0].mxu1  ;;  %vm8821_vm7 = vnez %v8820_v35  ;;  %v3865_v56 = vpop.f32.mrb[1].mxu0  ;;  %vm8832_vm1 = vnez %v8831_v36  ;;  %v8835_v35 = vld [vmem:[#allocation85_spill] sm:$0xff] }
 0x103   : > { %vm1246_vm5 = vmand %vm8822_vm8, %vm8821_vm7  ;;  %v3937_v9 = vpop.f32.mrb[1].mxu1  ;;  %v7055_v40 = vadd.f32 %v3865_v56, %v3864_v34  ;;  %v3867_v61 = vpop.f32.mrb[2].mxu0  ;;  %vm8834_vm8 = vnez %v8833_v24  ;;  %v8842_v56 = vld [vmem:[#allocation80_spill] sm:$0xff]  ;;  %v8846_v24 = vld [vmem:[#allocation83_spill] sm:$0xff] }
 0x104   : > { %v7053_v13 = vadd.f32 %v3937_v9, %v3936_v51  ;;  %v3939_v19 = vpop.f32.mrb[2].mxu1  ;;  %v3868_v49 = vpop.f32.mrb[3].mxu0  ;;  %vm1248_vm7 = vmand %vm6892_vm6, %vm8832_vm1  ;;  %v8836_v9 = vld [vmem:[#allocation11_spill] sm:$0xff] }
 0x105   : > { %v3940_v26 = vpop.f32.mrb[3].mxu1  ;;  %v7061_v41 = vadd.f32 %v3868_v49, %v3867_v61 }
 0x108   : > { %2528 = vmatmul.mubr.bf16.gmra.mrb[104].mxu0 %v8691_v57 }
 0x109   : > { %3745 = vmatmul.mubr.msk.bf16.gmra.mrb[104].mxu1 %vm8815_vm2, %v8813_v50  ;;  %3703 = vmatprep.mubr.msk.bf16.mxu0 %vm3701_vm13, %v8816_v53  ;;  %vm8827_vm13 = vnez %v8826_v63  ;;  %vm8828_vm2 = vnez %v8621_v43  ;;  %v3942_v38 = vpop.f32.mrb[4].mxu1  ;;  %v3870_v23 = vpop.f32.mrb[4].mxu0 }
 0x10a   : > { %3748 = vmatprep.mubr.msk.bf16.mxu1 %vm8819_vm12, %v5728_v8  ;;  %vm3800_vm12 = vmpackc.low %vm1246_vm5, %vm8823_vm9  ;;  %v7059_v8 = vadd.f32 %v3940_v26, %v3939_v19  ;;  %v3943_v27 = vpop.f32.mrb[5].mxu1  ;;  %v3871_v14 = vpop.f32.mrb[5].mxu0  ;;  %vm8840_vm9 = vnez %v8640_v15  ;;  %v8843_v15 = vld [vmem:[#allocation87_spill] sm:$0xff] }
 0x10b   : > { %vm8829_vm15 = vmpackc.low %vm8755_vm0, %vm8828_vm2  ;;  %v3945_v43 = vpop.f32.mrb[6].mxu1  ;;  %v7086_v50 = vadd.f32 %v3871_v14, %v3870_v23  ;;  %v3873_v29 = vpop.f32.mrb[6].mxu0  ;;  %vm8849_vm2 = vnez %v8680_v39  ;;  %v8852_v14 = vld [vmem:[#allocation86_spill] sm:$0xff] }
 0x10c   : > { %vm1250_vm5 = vmand %vm6940_vm3, %vm8834_vm8  ;;  %v3946_v48 = vpop.f32.mrb[7].mxu1  ;;  %v3874_v51 = vpop.f32.mrb[7].mxu0  ;;  %vm8837_vm3 = vnez %v8836_v9  ;;  %vm8856_vm8 = vnez %v8714_v1 }
 0x10d   : > { %vm3803_vm0 = vmpackc.low %vm1248_vm7, %vm6886_vm4  ;;  %v7090_v34 = vadd.f32 %v3946_v48, %v3945_v43  ;;  %v7092_v46 = vadd.f32 %v3874_v51, %v3873_v29  ;;  %vm8839_vm4 = vnez %v8643_v31  ;;  %v8853_v43 = vld [vmem:[#allocation50_spill] sm:$0xff] }
 0x10e   : > { %vm3806_vm6 = vmpackc.low %vm1250_vm5, %vm6934_vm14  ;;  %vm8854_vm7 = vnez %v8853_v43  ;;  %vm8858_vm5 = vnez %v8726_v5  ;;  %v8866_v5 = vld [vmem:[#allocation5_spill] sm:$0xff] }
 0x110   : > { %2536 = vmatmul.mubr.bf16.gmra.mrb[108].mxu0 %v8824_v60 }
 0x111   : > { %3751 = vmatmul.mubr.msk.bf16.gmra.mrb[108].mxu1 %vm8827_vm13, %v8825_v32  ;;  %4336 = vmatprep.mubr.msk.bf16.mxu0 %vm3800_vm12, %v8830_v3  ;;  %vm8841_vm12 = vmpackc.low %vm8839_vm4, %vm8840_vm9  ;;  %v3948_v22 = vpop.f32.mrb[8].mxu1  ;;  %v3876_v19 = vpop.f32.mrb[8].mxu0 }
 0x112   : > { %3754 = vmatprep.mubr.msk.bf16.mxu1 %vm8829_vm15, %v5944_v55  ;;  %v7084_v55 = vadd.f32 %v3943_v27, %v3942_v38  ;;  %v3949_v61 = vpop.f32.mrb[9].mxu1  ;;  %v3877_v26 = vpop.f32.mrb[9].mxu0  ;;  %v8847_v27 = vld [vmem:[#allocation49_spill] sm:$0xff]  ;;  %vm8850_vm15 = vnez %v8677_v30 }
 0x113   : > { %v7105_v49 = vadd.f32 %v3949_v61, %v3948_v22  ;;  %v3951_v32 = vpop.f32.mrb[10].mxu1  ;;  %v7107_v63 = vadd.f32 %v3877_v26, %v3876_v19  ;;  %v3879_v3 = vpop.f32.mrb[10].mxu0  ;;  %vm8848_vm13 = vnez %v8847_v27  ;;  %vm8851_vm1 = vmpackc.low %vm8849_vm2, %vm8850_vm15  ;;  %v8857_v26 = vld [vmem:[#allocation88_spill] sm:$0xff] }
 0x114   : > { %v3952_v36 = vpop.f32.mrb[11].mxu1  ;;  %v3880_v38 = vpop.f32.mrb[11].mxu0 }
 0x115   : > { %v7109_v23 = vadd.f32 %v3952_v36, %v3951_v32  ;;  %v7111_v31 = vadd.f32 %v3880_v38, %v3879_v3  ;;  %v8862_v36 = vld [vmem:[#allocation4_spill] sm:$0xff] }
 0x116   : > { %v8863_v1 = vshra.s32 %v8862_v36, 4 }
 0x118   : > { %4337 = vmatmul.mubr.msk.bf16.vlgmr.msra.gmra.mrb[112].mxu0 %vm3803_vm0, %v8838_v6  ;;  %vm8859_vm0 = vnez %v8721_v10  ;;  %vm7153_vm4 = vcmp.le.s32.totalorder %v8863_v1, 14 }
 0x119   : > { %3757 = vmatmul.mubr.msk.bf16.gmra.mrb[112].mxu1 %vm8837_vm3, %v8835_v35  ;;  %4340 = vmatprep.mubr.msk.bf16.mxu0 %vm3806_vm6, %v8842_v56  ;;  %v3882_v48 = vpop.f32.mrb[12].mxu0  ;;  %vm8860_vm6 = vmpackc.low %vm8859_vm0, %vm8780_vm10  ;;  %vm8861_vm3 = vnez %v8734_v62  ;;  %vm8885_vm0 = vnez %v8765_v16 }
 0x11a   : > { %3760 = vmatprep.mubr.msk.bf16.mxu1 %vm8841_vm12, %v6170_v45  ;;  %v8844_v45 = vld [vmem:[#allocation77_spill] sm:$0xff]  ;;  %v3883_v35 = vpop.f32.mrb[13].mxu0  ;;  %vm8871_vm12 = vnez %v8738_v54 }
 0x11b   : > { %vm8845_vm14 = vnez %v8844_v45  ;;  %v3954_v29 = vpop.f32.mrb[12].mxu1  ;;  %v7130_v56 = vadd.f32 %v3883_v35, %v3882_v48  ;;  %v3885_v22 = vpop.f32.mrb[14].mxu0 }
 0x11c   : > { %v3955_v51 = vpop.f32.mrb[13].mxu1  ;;  %v3886_v39 = vpop.f32.mrb[15].mxu0 }
 0x11d   : > { %v7128_v9 = vadd.f32 %v3955_v51, %v3954_v29  ;;  %v3957_v6 = vpop.f32.mrb[14].mxu1  ;;  %v7134_v30 = vadd.f32 %v3886_v39, %v3885_v22  ;;  %v8870_v51 = vld [vmem:[#allocation32_spill] sm:$0xff]  ;;  %v8876_v22 = vld [vmem:[#allocation15_spill] sm:$0xff] }
 0x11e   : > { %v3958_v19 = vpop.f32.mrb[15].mxu1 }
 0x11f   : > { %v7132_v61 = vadd.f32 %v3958_v19, %v3957_v6  ;;  %v8877_v19 = vshra.s32 %v8876_v22, 4 }
 0x120   : > { %4341 = vmatmul.mubr.msk.bf16.gmra.mrb[116].mxu0 %vm8848_vm13, %v8846_v24  ;;  %vm8873_vm13 = vnez %v8758_v0 }
 0x121   : > { %3763 = vmatmul.mubr.msk.bf16.gmra.mrb[116].mxu1 %vm8845_vm14, %v8843_v15  ;;  %4344 = vmatprep.mubr.msk.bf16.mxu0 %vm8854_vm7, %v8852_v14  ;;  %v8867_v15 = vshra.s32 %v8866_v5, 4  ;;  %vm8872_vm14 = vnez %v8744_v52  ;;  %v8880_v52 = vld [vmem:[#allocation17_spill] sm:$0xff] }
 0x122   : > { %3766 = vmatprep.mubr.msk.bf16.mxu1 %vm8851_vm1, %v8790_v2  ;;  %v8855_v2 = vld [vmem:[#allocation21_spill] sm:$0xff]  ;;  %vm7193_vm1 = vcmp.le.s32.totalorder %v8877_v19, 14  ;;  %v8898_v19 = vld [vmem:[#allocation38_spill] sm:$0xff] }
 0x123   : > { %v3976_v32 = vpop.f32.mrb[16].mxu1  ;;  %vm7159_vm9 = vcmp.le.s32.totalorder %v8867_v15, 14 }
 0x124   : > { %v3888_v3 = vpop.f32.mrb[16].mxu0  ;;  %v3977_v11 = vpop.f32.mrb[17].mxu1  ;;  %vm3776_vm10 = vmpackc.low %vm7159_vm9, %vm7153_vm4 }
 0x125   : > { %v3978_v45 = vadd.f32 %v3977_v11, %v3976_v32  ;;  %v3979_v24 = vpop.f32.mrb[18].mxu1  ;;  %v8884_v11 = vld [vmem:[#allocation44_spill] sm:$0xff] }
 0x126   : > { %v3980_v27 = vpop.f32.mrb[19].mxu1 }
 0x127   : > { %v7170_v43 = vadd.f32 %v3978_v45, %v7055_v40  ;;  %v3981_v29 = vadd.f32 %v3980_v27, %v3979_v24  ;;  %v8874_v40 = vld [vmem:[#allocation16_spill] sm:$0xff]  ;;  %v8889_v45 = vld [vmem:[#allocation31_spill] sm:$0xff] }
 0x128   : > { %4345 = vmatmul.mubr.msk.bf16.gmra.mrb[120].mxu0 %vm8858_vm5, %v8857_v26  ;;  %vm8875_vm2 = vnez %v8874_v40  ;;  %v8890_v24 = vshra.s32 %v8889_v45, 4 }
 0x129   : > { %3769 = vmatmul.mubr.msk.bf16.gmra.mrb[120].mxu1 %vm8856_vm8, %v8855_v2  ;;  %4348 = vmatprep.mubr.msk.bf16.mxu0 %vm8861_vm3, %v6247_v18  ;;  %v7181_v35 = vadd.f32 %v3981_v29, %v7061_v41  ;;  %vm1109_vm15 = vmand %vm7153_vm4, %vm8875_vm2  ;;  %v8881_v41 = vshra.s32 %v8880_v52, 4  ;;  %v8900_v52 = vld [vmem:[#allocation56_spill] sm:$0xff] }
 0x12a   : > { %3772 = vmatprep.mubr.msk.bf16.mxu1 %vm8860_vm6, %v8797_v17  ;;  %v3889_v17 = vpop.f32.mrb[17].mxu0  ;;  %vm3779_vm8 = vmpackc.low %vm7159_vm9, %vm1109_vm15  ;;  %vm8886_vm6 = vnez %v8777_v59 }
 0x12b   : > { %v7163_v62 = vadd.f32 %v3889_v17, %v3888_v3  ;;  %v3891_v18 = vpop.f32.mrb[18].mxu0  ;;  %v3982_v54 = vpop.f32.mrb[20].mxu1  ;;  %vm7199_vm7 = vcmp.le.s32.totalorder %v8881_v41, 14 }
 0x12c   : > { %v3892_v14 = vpop.f32.mrb[19].mxu0  ;;  %vm3782_vm5 = vmpackc.low %vm7199_vm7, %vm7193_vm1 }
 0x12d   : > { %v7172_v48 = vadd.f32 %v3892_v14, %v3891_v18  ;;  %v3894_v6 = vpop.f32.mrb[20].mxu0  ;;  %v8916_v18 = vld [vmem:[#allocation51_spill] sm:$0xff] }
 0x12e   : > { %v3895_v0 = vpop.f32.mrb[21].mxu0 }
 0x12f   : > { %v7203_v26 = vadd.f32 %v3895_v0, %v3894_v6  ;;  %v3897_v32 = vpop.f32.mrb[22].mxu0 }
 0x130   : > { %4349 = vmatmul.mubr.msk.bf16.gmra.mrb[124].mxu0 %vm8872_vm14, %v6292_v7  ;;  %v3898_v36 = vpop.f32.mrb[23].mxu0 }
 0x131   : > { %3775 = vmatmul.mubr.msk.bf16.gmra.mrb[124].mxu1 %vm8871_vm12, %v8870_v51  ;;  %4352 = vmatprep.mubr.msk.bf16.mxu0 %vm8873_vm13, %v6356_v42  ;;  %v3983_v42 = vpop.f32.mrb[21].mxu1  ;;  %v7214_v15 = vadd.f32 %v3898_v36, %v3897_v32  ;;  %vm7233_vm12 = vcmp.le.s32.totalorder %v8890_v24, 14  ;;  %vm8897_vm13 = vnez %v8537_v25  ;;  %v8915_v24 = vld [vmem:[#allocation18_spill] sm:$0xff] }
 0x132   : > { %3778 = vmatprep.mubr.msk.bf16.mxu1 %vm3776_vm10, %v8804_v44  ;;  %v3984_v39 = vadd.f32 %v3983_v42, %v3982_v54  ;;  %v3985_v2 = vpop.f32.mrb[22].mxu1  ;;  %vm1270_vm2 = vmand %vm7159_vm9, %vm8897_vm13 }
 0x133   : > { %v3986_v3 = vpop.f32.mrb[23].mxu1  ;;  %vm3836_vm9 = vmpackc.low %vm1270_vm2, %vm7153_vm4  ;;  %vm8902_vm4 = vnez %v8581_v47 }
 0x134   : > { %v7212_v1 = vadd.f32 %v3984_v39, %v7086_v50  ;;  %v3987_v5 = vadd.f32 %v3986_v3, %v3985_v2  ;;  %v8887_v50 = vld [vmem:[#allocation28_spill] sm:$0xff]  ;;  %v3900_v59 = vpop.f32.mrb[24].mxu0 }
 0x135   : > { %vm8888_vm3 = vnez %v8887_v50  ;;  %v3901_v27 = vpop.f32.mrb[25].mxu0  ;;  %v8914_v50 = vld [vmem:[#allocation20_spill] sm:$0xff] }
 0x136   : > { %v7221_v17 = vadd.f32 %v3987_v5, %v7092_v46  ;;  %vm1111_vm10 = vmand %vm7193_vm1, %vm8888_vm3  ;;  %v7249_v51 = vadd.f32 %v3901_v27, %v3900_v59  ;;  %v3903_v40 = vpop.f32.mrb[26].mxu0 }
 0x137   : > { %vm3785_vm15 = vmpackc.low %vm7199_vm7, %vm1111_vm10  ;;  %v3904_v25 = vpop.f32.mrb[27].mxu0 }
 0x138   : > { %4353 = vmatmul.mubr.msk.bf16.gmra.mrb[128].mxu0 %vm8885_vm0, %v6463_v58  ;;  %v8893_v58 = vld [vmem:[#allocation33_spill] sm:$0xff]  ;;  %v7260_v22 = vadd.f32 %v3904_v25, %v3903_v40  ;;  %vm1272_vm3 = vmand %vm7199_vm7, %vm8902_vm4  ;;  %vm8913_vm7 = vnez %v8626_v12  ;;  %v8919_v40 = vld [vmem:[#allocation68_spill] sm:$0xff] }
 0x139   : > { %3781 = vmatmul.mubr.msk.bf16.gmra.mrb[128].mxu1 %vm3779_vm8, %v8884_v11  ;;  %4356 = vmatprep.mubr.msk.bf16.mxu0 %vm8886_vm6, %v6047_v21  ;;  %v8894_v16 = vshra.s32 %v8893_v58, 4  ;;  %vm8901_vm6 = vnez %v8782_v28  ;;  %v8905_v28 = vld [vmem:[#allocation43_spill] sm:$0xff] }
 0x13a   : > { %3784 = vmatprep.mubr.msk.bf16.mxu1 %vm3782_vm5, %v8691_v57  ;;  %v3988_v57 = vpop.f32.mrb[24].mxu1  ;;  %vm8899_vm5 = vnez %v8898_v19 }
 0x13b   : > { %vm7239_vm14 = vcmp.le.s32.totalorder %v8894_v16, 14  ;;  %v3989_v21 = vpop.f32.mrb[25].mxu1  ;;  %vm1113_vm0 = vmand %vm7233_vm12, %vm8899_vm5 }
 0x13c   : > { %v3990_v14 = vadd.f32 %v3989_v21, %v3988_v57  ;;  %v3991_v29 = vpop.f32.mrb[26].mxu1  ;;  %vm3788_vm8 = vmpackc.low %vm7239_vm14, %vm7233_vm12  ;;  %v3906_v44 = vpop.f32.mrb[28].mxu0 }
 0x13d   : > { %v3992_v54 = vpop.f32.mrb[27].mxu1  ;;  %vm7281_vm10 = vmpackc.low %vm7239_vm14, %vm1113_vm0  ;;  %v3907_v0 = vpop.f32.mrb[29].mxu0 }
 0x13e   : > { %v7258_v10 = vadd.f32 %v3990_v14, %v7107_v63  ;;  %v3993_v6 = vadd.f32 %v3992_v54, %v3991_v29  ;;  %v3994_v47 = vpop.f32.mrb[28].mxu1  ;;  %v7303_v32 = vadd.f32 %v3907_v0, %v3906_v44  ;;  %v3909_v3 = vpop.f32.mrb[30].mxu0  ;;  %v8918_v29 = vld [vmem:[#allocation30_spill] sm:$0xff] }
 0x13f   : > { %v3995_v42 = vpop.f32.mrb[29].mxu1  ;;  %v3910_v12 = vpop.f32.mrb[31].mxu0 }
 0x140   : > { %4357 = vmatmul.mubr.msk.bf16.gmra.mrb[132].mxu0 %vm8901_vm6, %v6084_v33  ;;  %v7271_v38 = vadd.f32 %v3993_v6, %v7111_v31  ;;  %v8906_v33 = vshra.s32 %v8905_v28, 4  ;;  %v3996_v39 = vadd.f32 %v3995_v42, %v3994_v47  ;;  %v3997_v2 = vpop.f32.mrb[30].mxu1  ;;  %v7314_v11 = vadd.f32 %v3910_v12, %v3909_v3 }
 0x141   : > { %3787 = vmatmul.mubr.msk.bf16.gmra.mrb[132].mxu1 %vm3785_vm15, %v8900_v52  ;;  %4360 = vmatprep.mubr.msk.bf16.mxu0 %vm3836_vm9, %v6102_v37  ;;  %vm1274_vm15 = vmand %vm7239_vm14, %vm8913_vm7  ;;  %v3998_v36 = vpop.f32.mrb[31].mxu1 }
 0x142   : > { %3790 = vmatprep.mubr.msk.bf16.mxu1 %vm3788_vm8, %v8824_v60  ;;  %vm7287_vm13 = vcmp.le.s32.totalorder %v8906_v33, 14  ;;  %v8909_v60 = vld [vmem:[#allocation45_spill] sm:$0xff]  ;;  %vm3839_vm8 = vmpackc.low %vm1272_vm3, %vm7193_vm1  ;;  %v7312_v5 = vadd.f32 %v3996_v39, %v7130_v56  ;;  %v3999_v7 = vadd.f32 %v3998_v36, %v3997_v2  ;;  %vm8917_vm1 = vnez %v8916_v18 }
 0x143   : > { %v8910_v41 = vshra.s32 %v8909_v60, 4  ;;  %vm3842_vm14 = vmpackc.low %vm1274_vm15, %vm7233_vm12 }
 0x144   : > { %v7321_v45 = vadd.f32 %v3999_v7, %v7134_v30  ;;  %vm1115_vm12 = vmand %vm7287_vm13, %vm8917_vm1 }
 0x145   : > { %vm7293_vm2 = vcmp.le.s32.totalorder %v8910_v41, 14  ;;  %v3912_v58 = vpop.f32.mrb[32].mxu0 }
 0x146   : > { %vm3794_vm9 = vmpackc.low %vm7293_vm2, %vm7287_vm13  ;;  %v4000_v56 = vpop.f32.mrb[32].mxu1  ;;  %v3913_v16 = vpop.f32.mrb[33].mxu0 }
 0x147   : > { %vm1276_vm5 = vmand %vm7293_vm2, %vm8812_vm11  ;;  %v3915_v57 = vpop.f32.mrb[34].mxu0 }
 0x148   : > { %4361 = vmatmul.mubr.msk.bf16.gmra.mrb[136].mxu0 %vm3839_vm8, %v6821_v4  ;;  %v4001_v4 = vpop.f32.mrb[33].mxu1  ;;  %vm3797_vm0 = vmpackc.low %vm7293_vm2, %vm1115_vm12  ;;  %v3916_v20 = vpop.f32.mrb[35].mxu0 }
 0x149   : > { %3793 = vmatmul.mubr.msk.bf16.gmra.mrb[136].mxu1 %vm7281_vm10, %v8914_v50  ;;  %4364 = vmatprep.mubr.msk.bf16.mxu0 %vm3842_vm14, %v8816_v53  ;;  %v4002_v30 = vadd.f32 %v4001_v4, %v4000_v56  ;;  %v4003_v46 = vpop.f32.mrb[34].mxu1  ;;  %v7335_v53 = vadd.f32 %v3913_v16, %v3912_v58  ;;  %vm3845_vm6 = vmpackc.low %vm1276_vm5, %vm7287_vm13  ;;  %v3917_v14 = vadd.f32 %v3916_v20, %v3915_v57 }
 0x14a   : > { %3796 = vmatprep.mubr.msk.bf16.mxu1 %vm3794_vm9, %v8915_v24  ;;  %v4004_v59 = vpop.f32.mrb[35].mxu1 }
 0x14b   : > { %v7340_v21 = vadd.f32 %v4002_v30, %v7163_v62  ;;  %v4005_v27 = vadd.f32 %v4004_v59, %v4003_v46 }
 0x14d   : > { %v7345_v54 = vadd.f32 %v4005_v27, %v7172_v48 }
 0x150   : > { %4365 = vmatmul.mubr.msk.bf16.gmra.mrb[140].mxu0 %vm3845_vm6, %v8919_v40  ;;  %v3918_v6 = vpop.f32.mrb[36].mxu0 }
 0x151   : > { %3799 = vmatmul.mubr.msk.bf16.gmra.mrb[140].mxu1 %vm3797_vm0, %v8918_v29  ;;  %v3919_v52 = vpop.f32.mrb[37].mxu0 }
 0x152   : > { %v4006_v25 = vpop.f32.mrb[36].mxu1  ;;  %v3920_v33 = vadd.f32 %v3919_v52, %v3918_v6  ;;  %v3921_v31 = vpop.f32.mrb[38].mxu0 }
 0x153   : > { %v4007_v19 = vpop.f32.mrb[37].mxu1  ;;  %v3922_v62 = vpop.f32.mrb[39].mxu0 }
 0x154   : > { %v4008_v63 = vadd.f32 %v4007_v19, %v4006_v25  ;;  %v4009_v28 = vpop.f32.mrb[38].mxu1  ;;  %v3923_v47 = vadd.f32 %v3922_v62, %v3921_v31 }
 0x155   : > { %v4010_v60 = vpop.f32.mrb[39].mxu1 }
 0x156   : > { %v7348_v41 = vadd.f32 %v4008_v63, %v7203_v26  ;;  %v4011_v37 = vadd.f32 %v4010_v60, %v4009_v28 }
 0x158   : > { %v7351_v44 = vadd.f32 %v4011_v37, %v7214_v15 }
 0x15a   : > { %v3924_v42 = vpop.f32.mrb[40].mxu0 }
 0x15b   : > { %v4012_v48 = vpop.f32.mrb[40].mxu1  ;;  %v3925_v39 = vpop.f32.mrb[41].mxu0 }
 0x15c   : > { %v4013_v0 = vpop.f32.mrb[41].mxu1  ;;  %v7353_v36 = vadd.f32 %v3925_v39, %v3924_v42  ;;  %v3927_v12 = vpop.f32.mrb[42].mxu0 }
 0x15d   : > { %v4014_v2 = vadd.f32 %v4013_v0, %v4012_v48  ;;  %v4015_v3 = vpop.f32.mrb[42].mxu1  ;;  %v3928_v50 = vpop.f32.mrb[43].mxu0 }
 0x15e   : > { %v4016_v7 = vpop.f32.mrb[43].mxu1  ;;  %v3929_v18 = vadd.f32 %v3928_v50, %v3927_v12 }
 0x15f   : > { %v7356_v24 = vadd.f32 %v4014_v2, %v7249_v51  ;;  %v4017_v26 = vadd.f32 %v4016_v7, %v4015_v3 }
 0x161   : > { %v7359_v56 = vadd.f32 %v4017_v26, %v7260_v22 }
 0x163   : > { %v3930_v58 = vpop.f32.mrb[44].mxu0 }
 0x164   : > { %v4018_v15 = vpop.f32.mrb[44].mxu1  ;;  %v3931_v16 = vpop.f32.mrb[45].mxu0 }
 0x165   : > { %v4019_v4 = vpop.f32.mrb[45].mxu1  ;;  %v7361_v57 = vadd.f32 %v3931_v16, %v3930_v58  ;;  %v3933_v59 = vpop.f32.mrb[46].mxu0 }
 0x166   : > { %v4020_v30 = vadd.f32 %v4019_v4, %v4018_v15  ;;  %v4021_v46 = vpop.f32.mrb[46].mxu1  ;;  %v3934_v27 = vpop.f32.mrb[47].mxu0 }
 0x167   : > { %v4022_v20 = vpop.f32.mrb[47].mxu1  ;;  %v7366_v40 = vadd.f32 %v3934_v27, %v3933_v59 }
 0x168   : > { %v7364_v29 = vadd.f32 %v4020_v30, %v7303_v32  ;;  %v4023_v51 = vadd.f32 %v4022_v20, %v4021_v46 }
 0x16a   : > { %v7369_v22 = vadd.f32 %v4023_v51, %v7314_v11 }
 0x16b   : > { %v4088_v6 = vpop.f32.mrb[48].mxu0 }
 0x16c   : > { %v4024_v25 = vpop.f32.mrb[48].mxu1  ;;  %v4089_v52 = vpop.f32.mrb[49].mxu0 }
 0x16d   : > { %v4025_v19 = vpop.f32.mrb[49].mxu1  ;;  %v4090_v28 = vadd.f32 %v4089_v52, %v4088_v6  ;;  %v4091_v60 = vpop.f32.mrb[50].mxu0 }
 0x16e   : > { %v4026_v63 = vadd.f32 %v4025_v19, %v4024_v25  ;;  %v4027_v31 = vpop.f32.mrb[50].mxu1  ;;  %v4092_v37 = vpop.f32.mrb[51].mxu0 }
 0x16f   : > { %v4028_v62 = vpop.f32.mrb[51].mxu1  ;;  %v7375_v32 = vadd.f32 %v4090_v28, %v7170_v43  ;;  %v4093_v0 = vadd.f32 %v4092_v37, %v4091_v60 }
 0x170   : > { %v7372_v48 = vadd.f32 %v4026_v63, %v7335_v53  ;;  %v4029_v42 = vadd.f32 %v4028_v62, %v4027_v31 }
 0x171   : > { %v7380_v39 = vadd.f32 %v4093_v0, %v7181_v35 }
 0x172   : > { %v7377_v11 = vadd.f32 %v4029_v42, %v3917_v14 }
 0x173   : > { %v4094_v3 = vpop.f32.mrb[52].mxu0 }
 0x174   : > { %v4030_v2 = vpop.f32.mrb[52].mxu1  ;;  %v4095_v7 = vpop.f32.mrb[53].mxu0 }
 0x175   : > { %v4031_v12 = vpop.f32.mrb[53].mxu1  ;;  %v4096_v26 = vadd.f32 %v4095_v7, %v4094_v3  ;;  %v4097_v58 = vpop.f32.mrb[54].mxu0 }
 0x176   : > { %v4032_v50 = vadd.f32 %v4031_v12, %v4030_v2  ;;  %v4033_v15 = vpop.f32.mrb[54].mxu1  ;;  %v4098_v4 = vpop.f32.mrb[55].mxu0 }
 0x177   : > { %v4034_v53 = vpop.f32.mrb[55].mxu1  ;;  %v7385_v43 = vadd.f32 %v4096_v26, %v7212_v1  ;;  %v4099_v30 = vadd.f32 %v4098_v4, %v4097_v58 }
 0x178   : > { %v7382_v16 = vadd.f32 %v4032_v50, %v3920_v33  ;;  %v4035_v14 = vadd.f32 %v4034_v53, %v4033_v15 }
 0x179   : > { %v7390_v35 = vadd.f32 %v4099_v30, %v7221_v17 }
 0x17a   : > { %v7387_v46 = vadd.f32 %v4035_v14, %v3923_v47 }
 0x17b   : > { %v4100_v20 = vpop.f32.mrb[56].mxu0 }
 0x17c   : > { %v4036_v59 = vpop.f32.mrb[56].mxu1  ;;  %v4101_v51 = vpop.f32.mrb[57].mxu0 }
 0x17d   : > { %v4037_v27 = vpop.f32.mrb[57].mxu1  ;;  %v4102_v6 = vadd.f32 %v4101_v51, %v4100_v20  ;;  %v4103_v52 = vpop.f32.mrb[58].mxu0 }
 0x17e   : > { %v4038_v25 = vadd.f32 %v4037_v27, %v4036_v59  ;;  %v4039_v19 = vpop.f32.mrb[58].mxu1  ;;  %v4104_v63 = vpop.f32.mrb[59].mxu0 }
 0x17f   : > { %v4040_v33 = vpop.f32.mrb[59].mxu1  ;;  %v7396_v28 = vadd.f32 %v4102_v6, %v7258_v10  ;;  %v4105_v31 = vadd.f32 %v4104_v63, %v4103_v52 }
 0x180   : > { %v7393_v1 = vadd.f32 %v4038_v25, %v7353_v36  ;;  %v4041_v47 = vadd.f32 %v4040_v33, %v4039_v19 }
 0x181   : > { %v7401_v60 = vadd.f32 %v4105_v31, %v7271_v38 }
 0x182   : > { %v7398_v17 = vadd.f32 %v4041_v47, %v3929_v18 }
 0x183   : > { %v4106_v37 = vpop.f32.mrb[60].mxu0 }
 0x184   : > { %v4042_v62 = vpop.f32.mrb[60].mxu1  ;;  %v4107_v0 = vpop.f32.mrb[61].mxu0 }
 0x185   : > { %v4043_v42 = vpop.f32.mrb[61].mxu1  ;;  %v4108_v3 = vadd.f32 %v4107_v0, %v4106_v37  ;;  %v4109_v7 = vpop.f32.mrb[62].mxu0 }
 0x186   : > { %v4044_v2 = vadd.f32 %v4043_v42, %v4042_v62  ;;  %v4045_v12 = vpop.f32.mrb[62].mxu1  ;;  %v4110_v50 = vpop.f32.mrb[63].mxu0 }
 0x187   : > { %v4046_v36 = vpop.f32.mrb[63].mxu1  ;;  %v7407_v26 = vadd.f32 %v4108_v3, %v7312_v5  ;;  %v4111_v15 = vadd.f32 %v4110_v50, %v4109_v7 }
 0x188   : > { %v7404_v10 = vadd.f32 %v4044_v2, %v7361_v57  ;;  %v4047_v18 = vadd.f32 %v4046_v36, %v4045_v12 }
 0x189   : > { %v7413_v58 = vadd.f32 %v4111_v15, %v7321_v45 }
 0x18a   : > { %v7410_v38 = vadd.f32 %v4047_v18, %v7366_v40 }
 0x18b   : > { %v4112_v4 = vpop.f32.mrb[64].mxu0 }
 0x18c   : > { %v4048_v53 = vpop.f32.mrb[64].mxu1  ;;  %v4113_v30 = vpop.f32.mrb[65].mxu0 }
 0x18d   : > { %v4049_v14 = vpop.f32.mrb[65].mxu1  ;;  %v4114_v20 = vadd.f32 %v4113_v30, %v4112_v4  ;;  %v4115_v57 = vpop.f32.mrb[66].mxu0 }
 0x18e   : > { %v4050_v59 = vadd.f32 %v4049_v14, %v4048_v53  ;;  %v4051_v27 = vpop.f32.mrb[66].mxu1  ;;  %v4116_v25 = vpop.f32.mrb[67].mxu0 }
 0x18f   : > { %v4052_v51 = vpop.f32.mrb[67].mxu1  ;;  %v7419_v6 = vadd.f32 %v4114_v20, %v7340_v21  ;;  %v4117_v19 = vadd.f32 %v4116_v25, %v4115_v57 }
 0x190   : > { %v7416_v5 = vadd.f32 %v4050_v59, %v7053_v13  ;;  %v4053_v40 = vadd.f32 %v4052_v51, %v4051_v27 }
 0x191   : > { %v7425_v52 = vadd.f32 %v4117_v19, %v7345_v54 }
 0x192   : > { %v7422_v45 = vadd.f32 %v4053_v40, %v7059_v8 }
 0x193   : > { %v4118_v63 = vpop.f32.mrb[68].mxu0 }
 0x194   : > { %v4054_v33 = vpop.f32.mrb[68].mxu1  ;;  %v4119_v31 = vpop.f32.mrb[69].mxu0 }
 0x195   : > { %v4055_v47 = vpop.f32.mrb[69].mxu1  ;;  %v4120_v37 = vadd.f32 %v4119_v31, %v4118_v63  ;;  %v4121_v13 = vpop.f32.mrb[70].mxu0 }
 0x196   : > { %v4056_v62 = vadd.f32 %v4055_v47, %v4054_v33  ;;  %v4057_v42 = vpop.f32.mrb[70].mxu1  ;;  %v4122_v2 = vpop.f32.mrb[71].mxu0 }
 0x197   : > { %v4058_v0 = vpop.f32.mrb[71].mxu1  ;;  %v7431_v3 = vadd.f32 %v4120_v37, %v7348_v41  ;;  %v4123_v12 = vadd.f32 %v4122_v2, %v4121_v13 }
 0x198   : > { %v7428_v21 = vadd.f32 %v4056_v62, %v7084_v55  ;;  %v4059_v8 = vadd.f32 %v4058_v0, %v4057_v42 }
 0x199   : > { %v7437_v7 = vadd.f32 %v4123_v12, %v7351_v44 }
 0x19a   : > { %v7434_v54 = vadd.f32 %v4059_v8, %v7090_v34 }
 0x19b   : > { %v4124_v50 = vpop.f32.mrb[72].mxu0 }
 0x19c   : > { %v4060_v36 = vpop.f32.mrb[72].mxu1  ;;  %v4125_v15 = vpop.f32.mrb[73].mxu0 }
 0x19d   : > { %v4061_v18 = vpop.f32.mrb[73].mxu1  ;;  %v4126_v4 = vadd.f32 %v4125_v15, %v4124_v50  ;;  %v4127_v55 = vpop.f32.mrb[74].mxu0 }
 0x19e   : > { %v4062_v53 = vadd.f32 %v4061_v18, %v4060_v36  ;;  %v4063_v14 = vpop.f32.mrb[74].mxu1  ;;  %v4128_v59 = vpop.f32.mrb[75].mxu0 }
 0x19f   : > { %v4064_v30 = vpop.f32.mrb[75].mxu1  ;;  %v7443_v20 = vadd.f32 %v4126_v4, %v7356_v24  ;;  %v4129_v27 = vadd.f32 %v4128_v59, %v4127_v55 }
 0x1a0   : > { %v7440_v41 = vadd.f32 %v4062_v53, %v7105_v49  ;;  %v4065_v34 = vadd.f32 %v4064_v30, %v4063_v14 }
 0x1a1   : > { %v7449_v57 = vadd.f32 %v4129_v27, %v7359_v56 }
 0x1a2   : > { %v7446_v44 = vadd.f32 %v4065_v34, %v7109_v23 }
 0x1a3   : > { %v4130_v25 = vpop.f32.mrb[76].mxu0 }
 0x1a4   : > { %v4066_v51 = vpop.f32.mrb[76].mxu1  ;;  %v4131_v19 = vpop.f32.mrb[77].mxu0 }
 0x1a5   : > { %v4067_v40 = vpop.f32.mrb[77].mxu1  ;;  %v4132_v63 = vadd.f32 %v4131_v19, %v4130_v25  ;;  %v4133_v49 = vpop.f32.mrb[78].mxu0 }
 0x1a6   : > { %v4068_v33 = vadd.f32 %v4067_v40, %v4066_v51  ;;  %v4069_v47 = vpop.f32.mrb[78].mxu1  ;;  %v4134_v62 = vpop.f32.mrb[79].mxu0 }
 0x1a7   : > { %v4070_v31 = vpop.f32.mrb[79].mxu1  ;;  %v7455_v37 = vadd.f32 %v4132_v63, %v7364_v29  ;;  %v4135_v42 = vadd.f32 %v4134_v62, %v4133_v49 }
 0x1a8   : > { %v7452_v24 = vadd.f32 %v4068_v33, %v7128_v9  ;;  %v4071_v23 = vadd.f32 %v4070_v31, %v4069_v47 }
 0x1a9   : > { %v7461_v13 = vadd.f32 %v4135_v42, %v7369_v22 }
 0x1aa   : > { %v7458_v56 = vadd.f32 %v4071_v23, %v7132_v61 }
 0x1ab   : > { %v4136_v0 = vpop.f32.mrb[80].mxu0 }
 0x1ac   : > { %v4200_v2 = vpop.f32.mrb[80].mxu1  ;;  %v4137_v8 = vpop.f32.mrb[81].mxu0 }
 0x1ad   : > { %v4201_v12 = vpop.f32.mrb[81].mxu1  ;;  %v4138_v36 = vadd.f32 %v4137_v8, %v4136_v0  ;;  %v4139_v18 = vpop.f32.mrb[82].mxu0 }
 0x1ae   : > { %v4202_v50 = vadd.f32 %v4201_v12, %v4200_v2  ;;  %v4203_v9 = vpop.f32.mrb[82].mxu1  ;;  %v4140_v15 = vpop.f32.mrb[83].mxu0 }
 0x1af   : > { %v4204_v53 = vpop.f32.mrb[83].mxu1  ;;  %v7464_v29 = vadd.f32 %v4138_v36, %v7372_v48  ;;  %v4141_v4 = vadd.f32 %v4140_v15, %v4139_v18 }
 0x1b0   : > { %v4205_v14 = vadd.f32 %v4204_v53, %v4203_v9  ;;  %v7467_v61 = vadd.f32 %v4202_v50, %v7375_v32 }
 0x1b1   : > { %v7470_v22 = vadd.f32 %v4141_v4, %v7377_v11 }
 0x1b2   : > { %v7473_v55 = vadd.f32 %v4205_v14, %v7380_v39 }
 0x1b3   : > { %v4142_v30 = vpop.f32.mrb[84].mxu0 }
 0x1b4   : > { %v4206_v59 = vpop.f32.mrb[84].mxu1  ;;  %v4143_v34 = vpop.f32.mrb[85].mxu0 }
 0x1b5   : > { %v4207_v27 = vpop.f32.mrb[85].mxu1  ;;  %v4144_v51 = vadd.f32 %v4143_v34, %v4142_v30  ;;  %v4145_v40 = vpop.f32.mrb[86].mxu0 }
 0x1b6   : > { %v4208_v25 = vadd.f32 %v4207_v27, %v4206_v59  ;;  %v4209_v48 = vpop.f32.mrb[86].mxu1  ;;  %v4146_v19 = vpop.f32.mrb[87].mxu0 }
 0x1b7   : > { %v4210_v33 = vpop.f32.mrb[87].mxu1  ;;  %v7476_v63 = vadd.f32 %v4144_v51, %v7382_v16  ;;  %v4147_v32 = vadd.f32 %v4146_v19, %v4145_v40 }
 0x1b8   : > { %v4211_v47 = vadd.f32 %v4210_v33, %v4209_v48  ;;  %v7479_v11 = vadd.f32 %v4208_v25, %v7385_v43 }
 0x1b9   : > { %v7482_v39 = vadd.f32 %v4147_v32, %v7387_v46 }
 0x1ba   : > { %v7485_v49 = vadd.f32 %v4211_v47, %v7390_v35 }
 0x1bb   : > { %v4148_v31 = vpop.f32.mrb[88].mxu0 }
 0x1bc   : > { %v4212_v62 = vpop.f32.mrb[88].mxu1  ;;  %v4149_v23 = vpop.f32.mrb[89].mxu0 }
 0x1bd   : > { %v4213_v42 = vpop.f32.mrb[89].mxu1  ;;  %v4150_v0 = vadd.f32 %v4149_v23, %v4148_v31  ;;  %v4151_v8 = vpop.f32.mrb[90].mxu0 }
 0x1be   : > { %v4214_v2 = vadd.f32 %v4213_v42, %v4212_v62  ;;  %v4215_v16 = vpop.f32.mrb[90].mxu1  ;;  %v4152_v12 = vpop.f32.mrb[91].mxu0 }
 0x1bf   : > { %v4216_v36 = vpop.f32.mrb[91].mxu1  ;;  %v7488_v50 = vadd.f32 %v4150_v0, %v7393_v1  ;;  %v4153_v43 = vadd.f32 %v4152_v12, %v4151_v8 }
 0x1c0   : > { %v4217_v18 = vadd.f32 %v4216_v36, %v4215_v16  ;;  %v7491_v46 = vadd.f32 %v4214_v2, %v7396_v28 }
 0x1c1   : > { %v7494_v35 = vadd.f32 %v4153_v43, %v7398_v17 }
 0x1c2   : > { %v7497_v9 = vadd.f32 %v4217_v18, %v7401_v60 }
 0x1c3   : > { %v4154_v15 = vpop.f32.mrb[92].mxu0 }
 0x1c4   : > { %v4218_v53 = vpop.f32.mrb[92].mxu1  ;;  %v4155_v4 = vpop.f32.mrb[93].mxu0 }
 0x1c5   : > { %v4219_v14 = vpop.f32.mrb[93].mxu1  ;;  %v4156_v30 = vadd.f32 %v4155_v4, %v4154_v15  ;;  %v4157_v34 = vpop.f32.mrb[94].mxu0 }
 0x1c6   : > { %v4220_v59 = vadd.f32 %v4219_v14, %v4218_v53  ;;  %v4221_v1 = vpop.f32.mrb[94].mxu1  ;;  %v4158_v27 = vpop.f32.mrb[95].mxu0 }
 0x1c7   : > { %v4222_v51 = vpop.f32.mrb[95].mxu1  ;;  %v7500_v25 = vadd.f32 %v4156_v30, %v7404_v10  ;;  %v4159_v28 = vadd.f32 %v4158_v27, %v4157_v34 }
 0x1c8   : > { %v4223_v40 = vadd.f32 %v4222_v51, %v4221_v1  ;;  %v7503_v17 = vadd.f32 %v4220_v59, %v7407_v26 }
 0x1c9   : > { %v7506_v60 = vadd.f32 %v4159_v28, %v7410_v38 }
 0x1ca   : > { %v7509_v48 = vadd.f32 %v4223_v40, %v7413_v58 }
 0x1cb   : > { %v4160_v19 = vpop.f32.mrb[96].mxu0 }
 0x1cc   : > { %v4224_v33 = vpop.f32.mrb[96].mxu1  ;;  %v4161_v32 = vpop.f32.mrb[97].mxu0 }
 0x1cd   : > { %v4225_v47 = vpop.f32.mrb[97].mxu1  ;;  %v4162_v31 = vadd.f32 %v4161_v32, %v4160_v19  ;;  %v4163_v23 = vpop.f32.mrb[98].mxu0 }
 0x1ce   : > { %v4226_v62 = vadd.f32 %v4225_v47, %v4224_v33  ;;  %v4227_v10 = vpop.f32.mrb[98].mxu1  ;;  %v4164_v42 = vpop.f32.mrb[99].mxu0 }
 0x1cf   : > { %v4228_v0 = vpop.f32.mrb[99].mxu1  ;;  %v7512_v2 = vadd.f32 %v4162_v31, %v7416_v5  ;;  %v4165_v26 = vadd.f32 %v4164_v42, %v4163_v23 }
 0x1d0   : > { %v4229_v8 = vadd.f32 %v4228_v0, %v4227_v10  ;;  %v7515_v38 = vadd.f32 %v4226_v62, %v7419_v6 }
 0x1d1   : > { %v7518_v58 = vadd.f32 %v4165_v26, %v7422_v45 }
 0x1d2   : > { %v7521_v16 = vadd.f32 %v4229_v8, %v7425_v52 }
 0x1d3   : > { %v4166_v12 = vpop.f32.mrb[100].mxu0 }
 0x1d4   : > { %v4230_v36 = vpop.f32.mrb[100].mxu1  ;;  %v4167_v43 = vpop.f32.mrb[101].mxu0 }
 0x1d5   : > { %v4231_v18 = vpop.f32.mrb[101].mxu1  ;;  %v4168_v15 = vadd.f32 %v4167_v43, %v4166_v12  ;;  %v4169_v4 = vpop.f32.mrb[102].mxu0 }
 0x1d6   : > { %v4232_v53 = vadd.f32 %v4231_v18, %v4230_v36  ;;  %v4233_v5 = vpop.f32.mrb[102].mxu1  ;;  %v4170_v14 = vpop.f32.mrb[103].mxu0 }
 0x1d7   : > { %v4234_v30 = vpop.f32.mrb[103].mxu1  ;;  %v7524_v59 = vadd.f32 %v4168_v15, %v7428_v21  ;;  %v4171_v6 = vadd.f32 %v4170_v14, %v4169_v4 }
 0x1d8   : > { %v4235_v34 = vadd.f32 %v4234_v30, %v4233_v5  ;;  %v7527_v45 = vadd.f32 %v4232_v53, %v7431_v3 }
 0x1d9   : > { %v7530_v52 = vadd.f32 %v4171_v6, %v7434_v54 }
 0x1da   : > { %v7533_v1 = vadd.f32 %v4235_v34, %v7437_v7 }
 0x1db   : > { %v4172_v27 = vpop.f32.mrb[104].mxu0 }
 0x1dc   : > { %v4236_v51 = vpop.f32.mrb[104].mxu1  ;;  %v4173_v28 = vpop.f32.mrb[105].mxu0 }
 0x1dd   : > { %v4237_v40 = vpop.f32.mrb[105].mxu1  ;;  %v4174_v19 = vadd.f32 %v4173_v28, %v4172_v27  ;;  %v4175_v32 = vpop.f32.mrb[106].mxu0 }
 0x1de   : > { %v4238_v33 = vadd.f32 %v4237_v40, %v4236_v51  ;;  %v4239_v21 = vpop.f32.mrb[106].mxu1  ;;  %v4176_v47 = vpop.f32.mrb[107].mxu0 }
 0x1df   : > { %v4240_v31 = vpop.f32.mrb[107].mxu1  ;;  %v7536_v62 = vadd.f32 %v4174_v19, %v7440_v41  ;;  %v4177_v3 = vadd.f32 %v4176_v47, %v4175_v32 }
 0x1e0   : > { %v4241_v23 = vadd.f32 %v4240_v31, %v4239_v21  ;;  %v7539_v54 = vadd.f32 %v4238_v33, %v7443_v20 }
 0x1e1   : > { %v7542_v7 = vadd.f32 %v4177_v3, %v7446_v44 }
 0x1e2   : > { %v7545_v10 = vadd.f32 %v4241_v23, %v7449_v57 }
 0x1e3   : > { %v4178_v42 = vpop.f32.mrb[108].mxu0 }
 0x1e4   : > { %v4242_v0 = vpop.f32.mrb[108].mxu1  ;;  %v4179_v26 = vpop.f32.mrb[109].mxu0 }
 0x1e5   : > { %v4243_v8 = vpop.f32.mrb[109].mxu1  ;;  %v4180_v12 = vadd.f32 %v4179_v26, %v4178_v42  ;;  %v4181_v43 = vpop.f32.mrb[110].mxu0 }
 0x1e6   : > { %v4244_v36 = vadd.f32 %v4243_v8, %v4242_v0  ;;  %v4245_v41 = vpop.f32.mrb[110].mxu1  ;;  %v4182_v18 = vpop.f32.mrb[111].mxu0 }
 0x1e7   : > { %v4246_v15 = vpop.f32.mrb[111].mxu1  ;;  %v7548_v53 = vadd.f32 %v4180_v12, %v7452_v24  ;;  %v4183_v20 = vadd.f32 %v4182_v18, %v4181_v43 }
 0x1e8   : > { %v4247_v4 = vadd.f32 %v4246_v15, %v4245_v41  ;;  %v7551_v44 = vadd.f32 %v4244_v36, %v7455_v37 }
 0x1e9   : > { %v7554_v57 = vadd.f32 %v4183_v20, %v7458_v56 }
 0x1ea   : > { %v7557_v5 = vadd.f32 %v4247_v4, %v7461_v13 }
 0x1eb   : > { %v4338_v30 = vpop.f32.mrb[112].mxu0 }
 0x1ec   : > { %v4248_v14 = vpop.f32.mrb[112].mxu1  ;;  %v7560_v6 = vadd.f32 %v4338_v30, %v7479_v11  ;;  %v2739_v24 = vpop.f32.mrb[113].mxu0 }
 0x1ed   : > { %v4249_v34 = vpop.f32.mrb[113].mxu1  ;;  %v7563_v51 = vadd.f32 %v2739_v24, %v7467_v61  ;;  %v4339_v37 = vpop.f32.mrb[114].mxu0 }
 0x1ee   : > { %v4250_v27 = vadd.f32 %v4249_v34, %v4248_v14  ;;  %v4251_v28 = vpop.f32.mrb[114].mxu1  ;;  %v7566_v40 = vadd.f32 %v4339_v37, %v7485_v49  ;;  %v2742_v19 = vpop.f32.mrb[115].mxu0 }
 0x1ef   : > { %v4252_v56 = vpop.f32.mrb[115].mxu1  ;;  %v7576_v11 = vadd.f32 %v2742_v19, %v7473_v55 }
 0x1f0   : > { %v4253_v13 = vadd.f32 %v4252_v56, %v4251_v28  ;;  %v7579_v61 = vadd.f32 %v4250_v27, %v7464_v29  ;;  %v3377_v49 = vpack.c.bf16 %v7566_v40, %v7560_v6 }
 0x1f1   : > { %v3372_v33 = vpack.c.bf16 %v7576_v11, %v7563_v51 }
 0x1f2   : > { %v7586_v32 = vadd.f32 %v4253_v13, %v7470_v22  ;;  %3449 = vst [vmem:[%s7573_s4 + $0x8] sm:$0xff] %v3377_v49  }
 0x1f3   : > { %3373 = vst [vmem:[%s7573_s4] sm:$0xff] %v3372_v33   ;;  %v4342_v47 = vpop.f32.mrb[116].mxu0 }
 0x1f4   : > { %v4254_v21 = vpop.f32.mrb[116].mxu1  ;;  %v7591_v31 = vadd.f32 %v4342_v47, %v7503_v17  ;;  %v2755_v29 = vpop.f32.mrb[117].mxu0 }
 0x1f5   : > { %v4255_v55 = vpop.f32.mrb[117].mxu1  ;;  %v7594_v23 = vadd.f32 %v2755_v29, %v7491_v46  ;;  %v4343_v0 = vpop.f32.mrb[118].mxu0 }
 0x1f6   : > { %v4256_v3 = vadd.f32 %v4255_v55, %v4254_v21  ;;  %v4257_v42 = vpop.f32.mrb[118].mxu1  ;;  %v7597_v22 = vadd.f32 %v4343_v0, %v7509_v48  ;;  %v2758_v8 = vpop.f32.mrb[119].mxu0 }
 0x1f7   : > { %v4258_v26 = vpop.f32.mrb[119].mxu1  ;;  %v7600_v36 = vadd.f32 %v2758_v8, %v7497_v9 }
 0x1f8   : > { %v4259_v12 = vadd.f32 %v4258_v26, %v4257_v42  ;;  %v2651_v17 = vadd.f32 %v4256_v3, %v7476_v63  ;;  %v3387_v43 = vpack.c.bf16 %v7597_v22, %v7591_v31 }
 0x1f9   : > { %v3382_v46 = vpack.c.bf16 %v7600_v36, %v7594_v23 }
 0x1fa   : > { %v2654_v41 = vadd.f32 %v4259_v12, %v7482_v39  ;;  %3451 = vst [vmem:[%s7573_s4 + $0x18] sm:$0xff] %v3387_v43  }
 0x1fb   : > { %3450 = vst [vmem:[%s7573_s4 + $0x10] sm:$0xff] %v3382_v46   ;;  %v4346_v18 = vpop.f32.mrb[120].mxu0 }
 0x1fc   : > { %v4260_v48 = vpop.f32.mrb[120].mxu1  ;;  %v7611_v15 = vadd.f32 %v4346_v18, %v7527_v45  ;;  %v2771_v20 = vpop.f32.mrb[121].mxu0 }
 0x1fd   : > { %v4261_v9 = vpop.f32.mrb[121].mxu1  ;;  %v7614_v4 = vadd.f32 %v2771_v20, %v7515_v38  ;;  %v4347_v30 = vpop.f32.mrb[122].mxu0 }
 0x1fe   : > { %v4262_v63 = vadd.f32 %v4261_v9, %v4260_v48  ;;  %v4263_v14 = vpop.f32.mrb[122].mxu1  ;;  %v7617_v34 = vadd.f32 %v4347_v30, %v7533_v1  ;;  %v2774_v24 = vpop.f32.mrb[123].mxu0 }
 0x1ff   : > { %v4264_v39 = vpop.f32.mrb[123].mxu1  ;;  %v7620_v28 = vadd.f32 %v2774_v24, %v7521_v16 }
 0x200   : > { %v4265_v27 = vadd.f32 %v4264_v39, %v4263_v14  ;;  %v2659_v45 = vadd.f32 %v4262_v63, %v7488_v50  ;;  %v3397_v37 = vpack.c.bf16 %v7617_v34, %v7611_v15 }
 0x201   : > { %v3392_v38 = vpack.c.bf16 %v7620_v28, %v7614_v4 }
 0x202   : > { %v2662_v56 = vadd.f32 %v4265_v27, %v7494_v35  ;;  %3453 = vst [vmem:[%s7573_s4 + $0x28] sm:$0xff] %v3397_v37  }
 0x203   : > { %3452 = vst [vmem:[%s7573_s4 + $0x20] sm:$0xff] %v3392_v38   ;;  %v4350_v19 = vpop.f32.mrb[124].mxu0 }
 0x204   : > { %v4266_v1 = vpop.f32.mrb[124].mxu1  ;;  %v7631_v13 = vadd.f32 %v4350_v19, %v7551_v44  ;;  %v2787_v49 = vpop.f32.mrb[125].mxu0 }
 0x205   : > { %v4267_v16 = vpop.f32.mrb[125].mxu1  ;;  %v7634_v33 = vadd.f32 %v2787_v49, %v7539_v54  ;;  %v4351_v47 = vpop.f32.mrb[126].mxu0 }
 0x206   : > { %v4268_v50 = vadd.f32 %v4267_v16, %v4266_v1  ;;  %v4269_v21 = vpop.f32.mrb[126].mxu1  ;;  %v7637_v55 = vadd.f32 %v4351_v47, %v7557_v5  ;;  %v2790_v29 = vpop.f32.mrb[127].mxu0 }
 0x207   : > { %v4270_v35 = vpop.f32.mrb[127].mxu1  ;;  %v7640_v42 = vadd.f32 %v2790_v29, %v7545_v10 }
 0x208   : > { %v4271_v3 = vadd.f32 %v4270_v35, %v4269_v21  ;;  %v2667_v44 = vadd.f32 %v4268_v50, %v7500_v25  ;;  %v3407_v0 = vpack.c.bf16 %v7637_v55, %v7631_v13 }
 0x209   : > { %v3402_v54 = vpack.c.bf16 %v7640_v42, %v7634_v33 }
 0x20a   : > { %v2670_v26 = vadd.f32 %v4271_v3, %v7506_v60  ;;  %3455 = vst [vmem:[%s7573_s4 + $0x38] sm:$0xff] %v3407_v0  }
 0x20b   : > { %3454 = vst [vmem:[%s7573_s4 + $0x30] sm:$0xff] %v3402_v54   ;;  %v4354_v8 = vpop.f32.mrb[128].mxu0 }
 0x20c   : > { %v4272_v5 = vpop.f32.mrb[128].mxu1  ;;  %v7650_v12 = vadd.f32 %v4354_v8, %v2651_v17  ;;  %v2803_v10 = vpop.f32.mrb[129].mxu0 }
 0x20d   : > { %v4273_v43 = vpop.f32.mrb[129].mxu1  ;;  %v7653_v25 = vadd.f32 %v2803_v10, %v7579_v61  ;;  %v4355_v18 = vpop.f32.mrb[130].mxu0 }
 0x20e   : > { %v4274_v46 = vadd.f32 %v4273_v43, %v4272_v5  ;;  %v4275_v48 = vpop.f32.mrb[130].mxu1  ;;  %v7655_v9 = vadd.f32 %v4355_v18, %v2654_v41  ;;  %v2806_v60 = vpop.f32.mrb[131].mxu0 }
 0x20f   : > { %v4276_v20 = vpop.f32.mrb[131].mxu1  ;;  %v7658_v14 = vadd.f32 %v2806_v60, %v7586_v32 }
 0x210   : > { %v4277_v63 = vadd.f32 %v4276_v20, %v4275_v48  ;;  %v2675_v17 = vadd.f32 %v4274_v46, %v7512_v2  ;;  %v3417_v30 = vpack.c.bf16 %v7655_v9, %v7650_v12 }
 0x211   : > { %v3412_v39 = vpack.c.bf16 %v7658_v14, %v7653_v25 }
 0x212   : > { %v2678_v61 = vadd.f32 %v4277_v63, %v7518_v58  ;;  %3457 = vst [vmem:[%s7573_s4 + $0x48] sm:$0xff] %v3417_v30  }
 0x213   : > { %3456 = vst [vmem:[%s7573_s4 + $0x40] sm:$0xff] %v3412_v39   ;;  %v4358_v24 = vpop.f32.mrb[132].mxu0 }
 0x214   : > { %v4278_v41 = vpop.f32.mrb[132].mxu1  ;;  %v7668_v27 = vadd.f32 %v4358_v24, %v2667_v44  ;;  %v2819_v32 = vpop.f32.mrb[133].mxu0 }
 0x215   : > { %v4279_v37 = vpop.f32.mrb[133].mxu1  ;;  %v7670_v2 = vadd.f32 %v2819_v32, %v2659_v45  ;;  %v4359_v19 = vpop.f32.mrb[134].mxu0 }
 0x216   : > { %v4280_v38 = vadd.f32 %v4279_v37, %v4278_v41  ;;  %v4281_v1 = vpop.f32.mrb[134].mxu1  ;;  %v7672_v16 = vadd.f32 %v4359_v19, %v2670_v26  ;;  %v2822_v50 = vpop.f32.mrb[135].mxu0 }
 0x217   : > { %v4282_v49 = vpop.f32.mrb[135].mxu1  ;;  %v7674_v21 = vadd.f32 %v2822_v50, %v2662_v56 }
 0x218   : > { %v4283_v58 = vadd.f32 %v4282_v49, %v4281_v1  ;;  %v2683_v47 = vadd.f32 %v4280_v38, %v7524_v59  ;;  %v3427_v35 = vpack.c.bf16 %v7672_v16, %v7668_v27 }
 0x219   : > { %v3422_v29 = vpack.c.bf16 %v7674_v21, %v7670_v2 }
 0x21a   : > { %v2686_v45 = vadd.f32 %v4283_v58, %v7530_v52  ;;  %3459 = vst [vmem:[%s7573_s4 + $0x58] sm:$0xff] %v3427_v35  }
 0x21b   : > { %3458 = vst [vmem:[%s7573_s4 + $0x50] sm:$0xff] %v3422_v29   ;;  %v4362_v44 = vpop.f32.mrb[136].mxu0 }
 0x21c   : > { %v4284_v3 = vpop.f32.mrb[136].mxu1  ;;  %v7684_v0 = vadd.f32 %v4362_v44, %v2683_v47  ;;  %v2835_v56 = vpop.f32.mrb[137].mxu0 }
 0x21d   : > { %v4285_v54 = vpop.f32.mrb[137].mxu1  ;;  %v7686_v59 = vadd.f32 %v2835_v56, %v2675_v17  ;;  %v4363_v8 = vpop.f32.mrb[138].mxu0 }
 0x21e   : > { %v4286_v26 = vadd.f32 %v4285_v54, %v4284_v3  ;;  %v4287_v5 = vpop.f32.mrb[138].mxu1  ;;  %v7688_v43 = vadd.f32 %v4363_v8, %v2686_v45  ;;  %v2838_v46 = vpop.f32.mrb[139].mxu0 }
 0x21f   : > { %v4288_v10 = vpop.f32.mrb[139].mxu1  ;;  %v7690_v48 = vadd.f32 %v2838_v46, %v2678_v61 }
 0x220   : > { %v4289_v52 = vadd.f32 %v4288_v10, %v4287_v5  ;;  %v2691_v18 = vadd.f32 %v4286_v26, %v7536_v62  ;;  %v3437_v20 = vpack.c.bf16 %v7688_v43, %v7684_v0 }
 0x221   : > { %v3432_v60 = vpack.c.bf16 %v7690_v48, %v7686_v59 }
 0x222   : > { %v2694_v63 = vadd.f32 %v4289_v52, %v7542_v7  ;;  %3461 = vst [vmem:[%s7573_s4 + $0x68] sm:$0xff] %v3437_v20  }
 0x223   : > { %3460 = vst [vmem:[%s7573_s4 + $0x60] sm:$0xff] %v3432_v60   ;;  %v4366_v30 = vpop.f32.mrb[140].mxu0 }
 0x224   : > { %v4290_v17 = vpop.f32.mrb[140].mxu1  ;;  %v2851_v41 = vpop.f32.mrb[141].mxu0 }
 0x225   : > { %v4291_v39 = vpop.f32.mrb[141].mxu1  ;;  %v7700_v24 = vadd.f32 %v2851_v41, %v2691_v18  ;;  %v4367_v37 = vpop.f32.mrb[142].mxu0 }
 0x226   : > { %v4292_v61 = vadd.f32 %v4291_v39, %v4290_v17  ;;  %v4293_v62 = vpop.f32.mrb[142].mxu1  ;;  %v2854_v38 = vpop.f32.mrb[143].mxu0 }
 0x227   : > { %v4294_v32 = vpop.f32.mrb[143].mxu1  ;;  %v7703_v49 = vadd.f32 %v2854_v38, %v2694_v63 }
 0x228   : > { %v2699_v1 = vadd.f32 %v4292_v61, %v7548_v53  ;;  %v4295_v19 = vadd.f32 %v4294_v32, %v4293_v62  ;;  %v4539_v53 = vmov (!%p3332_p4), 0.0  }
 0x229   : > { %v3442_v58 = vpack.c.bf16 %v7703_v49, %v7700_v24  ;;  %3030 = vst [vmem:[%s7828_s3] sm:$0x3] (!%p3332_p4), %v4539_v53 }
 0x22a   : > { %v7705_v7 = vadd.f32 %v4366_v30, %v2699_v1  ;;  %v2702_v50 = vadd.f32 %v4295_v19, %v7554_v57  ;;  %3029 = sbr.rel (%p3332_p4) target bundleno = 561 (0x231), region = 32 }
 0x22b   : > { %3462 = vst [vmem:[%s7573_s4 + $0x70] sm:$0xff] %v3442_v58  }
 0x22c   : > { %v7710_v47 = vadd.f32 %v4367_v37, %v2702_v50 }
 0x22e   : > { %v3447_v35 = vpack.c.bf16 %v7710_v47, %v7705_v7 }
 0x230   : > { %3463 = vst [vmem:[%s7573_s4 + $0x78] sm:$0xff] %v3447_v35  }
 0x231 PF: > { %v3031_v57 = vadd.f32 %v7576_v11, %v7563_v51  ;;  %v3068_v3 = vmul.f32 %v7563_v51, %v7563_v51  ;;  %v3069_v44 = vmul.f32 %v7576_v11, %v7576_v11  ;;  %v3070_v56 = vmul.f32 %v7560_v6, %v7560_v6 }
 0x232   : > { %v3071_v5 = vmul.f32 %v7566_v40, %v7566_v40  ;;  %v3072_v46 = vmul.f32 %v7594_v23, %v7594_v23  ;;  %v3073_v11 = vmul.f32 %v7600_v36, %v7600_v36  ;;  %v3074_v20 = vmul.f32 %v7591_v31, %v7591_v31 }
 0x233   : > { %v3032_v29 = vadd.f32 %v3031_v57, %v7560_v6  ;;  %v3100_v8 = vadd.f32 %v3069_v44, %v3068_v3  ;;  %v3075_v63 = vmul.f32 %v7597_v22, %v7597_v22  ;;  %v3076_v30 = vmul.f32 %v7614_v4, %v7614_v4 }
 0x234   : > { %v3077_v41 = vmul.f32 %v7620_v28, %v7620_v28  ;;  %v3078_v62 = vmul.f32 %v7611_v15, %v7611_v15  ;;  %v3079_v32 = vmul.f32 %v7617_v34, %v7617_v34  ;;  %v3080_v1 = vmul.f32 %v7634_v33, %v7634_v33 }
 0x235   : > { %v3033_v45 = vadd.f32 %v3032_v29, %v7566_v40  ;;  %v3101_v51 = vadd.f32 %v3100_v8, %v3070_v56  ;;  %v3081_v50 = vmul.f32 %v7640_v42, %v7640_v42  ;;  %v3082_v35 = vmul.f32 %v7631_v13, %v7631_v13 }
 0x236   : > { %v3083_v57 = vmul.f32 %v7637_v55, %v7637_v55  ;;  %v3085_v44 = vmul.f32 %v7658_v14, %v7658_v14  ;;  %v3086_v56 = vmul.f32 %v7650_v12, %v7650_v12  ;;  %vm3138_vm11 = vcmask 1040384  }
 0x237   : > { %v3034_v54 = vadd.f32 %v3033_v45, %v7594_v23  ;;  %v3102_v18 = vadd.f32 %v3101_v51, %v3071_v5  ;;  %v3084_v45 = vmul.f32 %v7653_v25, %v7653_v25  ;;  %v3087_v5 = vmul.f32 %v7655_v9, %v7655_v9 }
 0x238   : > { %v3089_v51 = vmul.f32 %v7674_v21, %v7674_v21 }
 0x239   : > { %v3035_v26 = vadd.f32 %v3034_v54, %v7600_v36  ;;  %v3103_v60 = vadd.f32 %v3102_v18, %v3072_v46 }
 0x23b   : > { %v3036_v10 = vadd.f32 %v3035_v26, %v7591_v31  ;;  %v3104_v17 = vadd.f32 %v3103_v60, %v3073_v11  ;;  %v3090_v11 = vmul.f32 %v7668_v27, %v7668_v27  ;;  %v3092_v60 = vmul.f32 %v7686_v59, %v7686_v59 }
 0x23d   : > { %v3037_v52 = vadd.f32 %v3036_v10, %v7597_v22  ;;  %v3105_v39 = vadd.f32 %v3104_v17, %v3074_v20  ;;  %v3088_v10 = vmul.f32 %v7670_v2, %v7670_v2 }
 0x23f   : > { %v3038_v6 = vadd.f32 %v3037_v52, %v7614_v4  ;;  %v3106_v61 = vadd.f32 %v3105_v39, %v3075_v63  ;;  %v3093_v63 = vmul.f32 %v7690_v48, %v7690_v48  ;;  %v3095_v39 = vmul.f32 %v7688_v43, %v7688_v43 }
 0x241   : > { %v3039_v40 = vadd.f32 %v3038_v6, %v7620_v28  ;;  %v3107_v37 = vadd.f32 %v3106_v61, %v3076_v30  ;;  %v3091_v6 = vmul.f32 %v7672_v16, %v7672_v16 }
 0x243   : > { %v3040_v23 = vadd.f32 %v3039_v40, %v7611_v15  ;;  %v3108_v38 = vadd.f32 %v3107_v37, %v3077_v41  ;;  %v3096_v41 = vmul.f32 %v7700_v24, %v7700_v24  ;;  %v3098_v37 = vmul.f32 %v7705_v7, %v7705_v7 }
 0x245   : > { %v3041_v36 = vadd.f32 %v3040_v23, %v7617_v34  ;;  %v3109_v19 = vadd.f32 %v3108_v38, %v3078_v62  ;;  %v3094_v23 = vmul.f32 %v7684_v0, %v7684_v0 }
 0x247   : > { %v3042_v31 = vadd.f32 %v3041_v36, %v7634_v33  ;;  %v3110_v58 = vadd.f32 %v3109_v19, %v3079_v32 }
 0x249   : > { %v3043_v22 = vadd.f32 %v3042_v31, %v7640_v42  ;;  %v3111_v53 = vadd.f32 %v3110_v58, %v3080_v1  ;;  %v3097_v31 = vmul.f32 %v7703_v49, %v7703_v49 }
 0x24b   : > { %v3044_v4 = vadd.f32 %v3043_v22, %v7631_v13  ;;  %v3112_v29 = vadd.f32 %v3111_v53, %v3081_v50 }
 0x24d   : > { %v3045_v28 = vadd.f32 %v3044_v4, %v7637_v55  ;;  %v3113_v3 = vadd.f32 %v3112_v29, %v3082_v35 }
 0x24f   : > { %v3046_v15 = vadd.f32 %v3045_v28, %v7653_v25  ;;  %v3114_v54 = vadd.f32 %v3113_v3, %v3083_v57 }
 0x251   : > { %v3047_v34 = vadd.f32 %v3046_v15, %v7658_v14  ;;  %v3115_v26 = vadd.f32 %v3114_v54, %v3084_v45 }
 0x253   : > { %v3048_v33 = vadd.f32 %v3047_v34, %v7650_v12  ;;  %v3116_v8 = vadd.f32 %v3115_v26, %v3085_v44 }
 0x255   : > { %v3049_v42 = vadd.f32 %v3048_v33, %v7655_v9  ;;  %v3117_v46 = vadd.f32 %v3116_v8, %v3086_v56 }
 0x257   : > { %v3050_v13 = vadd.f32 %v3049_v42, %v7670_v2  ;;  %v3118_v52 = vadd.f32 %v3117_v46, %v3087_v5 }
 0x259   : > { %v3051_v55 = vadd.f32 %v3050_v13, %v7674_v21  ;;  %v3119_v18 = vadd.f32 %v3118_v52, %v3088_v10 }
 0x25b   : > { %v3052_v25 = vadd.f32 %v3051_v55, %v7668_v27  ;;  %v3120_v20 = vadd.f32 %v3119_v18, %v3089_v51 }
 0x25d   : > { %v3053_v14 = vadd.f32 %v3052_v25, %v7672_v16  ;;  %v3121_v40 = vadd.f32 %v3120_v20, %v3090_v11 }
 0x25f   : > { %v3054_v12 = vadd.f32 %v3053_v14, %v7686_v59  ;;  %v3122_v17 = vadd.f32 %v3121_v40, %v3091_v6 }
 0x261   : > { %v3055_v9 = vadd.f32 %v3054_v12, %v7690_v48  ;;  %v3123_v30 = vadd.f32 %v3122_v17, %v3092_v60 }
 0x263   : > { %v3056_v2 = vadd.f32 %v3055_v9, %v7684_v0  ;;  %v3124_v36 = vadd.f32 %v3123_v30, %v3093_v63 }
 0x265   : > { %v3057_v21 = vadd.f32 %v3056_v2, %v7688_v43  ;;  %v3125_v61 = vadd.f32 %v3124_v36, %v3094_v23  ;;  %v3099_v43 = vmul.f32 %v7710_v47, %v7710_v47 }
 0x267   : > { %v3058_v27 = vadd.f32 %v3057_v21, %v7700_v24  ;;  %v3126_v62 = vadd.f32 %v3125_v61, %v3095_v39 }
 0x269   : > { %v3059_v16 = vadd.f32 %v3058_v27, %v7703_v49  ;;  %v3127_v22 = vadd.f32 %v3126_v62, %v3096_v41 }
 0x26b   : > { %v3060_v59 = vadd.f32 %v3059_v16, %v7705_v7  ;;  %v3128_v38 = vadd.f32 %v3127_v22, %v3097_v31  ;;  %v3137_v7 = vld [vmem:[%s7828_s3] sm:$0x3] }
 0x26d   : > { %v3061_v48 = vadd.f32 %v3060_v59, %v7710_v47  ;;  %v3129_v1 = vadd.f32 %v3128_v38, %v3098_v37 }
 0x26f   : > { %v3062_v0 = vrot.slane %v3061_v48, 4  ;;  %v3130_v24 = vadd.f32 %v3129_v1, %v3099_v43 }
 0x271   : > { %v3063_v32 = vadd.f32 %v3062_v0, %v3061_v48  ;;  %v3131_v28 = vrot.slane %v3130_v24, 4 }
 0x273   : > { %v3064_v4 = vrot.slane %v3063_v32, 2  ;;  %v3132_v50 = vadd.f32 %v3131_v28, %v3130_v24 }
 0x275   : > { %v3065_v19 = vadd.f32 %v3064_v4, %v3063_v32  ;;  %v3133_v15 = vrot.slane %v3132_v50, 2 }
 0x277   : > { %v3066_v58 = vrot.slane %v3065_v19, 1  ;;  %v3134_v49 = vadd.f32 %v3133_v15, %v3132_v50 }
 0x279   : > { %v3067_v35 = vadd.f32 %v3066_v58, %v3065_v19  ;;  %v3135_v53 = vrot.slane %v3134_v49, 1 }
 0x27b   : > { %v3136_v34 = vadd.f32 %v3135_v53, %v3134_v49 }
 0x27d   : > { %v3139_v57 = vsel %vm3138_vm11, %v3067_v35, %v3136_v34 }
 0x27e   : > { %v3140_v47 = vadd.f32 %v3139_v57, %v3137_v7 }
 0x280   : > { %3141 = vst [vmem:[%s7828_s3] sm:$0x3] %v3140_v47 }
 0x281 PF: > { %s14_s12 = sadd.s32 1, %s4536_s12  }
 0x282   : > { %p11_p5 = scmp.ge.s32.totalorder %s14_s12, 4  }
 0x284   :  { %13 = sbr.rel (!%p11_p5) target bundleno = 1 (0x1), region = 70 }

// kernel: densenet_forward.19
= control target key start
LH: loop header
LB: loop body
LE: loop exit
PB: predicated region body
PF: predicated region fallthrough
CT: control target
= control target key end

     0   :  { %v339_v12 = vmov 1966171168   ;;  %v37_v14 = vlaneseq  ;;  %v340_v52 = vmov 0.0   ;;  %vm249_vm0 = vcmask 1040384   ;;  %s430_s4 = inlined_call_operand.vmem [shape: bf16[128,128], index: 4, kind: input, shape index: {}]   ;;  %s431_s1 = inlined_call_operand.vmem [shape: f32[2,128], index: 1, kind: input, shape index: {}]   ;;  %s432_s0 = inlined_call_operand.vmem [shape: bf16[32,128], index: 0, kind: input, shape index: {}]   ;;  %s433_s2 = inlined_call_operand.vmem [shape: f32[1,128], index: 2, kind: input, shape index: {}]   ;;  %s434_s3 = inlined_call_operand.vmem [shape: f32[1,128], index: 3, kind: input, shape index: {}]   ;;  %s435_s6 = inlined_call_operand.vmem [shape: f32[2,128], index: 6, kind: output, shape index: {1}]   ;;  %s436_s5 = inlined_call_operand.vmem [shape: bf16[32,128], index: 5, kind: output, shape index: {0}]  }
   0x1   :  { %v329_v0 = vld [vmem:[%s430_s4] sm:$0xff]   ;;  %v330_v1 = vld [vmem:[%s430_s4 + $0x8] sm:$0xff]   ;;  %v331_v2 = vld [vmem:[%s430_s4 + $0x10] sm:$0xff]   ;;  %v35_v13 = vunpack.c.l.s4 %v339_v12  ;;  %225 = vst [vmem:[%s435_s6] sm:$0x3] %v340_v52 }
   0x2   :  { %307 = vmatprep.subr.bf16.mxu0 %v329_v0  ;;  %v332_v3 = vld [vmem:[%s430_s4 + $0x18] sm:$0xff]   ;;  %v23_v4 = vld [vmem:[%s431_s1] sm:$0x3]  ;;  %v334_v10 = vld [vmem:[%s430_s4 + $0x28] sm:$0xff]   ;;  %v38_v17 = vshrl.u32 %v37_v14, 7 }
   0x3   :  { %308 = vmatpush3.bf16.msra.mxu0 %v329_v0  ;;  %v24_v5 = vmul.f32 0.03125, %v23_v4  ;;  %v333_v7 = vld [vmem:[%s430_s4 + $0x20] sm:$0xff]   ;;  %v335_v15 = vld [vmem:[%s430_s4 + $0x30] sm:$0xff]   ;;  %v36_v16 = vunpack.c.0.s8 %v35_v13  ;;  %v336_v18 = vld [vmem:[%s430_s4 + $0x38] sm:$0xff]  }
   0x4   :  { %309 = vmatprep.subr.bf16.mxu0 %v330_v1  ;;  %v30_v23 = vld [vmem:[%s433_s2] sm:$0x1]  ;;  %v295_v25 = vld [vmem:[%s432_s0 + $0x8] sm:$0xff]   ;;  %v65_v27 = vsub.s32 0, %v38_v17 }
   0x5   :  { %v25_v6 = vmul.f32 %v24_v5, %v24_v5  ;;  %v39_v19 = vsub.s32 %v36_v16, %v38_v17  ;;  %v278_v24 = vld [vmem:[%s432_s0] sm:$0xff]   ;;  %v283_v31 = vunpack.c.l.bf16 %v295_v25  ;;  %v284_v33 = vunpack.c.h.bf16 %v295_v25 }
   0x6   :  { %v279_v29 = vunpack.c.l.bf16 %v278_v24  ;;  %v280_v30 = vunpack.c.h.bf16 %v278_v24  ;;  %v51_v32 = vld [vmem:[%s434_s3] sm:$0x1] }
   0x7   :  { %310 = vmatpush3.bf16.msra.mxu0 %v330_v1  ;;  %v27_v8 = vrot.slane %v25_v6, 7 }
   0x8   :  { %311 = vmatprep.subr.bf16.mxu0 %v331_v2  ;;  %v248_v17 = vld [vmem:[%s435_s6] sm:$0x3] }
   0x9   :  { %v29_v9 = vsub.f32 %v24_v5, %v27_v8 }
   0xb   :  { %312 = vmatpush3.bf16.msra.mxu0 %v331_v2  ;;  %v31_v11 = vadd.f32 1e-05, %v29_v9 }
   0xc   :  { %313 = vmatprep.subr.bf16.mxu0 %v332_v3 }
   0xd   :  { %337 = vrsqrt.f32 %v31_v11 }
   0xf   :  { %314 = vmatpush3.bf16.msra.mxu0 %v332_v3 }
  0x10   :  { %315 = vmatprep.subr.bf16.mxu0 %v333_v7 }
  0x13   :  { %316 = vmatpush3.bf16.msra.mxu0 %v333_v7 }
  0x14   :  { %317 = vmatprep.subr.bf16.mxu0 %v334_v10 }
  0x17   :  { %318 = vmatpush3.bf16.msra.mxu0 %v334_v10  ;;  %v338_v20 = vpop.eup %337 }
  0x18   :  { %319 = vmatprep.subr.bf16.mxu0 %v335_v15  ;;  %v40_v21 = vrot.slane %v338_v20, %v39_v19 }
  0x1a   :  { %v41_v22 = vcombine.high %v40_v21, %v40_v21 }
  0x1b   :  { %320 = vmatpush3.bf16.msra.mxu0 %v335_v15 }
  0x1c   :  { %321 = vmatprep.subr.bf16.mxu0 %v336_v18  ;;  %v48_v26 = vrot.slane %v41_v22, %v39_v19 }
  0x1e   :  { %v50_v28 = vmul.f32 %v48_v26, %v30_v23 }
  0x1f   :  { %322 = vmatpush3.bf16.msra.mxu0 %v336_v18 }
  0x20   :  { %v52_v34 = vmul.f32 %v50_v28, %v24_v5  ;;  %v66_v35 = vrot.slane %v50_v28, %v65_v27 }
  0x22   :  { %v53_v36 = vsub.f32 %v51_v32, %v52_v34  ;;  %v68_v37 = vmul.f32 %v279_v29, %v66_v35  ;;  %v69_v38 = vmul.f32 %v280_v30, %v66_v35  ;;  %v70_v39 = vmul.f32 %v283_v31, %v66_v35 }
  0x23   :  { %v71_v40 = vmul.f32 %v284_v33, %v66_v35 }
  0x24   :  { %v76_v41 = vrot.slane %v53_v36, %v65_v27 }
  0x26   :  { %v78_v42 = vadd.f32 %v76_v41, %v68_v37  ;;  %v79_v43 = vadd.f32 %v76_v41, %v69_v38  ;;  %v80_v44 = vadd.f32 %v76_v41, %v70_v39  ;;  %v81_v45 = vadd.f32 %v76_v41, %v71_v40 }
  0x28   :  { %v82_v46 = vmax.f32 %v78_v42, 0.0  ;;  %v83_v47 = vmax.f32 %v79_v43, 0.0  ;;  %v84_v48 = vmax.f32 %v80_v44, 0.0  ;;  %v85_v49 = vmax.f32 %v81_v45, 0.0 }
  0x2a   :  { %v86_v50 = vpack.c.bf16 %v83_v47, %v82_v46  ;;  %v87_v51 = vpack.c.bf16 %v85_v49, %v84_v48 }
  0x2c   :  { %323 = vmatprep.mubr.bf16.mxu0 %v86_v50 }
  0x2d   :  { %324 = vmatmul.mubr.bf16.vlgmr.msra.gmra.mrb[0].mxu0 %v87_v51 }
 0x100   :  { %v325_v53 = vpop.f32.mrb[0].mxu0 }
 0x101   :  { %v186_v54 = vpop.f32.mrb[1].mxu0  ;;  %v237_v62 = vmul.f32 %v325_v53, %v325_v53 }
 0x102   :  { %v326_v55 = vpop.f32.mrb[2].mxu0  ;;  %v235_v58 = vmul.f32 %v186_v54, %v186_v54 }
 0x103   :  { %v293_v56 = vpack.c.bf16 %v326_v55, %v325_v53  ;;  %v189_v57 = vpop.f32.mrb[3].mxu0  ;;  %v238_v1 = vmul.f32 %v326_v55, %v326_v55 }
 0x104   :  { %v288_v59 = vpack.c.bf16 %v189_v57, %v186_v54  ;;  %v226_v60 = vadd.f32 %v189_v57, %v186_v54  ;;  %v236_v61 = vmul.f32 %v189_v57, %v189_v57 }
 0x105   :  { %296 = vst [vmem:[%s436_s5 + $0x8] sm:$0xff] %v293_v56  }
 0x106   :  { %289 = vst [vmem:[%s436_s5] sm:$0xff] %v288_v59   ;;  %v227_v63 = vadd.f32 %v325_v53, %v226_v60  ;;  %v239_v0 = vadd.f32 %v236_v61, %v235_v58 }
 0x108   :  { %v228_v2 = vadd.f32 %v326_v55, %v227_v63  ;;  %v240_v3 = vadd.f32 %v239_v0, %v237_v62 }
 0x10a   :  { %v229_v4 = vrot.slane %v228_v2, 4  ;;  %v241_v5 = vadd.f32 %v240_v3, %v238_v1 }
 0x10c   :  { %v230_v6 = vadd.f32 %v229_v4, %v228_v2  ;;  %v242_v7 = vrot.slane %v241_v5, 4 }
 0x10e   :  { %v231_v8 = vrot.slane %v230_v6, 2  ;;  %v243_v9 = vadd.f32 %v242_v7, %v241_v5 }
 0x110   :  { %v232_v10 = vadd.f32 %v231_v8, %v230_v6  ;;  %v244_v11 = vrot.slane %v243_v9, 2 }
 0x112   :  { %v233_v12 = vrot.slane %v232_v10, 1  ;;  %v245_v13 = vadd.f32 %v244_v11, %v243_v9 }
 0x114   :  { %v246_v14 = vrot.slane %v245_v13, 1  ;;  %v234_v15 = vadd.f32 %v233_v12, %v232_v10 }
 0x116   :  { %v247_v16 = vadd.f32 %v246_v14, %v245_v13 }
 0x118   :  { %v250_v18 = vsel %vm249_vm0, %v234_v15, %v247_v16 }
 0x119   :  { %v251_v19 = vadd.f32 %v250_v18, %v248_v17 }
 0x11b   :  { %252 = vst [vmem:[%s435_s6] sm:$0x3] %v251_v19 }

// kernel: densenet_forward.23
= control target key start
LH: loop header
LB: loop body
LE: loop exit
PB: predicated region body
PF: predicated region fallthrough
CT: control target
= control target key end

     0   :  { %v318_v1 = vmov 0.0   ;;  %vm319_vm0 = vmmov 0   ;;  %s411_s0 = inlined_call_operand.vmem [shape: bf16[32,128], index: 0, kind: input, shape index: {}]   ;;  %s412_s1 = inlined_call_operand.vmem [shape: f32[2,128], index: 1, kind: input, shape index: {}]   ;;  %s413_s2 = inlined_call_operand.vmem [shape: f32[1,128], index: 2, kind: input, shape index: {}]   ;;  %s414_s3 = inlined_call_operand.vmem [shape: f32[1,128], index: 3, kind: input, shape index: {}, may-alias: {3,5}]   ;;  %s415_s4 = inlined_call_operand.vmem [shape: bf16[128,128], index: 4, kind: input, shape index: {}]   ;;  %s416_s5 = inlined_call_operand.vmem [shape: f32[1,128], index: 5, kind: input, shape index: {}, may-alias: {3,5}]   ;;  %s417_s6 = inlined_call_operand.hbm [shape: f32[2,128], index: 6, kind: output, shape index: {}]  }
   0x1   :  { %v284_v0 = vld [vmem:[%s415_s4] sm:$0xff]   ;;  %260 = vmatprep.subr.bf16.mxu0 %v318_v1  ;;  %v285_v2 = vld [vmem:[%s415_s4 + $0x8] sm:$0xff]   ;;  %276 = vmatprep.mubr.msk.bf16.mxu0 %vm319_vm0, %v318_v1  ;;  %v286_v3 = vld [vmem:[%s415_s4 + $0x10] sm:$0xff]  }
   0x2   :  { %261 = vmatpush3.bf16.msra.mxu0 %v284_v0  ;;  %v25_v4 = vld [vmem:[%s412_s1] sm:$0x3]  ;;  %v287_v6 = vld [vmem:[%s415_s4 + $0x18] sm:$0xff]  }
   0x3   :  { %262 = vmatprep.subr.bf16.mxu0 %v318_v1  ;;  %v26_v5 = vmul.f32 0.03125, %v25_v4 }
   0x6   :  { %263 = vmatpush3.bf16.msra.mxu0 %v285_v2 }
   0x7   :  { %264 = vmatprep.subr.bf16.mxu0 %v318_v1 }
   0xa   :  { %265 = vmatpush3.bf16.msra.mxu0 %v286_v3 }
   0xb   :  { %11 = vsyncpa [#allocation3], 0  ;;  %266 = vmatprep.subr.bf16.mxu0 %v318_v1  ;;  %v27_v7 = vmul.f32 %v26_v5, %v26_v5  ;;  %v288_v9 = vld [vmem:[%s415_s4 + $0x20] sm:$0xff]   ;;  %v289_v12 = vld [vmem:[%s415_s4 + $0x28] sm:$0xff]   ;;  %v320_v13 = vmov 1966171168   ;;  %v39_v15 = vlaneseq }
   0xc   :  { %v37_v14 = vunpack.c.l.s4 %v320_v13  ;;  %v290_v16 = vld [vmem:[%s415_s4 + $0x30] sm:$0xff]   ;;  %v291_v19 = vld [vmem:[%s415_s4 + $0x38] sm:$0xff]   ;;  %v32_v24 = vld [vmem:[%s413_s2] sm:$0x1]  ;;  %vm104_vm1 = vcmask 1040384  }
   0xd   :  { %v29_v8 = vrot.slane %v27_v7, 7  ;;  %v40_v18 = vshrl.u32 %v39_v15, 7  ;;  %v243_v25 = vld [vmem:[%s411_s0] sm:$0xff]   ;;  %v250_v26 = vld [vmem:[%s411_s0 + $0x8] sm:$0xff]  }
   0xe   :  { %267 = vmatpush3.bf16.msra.mxu0 %v287_v6  ;;  %v38_v17 = vunpack.c.0.s8 %v37_v14  ;;  %v244_v30 = vunpack.c.l.bf16 %v243_v25  ;;  %v245_v31 = vunpack.c.h.bf16 %v243_v25  ;;  %v248_v32 = vunpack.c.l.bf16 %v250_v26  ;;  %v53_v33 = vld [vmem:[%s414_s3] sm:$0x1]  ;;  %s321_s3 = smov [#allocation2]  }
   0xf   :  { %268 = vmatprep.subr.bf16.mxu0 %v318_v1  ;;  %v31_v10 = vsub.f32 %v26_v5, %v29_v8  ;;  %v63_v28 = vsub.s32 0, %v40_v18  ;;  %v249_v34 = vunpack.c.h.bf16 %v250_v26  ;;  %s225_s21 = sshll.u32 %s321_s3, 4  ;;  %s226_s21 = int_to_ptr.vmem [resolvable:$true] %s225_s21 }
  0x10   :  { %v41_v20 = vsub.s32 %v38_v17, %v40_v18  ;;  %s294_s22 = scalar_lea.vmem %s226_s21, 32  ;;  %p299_p1 = scmp.lt.s32.totalorder %s226_s21, %s226_s21 }
  0x11   :  { %v33_v11 = vadd.f32 1e-05, %v31_v10  ;;  %p295_p0 = scmp.ne.s32.totalorder %s226_s21, %s294_s22  ;;  %p300_p2 = scmp.lt.s32.totalorder %s294_s22, %s294_s22 }
  0x12   :  { %269 = vmatpush3.bf16.msra.mxu0 %v288_v9 }
  0x13   :  { %270 = vmatprep.subr.bf16.mxu0 %v318_v1  ;;  %292 = vrsqrt.f32 %v33_v11  ;;  %p301_p3 = por %p300_p2, %p299_p1 }
  0x15   :  { %p302_p4 = pnand %p301_p3, %p295_p0 }
  0x16   :  { %271 = vmatpush3.bf16.msra.mxu0 %v289_v12 }
  0x17   :  { %272 = vmatprep.subr.bf16.mxu0 %v318_v1 }
  0x1a   :  { %273 = vmatpush3.bf16.msra.mxu0 %v290_v16 }
  0x1b   :  { %274 = vmatprep.subr.bf16.mxu0 %v318_v1 }
  0x1d   :  { %v293_v21 = vpop.eup %292 }
  0x1e   :  { %275 = vmatpush3.bf16.msra.mxu0 %v291_v19  ;;  %v42_v22 = vrot.slane %v293_v21, %v41_v20 }
  0x20   :  { %v43_v23 = vcombine.high %v42_v22, %v42_v22 }
  0x22   :  { %v50_v27 = vrot.slane %v43_v23, %v41_v20 }
  0x24   :  { %v52_v29 = vmul.f32 %v50_v27, %v32_v24 }
  0x26   :  { %v54_v35 = vmul.f32 %v52_v29, %v26_v5  ;;  %v64_v36 = vrot.slane %v52_v29, %v63_v28  ;;  %v233_v5 = vld [vmem:[%s416_s5] ss:$0 sm:$0xff] }
  0x28   :  { %v55_v37 = vsub.f32 %v53_v33, %v54_v35  ;;  %v66_v38 = vmul.f32 %v244_v30, %v64_v36  ;;  %v67_v39 = vmul.f32 %v245_v31, %v64_v36  ;;  %v90_v40 = vmul.f32 %v248_v32, %v64_v36 }
  0x29   :  { %v91_v41 = vmul.f32 %v249_v34, %v64_v36 }
  0x2a   :  { %v72_v42 = vrot.slane %v55_v37, %v63_v28 }
  0x2c   :  { %v74_v43 = vadd.f32 %v72_v42, %v66_v38  ;;  %v75_v44 = vadd.f32 %v72_v42, %v67_v39  ;;  %v92_v45 = vadd.f32 %v90_v40, %v72_v42  ;;  %v93_v46 = vadd.f32 %v91_v41, %v72_v42 }
  0x2e   :  { %v76_v47 = vmax.f32 %v74_v43, 0.0  ;;  %v77_v48 = vmax.f32 %v75_v44, 0.0  ;;  %v94_v49 = vmax.f32 %v92_v45, 0.0  ;;  %v95_v50 = vmax.f32 %v93_v46, 0.0 }
  0x30   :  { %v78_v51 = vadd.f32 %v77_v48, %v76_v47  ;;  %v96_v52 = vadd.f32 %v95_v50, %v94_v49 }
  0x32   :  { %v79_v53 = vrot.slane %v78_v51, 4  ;;  %v97_v54 = vrot.slane %v96_v52, 4 }
  0x34   :  { %v80_v55 = vadd.f32 %v79_v53, %v78_v51  ;;  %v98_v56 = vadd.f32 %v97_v54, %v96_v52 }
  0x36   :  { %v81_v57 = vrot.slane %v80_v55, 2  ;;  %v99_v58 = vrot.slane %v98_v56, 2 }
  0x38   :  { %v82_v59 = vadd.f32 %v81_v57, %v80_v55  ;;  %v100_v60 = vadd.f32 %v99_v58, %v98_v56 }
  0x3a   :  { %v83_v61 = vrot.slane %v82_v59, 1  ;;  %v101_v62 = vrot.slane %v100_v60, 1 }
  0x3c   :  { %v84_v63 = vadd.f32 %v83_v61, %v82_v59  ;;  %v102_v0 = vadd.f32 %v101_v62, %v100_v60 }
  0x3e   :  { %v85_v1 = vmul.f32 0.0625, %v84_v63  ;;  %v103_v2 = vmul.f32 0.0625, %v102_v0 }
  0x40   :  { %v105_v3 = vsel %vm104_vm1, %v85_v1, %v103_v2 }
  0x41   :  { %v106_v4 = vpack.c.bf16 %v105_v3, %v105_v3 }
  0x43   :  { %277 = vmatmul.mubr.bf16.vlgmr.msra.gmra.mrb[0].mxu0 %v106_v4 }
 0x116   :  { %v212_v6 = vpop.f32.mrb[0].mxu0 }
 0x117   :  { %v213_v7 = vadd.f32 %v233_v5, %v212_v6  ;;  %v278_v8 = vpop.f32.mrb[1].mxu0 }
 0x118   :  { %v215_v9 = vpop.f32.mrb[2].mxu0 }
 0x119   :  { %218 = vst [vmem:[#allocation2] sm:$0x3] %v213_v7  ;;  %v279_v10 = vpop.f32.mrb[3].mxu0 }
 0x11a   :  { %305 = shalt.err (!%p302_p4)
}
 0x11b   :  { %s306_s5 = scalar_lea.hbm %s417_s6, 32 }
 0x11c   :  { %p307_p5 = scmp.ne.s32.totalorder %s417_s6, %s306_s5  ;;  %p310_p6 = scmp.lt.u32.totalorder %s306_s5, %s417_s6 }
 0x11e   :  { %p312_p7 = pnand %p310_p6, %p307_p5 }
 0x120   :  { %315 = shalt.err (!%p312_p7)
}
 0x121   :  { %228 = dma.vmem_to_hbm [thread:$0]  %s226_s21, 32, %s417_s6, [#allocation3]  }
 0x122   :  { %316 = dma.done.wait [#allocation3], 32  }
 0x123   :  { %317 = vsyncadd [#allocation3], 4294967264 }
 0x124   :  { %232 = vsyncpa [#allocation3], 1 }

// kernel: densenet_forward.20
= control target key start
LH: loop header
LB: loop body
LE: loop exit
PB: predicated region body
PF: predicated region fallthrough
CT: control target
= control target key end

     0   :  { %s1721_s24 = smov 0   ;;  %s2155_s0 = inlined_call_operand.vmem [shape: bf16[2,16,128], index: 0, kind: input, shape index: {}]   ;;  %s2156_s1 = inlined_call_operand.vmem [shape: f32[2,128], index: 1, kind: input, shape index: {}]   ;;  %s2157_s2 = inlined_call_operand.vmem [shape: f32[1,128], index: 2, kind: input, shape index: {}]   ;;  %s2158_s3 = inlined_call_operand.vmem [shape: f32[1,128], index: 3, kind: input, shape index: {}]   ;;  %s2159_s4 = inlined_call_operand.vmem [shape: bf16[1152,128], index: 4, kind: input, shape index: {}]   ;;  %s2160_s5 = inlined_call_operand.vmem [shape: bf16[2,16,128], index: 5, kind: input, shape index: {}, may-alias: {5,6}]   ;;  %s2161_s6 = inlined_call_operand.vmem [shape: bf16[2,16,128], index: 6, kind: output, shape index: {0}, may-alias: {5,6}]   ;;  %s2162_s7 = inlined_call_operand.vmem [shape: f32[2,128], index: 7, kind: output, shape index: {1}]  }
   0x1 LB: > { %s1727_s25 = sadd.s32 4294967295, %s1675_s24   ;;  %p1340_p0 = scmp.ge.s32.totalorder %s1675_s24, 1  ;;  %s1675_s24 = sphi %s1721_s24, %s18_s24  }
   0x2   : > { %p245_p1 = scmp.lt.s32.totalorder %s1675_s24, 3 }
   0x4   : > { %p246_p2 = pnand %p1340_p0, %p245_p1 }
   0x5   : > { %v1595_v0 = vld [vmem:[%s2159_s4 + $0x40] sm:$0xff] (!%p246_p2)   ;;  %v1599_v4 = vld [vmem:[%s2159_s4 + $0x48] sm:$0xff] (!%p246_p2)   ;;  %v1603_v8 = vld [vmem:[%s2159_s4 + $0x50] sm:$0xff] (!%p246_p2)   ;;  %p282_p3 = scmp.lt.s32.totalorder (!%p246_p2), %s1727_s25, 1  ;;  %v1677_v40 = vmov (!%p246_p2), 1966171168   ;;  %v316_v42 = vlaneseq (!%p246_p2) }
   0x6   : > { %249 = sbr.rel (%p246_p2) target bundleno = 362 (0x16a), region = 44  ;;  %v1596_v1 = vld [vmem:[%s2159_s4] sm:$0xff] (!%p246_p2)   ;;  %1466 = vmatprep.subr.bf16.mxu0 (!%p246_p2), %v1595_v0  ;;  %v1600_v5 = vld [vmem:[%s2159_s4 + $0x8] sm:$0xff] (!%p246_p2)   ;;  %v1604_v9 = vld [vmem:[%s2159_s4 + $0x10] sm:$0xff] (!%p246_p2)   ;;  %v314_v41 = vunpack.c.l.s4 (!%p246_p2), %v1677_v40  ;;  %p1421_p4 = scmp.ne.s32.totalorder (!%p246_p2), %s1727_s25, 0 }
   0x7   : > { %v1597_v2 = vld [vmem:[%s2159_s4 + $0xc0] sm:$0xff] (!%p246_p2)   ;;  %1467 = vmatpush3.bf16.msra.mxu0 (!%p246_p2), %v1596_v1  ;;  %v1601_v6 = vld [vmem:[%s2159_s4 + $0xc8] sm:$0xff] (!%p246_p2)   ;;  %v1605_v10 = vld [vmem:[%s2159_s4 + $0xd0] sm:$0xff] (!%p246_p2)   ;;  %v1838_v44 = vshrl.u32 (!%p246_p2), %v316_v42, 7 }
   0x8   : > { %v1598_v3 = vld [vmem:[%s2159_s4 + $0x80] sm:$0xff] (!%p246_p2)   ;;  %1488 = vmatprep.subr.bf16.mxu1 (!%p246_p2), %v1597_v2  ;;  %1468 = vmatprep.subr.bf16.mxu0 (!%p246_p2), %v1599_v4  ;;  %v1602_v7 = vld [vmem:[%s2159_s4 + $0x88] sm:$0xff] (!%p246_p2)   ;;  %v1606_v11 = vld [vmem:[%s2159_s4 + $0x90] sm:$0xff] (!%p246_p2)   ;;  %v315_v43 = vunpack.c.0.s8 (!%p246_p2), %v314_v41 }
   0x9   : > { %1489 = vmatpush3.bf16.msra.mxu1 (!%p246_p2), %v1598_v3  ;;  %v1607_v12 = vld [vmem:[%s2159_s4 + $0x58] sm:$0xff] (!%p246_p2)   ;;  %v1611_v16 = vld [vmem:[%s2159_s4 + $0x60] sm:$0xff] (!%p246_p2)   ;;  %v1615_v20 = vld [vmem:[%s2159_s4 + $0x68] sm:$0xff] (!%p246_p2)   ;;  %v353_v48 = vadd.s32 (!%p246_p2), 8, %v1838_v44  ;;  %v336_v53 = vsub.s32 (!%p246_p2), 0, %v1838_v44  ;;  %v356_v54 = vshra.s32 (!%p246_p2), %v1838_v44, 2 }
   0xa   : > { %1490 = vmatprep.subr.bf16.mxu1 (!%p246_p2), %v1601_v6  ;;  %v1608_v13 = vld [vmem:[%s2159_s4 + $0x18] sm:$0xff] (!%p246_p2)   ;;  %v1612_v17 = vld [vmem:[%s2159_s4 + $0x20] sm:$0xff] (!%p246_p2)   ;;  %v1616_v21 = vld [vmem:[%s2159_s4 + $0x28] sm:$0xff] (!%p246_p2)   ;;  %v318_v45 = vsub.s32 (!%p246_p2), %v315_v43, %v1838_v44  ;;  %v354_v56 = vand.u32 (!%p246_p2), 3, %v1838_v44  ;;  %vm375_vm6 = vcmp.lt.s32.totalorder (!%p246_p2), %v1838_v44, 4  ;;  %vm360_vm8 = vcmp.lt.s32.totalorder (!%p246_p2), %v1838_v44, 5 }
   0xb   : > { %1469 = vmatpush3.bf16.msra.mxu0 (!%p246_p2), %v1600_v5  ;;  %v1609_v14 = vld [vmem:[%s2159_s4 + $0xd8] sm:$0xff] (!%p246_p2)   ;;  %v1613_v18 = vld [vmem:[%s2159_s4 + $0xe0] sm:$0xff] (!%p246_p2)   ;;  %v1617_v22 = vld [vmem:[%s2159_s4 + $0xe8] sm:$0xff] (!%p246_p2)   ;;  %v357_v55 = vshra.s32 (!%p246_p2), %v353_v48, 2  ;;  %v355_v60 = vand.u32 (!%p246_p2), 3, %v353_v48  ;;  %vm1857_vm0 = vcmp.ge.s32.totalorder (!%p246_p2), %v356_v54, 1 }
   0xc   : > { %1470 = vmatprep.subr.bf16.mxu0 (!%p246_p2), %v1603_v8  ;;  %v1610_v15 = vld [vmem:[%s2159_s4 + $0x98] sm:$0xff] (!%p246_p2)   ;;  %v1614_v19 = vld [vmem:[%s2159_s4 + $0xa0] sm:$0xff] (!%p246_p2)   ;;  %v1618_v23 = vld [vmem:[%s2159_s4 + $0xa8] sm:$0xff] (!%p246_p2)   ;;  %vm1865_vm2 = vcmp.ge.s32.totalorder (!%p246_p2), %v354_v56, 1  ;;  %vm1887_vm9 = vcmp.le.s32.totalorder (!%p246_p2), %v354_v56, 2  ;;  %vm397_vm12 = vcmp.lt.s32.totalorder (!%p246_p2), %v1838_v44, 1 }
   0xd   : > { %1491 = vmatpush3.bf16.msra.mxu1 %v1602_v7  ;;  %v1619_v24 = vld [vmem:[%s2159_s4 + $0x70] sm:$0xff]   ;;  %v1623_v28 = vld [vmem:[%s2159_s4 + $0x78] sm:$0xff]   ;;  %v302_v32 = vld [vmem:[%s2156_s1] sm:$0x3]  ;;  %s283_s10 = scalar_select %p282_p3, %s1727_s25, 1  ;;  %vm1861_vm1 = vcmp.ge.s32.totalorder %v357_v55, 1 }
   0xe   : > { %1492 = vmatprep.subr.bf16.mxu1 %v1605_v10  ;;  %v1620_v25 = vld [vmem:[%s2159_s4 + $0x30] sm:$0xff]   ;;  %v1624_v29 = vld [vmem:[%s2159_s4 + $0x38] sm:$0xff]   ;;  %v303_v33 = vmul.f32 0.03125, %v302_v32  ;;  %v1627_v34 = vld [vmem:[%s2159_s4 + $0x140] sm:$0xff]   ;;  %vm1869_vm3 = vcmp.ge.s32.totalorder %v355_v60, 1  ;;  %vm1891_vm10 = vcmp.le.s32.totalorder %v355_v60, 2 }
   0xf   : > { %1471 = vmatpush3.bf16.msra.mxu0 %v1604_v9  ;;  %v1621_v26 = vld [vmem:[%s2159_s4 + $0xf0] sm:$0xff]   ;;  %v1625_v30 = vld [vmem:[%s2159_s4 + $0xf8] sm:$0xff]   ;;  %v1629_v37 = vld [vmem:[%s2159_s4 + $0x1c0] sm:$0xff]   ;;  %s1840_s11 = sshll.u32 %s283_s10, 3  ;;  %vm384_vm14 = vcmp.lt.s32.totalorder %v1838_v44, 3  ;;  %vm1910_vm7 = vcmp.le.s32.totalorder %v356_v54, 2 }
  0x10   : > { %1472 = vmatprep.subr.bf16.mxu0 %v1607_v12  ;;  %v1622_v27 = vld [vmem:[%s2159_s4 + $0xb0] sm:$0xff]   ;;  %v1626_v31 = vld [vmem:[%s2159_s4 + $0xb8] sm:$0xff]   ;;  %v304_v35 = vmul.f32 %v303_v33, %v303_v33  ;;  %s286_s14 = scalar_lea.vmem %s2155_s0, %s1840_s11  ;;  %v309_v51 = vld [vmem:[%s2157_s2] sm:$0x1]  ;;  %vm1950_vm15 = vcmp.le.s32.totalorder %v357_v55, 2  ;;  %s291_s17 = scalar_lea.vmem %s2160_s5, %s1840_s11 }
  0x11   : > { %1493 = vmatpush3.bf16.msra.mxu1 %v1606_v11  ;;  %v1430_v49 = vld [vmem:[%s286_s14] sm:$0xff]   ;;  %vm367_vm4 = vmand %vm1857_vm0, %vm1865_vm2  ;;  %v1633_v42 = vld [vmem:[%s2159_s4 + $0x1c8] sm:$0xff]   ;;  %s296_s20 = scalar_lea.vmem %s2161_s6, %s1840_s11 }
  0x12   : > { %1494 = vmatprep.subr.bf16.mxu1 %v1609_v14  ;;  %v306_v36 = vrot.slane %v304_v35, 7  ;;  %v1431_v57 = vunpack.c.l.bf16 %v1430_v49  ;;  %v1432_v58 = vunpack.c.h.bf16 %v1430_v49  ;;  %v330_v61 = vld [vmem:[%s2158_s3] sm:$0x1]  ;;  %vm368_vm5 = vmand %vm1861_vm1, %vm1869_vm3  ;;  %v1634_v49 = vld [vmem:[%s2159_s4 + $0x188] sm:$0xff]  }
  0x13   : > { %1473 = vmatpush3.bf16.msra.mxu0 %v1608_v13  ;;  %vm1899_vm11 = vmpackc.low %vm368_vm5, %vm367_vm4  ;;  %v1641_v54 = vld [vmem:[%s2159_s4 + $0x1d8] sm:$0xff]   ;;  %v1643_v56 = vld [vmem:[%s2159_s4 + $0x160] sm:$0xff]  }
  0x14   : > { %1474 = vmatprep.subr.bf16.mxu0 %v1611_v16  ;;  %v308_v38 = vsub.f32 %v303_v33, %v306_v36  ;;  %vm1448_vm13 = vmpackc.low %vm1869_vm3, %vm1865_vm2  ;;  %v1640_v55 = vld [vmem:[%s2159_s4 + $0x118] sm:$0xff]   ;;  %v1647_v60 = vld [vmem:[%s2159_s4 + $0x168] sm:$0xff]  }
  0x15   : > { %1495 = vmatpush3.bf16.msra.mxu1 %v1610_v15  ;;  %vm389_vm4 = vmand %vm1857_vm0, %vm1887_vm9  ;;  %v1651_v0 = vld [vmem:[%s2159_s4 + $0x170] sm:$0xff]   ;;  %v1650_v1 = vld [vmem:[%s2159_s4 + $0x1a8] sm:$0xff]  }
  0x16   : > { %1496 = vmatprep.subr.bf16.mxu1 %v1613_v18  ;;  %v310_v39 = vadd.f32 1e-05, %v308_v38  ;;  %vm390_vm5 = vmand %vm1861_vm1, %vm1891_vm10  ;;  %v1658_v14 = vld [vmem:[%s2159_s4 + $0x1b8] sm:$0xff]   ;;  %v1660_v6 = vld [vmem:[%s2159_s4 + $0x208] sm:$0xff]  }
  0x17   : > { %1475 = vmatpush3.bf16.msra.mxu0 %v1612_v17  ;;  %v1434_v10 = vld [vmem:[%s291_s17] sm:$0xff]  }
  0x18   : > { %1476 = vmatprep.subr.bf16.mxu0 %v1615_v20  ;;  %1667 = vrsqrt.f32 %v310_v39  ;;  %v1628_v20 = vld [vmem:[%s2159_s4 + $0x100] sm:$0xff]   ;;  %v1435_v15 = vunpack.c.l.bf16 %v1434_v10 }
  0x19   : > { %1497 = vmatpush3.bf16.msra.mxu1 %v1614_v19 }
  0x1a   : > { %1498 = vmatprep.subr.bf16.mxu1 %v1617_v22 }
  0x1b   : > { %1477 = vmatpush3.bf16.msra.mxu0 %v1616_v21 }
  0x1c   : > { %1478 = vmatprep.subr.bf16.mxu0 %v1619_v24 }
  0x1d   : > { %1499 = vmatpush3.bf16.msra.mxu1 %v1618_v23 }
  0x1e   : > { %1500 = vmatprep.subr.bf16.mxu1 %v1621_v26 }
  0x1f   : > { %1479 = vmatpush3.bf16.msra.mxu0 %v1620_v25 }
  0x20   : > { %1480 = vmatprep.subr.bf16.mxu0 %v1623_v28 }
  0x21   : > { %1501 = vmatpush3.bf16.msra.mxu1 %v1622_v27 }
  0x22   : > { %1502 = vmatprep.subr.bf16.mxu1 %v1625_v30  ;;  %v1668_v46 = vpop.eup %1667 }
  0x23   : > { %1481 = vmatpush3.bf16.msra.mxu0 %v1624_v29  ;;  %v319_v47 = vrot.slane %v1668_v46, %v318_v45  ;;  %v1635_v46 = vld [vmem:[%s2159_s4 + $0x150] sm:$0xff]  }
  0x24   : > { %1510 = vmatprep.subr.bf16.mxu0 %v1627_v34 }
  0x25   : > { %1503 = vmatpush3.bf16.msra.mxu1 %v1626_v31  ;;  %v320_v50 = vcombine.high %v319_v47, %v319_v47  ;;  %v1630_v31 = vld [vmem:[%s2159_s4 + $0x180] sm:$0xff]  }
  0x26   : > { %1532 = vmatprep.subr.bf16.mxu1 %v1629_v37  ;;  %v1631_v37 = vld [vmem:[%s2159_s4 + $0x148] sm:$0xff]  }
  0x27   : > { %v327_v52 = vrot.slane %v320_v50, %v318_v45  ;;  %v1632_v45 = vld [vmem:[%s2159_s4 + $0x108] sm:$0xff]  }
  0x29   : > { %v329_v59 = vmul.f32 %v327_v52, %v309_v51  ;;  %v1637_v51 = vld [vmem:[%s2159_s4 + $0x1d0] sm:$0xff]   ;;  %v1639_v52 = vld [vmem:[%s2159_s4 + $0x158] sm:$0xff]  }
  0x2b   : > { %v331_v62 = vmul.f32 %v329_v59, %v303_v33  ;;  %v337_v63 = vrot.slane %v329_v59, %v336_v53  ;;  %v1644_v59 = vld [vmem:[%s2159_s4 + $0x120] sm:$0xff]  }
  0x2d   : > { %v332_v3 = vsub.f32 %v330_v61, %v331_v62  ;;  %v339_v4 = vmul.f32 %v1431_v57, %v337_v63  ;;  %v340_v5 = vmul.f32 %v1432_v58, %v337_v63  ;;  %v1642_v57 = vld [vmem:[%s2159_s4 + $0x198] sm:$0xff]   ;;  %v1645_v58 = vld [vmem:[%s2159_s4 + $0x1e0] sm:$0xff]   ;;  %v1649_v62 = vld [vmem:[%s2159_s4 + $0x1e8] sm:$0xff]  }
  0x2e   : > { %v1646_v61 = vld [vmem:[%s2159_s4 + $0x1a0] sm:$0xff]   ;;  %v1648_v63 = vld [vmem:[%s2159_s4 + $0x128] sm:$0xff]  }
  0x2f   : > { %v345_v7 = vrot.slane %v332_v3, %v336_v53  ;;  %v1638_v53 = vld [vmem:[%s2159_s4 + $0x190] sm:$0xff]  }
  0x30   : > { %v1653_v3 = vld [vmem:[%s2159_s4 + $0x1f0] sm:$0xff]  }
  0x31   : > { %v347_v8 = vadd.f32 %v345_v7, %v339_v4  ;;  %v348_v9 = vadd.f32 %v345_v7, %v340_v5  ;;  %v1652_v4 = vld [vmem:[%s2159_s4 + $0x130] sm:$0xff]   ;;  %v1655_v5 = vld [vmem:[%s2159_s4 + $0x178] sm:$0xff]  }
  0x32   : > { %v1654_v7 = vld [vmem:[%s2159_s4 + $0x1b0] sm:$0xff]  }
  0x33   : > { %v1895_v12 = vmax.f32 %v347_v8, 0.0  ;;  %v1897_v13 = vmax.f32 %v348_v9, 0.0  ;;  %v1657_v8 = vld [vmem:[%s2159_s4 + $0x1f8] sm:$0xff]  }
  0x34   : > { %v1656_v9 = vld [vmem:[%s2159_s4 + $0x138] sm:$0xff]  }
  0x35   : > { %v373_v16 = vrot.slane %v1895_v12, 4  ;;  %v374_v17 = vrot.slane %v1897_v13, 4  ;;  %v358_v18 = vrot.slane %v1895_v12, 3  ;;  %v359_v19 = vrot.slane %v1897_v13, 3 }
  0x36   : > { %v395_v21 = vrot.slane %v1895_v12, 7  ;;  %v396_v22 = vrot.slane %v1897_v13, 7  ;;  %v382_v23 = vrot.slane %v1895_v12, 5  ;;  %v383_v24 = vrot.slane %v1897_v13, 5 }
  0x37   : > { %v376_v25 = vsel %vm375_vm6, %v373_v16, %v374_v17  ;;  %v377_v26 = vsel %vm375_vm6, %v374_v17, %v373_v16  ;;  %v1939_v27 = vsel %vm360_vm8, %v358_v18, %v359_v19  ;;  %v1943_v28 = vsel %vm360_vm8, %v359_v19, %v358_v18  ;;  %vm2181_vm6 = vmpackc.low %vm1861_vm1, %vm1857_vm0  ;;  %v1659_v17 = vld [vmem:[%s2159_s4 + $0x200] sm:$0xff]  }
  0x38   : > { %v1443_v29 = vpack.c.bf16 %v376_v25, %v377_v26  ;;  %v1446_v30 = vpack.c.bf16 %v1939_v27, %v1943_v28  ;;  %v398_v33 = vsel %vm397_vm12, %v395_v21, %v396_v22  ;;  %v399_v34 = vsel %vm397_vm12, %v396_v22, %v395_v21  ;;  %vm1451_vm8 = vmpackc.low %vm390_vm5, %vm389_vm4  ;;  %v1663_v19 = vld [vmem:[%s2159_s4 + $0x220] sm:$0xff]   ;;  %v1665_v21 = vld [vmem:[%s2159_s4 + $0x230] sm:$0xff]  }
  0x39   : > { %v1960_v35 = vsel %vm384_vm14, %v382_v23, %v383_v24  ;;  %v1964_v36 = vsel %vm384_vm14, %v383_v24, %v382_v23  ;;  %v1458_v38 = vpack.c.bf16 %v377_v26, %v376_v25  ;;  %v1449_v39 = vpack.c.bf16 %v398_v33, %v399_v34  ;;  %vm1457_vm0 = vmpackc.low %vm1950_vm15, %vm1910_vm7  ;;  %v1666_v22 = vld [vmem:[%s2159_s4 + $0x238] sm:$0xff]  }
  0x3a   : > { %1444 = vmatprep.mubr.msk.bf16.mxu0 %vm2181_vm6, %v1443_v29  ;;  %v1452_v40 = vpack.c.bf16 %v1960_v35, %v1964_v36  ;;  %v406_v41 = vrot.slane %v1895_v12, 1  ;;  %v407_v43 = vrot.slane %v1897_v13, 1  ;;  %vm2182_vm1 = vcmp.lt.s32.totalorder %v1838_v44, 7  ;;  %vm1454_vm12 = vmpackc.low %vm1891_vm10, %vm1887_vm9  ;;  %v1636_v44 = vld [vmem:[%s2159_s4 + $0x110] sm:$0xff]  }
  0x3b   : > { %1447 = vmatmul.mubr.msk.bf16.vlgmr.msra.gmra.mrb[0].mxu0 %vm1899_vm11, %v1446_v30  ;;  %1450 = vmatprep.mubr.msk.bf16.mxu1 %vm1448_vm13, %v1449_v39  ;;  %vm2183_vm11 = vmmov %vm2182_vm1  ;;  %v404_v16 = vpack.c.bf16 %v1897_v13, %v1895_v12  ;;  %v1461_v2 = vpack.c.bf16 %v1943_v28, %v1939_v27  ;;  %v1678_v18 = vmov 0.0   ;;  %vm1679_vm4 = vmmov 0   ;;  %v1661_v12 = vld [vmem:[%s2159_s4 + $0x210] sm:$0xff]   ;;  %v1662_v13 = vld [vmem:[%s2159_s4 + $0x218] sm:$0xff]  }
  0x3c   : > { %1511 = vmatpush3.bf16.msra.mxu0 %v1628_v20  ;;  %1453 = vmatmul.mubr.msk.bf16.vlgmr.msra.gmra.mrb[0].mxu1 %vm1451_vm8, %v1452_v40  ;;  %v409_v47 = vsel %vm2182_vm1, %v406_v41, %v407_v43  ;;  %v410_v48 = vsel %vm2183_vm11, %v407_v43, %v406_v41  ;;  %vm417_vm13 = vmand %vm1910_vm7, %vm1865_vm2  ;;  %v1664_v20 = vld [vmem:[%s2159_s4 + $0x228] sm:$0xff]   ;;  %v1464_v23 = vpack.c.bf16 %v1964_v36, %v1960_v35  ;;  %v1436_v28 = vunpack.c.h.bf16 %v1434_v10 }
  0x3d   : > { %1512 = vmatprep.subr.bf16.mxu0 %v1631_v37  ;;  %1533 = vmatpush3.bf16.msra.mxu1 %v1630_v31  ;;  %v1455_v50 = vpack.c.bf16 %v410_v48, %v409_v47  ;;  %vm418_vm14 = vmand %vm1950_vm15, %vm1869_vm3 }
  0x3e   : > { %1459 = vmatprep.mubr.msk.bf16.mxu1 %vm1457_vm0, %v1458_v38  ;;  %1534 = vmatprep.subr.bf16.mxu1 %v1633_v42  ;;  %vm1460_vm2 = vmpackc.low %vm418_vm14, %vm417_vm13 }
  0x3f   : > { %1456 = vmatprep.mubr.msk.bf16.mxu0 %vm1454_vm12, %v1455_v50  ;;  %vm427_vm3 = vmand %vm1910_vm7, %vm1887_vm9 }
  0x40   : > { %1513 = vmatpush3.bf16.msra.mxu0 %v1632_v45  ;;  %vm428_vm5 = vmand %vm1950_vm15, %vm1891_vm10 }
  0x41   : > { %1514 = vmatprep.subr.bf16.mxu0 %v1635_v46  ;;  %1535 = vmatpush3.bf16.msra.mxu1 %v1634_v49  ;;  %vm1463_vm6 = vmpackc.low %vm428_vm5, %vm427_vm3 }
  0x42   : > { %1536 = vmatprep.subr.bf16.mxu1 %v1637_v51 }
  0x44   : > { %1515 = vmatpush3.bf16.msra.mxu0 %v1636_v44 }
  0x45   : > { %1516 = vmatprep.subr.bf16.mxu0 %v1639_v52  ;;  %1537 = vmatpush3.bf16.msra.mxu1 %v1638_v53 }
  0x46   : > { %1538 = vmatprep.subr.bf16.mxu1 %v1641_v54 }
  0x48   : > { %1517 = vmatpush3.bf16.msra.mxu0 %v1640_v55 }
  0x49   : > { %1518 = vmatprep.subr.bf16.mxu0 %v1643_v56  ;;  %1539 = vmatpush3.bf16.msra.mxu1 %v1642_v57 }
  0x4a   : > { %1540 = vmatprep.subr.bf16.mxu1 %v1645_v58 }
  0x4c   : > { %1519 = vmatpush3.bf16.msra.mxu0 %v1644_v59 }
  0x4d   : > { %1520 = vmatprep.subr.bf16.mxu0 %v1647_v60  ;;  %1541 = vmatpush3.bf16.msra.mxu1 %v1646_v61 }
  0x4e   : > { %1542 = vmatprep.subr.bf16.mxu1 %v1649_v62 }
  0x50   : > { %1521 = vmatpush3.bf16.msra.mxu0 %v1648_v63  ;;  %v1680_v63 = vmov (!%p1421_p4), 0.0  }
  0x51   : > { %1522 = vmatprep.subr.bf16.mxu0 %v1651_v0  ;;  %1543 = vmatpush3.bf16.msra.mxu1 %v1650_v1  ;;  %1241 = vst [vmem:[%s2162_s7] sm:$0x3] (!%p1421_p4), %v1680_v63 }
  0x52   : > { %1544 = vmatprep.subr.bf16.mxu1 %v1653_v3 }
  0x54   : > { %1523 = vmatpush3.bf16.msra.mxu0 %v1652_v4 }
  0x55   : > { %1524 = vmatprep.subr.bf16.mxu0 %v1655_v5  ;;  %1545 = vmatpush3.bf16.msra.mxu1 %v1654_v7 }
  0x56   : > { %1546 = vmatprep.subr.bf16.mxu1 %v1657_v8 }
  0x58   : > { %1525 = vmatpush3.bf16.msra.mxu0 %v1656_v9 }
  0x59   : > { %1563 = vmatprep.subr.bf16.mxu0 %v1678_v18  ;;  %1547 = vmatpush3.bf16.msra.mxu1 %v1658_v14 }
  0x5b   : > { %1137 = vmatmul.mubr.bf16.vlgmr.msra.gmra.mrb[4].mxu0 %v404_v16 }
  0x5c   : > { %1564 = vmatpush3.bf16.msra.mxu0 %v1659_v17  ;;  %1579 = vmatprep.mubr.msk.bf16.mxu0 %vm1679_vm4, %v1678_v18 }
  0x5d   : > { %1462 = vmatmul.mubr.msk.bf16.vlgmr.msra.gmra.mrb[4].mxu1 %vm1460_vm2, %v1461_v2  ;;  %1565 = vmatprep.subr.bf16.mxu0 %v1678_v18 }
  0x60   : > { %1566 = vmatpush3.bf16.msra.mxu0 %v1660_v6 }
  0x61   : > { %1567 = vmatprep.subr.bf16.mxu0 %v1678_v18 }
  0x64   : > { %1568 = vmatpush3.bf16.msra.mxu0 %v1661_v12 }
  0x65   : > { %1569 = vmatprep.subr.bf16.mxu0 %v1678_v18 }
  0x68   : > { %1570 = vmatpush3.bf16.msra.mxu0 %v1662_v13 }
  0x69   : > { %1571 = vmatprep.subr.bf16.mxu0 %v1678_v18 }
  0x6c   : > { %1572 = vmatpush3.bf16.msra.mxu0 %v1663_v19 }
  0x6d   : > { %1573 = vmatprep.subr.bf16.mxu0 %v1678_v18 }
  0x70   : > { %1574 = vmatpush3.bf16.msra.mxu0 %v1664_v20 }
  0x71   : > { %1575 = vmatprep.subr.bf16.mxu0 %v1678_v18 }
  0x74   : > { %1576 = vmatpush3.bf16.msra.mxu0 %v1665_v21 }
  0x75   : > { %1577 = vmatprep.subr.bf16.mxu0 %v1678_v18 }
  0x78   : > { %1578 = vmatpush3.bf16.msra.mxu0 %v1666_v22 }
  0x7b   : > { %1580 = vmatmul.mubr.msk.bf16.vlgmr.msra.gmra.mrb[8].mxu0 %vm1463_vm6, %v1464_v23 }
 0x10e   : > { %v1482_v24 = vpop.f32.mrb[0].mxu0 }
 0x10f   : > { %v1483_v25 = vpop.f32.mrb[1].mxu0  ;;  %v1504_v11 = vpop.f32.mrb[0].mxu1 }
 0x110   : > { %v1484_v26 = vadd.f32 %v1483_v25, %v1482_v24  ;;  %v1485_v27 = vpop.f32.mrb[2].mxu0  ;;  %v1505_v30 = vpop.f32.mrb[1].mxu1 }
 0x111   : > { %v1486_v29 = vpop.f32.mrb[3].mxu0  ;;  %v1506_v33 = vadd.f32 %v1505_v30, %v1504_v11  ;;  %v1507_v34 = vpop.f32.mrb[2].mxu1 }
 0x112   : > { %v1057_v31 = vadd.f32 %v1484_v26, %v1435_v15  ;;  %v1487_v32 = vadd.f32 %v1486_v29, %v1485_v27  ;;  %v1508_v35 = vpop.f32.mrb[3].mxu1 }
 0x113   : > { %v1509_v38 = vadd.f32 %v1508_v35, %v1507_v34 }
 0x114   : > { %v1060_v36 = vadd.f32 %v1487_v32, %v1436_v28  ;;  %v1098_v37 = vadd.f32 %v1506_v33, %v1057_v31 }
 0x116   : > { %v1101_v39 = vadd.f32 %v1509_v38, %v1060_v36 }
 0x12e   : > { %v1526_v40 = vpop.f32.mrb[4].mxu0 }
 0x12f   : > { %v1527_v41 = vpop.f32.mrb[5].mxu0 }
 0x130   : > { %v1528_v42 = vadd.f32 %v1527_v41, %v1526_v40  ;;  %v1529_v43 = vpop.f32.mrb[6].mxu0  ;;  %v1548_v45 = vpop.f32.mrb[4].mxu1 }
 0x131   : > { %v1530_v46 = vpop.f32.mrb[7].mxu0  ;;  %v1549_v47 = vpop.f32.mrb[5].mxu1 }
 0x132   : > { %v1139_v48 = vadd.f32 %v1528_v42, %v1098_v37  ;;  %v1531_v49 = vadd.f32 %v1530_v46, %v1529_v43  ;;  %v1550_v50 = vadd.f32 %v1549_v47, %v1548_v45  ;;  %v1551_v51 = vpop.f32.mrb[6].mxu1 }
 0x133   : > { %v1552_v44 = vpop.f32.mrb[7].mxu1 }
 0x134   : > { %v1142_v52 = vadd.f32 %v1531_v49, %v1101_v39  ;;  %v1553_v53 = vadd.f32 %v1552_v44, %v1551_v51  ;;  %v1180_v54 = vadd.f32 %v1550_v50, %v1139_v48 }
 0x136   : > { %v1183_v55 = vadd.f32 %v1553_v53, %v1142_v52 }
 0x14e   : > { %v1220_v56 = vpop.f32.mrb[8].mxu0 }
 0x14f   : > { %v1221_v57 = vadd.f32 %v1220_v56, %v1180_v54  ;;  %v1581_v58 = vpop.f32.mrb[9].mxu0  ;;  %1240 = sbr.rel (%p1421_p4) target bundleno = 342 (0x156), region = 48 }
 0x150   : > { %v1223_v59 = vpop.f32.mrb[10].mxu0 }
 0x151   : > { %v1224_v60 = vadd.f32 %v1223_v59, %v1183_v55  ;;  %v1582_v61 = vpop.f32.mrb[11].mxu0 }
 0x153   : > { %v1440_v62 = vpack.c.bf16 %v1224_v60, %v1221_v57 }
 0x155   : > { %1441 = vst [vmem:[%s296_s20] sm:$0xff] %v1440_v62  }
 0x156 PF: > { %v1242_v0 = vadd.f32 %v1224_v60, %v1221_v57  ;;  %v1249_v1 = vmul.f32 %v1221_v57, %v1221_v57  ;;  %v1250_v3 = vmul.f32 %v1224_v60, %v1224_v60  ;;  %vm1259_vm7 = vcmask 1040384   ;;  %v1258_v19 = vld [vmem:[%s2162_s7] sm:$0x3] }
 0x158   : > { %v1243_v4 = vrot.slane %v1242_v0, 4  ;;  %v1251_v5 = vadd.f32 %v1250_v3, %v1249_v1 }
 0x15a   : > { %v1244_v7 = vadd.f32 %v1243_v4, %v1242_v0  ;;  %v1252_v8 = vrot.slane %v1251_v5, 4 }
 0x15c   : > { %v1245_v9 = vrot.slane %v1244_v7, 2  ;;  %v1253_v14 = vadd.f32 %v1252_v8, %v1251_v5 }
 0x15e   : > { %v1246_v16 = vadd.f32 %v1245_v9, %v1244_v7  ;;  %v1254_v17 = vrot.slane %v1253_v14, 2 }
 0x160   : > { %v1247_v2 = vrot.slane %v1246_v16, 1  ;;  %v1255_v18 = vadd.f32 %v1254_v17, %v1253_v14 }
 0x162   : > { %v1248_v6 = vadd.f32 %v1247_v2, %v1246_v16  ;;  %v1256_v12 = vrot.slane %v1255_v18, 1 }
 0x164   : > { %v1257_v13 = vadd.f32 %v1256_v12, %v1255_v18 }
 0x166   : > { %v1260_v20 = vsel %vm1259_vm7, %v1248_v6, %v1257_v13 }
 0x167   : > { %v1261_v21 = vadd.f32 %v1260_v20, %v1258_v19 }
 0x169   : > { %1262 = vst [vmem:[%s2162_s7] sm:$0x3] %v1261_v21 }
 0x16a PF: > { %s18_s24 = sadd.s32 1, %s1675_s24  }
 0x16b   : > { %p15_p5 = scmp.ge.s32.totalorder %s18_s24, 4  }
 0x16d   :  { %17 = sbr.rel (!%p15_p5) target bundleno = 1 (0x1), region = 89 }

</bundles_post_ra>
